<compile_context>
chip_gen: v6e
topology: v6e:2x2x1
jax: 0.10.0
libtpu: 0.0.40
codegen_flags: <defaults>
</compile_context>

<pallas_src>
import functools

import numpy as np
import jax
import jax.numpy as jnp
from jax import lax
from jax.experimental import pallas as pl
from jax.experimental.pallas import tpu as pltpu

LANE = 128
BN_EPS = 1e-5
VMEM_LIMIT = 48 * 1024 * 1024      # scoped-VMEM budget, safe on v5e/v6e/v7x


def _round_up(x, m):
    return -(-x // m) * m


def _pick_tile(size, candidates):
    for c in candidates:
        if size % c == 0:
            return c
    return candidates[-1]


# --------------------------- Pallas kernels ----------------------------------

def _mm_kernel(a_ref, b_ref, bias_ref, o_ref, *rest,
               relu, want_stats, n_k, block_m, m_valid, i_axis):
    """Fused matmul: A@B + bias [+ relu] [+ boundary-row mask]
    [+ BN partial stats (per-column sum / sum-of-squares)].

    NOTE: every pl.program_id is read at the top of the body and only the
    resulting values are used inside pl.when branches (program_id inside a cond
    branch does not lower in interpret mode).
    """
    idx = 0
    stats_ref = rest[idx] if want_stats else None
    idx += int(want_stats)
    acc_ref = rest[idx] if n_k > 1 else None

    i_id = pl.program_id(i_axis)
    k_id = pl.program_id(2)

    if n_k > 1:
        @pl.when(k_id == 0)
        def _():
            acc_ref[...] = jnp.zeros_like(acc_ref)
        acc_ref[...] += jnp.dot(a_ref[...], b_ref[...],
                                preferred_element_type=jnp.float32)

    def finish():
        if n_k > 1:
            y = acc_ref[...] + bias_ref[...]
        else:                                  # single-K fast path, no scratch
            y = jnp.dot(a_ref[...], b_ref[...],
                        preferred_element_type=jnp.float32) + bias_ref[...]
        if relu:
            y = jnp.maximum(y, 0.0)

        def write(yv):
            o_ref[...] = yv.astype(o_ref.dtype)
            if want_stats:
                s = jnp.sum(yv, axis=0, keepdims=True)        # (1, tn)
                q = jnp.sum(yv * yv, axis=0, keepdims=True)   # (1, tn)
                row = lax.broadcasted_iota(jnp.int32, (8, yv.shape[1]), 0)
                blk = jnp.where(row == 0, s, jnp.where(row == 1, q, 0.0))
                stats_ref[...] = blk[None].astype(stats_ref.dtype)

        if m_valid is None:
            write(y)
        else:
            # padded rows live only in the last row tile -> gate masking there
            boundary = m_valid // block_m          # python int
            tail = m_valid - boundary * block_m    # python int

            @pl.when(i_id != boundary)
            def _():
                write(y)

            @pl.when(i_id == boundary)
            def _():
                rows = lax.broadcasted_iota(jnp.int32, (block_m, 1), 0)
                write(jnp.where(rows < tail, y, 0.0))

    if n_k > 1:
        @pl.when(k_id == n_k - 1)
        def _():
            finish()
    else:
        finish()


def _bn_kernel(*refs, relu, has_res):
    """Fused BatchNorm-normalize [+ ReLU] [+ residual add] (elementwise)."""
    y_ref, mean_ref, istd_ref = refs[0], refs[1], refs[2]
    res_ref = refs[3] if has_res else None
    o_ref = refs[-1]
    y = (y_ref[...].astype(jnp.float32) - mean_ref[...]) * istd_ref[...]
    if relu:
        y = jnp.maximum(y, 0.0)
    if has_res:
        y = y + res_ref[...].astype(jnp.float32)
    o_ref[...] = y.astype(o_ref.dtype)


# ------------------------ cached pallas_call builders -------------------------

def _choose_tiles(Mp, Kp, Np):
    tm = _pick_tile(Mp, (512, 256, 128))
    tn = _pick_tile(Np, (512, 256, 128))
    tk = _pick_tile(Kp, (2048, 1024, 512, 256, 128))
    # v7x: try to give both TensorCores work when the parallel grid collapses.
    if Mp // tm == 1 and Np // tn == 1 and tm >= 256:
        tm //= 2
    n_i, n_j = Mp // tm, Np // tn
    a_bytes, b_bytes = Mp * Kp, Kp * Np
    # With n_k == 1 the outermost parallel axis keeps the other operand
    # resident across the inner sweep; re-stream whichever operand is cheaper.
    j_outer = (n_j * a_bytes + b_bytes) <= (a_bytes + n_i * b_bytes)
    return tm, tn, tk, j_outer


@functools.lru_cache(maxsize=None)
def _build_matmul(Mp, Kp, Np, tm, tn, tk, relu, want_stats, m_valid, j_outer,
                  out_dtype):
    n_i, n_j, n_k = Mp // tm, Np // tn, Kp // tk
    i_axis = 1 if j_outer else 0
    kern = functools.partial(_mm_kernel, relu=relu, want_stats=want_stats,
                             n_k=n_k, block_m=tm, m_valid=m_valid,
                             i_axis=i_axis)
    if j_outer:
        grid = (n_j, n_i, n_k)
        a_map = lambda j, i, k: (i, k)
        b_map = lambda j, i, k: (k, j)
        c_map = lambda j, i, k: (0, j)
        o_map = lambda j, i, k: (i, j)
        s_map = lambda j, i, k: (i, 0, j)
    else:
        grid = (n_i, n_j, n_k)
        a_map = lambda i, j, k: (i, k)
        b_map = lambda i, j, k: (k, j)
        c_map = lambda i, j, k: (0, j)
        o_map = lambda i, j, k: (i, j)
        s_map = lambda i, j, k: (i, 0, j)

    in_specs = [pl.BlockSpec((tm, tk), a_map),
                pl.BlockSpec((tk, tn), b_map),
                pl.BlockSpec((1, tn), c_map)]
    if want_stats:
        out_shape = (jax.ShapeDtypeStruct((Mp, Np), out_dtype),
                     jax.ShapeDtypeStruct((n_i, 8, Np), jnp.float32))
        out_specs = [pl.BlockSpec((tm, tn), o_map),
                     pl.BlockSpec((1, 8, tn), s_map)]
    else:
        out_shape = jax.ShapeDtypeStruct((Mp, Np), out_dtype)
        out_specs = pl.BlockSpec((tm, tn), o_map)
    scratch = [pltpu.VMEM((tm, tn), jnp.float32)] if n_k > 1 else []
    return pl.pallas_call(
        kern,
        out_shape=out_shape,
        grid_spec=pltpu.PrefetchScalarGridSpec(
            num_scalar_prefetch=0, grid=grid,
            in_specs=in_specs, out_specs=out_specs,
            scratch_shapes=scratch),
        compiler_params=pltpu.CompilerParams(
            dimension_semantics=("parallel", "parallel", "arbitrary"),
            vmem_limit_bytes=VMEM_LIMIT),
    )


@functools.lru_cache(maxsize=None)
def _build_bn(Mp, Np, relu, has_res):
    cands = tuple(c for c in (1024, 512, 256, 128) if c * Np * 2 <= (2 << 20))
    te = _pick_tile(Mp, cands or (128,))
    kern = functools.partial(_bn_kernel, relu=relu, has_res=has_res)
    in_specs = [pl.BlockSpec((te, Np), lambda i: (i, 0)),
                pl.BlockSpec((1, Np), lambda i: (0, 0)),
                pl.BlockSpec((1, Np), lambda i: (0, 0))]
    if has_res:
        in_specs.append(pl.BlockSpec((te, Np), lambda i: (i, 0)))
    return pl.pallas_call(
        kern,
        out_shape=jax.ShapeDtypeStruct((Mp, Np), jnp.bfloat16),
        grid_spec=pltpu.PrefetchScalarGridSpec(
            num_scalar_prefetch=0, grid=(Mp // te,),
            in_specs=in_specs,
            out_specs=pl.BlockSpec((te, Np), lambda i: (i, 0))),
        compiler_params=pltpu.CompilerParams(
            dimension_semantics=("parallel",),
            vmem_limit_bytes=VMEM_LIMIT),
    )


@functools.lru_cache(maxsize=None)
def _build_conv3(n, h, w, cinp, coutp, tn):
    """3x3 / stride-1 / pad-1 conv: in-kernel 9-tap accumulation on one
    spatially padded NHWC image block (no HBM im2col), fused bias + per-image
    BatchNorm partial stats."""
    hw = h * w

    def kern(x_ref, w_ref, b_ref, o_ref, st_ref):
        acc = jnp.zeros((hw, tn), jnp.float32)
        for t in range(9):                        # static unroll: 9 MXU matmuls
            dy, dx = t // 3, t % 3
            a = x_ref[0, dy:dy + h, dx:dx + w, :].reshape(hw, cinp)
            acc = acc + jnp.dot(a, w_ref[t],
                                preferred_element_type=jnp.float32)
        y = acc + b_ref[...]
        o_ref[...] = y.reshape(1, h, w, tn).astype(o_ref.dtype)
        s = jnp.sum(y, axis=0, keepdims=True)
        q = jnp.sum(y * y, axis=0, keepdims=True)
        row = lax.broadcasted_iota(jnp.int32, (8, tn), 0)
        blk = jnp.where(row == 0, s, jnp.where(row == 1, q, 0.0))
        st_ref[...] = blk[None].astype(st_ref.dtype)

    return pl.pallas_call(
        kern,
        out_shape=(jax.ShapeDtypeStruct((n, h, w, coutp), jnp.bfloat16),
                   jax.ShapeDtypeStruct((n, 8, coutp), jnp.float32)),
        grid_spec=pltpu.PrefetchScalarGridSpec(
            num_scalar_prefetch=0, grid=(n, coutp // tn),
            in_specs=[pl.BlockSpec((1, h + 2, w + 2, cinp),
                                   lambda b, j: (b, 0, 0, 0)),
                      pl.BlockSpec((9, cinp, tn), lambda b, j: (0, 0, j)),
                      pl.BlockSpec((1, tn), lambda b, j: (0, j))],
            out_specs=[pl.BlockSpec((1, h, w, tn), lambda b, j: (b, 0, 0, j)),
                       pl.BlockSpec((1, 8, tn), lambda b, j: (b, 0, j))]),
        compiler_params=pltpu.CompilerParams(
            dimension_semantics=("parallel", "parallel"),
            vmem_limit_bytes=VMEM_LIMIT),
    )


# ------------------------------ op wrappers -----------------------------------

def _matmul(a_pad, wp, bp, *, relu=False, want_stats=False, m_valid=None,
            out_dtype=jnp.bfloat16):
    """A(Mp,Kp padded) @ W(Kp,Np packed) + bias, fused epilogue."""
    Mp, Kp = a_pad.shape
    Kw, Np = wp.shape
    if Kw != Kp:
        raise ValueError(f"K mismatch: activation {Kp} vs packed weight {Kw}")
    tm, tn, tk, j_outer = _choose_tiles(Mp, Kp, Np)
    fn = _build_matmul(Mp, Kp, Np, tm, tn, tk, bool(relu), bool(want_stats),
                       m_valid, j_outer, out_dtype)
    out = fn(a_pad.astype(jnp.bfloat16), wp, bp)
    if want_stats:
        return out[0], out[1]
    return out, None


class Act:
    """Activation as a zero-padded flat (Mp, Cp) bf16 matrix + NHW metadata."""

    def __init__(self, flat, n, h, w):
        self.flat, self.n, self.h, self.w = flat, n, h, w

    @property
    def m(self):
        return self.n * self.h * self.w


def _act_from_4d(x4):
    """x4 is (N, H, W, Cp) with channels already lane-padded."""
    n, h, w, cp = x4.shape
    m = n * h * w
    mp = _round_up(m, 128)
    flat = x4.reshape(m, cp).astype(jnp.bfloat16)
    if mp != m:
        flat = jnp.pad(flat, ((0, mp - m), (0, 0)))
    return Act(flat, n, h, w)


def _subsample2(act):
    """Spatial stride-2 subsample (the spatial part of a 1x1/stride-2 conv)."""
    cp = act.flat.shape[1]
    x4 = act.flat[:act.m].reshape(act.n, act.h, act.w, cp)[:, ::2, ::2, :]
    return _act_from_4d(x4)


def _im2col(x, kh, kw, stride, pad):
    """bf16 patches in (kh, kw, cin) feature order.  Only used by conv1."""
    n, h, w, c = x.shape
    xp = jnp.pad(x, ((0, 0), (pad, pad), (pad, pad), (0, 0))) if pad else x
    ho = (h + 2 * pad - kh) // stride + 1
    wo = (w + 2 * pad - kw) // stride + 1
    cols = [xp[:, i:i + stride * ho:stride, j:j + stride * wo:stride, :]
            for i in range(kh) for j in range(kw)]
    patches = jnp.concatenate(cols, axis=-1).reshape(n * ho * wo, kh * kw * c)
    return patches, (n, ho, wo)


def _conv_flat(act, p, *, relu=False, want_stats=False):
    """1x1 stride-1 conv consuming the padded flat activation directly."""
    m_valid = act.m if (want_stats and act.m != act.flat.shape[0]) else None
    return _matmul(act.flat, p['w'], p['b'], relu=relu,
                   want_stats=want_stats, m_valid=m_valid)


def _conv3x3(act, p):
    """3x3/s1/p1 conv via the in-kernel tap-accumulation kernel."""
    n, h, w, m = act.n, act.h, act.w, act.m
    cinp = act.flat.shape[1]
    coutp = p['w'].shape[2]
    xp = jnp.pad(act.flat[:m].reshape(n, h, w, cinp),
                 ((0, 0), (1, 1), (1, 1), (0, 0)))
    tn = coutp if coutp <= 512 else _pick_tile(coutp, (512, 256, 128))
    y4, stats = _build_conv3(n, h, w, cinp, coutp, tn)(xp, p['w'], p['b'])
    mp = _round_up(m, 128)
    yf = y4.reshape(m, coutp)
    if mp != m:
        yf = jnp.pad(yf, ((0, mp - m), (0, 0)))
    return yf, stats


def _bn_apply(y_pad, stats, m, *, residual=None, relu=True):
    """Finish BN from fused partial stats; BN (+ReLU) (+residual) in one pass."""
    st = jnp.sum(stats, axis=0)                       # (8, Np); rows 0/1 = s/sq
    mean = st[0] / m
    var = jnp.maximum(st[1] / m - mean * mean, 0.0)   # clamp E[x^2]-mean^2
    istd = lax.rsqrt(var + BN_EPS)
    Mp, Np = y_pad.shape
    fn = _build_bn(Mp, Np, bool(relu), residual is not None)
    args = (y_pad, mean.reshape(1, Np), istd.reshape(1, Np))
    if residual is not None:
        args = args + (residual,)
    return fn(*args)


def maxpool_3x3_s2_p1(x):
    """3x3 / stride-2 / pad-1 max pool as a 9-tap jnp.maximum tree."""
    n, h, w, c = x.shape
    xp = jnp.pad(x, ((0, 0), (1, 1), (1, 1), (0, 0)), constant_values=-jnp.inf)
    ho = (h - 1) // 2 + 1
    wo = (w - 1) // 2 + 1
    out = None
    for i in range(3):
        for j in range(3):
            tap = xp[:, i:i + 2 * ho:2, j:j + 2 * wo:2, :]
            out = tap if out is None else jnp.maximum(out, tap)
    return out


# -------------------------------- the model -----------------------------------

def bottleneck_fwd(act, p):
    down = 'downsample' in p
    if down:
        # 1x1 stride-2 conv == spatial subsample + 1x1 stride-1; subsample once
        # and share between the shortcut conv and c1.
        base = _subsample2(act)
        res, _ = _conv_flat(base, p['downsample'])             # plain conv, no BN
    else:
        # `x.size() is not out.size()` in the reference is an identity check on
        # torch.Size objects -> always True, so dim_equalizer always applies.
        base = act
        res, _ = _conv_flat(base, p['equalizer'])              # plain conv, no BN
    y1, st1 = _conv_flat(base, p['c1'], want_stats=True)
    a1 = Act(_bn_apply(y1, st1, base.m, relu=True), base.n, base.h, base.w)
    y2, st2 = _conv3x3(a1, p['c2'])
    a2 = Act(_bn_apply(y2, st2, a1.m, relu=True), a1.n, a1.h, a1.w)
    y3, st3 = _conv_flat(a2, p['c3'], want_stats=True)
    # reference order: out = relu(bn3(conv3(.))), then out = out + shortcut
    out = _bn_apply(y3, st3, a2.m, residual=res, relu=True)
    return Act(out, a2.n, a2.h, a2.w)


def resnet_forward(x_nchw, pk, *, num_classes=10):
    x = jnp.transpose(x_nchw, (0, 2, 3, 1)).astype(jnp.bfloat16)  # NCHW -> NHWC
    # layer_1: Conv(3, base, 7, s2, p3) with the ReLU fused into the matmul
    # epilogue (no BN on this path), then MaxPool(3, 2, 1).
    # TODO(synk): fold the 7x7 conv1 taps into the matmul K-loop like the 3x3
    # kernel instead of materializing the 49-tap im2col patches (one-off op).
    patches, (n, ho, wo) = _im2col(x, 7, 7, 2, 3)
    m, kf = patches.shape
    mp, kp = _round_up(m, 128), pk['conv1']['w'].shape[0]
    a = jnp.pad(patches, ((0, mp - m), (0, kp - kf)))
    y, _ = _matmul(a, pk['conv1']['w'], pk['conv1']['b'], relu=True)
    coutp = pk['conv1']['w'].shape[1]
    y4 = y[:m].reshape(n, ho, wo, coutp)
    act = _act_from_4d(maxpool_3x3_s2_p1(y4))
    for name in ('layer2', 'layer3', 'layer4', 'layer5'):
        for blk in pk[name]:
            act = bottleneck_fwd(act, blk)
    # avgpool(kernel=1, stride=1) is the identity; the reference `.view(B,-1)`
    # into the fc only type-checks for a 1x1 final feature map, where the flat
    # rows already equal the NCHW flatten.
    logits, _ = _matmul(act.flat, pk['fc']['w'], pk['fc']['b'],
                        out_dtype=jnp.float32)
    return logits[:act.n, :num_classes]


# ------------------------- parameter init & packing ----------------------------

def _init_conv(key, cin, cout, k):
    kw_, kb = jax.random.split(key)
    fan_in = cin * k * k
    w = jax.random.normal(kw_, (cout, cin, k, k), jnp.float32) / np.sqrt(fan_in)
    b = jax.random.normal(kb, (cout,), jnp.float32) * 0.01
    return {'w': w, 'b': b}


def _init_bottleneck(key, in_dim, mid_dim, out_dim, down):
    k = jax.random.split(key, 5)
    p = {'c1': _init_conv(k[0], in_dim, mid_dim, 1),
         'c2': _init_conv(k[1], mid_dim, mid_dim, 3),
         'c3': _init_conv(k[2], mid_dim, out_dim, 1)}
    if down:
        p['downsample'] = _init_conv(k[3], in_dim, out_dim, 1)
    else:
        p['equalizer'] = _init_conv(k[4], in_dim, out_dim, 1)
    return p


def init_resnet(key, base_dim, num_classes=10):
    keys = jax.random.split(key, 20)
    ki = iter(keys)
    params = {'conv1': _init_conv(next(ki), 3, base_dim, 7)}
    b = base_dim
    cfg2 = [(b, b, b * 4, False), (b * 4, b, b * 4, False),
            (b * 4, b, b * 4, True)]
    cfg3 = [(b * 4, b * 2, b * 8, False)] + \
           [(b * 8, b * 2, b * 8, False)] * 2 + [(b * 8, b * 2, b * 8, True)]
    cfg4 = [(b * 8, b * 4, b * 16, False)] + \
           [(b * 16, b * 4, b * 16, False)] * 4 + [(b * 16, b * 4, b * 16, True)]
    cfg5 = [(b * 16, b * 8, b * 32, False)] + \
           [(b * 32, b * 8, b * 32, False)] * 2
    for name, cfg in (('layer2', cfg2), ('layer3', cfg3),
                      ('layer4', cfg4), ('layer5', cfg5)):
        params[name] = [_init_bottleneck(next(ki), *c) for c in cfg]
    kfw, kfb = jax.random.split(next(ki))
    params['fc'] = {
        'w': jax.random.normal(kfw, (num_classes, b * 32), jnp.float32)
             / np.sqrt(b * 32),
        'b': jax.random.normal(kfb, (num_classes,), jnp.float32) * 0.01}
    return params


def _pad_bias(b, npad):
    return jnp.pad(b.astype(jnp.float32).reshape(1, -1),
                   ((0, 0), (0, npad - b.shape[0])))


def _pack_1x1(p):
    cout, cin = p['w'].shape[0], p['w'].shape[1]
    kp, npad = _round_up(cin, LANE), _round_up(cout, LANE)
    w = p['w'].reshape(cout, cin).T                            # (cin, cout)
    w = jnp.pad(w, ((0, kp - cin), (0, npad - cout))).astype(jnp.bfloat16)
    return {'w': w, 'b': _pad_bias(p['b'], npad)}


def _pack_3x3(p):
    cout, cin = p['w'].shape[0], p['w'].shape[1]
    kp, npad = _round_up(cin, LANE), _round_up(cout, LANE)
    w = jnp.transpose(p['w'], (2, 3, 1, 0)).reshape(9, cin, cout)
    w = jnp.pad(w, ((0, 0), (0, kp - cin), (0, npad - cout))).astype(jnp.bfloat16)
    return {'w': w, 'b': _pad_bias(p['b'], npad)}


def _pack_im2col(p, k):
    cout, cin = p['w'].shape[0], p['w'].shape[1]
    kfeat = k * k * cin
    kp, npad = _round_up(kfeat, LANE), _round_up(cout, LANE)
    w = jnp.transpose(p['w'], (2, 3, 1, 0)).reshape(kfeat, cout)
    w = jnp.pad(w, ((0, kp - kfeat), (0, npad - cout))).astype(jnp.bfloat16)
    return {'w': w, 'b': _pad_bias(p['b'], npad)}


def _pack_fc(p):
    nout, kin = p['w'].shape
    kp, npad = _round_up(kin, LANE), _round_up(nout, LANE)
    w = jnp.pad(p['w'].T, ((0, kp - kin), (0, npad - nout))).astype(jnp.bfloat16)
    return {'w': w, 'b': _pad_bias(p['b'], npad)}


def pack_params(params):
    """One-time weight packing (transpose / pad / bf16) -- done per model, not
    per forward pass.  The packed pytree contains arrays only."""
    pk = {'conv1': _pack_im2col(params['conv1'], 7),
          'fc': _pack_fc(params['fc'])}
    for name in ('layer2', 'layer3', 'layer4', 'layer5'):
        blocks = []
        for blk in params[name]:
            pb = {'c1': _pack_1x1(blk['c1']),
                  'c2': _pack_3x3(blk['c2']),
                  'c3': _pack_1x1(blk['c3'])}
            if 'downsample' in blk:
                pb['downsample'] = _pack_1x1(blk['downsample'])
            else:
                pb['equalizer'] = _pack_1x1(blk['equalizer'])
            blocks.append(pb)
        pk[name] = blocks
    return pk


# ----------------------------------- main ---------------------------------------

if __name__ == "__main__":
    base_dim = 8        # small stand-in for the reference base_dim=64
    batch = 2
    num_classes = 10
    key = jax.random.PRNGKey(0)
    pkey, xkey = jax.random.split(key)
    params = init_resnet(pkey, base_dim, num_classes=num_classes)
    packed = pack_params(params)            # one-time packing
    # 32x32 input -> final feature map is 1x1, so `.view(B, -1)` matches the
    # fc in_features (base_dim*32), exactly as the reference module requires.
    x = jax.random.normal(xkey, (batch, 3, 32, 32), jnp.float32)
    fwd = jax.jit(functools.partial(resnet_forward, num_classes=num_classes))
    logits = fwd(x, packed)
    jax.block_until_ready(logits)
    assert logits.shape == (batch, num_classes)
    print("KERNEL_OK")
</pallas_src>

<mosaic_0001>
module attributes {stable_mosaic.version = 11 : i64} {
  func.func @_mm_kernel(%arg0: i32, %arg1: i32, %arg2: i32, %arg3: memref<256x256xbf16, #tpu.memory_space<vmem>>, %arg4: memref<256x128xbf16, #tpu.memory_space<vmem>>, %arg5: memref<1x128xf32, #tpu.memory_space<vmem>>, %arg6: memref<256x128xbf16, #tpu.memory_space<vmem>>) attributes {dimension_semantics = [#tpu.dimension_semantics<parallel>, #tpu.dimension_semantics<parallel>, #tpu.dimension_semantics<arbitrary>], iteration_bounds = array<i64: 1, 2, 1>, scalar_prefetch = 0 : i64, scratch_operands = 0 : i64, tpu.core_type = #tpu.core_type<tc>, window_params = [{transform_indices = @transform_0, window_bounds = array<i64: 256, 256>}, {transform_indices = @transform_1, window_bounds = array<i64: 256, 128>}, {transform_indices = @transform_2, window_bounds = array<i64: 1, 128>}, {transform_indices = @transform_3, window_bounds = array<i64: 256, 128>}]} {
    %c0 = arith.constant 0 : index
    %c0_0 = arith.constant 0 : index
    %0 = vector.load %arg3[%c0, %c0_0] : memref<256x256xbf16, #tpu.memory_space<vmem>>, vector<256x256xbf16>
    %c0_1 = arith.constant 0 : index
    %c0_2 = arith.constant 0 : index
    %1 = vector.load %arg4[%c0_1, %c0_2] : memref<256x128xbf16, #tpu.memory_space<vmem>>, vector<256x128xbf16>
    %cst = arith.constant dense<0.000000e+00> : vector<256x128xf32>
    %2 = tpu.matmul %0, %1, %cst {dimension_numbers = #tpu.dot_dimension_numbers<[1], [0], [0], [1], [0, 0, 1, 1], [], []>} : vector<256x256xbf16>, vector<256x128xbf16>, vector<256x128xf32> -> vector<256x128xf32>
    %c0_3 = arith.constant 0 : index
    %c0_4 = arith.constant 0 : index
    %3 = vector.load %arg5[%c0_3, %c0_4] : memref<1x128xf32, #tpu.memory_space<vmem>>, vector<1x128xf32>
    %4 = vector.broadcast %3 : vector<1x128xf32> to vector<256x128xf32>
    %5 = arith.addf %2, %4 : vector<256x128xf32>
    %cst_5 = arith.constant 0.000000e+00 : f32
    %6 = vector.broadcast %cst_5 : f32 to vector<256x128xf32>
    %7 = arith.maximumf %5, %6 : vector<256x128xf32>
    %8 = arith.truncf %7 : vector<256x128xf32> to vector<256x128xbf16>
    %c0_6 = arith.constant 0 : index
    %c0_7 = arith.constant 0 : index
    %9 = vector.load %arg6[%c0_6, %c0_7] : memref<256x128xbf16, #tpu.memory_space<vmem>>, vector<256x128xbf16>
    tpu.vector_store %arg6[%c0_6, %c0_7], %8 {strides = array<i32>} : memref<256x128xbf16, #tpu.memory_space<vmem>>, vector<256x128xbf16>,
    return
  }
  func.func @transform_0(%arg0: i32, %arg1: i32, %arg2: i32) -> (i32, i32) {
    %c0_i32 = arith.constant 0 : i32
    return %arg1, %arg2 : i32, i32
  }
  func.func @transform_1(%arg0: i32, %arg1: i32, %arg2: i32) -> (i32, i32) {
    %c0_i32 = arith.constant 0 : i32
    return %arg2, %arg0 : i32, i32
  }
  func.func @transform_2(%arg0: i32, %arg1: i32, %arg2: i32) -> (i32, i32) {
    %c0_i32 = arith.constant 0 : i32
    %c0_i32_0 = arith.constant 0 : i32
    return %c0_i32, %arg0 : i32, i32
  }
  func.func @transform_3(%arg0: i32, %arg1: i32, %arg2: i32) -> (i32, i32) {
    %c0_i32 = arith.constant 0 : i32
    return %arg1, %arg0 : i32, i32
  }
}

module attributes {stable_mosaic.version = 11 : i64} {
  func.func @_mm_kernel(%arg0: i32, %arg1: i32, %arg2: i32, %arg3: memref<128x128xbf16, #tpu.memory_space<vmem>>, %arg4: memref<128x128xbf16, #tpu.memory_space<vmem>>, %arg5: memref<1x128xf32, #tpu.memory_space<vmem>>, %arg6: memref<128x128xbf16, #tpu.memory_space<vmem>>) attributes {dimension_semantics = [#tpu.dimension_semantics<parallel>, #tpu.dimension_semantics<parallel>, #tpu.dimension_semantics<arbitrary>], iteration_bounds = array<i64: 1, 1, 1>, scalar_prefetch = 0 : i64, scratch_operands = 0 : i64, tpu.core_type = #tpu.core_type<tc>, window_params = [{transform_indices = @transform_0, window_bounds = array<i64: 128, 128>}, {transform_indices = @transform_1, window_bounds = array<i64: 128, 128>}, {transform_indices = @transform_2, window_bounds = array<i64: 1, 128>}, {transform_indices = @transform_3, window_bounds = array<i64: 128, 128>}]} {
    %c0 = arith.constant 0 : index
    %c0_0 = arith.constant 0 : index
    %0 = vector.load %arg3[%c0, %c0_0] : memref<128x128xbf16, #tpu.memory_space<vmem>>, vector<128x128xbf16>
    %c0_1 = arith.constant 0 : index
    %c0_2 = arith.constant 0 : index
    %1 = vector.load %arg4[%c0_1, %c0_2] : memref<128x128xbf16, #tpu.memory_space<vmem>>, vector<128x128xbf16>
    %cst = arith.constant dense<0.000000e+00> : vector<128x128xf32>
    %2 = tpu.matmul %0, %1, %cst {dimension_numbers = #tpu.dot_dimension_numbers<[1], [0], [0], [1], [0, 0, 1, 1], [], []>} : vector<128x128xbf16>, vector<128x128xbf16>, vector<128x128xf32> -> vector<128x128xf32>
    %c0_3 = arith.constant 0 : index
    %c0_4 = arith.constant 0 : index
    %3 = vector.load %arg5[%c0_3, %c0_4] : memref<1x128xf32, #tpu.memory_space<vmem>>, vector<1x128xf32>
    %4 = vector.broadcast %3 : vector<1x128xf32> to vector<128x128xf32>
    %5 = arith.addf %2, %4 : vector<128x128xf32>
    %6 = arith.truncf %5 : vector<128x128xf32> to vector<128x128xbf16>
    %c0_5 = arith.constant 0 : index
    %c0_6 = arith.constant 0 : index
    %7 = vector.load %arg6[%c0_5, %c0_6] : memref<128x128xbf16, #tpu.memory_space<vmem>>, vector<128x128xbf16>
    tpu.vector_store %arg6[%c0_5, %c0_6], %6 {strides = array<i32>} : memref<128x128xbf16, #tpu.memory_space<vmem>>, vector<128x128xbf16>,
    return
  }
  func.func @transform_0(%arg0: i32, %arg1: i32, %arg2: i32) -> (i32, i32) {
    %c0_i32 = arith.constant 0 : i32
    return %arg1, %arg2 : i32, i32
  }
  func.func @transform_1(%arg0: i32, %arg1: i32, %arg2: i32) -> (i32, i32) {
    %c0_i32 = arith.constant 0 : i32
    return %arg2, %arg0 : i32, i32
  }
  func.func @transform_2(%arg0: i32, %arg1: i32, %arg2: i32) -> (i32, i32) {
    %c0_i32 = arith.constant 0 : i32
    %c0_i32_0 = arith.constant 0 : i32
    return %c0_i32, %arg0 : i32, i32
  }
  func.func @transform_3(%arg0: i32, %arg1: i32, %arg2: i32) -> (i32, i32) {
    %c0_i32 = arith.constant 0 : i32
    return %arg1, %arg0 : i32, i32
  }
}

module attributes {stable_mosaic.version = 11 : i64} {
  func.func @_mm_kernel(%arg0: i32, %arg1: i32, %arg2: i32, %arg3: memref<128x128xbf16, #tpu.memory_space<vmem>>, %arg4: memref<128x128xbf16, #tpu.memory_space<vmem>>, %arg5: memref<1x128xf32, #tpu.memory_space<vmem>>, %arg6: memref<128x128xbf16, #tpu.memory_space<vmem>>, %arg7: memref<1x8x128xf32, #tpu.memory_space<vmem>>) attributes {dimension_semantics = [#tpu.dimension_semantics<parallel>, #tpu.dimension_semantics<parallel>, #tpu.dimension_semantics<arbitrary>], iteration_bounds = array<i64: 1, 1, 1>, scalar_prefetch = 0 : i64, scratch_operands = 0 : i64, tpu.core_type = #tpu.core_type<tc>, window_params = [{transform_indices = @transform_0, window_bounds = array<i64: 128, 128>}, {transform_indices = @transform_1, window_bounds = array<i64: 128, 128>}, {transform_indices = @transform_2, window_bounds = array<i64: 1, 128>}, {transform_indices = @transform_3, window_bounds = array<i64: 128, 128>}, {transform_indices = @transform_4, window_bounds = array<i64: 1, 8, 128>}]} {
    %c0 = arith.constant 0 : index
    %c0_0 = arith.constant 0 : index
    %0 = vector.load %arg3[%c0, %c0_0] : memref<128x128xbf16, #tpu.memory_space<vmem>>, vector<128x128xbf16>
    %c0_1 = arith.constant 0 : index
    %c0_2 = arith.constant 0 : index
    %1 = vector.load %arg4[%c0_1, %c0_2] : memref<128x128xbf16, #tpu.memory_space<vmem>>, vector<128x128xbf16>
    %cst = arith.constant dense<0.000000e+00> : vector<128x128xf32>
    %2 = tpu.matmul %0, %1, %cst {dimension_numbers = #tpu.dot_dimension_numbers<[1], [0], [0], [1], [0, 0, 1, 1], [], []>} : vector<128x128xbf16>, vector<128x128xbf16>, vector<128x128xf32> -> vector<128x128xf32>
    %c0_3 = arith.constant 0 : index
    %c0_4 = arith.constant 0 : index
    %3 = vector.load %arg5[%c0_3, %c0_4] : memref<1x128xf32, #tpu.memory_space<vmem>>, vector<1x128xf32>
    %4 = vector.broadcast %3 : vector<1x128xf32> to vector<128x128xf32>
    %5 = arith.addf %2, %4 : vector<128x128xf32>
    %6 = arith.truncf %5 : vector<128x128xf32> to vector<128x128xbf16>
    %c0_5 = arith.constant 0 : index
    %c0_6 = arith.constant 0 : index
    %7 = vector.load %arg6[%c0_5, %c0_6] : memref<128x128xbf16, #tpu.memory_space<vmem>>, vector<128x128xbf16>
    tpu.vector_store %arg6[%c0_5, %c0_6], %6 {strides = array<i32>} : memref<128x128xbf16, #tpu.memory_space<vmem>>, vector<128x128xbf16>,
    %cst_7 = arith.constant dense<0.000000e+00> : vector<128xf32>
    %8 = vector.multi_reduction <add>, %5, %cst_7 [0] : vector<128x128xf32> to vector<128xf32>
    %9 = vector.shape_cast %8 : vector<128xf32> to vector<1x128xf32>
    %10 = arith.mulf %5, %5 : vector<128x128xf32>
    %cst_8 = arith.constant dense<0.000000e+00> : vector<128xf32>
    %11 = vector.multi_reduction <add>, %10, %cst_8 [0] : vector<128x128xf32> to vector<128xf32>
    %12 = vector.shape_cast %11 : vector<128xf32> to vector<1x128xf32>
    %13 = tpu.iota {dimensions = array<i32: 0>} : vector<8x128xi32>
    %c0_i32 = arith.constant 0 : i32
    %14 = vector.broadcast %c0_i32 : i32 to vector<8x128xi32>
    %15 = arith.cmpi eq, %13, %14 : vector<8x128xi32>
    %c1_i32 = arith.constant 1 : i32
    %16 = vector.broadcast %c1_i32 : i32 to vector<8x128xi32>
    %17 = arith.cmpi eq, %13, %16 : vector<8x128xi32>
    %cst_9 = arith.constant 0.000000e+00 : f32
    %18 = vector.shape_cast %12 : vector<1x128xf32> to vector<1x128xf32>
    %19 = vector.broadcast %18 : vector<1x128xf32> to vector<8x128xf32>
    %20 = vector.broadcast %cst_9 : f32 to vector<8x128xf32>
    %21 = arith.select %17, %19, %20 : vector<8x128xi1>, vector<8x128xf32>
    %22 = vector.shape_cast %9 : vector<1x128xf32> to vector<1x128xf32>
    %23 = vector.broadcast %22 : vector<1x128xf32> to vector<8x128xf32>
    %24 = arith.select %15, %23, %21 : vector<8x128xi1>, vector<8x128xf32>
    %25 = vector.shape_cast %24 : vector<8x128xf32> to vector<1x8x128xf32>
    %c0_10 = arith.constant 0 : index
    %c0_11 = arith.constant 0 : index
    %c0_12 = arith.constant 0 : index
    %26 = vector.load %arg7[%c0_10, %c0_11, %c0_12] : memref<1x8x128xf32, #tpu.memory_space<vmem>>, vector<1x8x128xf32>
    tpu.vector_store %arg7[%c0_10, %c0_11, %c0_12], %25 {strides = array<i32>} : memref<1x8x128xf32, #tpu.memory_space<vmem>>, vector<1x8x128xf32>,
    return
  }
  func.func @transform_0(%arg0: i32, %arg1: i32, %arg2: i32) -> (i32, i32) {
    %c0_i32 = arith.constant 0 : i32
    return %arg1, %arg2 : i32, i32
  }
  func.func @transform_1(%arg0: i32, %arg1: i32, %arg2: i32) -> (i32, i32) {
    %c0_i32 = arith.constant 0 : i32
    return %arg2, %arg0 : i32, i32
  }
  func.func @transform_2(%arg0: i32, %arg1: i32, %arg2: i32) -> (i32, i32) {
    %c0_i32 = arith.constant 0 : i32
    %c0_i32_0 = arith.constant 0 : i32
    return %c0_i32, %arg0 : i32, i32
  }
  func.func @transform_3(%arg0: i32, %arg1: i32, %arg2: i32) -> (i32, i32) {
    %c0_i32 = arith.constant 0 : i32
    return %arg1, %arg0 : i32, i32
  }
  func.func @transform_4(%arg0: i32, %arg1: i32, %arg2: i32) -> (i32, i32, i32) {
    %c0_i32 = arith.constant 0 : i32
    %c0_i32_0 = arith.constant 0 : i32
    return %arg1, %c0_i32, %arg0 : i32, i32, i32
  }
}

module attributes {stable_mosaic.version = 11 : i64} {
  func.func @_bn_kernel(%arg0: i32, %arg1: memref<128x128xbf16, #tpu.memory_space<vmem>>, %arg2: memref<1x128xf32, #tpu.memory_space<vmem>>, %arg3: memref<1x128xf32, #tpu.memory_space<vmem>>, %arg4: memref<128x128xbf16, #tpu.memory_space<vmem>>) attributes {dimension_semantics = [#tpu.dimension_semantics<parallel>], iteration_bounds = array<i64: 1>, scalar_prefetch = 0 : i64, scratch_operands = 0 : i64, tpu.core_type = #tpu.core_type<tc>, window_params = [{transform_indices = @transform_0, window_bounds = array<i64: 128, 128>}, {pipeline_mode = #tpu.pipeline_mode<synchronous>, transform_indices = @transform_1, window_bounds = array<i64: 1, 128>}, {pipeline_mode = #tpu.pipeline_mode<synchronous>, transform_indices = @transform_2, window_bounds = array<i64: 1, 128>}, {transform_indices = @transform_3, window_bounds = array<i64: 128, 128>}]} {
    %c0 = arith.constant 0 : index
    %c0_0 = arith.constant 0 : index
    %0 = vector.load %arg1[%c0, %c0_0] : memref<128x128xbf16, #tpu.memory_space<vmem>>, vector<128x128xbf16>
    %1 = arith.extf %0 : vector<128x128xbf16> to vector<128x128xf32>
    %c0_1 = arith.constant 0 : index
    %c0_2 = arith.constant 0 : index
    %2 = vector.load %arg2[%c0_1, %c0_2] : memref<1x128xf32, #tpu.memory_space<vmem>>, vector<1x128xf32>
    %3 = vector.broadcast %2 : vector<1x128xf32> to vector<128x128xf32>
    %4 = arith.subf %1, %3 : vector<128x128xf32>
    %c0_3 = arith.constant 0 : index
    %c0_4 = arith.constant 0 : index
    %5 = vector.load %arg3[%c0_3, %c0_4] : memref<1x128xf32, #tpu.memory_space<vmem>>, vector<1x128xf32>
    %6 = vector.broadcast %5 : vector<1x128xf32> to vector<128x128xf32>
    %7 = arith.mulf %4, %6 : vector<128x128xf32>
    %cst = arith.constant 0.000000e+00 : f32
    %8 = vector.broadcast %cst : f32 to vector<128x128xf32>
    %9 = arith.maximumf %7, %8 : vector<128x128xf32>
    %10 = arith.truncf %9 : vector<128x128xf32> to vector<128x128xbf16>
    %c0_5 = arith.constant 0 : index
    %c0_6 = arith.constant 0 : index
    %11 = vector.load %arg4[%c0_5, %c0_6] : memref<128x128xbf16, #tpu.memory_space<vmem>>, vector<128x128xbf16>
    tpu.vector_store %arg4[%c0_5, %c0_6], %10 {strides = array<i32>} : memref<128x128xbf16, #tpu.memory_space<vmem>>, vector<128x128xbf16>,
    return
  }
  func.func @transform_0(%arg0: i32) -> (i32, i32) {
    %c0_i32 = arith.constant 0 : i32
    %c0_i32_0 = arith.constant 0 : i32
    return %arg0, %c0_i32 : i32, i32
  }
  func.func @transform_1(%arg0: i32) -> (i32, i32) {
    %c0_i32 = arith.constant 0 : i32
    %c0_i32_0 = arith.constant 0 : i32
    %c0_i32_1 = arith.constant 0 : i32
    return %c0_i32, %c0_i32_0 : i32, i32
  }
  func.func @transform_2(%arg0: i32) -> (i32, i32) {
    %c0_i32 = arith.constant 0 : i32
    %c0_i32_0 = arith.constant 0 : i32
    %c0_i32_1 = arith.constant 0 : i32
    return %c0_i32, %c0_i32_0 : i32, i32
  }
  func.func @transform_3(%arg0: i32) -> (i32, i32) {
    %c0_i32 = arith.constant 0 : i32
    %c0_i32_0 = arith.constant 0 : i32
    return %arg0, %c0_i32 : i32, i32
  }
}

module attributes {stable_mosaic.version = 11 : i64} {
  func.func @kern(%arg0: i32, %arg1: i32, %arg2: memref<1x10x10x128xbf16, #tpu.memory_space<vmem>>, %arg3: memref<9x128x128xbf16, #tpu.memory_space<vmem>>, %arg4: memref<1x128xf32, #tpu.memory_space<vmem>>, %arg5: memref<1x8x8x128xbf16, #tpu.memory_space<vmem>>, %arg6: memref<1x8x128xf32, #tpu.memory_space<vmem>>) attributes {dimension_semantics = [#tpu.dimension_semantics<parallel>, #tpu.dimension_semantics<parallel>], iteration_bounds = array<i64: 2, 1>, scalar_prefetch = 0 : i64, scratch_operands = 0 : i64, tpu.core_type = #tpu.core_type<tc>, window_params = [{transform_indices = @transform_0, window_bounds = array<i64: 1, 10, 10, 128>}, {transform_indices = @transform_1, window_bounds = array<i64: 9, 128, 128>}, {transform_indices = @transform_2, window_bounds = array<i64: 1, 128>}, {transform_indices = @transform_3, window_bounds = array<i64: 1, 8, 8, 128>}, {transform_indices = @transform_4, window_bounds = array<i64: 1, 8, 128>}]} {
    %cst = arith.constant 0.000000e+00 : f32
    %0 = vector.broadcast %cst : f32 to vector<64x128xf32>
    %c0 = arith.constant 0 : index
    %c0_0 = arith.constant 0 : index
    %c0_1 = arith.constant 0 : index
    %c0_2 = arith.constant 0 : index
    %1 = vector.load %arg2[%c0, %c0_0, %c0_1, %c0_2] : memref<1x10x10x128xbf16, #tpu.memory_space<vmem>>, vector<1x8x8x128xbf16>
    %2 = vector.shape_cast %1 : vector<1x8x8x128xbf16> to vector<8x8x128xbf16>
    %3 = vector.shape_cast %2 : vector<8x8x128xbf16> to vector<64x128xbf16>
    %c0_3 = arith.constant 0 : index
    %c0_4 = arith.constant 0 : index
    %c0_5 = arith.constant 0 : index
    %4 = vector.load %arg3[%c0_3, %c0_4, %c0_5] : memref<9x128x128xbf16, #tpu.memory_space<vmem>>, vector<1x128x128xbf16>
    %5 = vector.shape_cast %4 : vector<1x128x128xbf16> to vector<128x128xbf16>
    %cst_6 = arith.constant dense<0.000000e+00> : vector<64x128xf32>
    %6 = tpu.matmul %3, %5, %cst_6 {dimension_numbers = #tpu.dot_dimension_numbers<[1], [0], [0], [1], [0, 0, 1, 1], [], []>} : vector<64x128xbf16>, vector<128x128xbf16>, vector<64x128xf32> -> vector<64x128xf32>
    %7 = arith.addf %0, %6 : vector<64x128xf32>
    %c0_7 = arith.constant 0 : index
    %c0_8 = arith.constant 0 : index
    %c1 = arith.constant 1 : index
    %c0_9 = arith.constant 0 : index
    %8 = vector.load %arg2[%c0_7, %c0_8, %c1, %c0_9] : memref<1x10x10x128xbf16, #tpu.memory_space<vmem>>, vector<1x8x8x128xbf16>
    %9 = vector.shape_cast %8 : vector<1x8x8x128xbf16> to vector<8x8x128xbf16>
    %10 = vector.shape_cast %9 : vector<8x8x128xbf16> to vector<64x128xbf16>
    %c1_10 = arith.constant 1 : index
    %c0_11 = arith.constant 0 : index
    %c0_12 = arith.constant 0 : index
    %11 = vector.load %arg3[%c1_10, %c0_11, %c0_12] : memref<9x128x128xbf16, #tpu.memory_space<vmem>>, vector<1x128x128xbf16>
    %12 = vector.shape_cast %11 : vector<1x128x128xbf16> to vector<128x128xbf16>
    %cst_13 = arith.constant dense<0.000000e+00> : vector<64x128xf32>
    %13 = tpu.matmul %10, %12, %cst_13 {dimension_numbers = #tpu.dot_dimension_numbers<[1], [0], [0], [1], [0, 0, 1, 1], [], []>} : vector<64x128xbf16>, vector<128x128xbf16>, vector<64x128xf32> -> vector<64x128xf32>
    %14 = arith.addf %7, %13 : vector<64x128xf32>
    %c0_14 = arith.constant 0 : index
    %c0_15 = arith.constant 0 : index
    %c2 = arith.constant 2 : index
    %c0_16 = arith.constant 0 : index
    %15 = vector.load %arg2[%c0_14, %c0_15, %c2, %c0_16] : memref<1x10x10x128xbf16, #tpu.memory_space<vmem>>, vector<1x8x8x128xbf16>
    %16 = vector.shape_cast %15 : vector<1x8x8x128xbf16> to vector<8x8x128xbf16>
    %17 = vector.shape_cast %16 : vector<8x8x128xbf16> to vector<64x128xbf16>
    %c2_17 = arith.constant 2 : index
    %c0_18 = arith.constant 0 : index
    %c0_19 = arith.constant 0 : index
    %18 = vector.load %arg3[%c2_17, %c0_18, %c0_19] : memref<9x128x128xbf16, #tpu.memory_space<vmem>>, vector<1x128x128xbf16>
    %19 = vector.shape_cast %18 : vector<1x128x128xbf16> to vector<128x128xbf16>
    %cst_20 = arith.constant dense<0.000000e+00> : vector<64x128xf32>
    %20 = tpu.matmul %17, %19, %cst_20 {dimension_numbers = #tpu.dot_dimension_numbers<[1], [0], [0], [1], [0, 0, 1, 1], [], []>} : vector<64x128xbf16>, vector<128x128xbf16>, vector<64x128xf32> -> vector<64x128xf32>
    %21 = arith.addf %14, %20 : vector<64x128xf32>
    %c0_21 = arith.constant 0 : index
    %c1_22 = arith.constant 1 : index
    %c0_23 = arith.constant 0 : index
    %c0_24 = arith.constant 0 : index
    %22 = vector.load %arg2[%c0_21, %c1_22, %c0_23, %c0_24] : memref<1x10x10x128xbf16, #tpu.memory_space<vmem>>, vector<1x8x8x128xbf16>
    %23 = vector.shape_cast %22 : vector<1x8x8x128xbf16> to vector<8x8x128xbf16>
    %24 = vector.shape_cast %23 : vector<8x8x128xbf16> to vector<64x128xbf16>
    %c3 = arith.constant 3 : index
    %c0_25 = arith.constant 0 : index
    %c0_26 = arith.constant 0 : index
    %25 = vector.load %arg3[%c3, %c0_25, %c0_26] : memref<9x128x128xbf16, #tpu.memory_space<vmem>>, vector<1x128x128xbf16>
    %26 = vector.shape_cast %25 : vector<1x128x128xbf16> to vector<128x128xbf16>
    %cst_27 = arith.constant dense<0.000000e+00> : vector<64x128xf32>
    %27 = tpu.matmul %24, %26, %cst_27 {dimension_numbers = #tpu.dot_dimension_numbers<[1], [0], [0], [1], [0, 0, 1, 1], [], []>} : vector<64x128xbf16>, vector<128x128xbf16>, vector<64x128xf32> -> vector<64x128xf32>
    %28 = arith.addf %21, %27 : vector<64x128xf32>
    %c0_28 = arith.constant 0 : index
    %c1_29 = arith.constant 1 : index
    %c1_30 = arith.constant 1 : index
    %c0_31 = arith.constant 0 : index
    %29 = vector.load %arg2[%c0_28, %c1_29, %c1_30, %c0_31] : memref<1x10x10x128xbf16, #tpu.memory_space<vmem>>, vector<1x8x8x128xbf16>
    %30 = vector.shape_cast %29 : vector<1x8x8x128xbf16> to vector<8x8x128xbf16>
    %31 = vector.shape_cast %30 : vector<8x8x128xbf16> to vector<64x128xbf16>
    %c4 = arith.constant 4 : index
    %c0_32 = arith.constant 0 : index
    %c0_33 = arith.constant 0 : index
    %32 = vector.load %arg3[%c4, %c0_32, %c0_33] : memref<9x128x128xbf16, #tpu.memory_space<vmem>>, vector<1x128x128xbf16>
    %33 = vector.shape_cast %32 : vector<1x128x128xbf16> to vector<128x128xbf16>
    %cst_34 = arith.constant dense<0.000000e+00> : vector<64x128xf32>
    %34 = tpu.matmul %31, %33, %cst_34 {dimension_numbers = #tpu.dot_dimension_numbers<[1], [0], [0], [1], [0, 0, 1, 1], [], []>} : vector<64x128xbf16>, vector<128x128xbf16>, vector<64x128xf32> -> vector<64x128xf32>
    %35 = arith.addf %28, %34 : vector<64x128xf32>
    %c0_35 = arith.constant 0 : index
    %c1_36 = arith.constant 1 : index
    %c2_37 = arith.constant 2 : index
    %c0_38 = arith.constant 0 : index
    %36 = vector.load %arg2[%c0_35, %c1_36, %c2_37, %c0_38] : memref<1x10x10x128xbf16, #tpu.memory_space<vmem>>, vector<1x8x8x128xbf16>
    %37 = vector.shape_cast %36 : vector<1x8x8x128xbf16> to vector<8x8x128xbf16>
    %38 = vector.shape_cast %37 : vector<8x8x128xbf16> to vector<64x128xbf16>
    %c5 = arith.constant 5 : index
    %c0_39 = arith.constant 0 : index
    %c0_40 = arith.constant 0 : index
    %39 = vector.load %arg3[%c5, %c0_39, %c0_40] : memref<9x128x128xbf16, #tpu.memory_space<vmem>>, vector<1x128x128xbf16>
    %40 = vector.shape_cast %39 : vector<1x128x128xbf16> to vector<128x128xbf16>
    %cst_41 = arith.constant dense<0.000000e+00> : vector<64x128xf32>
    %41 = tpu.matmul %38, %40, %cst_41 {dimension_numbers = #tpu.dot_dimension_numbers<[1], [0], [0], [1], [0, 0, 1, 1], [], []>} : vector<64x128xbf16>, vector<128x128xbf16>, vector<64x128xf32> -> vector<64x128xf32>
    %42 = arith.addf %35, %41 : vector<64x128xf32>
    %c0_42 = arith.constant 0 : index
    %c2_43 = arith.constant 2 : index
    %c0_44 = arith.constant 0 : index
    %c0_45 = arith.constant 0 : index
    %43 = vector.load %arg2[%c0_42, %c2_43, %c0_44, %c0_45] : memref<1x10x10x128xbf16, #tpu.memory_space<vmem>>, vector<1x8x8x128xbf16>
    %44 = vector.shape_cast %43 : vector<1x8x8x128xbf16> to vector<8x8x128xbf16>
    %45 = vector.shape_cast %44 : vector<8x8x128xbf16> to vector<64x128xbf16>
    %c6 = arith.constant 6 : index
    %c0_46 = arith.constant 0 : index
    %c0_47 = arith.constant 0 : index
    %46 = vector.load %arg3[%c6, %c0_46, %c0_47] : memref<9x128x128xbf16, #tpu.memory_space<vmem>>, vector<1x128x128xbf16>
    %47 = vector.shape_cast %46 : vector<1x128x128xbf16> to vector<128x128xbf16>
    %cst_48 = arith.constant dense<0.000000e+00> : vector<64x128xf32>
    %48 = tpu.matmul %45, %47, %cst_48 {dimension_numbers = #tpu.dot_dimension_numbers<[1], [0], [0], [1], [0, 0, 1, 1], [], []>} : vector<64x128xbf16>, vector<128x128xbf16>, vector<64x128xf32> -> vector<64x128xf32>
    %49 = arith.addf %42, %48 : vector<64x128xf32>
    %c0_49 = arith.constant 0 : index
    %c2_50 = arith.constant 2 : index
    %c1_51 = arith.constant 1 : index
    %c0_52 = arith.constant 0 : index
    %50 = vector.load %arg2[%c0_49, %c2_50, %c1_51, %c0_52] : memref<1x10x10x128xbf16, #tpu.memory_space<vmem>>, vector<1x8x8x128xbf16>
    %51 = vector.shape_cast %50 : vector<1x8x8x128xbf16> to vector<8x8x128xbf16>
    %52 = vector.shape_cast %51 : vector<8x8x128xbf16> to vector<64x128xbf16>
    %c7 = arith.constant 7 : index
    %c0_53 = arith.constant 0 : index
    %c0_54 = arith.constant 0 : index
    %53 = vector.load %arg3[%c7, %c0_53, %c0_54] : memref<9x128x128xbf16, #tpu.memory_space<vmem>>, vector<1x128x128xbf16>
    %54 = vector.shape_cast %53 : vector<1x128x128xbf16> to vector<128x128xbf16>
    %cst_55 = arith.constant dense<0.000000e+00> : vector<64x128xf32>
    %55 = tpu.matmul %52, %54, %cst_55 {dimension_numbers = #tpu.dot_dimension_numbers<[1], [0], [0], [1], [0, 0, 1, 1], [], []>} : vector<64x128xbf16>, vector<128x128xbf16>, vector<64x128xf32> -> vector<64x128xf32>
    %56 = arith.addf %49, %55 : vector<64x128xf32>
    %c0_56 = arith.constant 0 : index
    %c2_57 = arith.constant 2 : index
    %c2_58 = arith.constant 2 : index
    %c0_59 = arith.constant 0 : index
    %57 = vector.load %arg2[%c0_56, %c2_57, %c2_58, %c0_59] : memref<1x10x10x128xbf16, #tpu.memory_space<vmem>>, vector<1x8x8x128xbf16>
    %58 = vector.shape_cast %57 : vector<1x8x8x128xbf16> to vector<8x8x128xbf16>
    %59 = vector.shape_cast %58 : vector<8x8x128xbf16> to vector<64x128xbf16>
    %c8 = arith.constant 8 : index
    %c0_60 = arith.constant 0 : index
    %c0_61 = arith.constant 0 : index
    %60 = vector.load %arg3[%c8, %c0_60, %c0_61] : memref<9x128x128xbf16, #tpu.memory_space<vmem>>, vector<1x128x128xbf16>
    %61 = vector.shape_cast %60 : vector<1x128x128xbf16> to vector<128x128xbf16>
    %cst_62 = arith.constant dense<0.000000e+00> : vector<64x128xf32>
    %62 = tpu.matmul %59, %61, %cst_62 {dimension_numbers = #tpu.dot_dimension_numbers<[1], [0], [0], [1], [0, 0, 1, 1], [], []>} : vector<64x128xbf16>, vector<128x128xbf16>, vector<64x128xf32> -> vector<64x128xf32>
    %63 = arith.addf %56, %62 : vector<64x128xf32>
    %c0_63 = arith.constant 0 : index
    %c0_64 = arith.constant 0 : index
    %64 = vector.load %arg4[%c0_63, %c0_64] : memref<1x128xf32, #tpu.memory_space<vmem>>, vector<1x128xf32>
    %65 = vector.broadcast %64 : vector<1x128xf32> to vector<64x128xf32>
    %66 = arith.addf %63, %65 : vector<64x128xf32>
    %67 = vector.shape_cast %66 : vector<64x128xf32> to vector<1x8x8x128xf32>
    %68 = arith.truncf %67 : vector<1x8x8x128xf32> to vector<1x8x8x128xbf16>
    %c0_65 = arith.constant 0 : index
    %c0_66 = arith.constant 0 : index
    %c0_67 = arith.constant 0 : index
    %c0_68 = arith.constant 0 : index
    %69 = vector.load %arg5[%c0_65, %c0_66, %c0_67, %c0_68] : memref<1x8x8x128xbf16, #tpu.memory_space<vmem>>, vector<1x8x8x128xbf16>
    tpu.vector_store %arg5[%c0_65, %c0_66, %c0_67, %c0_68], %68 {strides = array<i32>} : memref<1x8x8x128xbf16, #tpu.memory_space<vmem>>, vector<1x8x8x128xbf16>,
    %cst_69 = arith.constant dense<0.000000e+00> : vector<128xf32>
    %70 = vector.multi_reduction <add>, %66, %cst_69 [0] : vector<64x128xf32> to vector<128xf32>
    %71 = vector.shape_cast %70 : vector<128xf32> to vector<1x128xf32>
    %72 = arith.mulf %66, %66 : vector<64x128xf32>
    %cst_70 = arith.constant dense<0.000000e+00> : vector<128xf32>
    %73 = vector.multi_reduction <add>, %72, %cst_70 [0] : vector<64x128xf32> to vector<128xf32>
    %74 = vector.shape_cast %73 : vector<128xf32> to vector<1x128xf32>
    %75 = tpu.iota {dimensions = array<i32: 0>} : vector<8x128xi32>
    %c0_i32 = arith.constant 0 : i32
    %76 = vector.broadcast %c0_i32 : i32 to vector<8x128xi32>
    %77 = arith.cmpi eq, %75, %76 : vector<8x128xi32>
    %c1_i32 = arith.constant 1 : i32
    %78 = vector.broadcast %c1_i32 : i32 to vector<8x128xi32>
    %79 = arith.cmpi eq, %75, %78 : vector<8x128xi32>
    %cst_71 = arith.constant 0.000000e+00 : f32
    %80 = vector.shape_cast %74 : vector<1x128xf32> to vector<1x128xf32>
    %81 = vector.broadcast %80 : vector<1x128xf32> to vector<8x128xf32>
    %82 = vector.broadcast %cst_71 : f32 to vector<8x128xf32>
    %83 = arith.select %79, %81, %82 : vector<8x128xi1>, vector<8x128xf32>
    %84 = vector.shape_cast %71 : vector<1x128xf32> to vector<1x128xf32>
    %85 = vector.broadcast %84 : vector<1x128xf32> to vector<8x128xf32>
    %86 = arith.select %77, %85, %83 : vector<8x128xi1>, vector<8x128xf32>
    %87 = vector.shape_cast %86 : vector<8x128xf32> to vector<1x8x128xf32>
    %c0_72 = arith.constant 0 : index
    %c0_73 = arith.constant 0 : index
    %c0_74 = arith.constant 0 : index
    %88 = vector.load %arg6[%c0_72, %c0_73, %c0_74] : memref<1x8x128xf32, #tpu.memory_space<vmem>>, vector<1x8x128xf32>
    tpu.vector_store %arg6[%c0_72, %c0_73, %c0_74], %87 {strides = array<i32>} : memref<1x8x128xf32, #tpu.memory_space<vmem>>, vector<1x8x128xf32>,
    return
  }
  func.func @transform_0(%arg0: i32, %arg1: i32) -> (i32, i32, i32, i32) {
    %c0_i32 = arith.constant 0 : i32
    %c0_i32_0 = arith.constant 0 : i32
    %c0_i32_1 = arith.constant 0 : i32
    %c0_i32_2 = arith.constant 0 : i32
    return %arg0, %c0_i32, %c0_i32_0, %c0_i32_1 : i32, i32, i32, i32
  }
  func.func @transform_1(%arg0: i32, %arg1: i32) -> (i32, i32, i32) {
    %c0_i32 = arith.constant 0 : i32
    %c0_i32_0 = arith.constant 0 : i32
    %c0_i32_1 = arith.constant 0 : i32
    return %c0_i32, %c0_i32_0, %arg1 : i32, i32, i32
  }
  func.func @transform_2(%arg0: i32, %arg1: i32) -> (i32, i32) {
    %c0_i32 = arith.constant 0 : i32
    %c0_i32_0 = arith.constant 0 : i32
    return %c0_i32, %arg1 : i32, i32
  }
  func.func @transform_3(%arg0: i32, %arg1: i32) -> (i32, i32, i32, i32) {
    %c0_i32 = arith.constant 0 : i32
    %c0_i32_0 = arith.constant 0 : i32
    %c0_i32_1 = arith.constant 0 : i32
    return %arg0, %c0_i32, %c0_i32_0, %arg1 : i32, i32, i32, i32
  }
  func.func @transform_4(%arg0: i32, %arg1: i32) -> (i32, i32, i32) {
    %c0_i32 = arith.constant 0 : i32
    %c0_i32_0 = arith.constant 0 : i32
    return %arg0, %c0_i32, %arg1 : i32, i32, i32
  }
}

module attributes {stable_mosaic.version = 11 : i64} {
  func.func @_bn_kernel(%arg0: i32, %arg1: memref<128x128xbf16, #tpu.memory_space<vmem>>, %arg2: memref<1x128xf32, #tpu.memory_space<vmem>>, %arg3: memref<1x128xf32, #tpu.memory_space<vmem>>, %arg4: memref<128x128xbf16, #tpu.memory_space<vmem>>, %arg5: memref<128x128xbf16, #tpu.memory_space<vmem>>) attributes {dimension_semantics = [#tpu.dimension_semantics<parallel>], iteration_bounds = array<i64: 1>, scalar_prefetch = 0 : i64, scratch_operands = 0 : i64, tpu.core_type = #tpu.core_type<tc>, window_params = [{transform_indices = @transform_0, window_bounds = array<i64: 128, 128>}, {pipeline_mode = #tpu.pipeline_mode<synchronous>, transform_indices = @transform_1, window_bounds = array<i64: 1, 128>}, {pipeline_mode = #tpu.pipeline_mode<synchronous>, transform_indices = @transform_2, window_bounds = array<i64: 1, 128>}, {transform_indices = @transform_3, window_bounds = array<i64: 128, 128>}, {transform_indices = @transform_4, window_bounds = array<i64: 128, 128>}]} {
    %c0 = arith.constant 0 : index
    %c0_0 = arith.constant 0 : index
    %0 = vector.load %arg1[%c0, %c0_0] : memref<128x128xbf16, #tpu.memory_space<vmem>>, vector<128x128xbf16>
    %1 = arith.extf %0 : vector<128x128xbf16> to vector<128x128xf32>
    %c0_1 = arith.constant 0 : index
    %c0_2 = arith.constant 0 : index
    %2 = vector.load %arg2[%c0_1, %c0_2] : memref<1x128xf32, #tpu.memory_space<vmem>>, vector<1x128xf32>
    %3 = vector.broadcast %2 : vector<1x128xf32> to vector<128x128xf32>
    %4 = arith.subf %1, %3 : vector<128x128xf32>
    %c0_3 = arith.constant 0 : index
    %c0_4 = arith.constant 0 : index
    %5 = vector.load %arg3[%c0_3, %c0_4] : memref<1x128xf32, #tpu.memory_space<vmem>>, vector<1x128xf32>
    %6 = vector.broadcast %5 : vector<1x128xf32> to vector<128x128xf32>
    %7 = arith.mulf %4, %6 : vector<128x128xf32>
    %cst = arith.constant 0.000000e+00 : f32
    %8 = vector.broadcast %cst : f32 to vector<128x128xf32>
    %9 = arith.maximumf %7, %8 : vector<128x128xf32>
    %c0_5 = arith.constant 0 : index
    %c0_6 = arith.constant 0 : index
    %10 = vector.load %arg4[%c0_5, %c0_6] : memref<128x128xbf16, #tpu.memory_space<vmem>>, vector<128x128xbf16>
    %11 = arith.extf %10 : vector<128x128xbf16> to vector<128x128xf32>
    %12 = arith.addf %9, %11 : vector<128x128xf32>
    %13 = arith.truncf %12 : vector<128x128xf32> to vector<128x128xbf16>
    %c0_7 = arith.constant 0 : index
    %c0_8 = arith.constant 0 : index
    %14 = vector.load %arg5[%c0_7, %c0_8] : memref<128x128xbf16, #tpu.memory_space<vmem>>, vector<128x128xbf16>
    tpu.vector_store %arg5[%c0_7, %c0_8], %13 {strides = array<i32>} : memref<128x128xbf16, #tpu.memory_space<vmem>>, vector<128x128xbf16>,
    return
  }
  func.func @transform_0(%arg0: i32) -> (i32, i32) {
    %c0_i32 = arith.constant 0 : i32
    %c0_i32_0 = arith.constant 0 : i32
    return %arg0, %c0_i32 : i32, i32
  }
  func.func @transform_1(%arg0: i32) -> (i32, i32) {
    %c0_i32 = arith.constant 0 : i32
    %c0_i32_0 = arith.constant 0 : i32
    %c0_i32_1 = arith.constant 0 : i32
    return %c0_i32, %c0_i32_0 : i32, i32
  }
  func.func @transform_2(%arg0: i32) -> (i32, i32) {
    %c0_i32 = arith.constant 0 : i32
    %c0_i32_0 = arith.constant 0 : i32
    %c0_i32_1 = arith.constant 0 : i32
    return %c0_i32, %c0_i32_0 : i32, i32
  }
  func.func @transform_3(%arg0: i32) -> (i32, i32) {
    %c0_i32 = arith.constant 0 : i32
    %c0_i32_0 = arith.constant 0 : i32
    return %arg0, %c0_i32 : i32, i32
  }
  func.func @transform_4(%arg0: i32) -> (i32, i32) {
    %c0_i32 = arith.constant 0 : i32
    %c0_i32_0 = arith.constant 0 : i32
    return %arg0, %c0_i32 : i32, i32
  }
}

module attributes {stable_mosaic.version = 11 : i64} {
  func.func @_mm_kernel(%arg0: i32, %arg1: i32, %arg2: i32, %arg3: memref<128x128xbf16, #tpu.memory_space<vmem>>, %arg4: memref<128x128xbf16, #tpu.memory_space<vmem>>, %arg5: memref<1x128xf32, #tpu.memory_space<vmem>>, %arg6: memref<128x128xbf16, #tpu.memory_space<vmem>>, %arg7: memref<1x8x128xf32, #tpu.memory_space<vmem>>) attributes {dimension_semantics = [#tpu.dimension_semantics<parallel>, #tpu.dimension_semantics<parallel>, #tpu.dimension_semantics<arbitrary>], iteration_bounds = array<i64: 1, 1, 1>, scalar_prefetch = 0 : i64, scratch_operands = 0 : i64, tpu.core_type = #tpu.core_type<tc>, window_params = [{transform_indices = @transform_0, window_bounds = array<i64: 128, 128>}, {transform_indices = @transform_1, window_bounds = array<i64: 128, 128>}, {transform_indices = @transform_2, window_bounds = array<i64: 1, 128>}, {transform_indices = @transform_3, window_bounds = array<i64: 128, 128>}, {transform_indices = @transform_4, window_bounds = array<i64: 1, 8, 128>}]} {
    %c0 = arith.constant 0 : index
    %c0_0 = arith.constant 0 : index
    %0 = vector.load %arg3[%c0, %c0_0] : memref<128x128xbf16, #tpu.memory_space<vmem>>, vector<128x128xbf16>
    %c0_1 = arith.constant 0 : index
    %c0_2 = arith.constant 0 : index
    %1 = vector.load %arg4[%c0_1, %c0_2] : memref<128x128xbf16, #tpu.memory_space<vmem>>, vector<128x128xbf16>
    %cst = arith.constant dense<0.000000e+00> : vector<128x128xf32>
    %2 = tpu.matmul %0, %1, %cst {dimension_numbers = #tpu.dot_dimension_numbers<[1], [0], [0], [1], [0, 0, 1, 1], [], []>} : vector<128x128xbf16>, vector<128x128xbf16>, vector<128x128xf32> -> vector<128x128xf32>
    %c0_3 = arith.constant 0 : index
    %c0_4 = arith.constant 0 : index
    %3 = vector.load %arg5[%c0_3, %c0_4] : memref<1x128xf32, #tpu.memory_space<vmem>>, vector<1x128xf32>
    %4 = vector.broadcast %3 : vector<1x128xf32> to vector<128x128xf32>
    %5 = arith.addf %2, %4 : vector<128x128xf32>
    %c0_i32 = arith.constant 0 : i32
    %6 = arith.cmpi ne, %arg1, %c0_i32 : i32
    %7 = arith.extui %6 : i1 to i32
    %c0_i32_5 = arith.constant 0 : i32
    %8 = arith.cmpi ne, %7, %c0_i32_5 : i32
    scf.if %8 {
      %12 = arith.truncf %5 : vector<128x128xf32> to vector<128x128xbf16>
      %c0_8 = arith.constant 0 : index
      %c0_9 = arith.constant 0 : index
      %13 = vector.load %arg6[%c0_8, %c0_9] : memref<128x128xbf16, #tpu.memory_space<vmem>>, vector<128x128xbf16>
      tpu.vector_store %arg6[%c0_8, %c0_9], %12 {strides = array<i32>} : memref<128x128xbf16, #tpu.memory_space<vmem>>, vector<128x128xbf16>,
      %cst_10 = arith.constant dense<0.000000e+00> : vector<128xf32>
      %14 = vector.multi_reduction <add>, %5, %cst_10 [0] : vector<128x128xf32> to vector<128xf32>
      %15 = vector.shape_cast %14 : vector<128xf32> to vector<1x128xf32>
      %16 = arith.mulf %5, %5 : vector<128x128xf32>
      %cst_11 = arith.constant dense<0.000000e+00> : vector<128xf32>
      %17 = vector.multi_reduction <add>, %16, %cst_11 [0] : vector<128x128xf32> to vector<128xf32>
      %18 = vector.shape_cast %17 : vector<128xf32> to vector<1x128xf32>
      %19 = tpu.iota {dimensions = array<i32: 0>} : vector<8x128xi32>
      %c0_i32_12 = arith.constant 0 : i32
      %20 = vector.broadcast %c0_i32_12 : i32 to vector<8x128xi32>
      %21 = arith.cmpi eq, %19, %20 : vector<8x128xi32>
      %c1_i32 = arith.constant 1 : i32
      %22 = vector.broadcast %c1_i32 : i32 to vector<8x128xi32>
      %23 = arith.cmpi eq, %19, %22 : vector<8x128xi32>
      %cst_13 = arith.constant 0.000000e+00 : f32
      %24 = vector.shape_cast %18 : vector<1x128xf32> to vector<1x128xf32>
      %25 = vector.broadcast %24 : vector<1x128xf32> to vector<8x128xf32>
      %26 = vector.broadcast %cst_13 : f32 to vector<8x128xf32>
      %27 = arith.select %23, %25, %26 : vector<8x128xi1>, vector<8x128xf32>
      %28 = vector.shape_cast %15 : vector<1x128xf32> to vector<1x128xf32>
      %29 = vector.broadcast %28 : vector<1x128xf32> to vector<8x128xf32>
      %30 = arith.select %21, %29, %27 : vector<8x128xi1>, vector<8x128xf32>
      %31 = vector.shape_cast %30 : vector<8x128xf32> to vector<1x8x128xf32>
      %c0_14 = arith.constant 0 : index
      %c0_15 = arith.constant 0 : index
      %c0_16 = arith.constant 0 : index
      %32 = vector.load %arg7[%c0_14, %c0_15, %c0_16] : memref<1x8x128xf32, #tpu.memory_space<vmem>>, vector<1x8x128xf32>
      tpu.vector_store %arg7[%c0_14, %c0_15, %c0_16], %31 {strides = array<i32>} : memref<1x8x128xf32, #tpu.memory_space<vmem>>, vector<1x8x128xf32>,
    } else {
    }
    %c0_i32_6 = arith.constant 0 : i32
    %9 = arith.cmpi eq, %arg1, %c0_i32_6 : i32
    %10 = arith.extui %9 : i1 to i32
    %c0_i32_7 = arith.constant 0 : i32
    %11 = arith.cmpi ne, %10, %c0_i32_7 : i32
    scf.if %11 {
      %12 = tpu.iota {dimensions = array<i32: 0>} : vector<128x1xi32>
      %c32_i32 = arith.constant 32 : i32
      %13 = vector.broadcast %c32_i32 : i32 to vector<128x1xi32>
      %14 = arith.cmpi slt, %12, %13 : vector<128x1xi32>
      %cst_8 = arith.constant 0.000000e+00 : f32
      %15 = vector.shape_cast %14 : vector<128x1xi1> to vector<128x1xi1>
      %16 = vector.broadcast %15 : vector<128x1xi1> to vector<128x128xi1>
      %17 = vector.broadcast %cst_8 : f32 to vector<128x128xf32>
      %18 = arith.select %16, %5, %17 : vector<128x128xi1>, vector<128x128xf32>
      %19 = arith.truncf %18 : vector<128x128xf32> to vector<128x128xbf16>
      %c0_9 = arith.constant 0 : index
      %c0_10 = arith.constant 0 : index
      %20 = vector.load %arg6[%c0_9, %c0_10] : memref<128x128xbf16, #tpu.memory_space<vmem>>, vector<128x128xbf16>
      tpu.vector_store %arg6[%c0_9, %c0_10], %19 {strides = array<i32>} : memref<128x128xbf16, #tpu.memory_space<vmem>>, vector<128x128xbf16>,
      %cst_11 = arith.constant dense<0.000000e+00> : vector<128xf32>
      %21 = vector.multi_reduction <add>, %18, %cst_11 [0] : vector<128x128xf32> to vector<128xf32>
      %22 = vector.shape_cast %21 : vector<128xf32> to vector<1x128xf32>
      %23 = arith.mulf %18, %18 : vector<128x128xf32>
      %cst_12 = arith.constant dense<0.000000e+00> : vector<128xf32>
      %24 = vector.multi_reduction <add>, %23, %cst_12 [0] : vector<128x128xf32> to vector<128xf32>
      %25 = vector.shape_cast %24 : vector<128xf32> to vector<1x128xf32>
      %26 = tpu.iota {dimensions = array<i32: 0>} : vector<8x128xi32>
      %c0_i32_13 = arith.constant 0 : i32
      %27 = vector.broadcast %c0_i32_13 : i32 to vector<8x128xi32>
      %28 = arith.cmpi eq, %26, %27 : vector<8x128xi32>
      %c1_i32 = arith.constant 1 : i32
      %29 = vector.broadcast %c1_i32 : i32 to vector<8x128xi32>
      %30 = arith.cmpi eq, %26, %29 : vector<8x128xi32>
      %cst_14 = arith.constant 0.000000e+00 : f32
      %31 = vector.shape_cast %25 : vector<1x128xf32> to vector<1x128xf32>
      %32 = vector.broadcast %31 : vector<1x128xf32> to vector<8x128xf32>
      %33 = vector.broadcast %cst_14 : f32 to vector<8x128xf32>
      %34 = arith.select %30, %32, %33 : vector<8x128xi1>, vector<8x128xf32>
      %35 = vector.shape_cast %22 : vector<1x128xf32> to vector<1x128xf32>
      %36 = vector.broadcast %35 : vector<1x128xf32> to vector<8x128xf32>
      %37 = arith.select %28, %36, %34 : vector<8x128xi1>, vector<8x128xf32>
      %38 = vector.shape_cast %37 : vector<8x128xf32> to vector<1x8x128xf32>
      %c0_15 = arith.constant 0 : index
      %c0_16 = arith.constant 0 : index
      %c0_17 = arith.constant 0 : index
      %39 = vector.load %arg7[%c0_15, %c0_16, %c0_17] : memref<1x8x128xf32, #tpu.memory_space<vmem>>, vector<1x8x128xf32>
      tpu.vector_store %arg7[%c0_15, %c0_16, %c0_17], %38 {strides = array<i32>} : memref<1x8x128xf32, #tpu.memory_space<vmem>>, vector<1x8x128xf32>,
    } else {
    }
    return
  }
  func.func @transform_0(%arg0: i32, %arg1: i32, %arg2: i32) -> (i32, i32) {
    %c0_i32 = arith.constant 0 : i32
    return %arg1, %arg2 : i32, i32
  }
  func.func @transform_1(%arg0: i32, %arg1: i32, %arg2: i32) -> (i32, i32) {
    %c0_i32 = arith.constant 0 : i32
    return %arg2, %arg0 : i32, i32
  }
  func.func @transform_2(%arg0: i32, %arg1: i32, %arg2: i32) -> (i32, i32) {
    %c0_i32 = arith.constant 0 : i32
    %c0_i32_0 = arith.constant 0 : i32
    return %c0_i32, %arg0 : i32, i32
  }
  func.func @transform_3(%arg0: i32, %arg1: i32, %arg2: i32) -> (i32, i32) {
    %c0_i32 = arith.constant 0 : i32
    return %arg1, %arg0 : i32, i32
  }
  func.func @transform_4(%arg0: i32, %arg1: i32, %arg2: i32) -> (i32, i32, i32) {
    %c0_i32 = arith.constant 0 : i32
    %c0_i32_0 = arith.constant 0 : i32
    return %arg1, %c0_i32, %arg0 : i32, i32, i32
  }
}

module attributes {stable_mosaic.version = 11 : i64} {
  func.func @kern(%arg0: i32, %arg1: i32, %arg2: memref<1x6x6x128xbf16, #tpu.memory_space<vmem>>, %arg3: memref<9x128x128xbf16, #tpu.memory_space<vmem>>, %arg4: memref<1x128xf32, #tpu.memory_space<vmem>>, %arg5: memref<1x4x4x128xbf16, #tpu.memory_space<vmem>>, %arg6: memref<1x8x128xf32, #tpu.memory_space<vmem>>) attributes {dimension_semantics = [#tpu.dimension_semantics<parallel>, #tpu.dimension_semantics<parallel>], iteration_bounds = array<i64: 2, 1>, scalar_prefetch = 0 : i64, scratch_operands = 0 : i64, tpu.core_type = #tpu.core_type<tc>, window_params = [{transform_indices = @transform_0, window_bounds = array<i64: 1, 6, 6, 128>}, {transform_indices = @transform_1, window_bounds = array<i64: 9, 128, 128>}, {transform_indices = @transform_2, window_bounds = array<i64: 1, 128>}, {transform_indices = @transform_3, window_bounds = array<i64: 1, 4, 4, 128>}, {transform_indices = @transform_4, window_bounds = array<i64: 1, 8, 128>}]} {
    %cst = arith.constant 0.000000e+00 : f32
    %0 = vector.broadcast %cst : f32 to vector<16x128xf32>
    %c0 = arith.constant 0 : index
    %c0_0 = arith.constant 0 : index
    %c0_1 = arith.constant 0 : index
    %c0_2 = arith.constant 0 : index
    %1 = vector.load %arg2[%c0, %c0_0, %c0_1, %c0_2] : memref<1x6x6x128xbf16, #tpu.memory_space<vmem>>, vector<1x4x4x128xbf16>
    %2 = vector.shape_cast %1 : vector<1x4x4x128xbf16> to vector<4x4x128xbf16>
    %3 = vector.shape_cast %2 : vector<4x4x128xbf16> to vector<16x128xbf16>
    %c0_3 = arith.constant 0 : index
    %c0_4 = arith.constant 0 : index
    %c0_5 = arith.constant 0 : index
    %4 = vector.load %arg3[%c0_3, %c0_4, %c0_5] : memref<9x128x128xbf16, #tpu.memory_space<vmem>>, vector<1x128x128xbf16>
    %5 = vector.shape_cast %4 : vector<1x128x128xbf16> to vector<128x128xbf16>
    %cst_6 = arith.constant dense<0.000000e+00> : vector<16x128xf32>
    %6 = tpu.matmul %3, %5, %cst_6 {dimension_numbers = #tpu.dot_dimension_numbers<[1], [0], [0], [1], [0, 0, 1, 1], [], []>} : vector<16x128xbf16>, vector<128x128xbf16>, vector<16x128xf32> -> vector<16x128xf32>
    %7 = arith.addf %0, %6 : vector<16x128xf32>
    %c0_7 = arith.constant 0 : index
    %c0_8 = arith.constant 0 : index
    %c1 = arith.constant 1 : index
    %c0_9 = arith.constant 0 : index
    %8 = vector.load %arg2[%c0_7, %c0_8, %c1, %c0_9] : memref<1x6x6x128xbf16, #tpu.memory_space<vmem>>, vector<1x4x4x128xbf16>
    %9 = vector.shape_cast %8 : vector<1x4x4x128xbf16> to vector<4x4x128xbf16>
    %10 = vector.shape_cast %9 : vector<4x4x128xbf16> to vector<16x128xbf16>
    %c1_10 = arith.constant 1 : index
    %c0_11 = arith.constant 0 : index
    %c0_12 = arith.constant 0 : index
    %11 = vector.load %arg3[%c1_10, %c0_11, %c0_12] : memref<9x128x128xbf16, #tpu.memory_space<vmem>>, vector<1x128x128xbf16>
    %12 = vector.shape_cast %11 : vector<1x128x128xbf16> to vector<128x128xbf16>
    %cst_13 = arith.constant dense<0.000000e+00> : vector<16x128xf32>
    %13 = tpu.matmul %10, %12, %cst_13 {dimension_numbers = #tpu.dot_dimension_numbers<[1], [0], [0], [1], [0, 0, 1, 1], [], []>} : vector<16x128xbf16>, vector<128x128xbf16>, vector<16x128xf32> -> vector<16x128xf32>
    %14 = arith.addf %7, %13 : vector<16x128xf32>
    %c0_14 = arith.constant 0 : index
    %c0_15 = arith.constant 0 : index
    %c2 = arith.constant 2 : index
    %c0_16 = arith.constant 0 : index
    %15 = vector.load %arg2[%c0_14, %c0_15, %c2, %c0_16] : memref<1x6x6x128xbf16, #tpu.memory_space<vmem>>, vector<1x4x4x128xbf16>
    %16 = vector.shape_cast %15 : vector<1x4x4x128xbf16> to vector<4x4x128xbf16>
    %17 = vector.shape_cast %16 : vector<4x4x128xbf16> to vector<16x128xbf16>
    %c2_17 = arith.constant 2 : index
    %c0_18 = arith.constant 0 : index
    %c0_19 = arith.constant 0 : index
    %18 = vector.load %arg3[%c2_17, %c0_18, %c0_19] : memref<9x128x128xbf16, #tpu.memory_space<vmem>>, vector<1x128x128xbf16>
    %19 = vector.shape_cast %18 : vector<1x128x128xbf16> to vector<128x128xbf16>
    %cst_20 = arith.constant dense<0.000000e+00> : vector<16x128xf32>
    %20 = tpu.matmul %17, %19, %cst_20 {dimension_numbers = #tpu.dot_dimension_numbers<[1], [0], [0], [1], [0, 0, 1, 1], [], []>} : vector<16x128xbf16>, vector<128x128xbf16>, vector<16x128xf32> -> vector<16x128xf32>
    %21 = arith.addf %14, %20 : vector<16x128xf32>
    %c0_21 = arith.constant 0 : index
    %c1_22 = arith.constant 1 : index
    %c0_23 = arith.constant 0 : index
    %c0_24 = arith.constant 0 : index
    %22 = vector.load %arg2[%c0_21, %c1_22, %c0_23, %c0_24] : memref<1x6x6x128xbf16, #tpu.memory_space<vmem>>, vector<1x4x4x128xbf16>
    %23 = vector.shape_cast %22 : vector<1x4x4x128xbf16> to vector<4x4x128xbf16>
    %24 = vector.shape_cast %23 : vector<4x4x128xbf16> to vector<16x128xbf16>
    %c3 = arith.constant 3 : index
    %c0_25 = arith.constant 0 : index
    %c0_26 = arith.constant 0 : index
    %25 = vector.load %arg3[%c3, %c0_25, %c0_26] : memref<9x128x128xbf16, #tpu.memory_space<vmem>>, vector<1x128x128xbf16>
    %26 = vector.shape_cast %25 : vector<1x128x128xbf16> to vector<128x128xbf16>
    %cst_27 = arith.constant dense<0.000000e+00> : vector<16x128xf32>
    %27 = tpu.matmul %24, %26, %cst_27 {dimension_numbers = #tpu.dot_dimension_numbers<[1], [0], [0], [1], [0, 0, 1, 1], [], []>} : vector<16x128xbf16>, vector<128x128xbf16>, vector<16x128xf32> -> vector<16x128xf32>
    %28 = arith.addf %21, %27 : vector<16x128xf32>
    %c0_28 = arith.constant 0 : index
    %c1_29 = arith.constant 1 : index
    %c1_30 = arith.constant 1 : index
    %c0_31 = arith.constant 0 : index
    %29 = vector.load %arg2[%c0_28, %c1_29, %c1_30, %c0_31] : memref<1x6x6x128xbf16, #tpu.memory_space<vmem>>, vector<1x4x4x128xbf16>
    %30 = vector.shape_cast %29 : vector<1x4x4x128xbf16> to vector<4x4x128xbf16>
    %31 = vector.shape_cast %30 : vector<4x4x128xbf16> to vector<16x128xbf16>
    %c4 = arith.constant 4 : index
    %c0_32 = arith.constant 0 : index
    %c0_33 = arith.constant 0 : index
    %32 = vector.load %arg3[%c4, %c0_32, %c0_33] : memref<9x128x128xbf16, #tpu.memory_space<vmem>>, vector<1x128x128xbf16>
    %33 = vector.shape_cast %32 : vector<1x128x128xbf16> to vector<128x128xbf16>
    %cst_34 = arith.constant dense<0.000000e+00> : vector<16x128xf32>
    %34 = tpu.matmul %31, %33, %cst_34 {dimension_numbers = #tpu.dot_dimension_numbers<[1], [0], [0], [1], [0, 0, 1, 1], [], []>} : vector<16x128xbf16>, vector<128x128xbf16>, vector<16x128xf32> -> vector<16x128xf32>
    %35 = arith.addf %28, %34 : vector<16x128xf32>
    %c0_35 = arith.constant 0 : index
    %c1_36 = arith.constant 1 : index
    %c2_37 = arith.constant 2 : index
    %c0_38 = arith.constant 0 : index
    %36 = vector.load %arg2[%c0_35, %c1_36, %c2_37, %c0_38] : memref<1x6x6x128xbf16, #tpu.memory_space<vmem>>, vector<1x4x4x128xbf16>
    %37 = vector.shape_cast %36 : vector<1x4x4x128xbf16> to vector<4x4x128xbf16>
    %38 = vector.shape_cast %37 : vector<4x4x128xbf16> to vector<16x128xbf16>
    %c5 = arith.constant 5 : index
    %c0_39 = arith.constant 0 : index
    %c0_40 = arith.constant 0 : index
    %39 = vector.load %arg3[%c5, %c0_39, %c0_40] : memref<9x128x128xbf16, #tpu.memory_space<vmem>>, vector<1x128x128xbf16>
    %40 = vector.shape_cast %39 : vector<1x128x128xbf16> to vector<128x128xbf16>
    %cst_41 = arith.constant dense<0.000000e+00> : vector<16x128xf32>
    %41 = tpu.matmul %38, %40, %cst_41 {dimension_numbers = #tpu.dot_dimension_numbers<[1], [0], [0], [1], [0, 0, 1, 1], [], []>} : vector<16x128xbf16>, vector<128x128xbf16>, vector<16x128xf32> -> vector<16x128xf32>
    %42 = arith.addf %35, %41 : vector<16x128xf32>
    %c0_42 = arith.constant 0 : index
    %c2_43 = arith.constant 2 : index
    %c0_44 = arith.constant 0 : index
    %c0_45 = arith.constant 0 : index
    %43 = vector.load %arg2[%c0_42, %c2_43, %c0_44, %c0_45] : memref<1x6x6x128xbf16, #tpu.memory_space<vmem>>, vector<1x4x4x128xbf16>
    %44 = vector.shape_cast %43 : vector<1x4x4x128xbf16> to vector<4x4x128xbf16>
    %45 = vector.shape_cast %44 : vector<4x4x128xbf16> to vector<16x128xbf16>
    %c6 = arith.constant 6 : index
    %c0_46 = arith.constant 0 : index
    %c0_47 = arith.constant 0 : index
    %46 = vector.load %arg3[%c6, %c0_46, %c0_47] : memref<9x128x128xbf16, #tpu.memory_space<vmem>>, vector<1x128x128xbf16>
    %47 = vector.shape_cast %46 : vector<1x128x128xbf16> to vector<128x128xbf16>
    %cst_48 = arith.constant dense<0.000000e+00> : vector<16x128xf32>
    %48 = tpu.matmul %45, %47, %cst_48 {dimension_numbers = #tpu.dot_dimension_numbers<[1], [0], [0], [1], [0, 0, 1, 1], [], []>} : vector<16x128xbf16>, vector<128x128xbf16>, vector<16x128xf32> -> vector<16x128xf32>
    %49 = arith.addf %42, %48 : vector<16x128xf32>
    %c0_49 = arith.constant 0 : index
    %c2_50 = arith.constant 2 : index
    %c1_51 = arith.constant 1 : index
    %c0_52 = arith.constant 0 : index
    %50 = vector.load %arg2[%c0_49, %c2_50, %c1_51, %c0_52] : memref<1x6x6x128xbf16, #tpu.memory_space<vmem>>, vector<1x4x4x128xbf16>
    %51 = vector.shape_cast %50 : vector<1x4x4x128xbf16> to vector<4x4x128xbf16>
    %52 = vector.shape_cast %51 : vector<4x4x128xbf16> to vector<16x128xbf16>
    %c7 = arith.constant 7 : index
    %c0_53 = arith.constant 0 : index
    %c0_54 = arith.constant 0 : index
    %53 = vector.load %arg3[%c7, %c0_53, %c0_54] : memref<9x128x128xbf16, #tpu.memory_space<vmem>>, vector<1x128x128xbf16>
    %54 = vector.shape_cast %53 : vector<1x128x128xbf16> to vector<128x128xbf16>
    %cst_55 = arith.constant dense<0.000000e+00> : vector<16x128xf32>
    %55 = tpu.matmul %52, %54, %cst_55 {dimension_numbers = #tpu.dot_dimension_numbers<[1], [0], [0], [1], [0, 0, 1, 1], [], []>} : vector<16x128xbf16>, vector<128x128xbf16>, vector<16x128xf32> -> vector<16x128xf32>
    %56 = arith.addf %49, %55 : vector<16x128xf32>
    %c0_56 = arith.constant 0 : index
    %c2_57 = arith.constant 2 : index
    %c2_58 = arith.constant 2 : index
    %c0_59 = arith.constant 0 : index
    %57 = vector.load %arg2[%c0_56, %c2_57, %c2_58, %c0_59] : memref<1x6x6x128xbf16, #tpu.memory_space<vmem>>, vector<1x4x4x128xbf16>
    %58 = vector.shape_cast %57 : vector<1x4x4x128xbf16> to vector<4x4x128xbf16>
    %59 = vector.shape_cast %58 : vector<4x4x128xbf16> to vector<16x128xbf16>
    %c8 = arith.constant 8 : index
    %c0_60 = arith.constant 0 : index
    %c0_61 = arith.constant 0 : index
    %60 = vector.load %arg3[%c8, %c0_60, %c0_61] : memref<9x128x128xbf16, #tpu.memory_space<vmem>>, vector<1x128x128xbf16>
    %61 = vector.shape_cast %60 : vector<1x128x128xbf16> to vector<128x128xbf16>
    %cst_62 = arith.constant dense<0.000000e+00> : vector<16x128xf32>
    %62 = tpu.matmul %59, %61, %cst_62 {dimension_numbers = #tpu.dot_dimension_numbers<[1], [0], [0], [1], [0, 0, 1, 1], [], []>} : vector<16x128xbf16>, vector<128x128xbf16>, vector<16x128xf32> -> vector<16x128xf32>
    %63 = arith.addf %56, %62 : vector<16x128xf32>
    %c0_63 = arith.constant 0 : index
    %c0_64 = arith.constant 0 : index
    %64 = vector.load %arg4[%c0_63, %c0_64] : memref<1x128xf32, #tpu.memory_space<vmem>>, vector<1x128xf32>
    %65 = vector.broadcast %64 : vector<1x128xf32> to vector<16x128xf32>
    %66 = arith.addf %63, %65 : vector<16x128xf32>
    %67 = vector.shape_cast %66 : vector<16x128xf32> to vector<1x4x4x128xf32>
    %68 = arith.truncf %67 : vector<1x4x4x128xf32> to vector<1x4x4x128xbf16>
    %c0_65 = arith.constant 0 : index
    %c0_66 = arith.constant 0 : index
    %c0_67 = arith.constant 0 : index
    %c0_68 = arith.constant 0 : index
    %69 = vector.load %arg5[%c0_65, %c0_66, %c0_67, %c0_68] : memref<1x4x4x128xbf16, #tpu.memory_space<vmem>>, vector<1x4x4x128xbf16>
    tpu.vector_store %arg5[%c0_65, %c0_66, %c0_67, %c0_68], %68 {strides = array<i32>} : memref<1x4x4x128xbf16, #tpu.memory_space<vmem>>, vector<1x4x4x128xbf16>,
    %cst_69 = arith.constant dense<0.000000e+00> : vector<128xf32>
    %70 = vector.multi_reduction <add>, %66, %cst_69 [0] : vector<16x128xf32> to vector<128xf32>
    %71 = vector.shape_cast %70 : vector<128xf32> to vector<1x128xf32>
    %72 = arith.mulf %66, %66 : vector<16x128xf32>
    %cst_70 = arith.constant dense<0.000000e+00> : vector<128xf32>
    %73 = vector.multi_reduction <add>, %72, %cst_70 [0] : vector<16x128xf32> to vector<128xf32>
    %74 = vector.shape_cast %73 : vector<128xf32> to vector<1x128xf32>
    %75 = tpu.iota {dimensions = array<i32: 0>} : vector<8x128xi32>
    %c0_i32 = arith.constant 0 : i32
    %76 = vector.broadcast %c0_i32 : i32 to vector<8x128xi32>
    %77 = arith.cmpi eq, %75, %76 : vector<8x128xi32>
    %c1_i32 = arith.constant 1 : i32
    %78 = vector.broadcast %c1_i32 : i32 to vector<8x128xi32>
    %79 = arith.cmpi eq, %75, %78 : vector<8x128xi32>
    %cst_71 = arith.constant 0.000000e+00 : f32
    %80 = vector.shape_cast %74 : vector<1x128xf32> to vector<1x128xf32>
    %81 = vector.broadcast %80 : vector<1x128xf32> to vector<8x128xf32>
    %82 = vector.broadcast %cst_71 : f32 to vector<8x128xf32>
    %83 = arith.select %79, %81, %82 : vector<8x128xi1>, vector<8x128xf32>
    %84 = vector.shape_cast %71 : vector<1x128xf32> to vector<1x128xf32>
    %85 = vector.broadcast %84 : vector<1x128xf32> to vector<8x128xf32>
    %86 = arith.select %77, %85, %83 : vector<8x128xi1>, vector<8x128xf32>
    %87 = vector.shape_cast %86 : vector<8x128xf32> to vector<1x8x128xf32>
    %c0_72 = arith.constant 0 : index
    %c0_73 = arith.constant 0 : index
    %c0_74 = arith.constant 0 : index
    %88 = vector.load %arg6[%c0_72, %c0_73, %c0_74] : memref<1x8x128xf32, #tpu.memory_space<vmem>>, vector<1x8x128xf32>
    tpu.vector_store %arg6[%c0_72, %c0_73, %c0_74], %87 {strides = array<i32>} : memref<1x8x128xf32, #tpu.memory_space<vmem>>, vector<1x8x128xf32>,
    return
  }
  func.func @transform_0(%arg0: i32, %arg1: i32) -> (i32, i32, i32, i32) {
    %c0_i32 = arith.constant 0 : i32
    %c0_i32_0 = arith.constant 0 : i32
    %c0_i32_1 = arith.constant 0 : i32
    %c0_i32_2 = arith.constant 0 : i32
    return %arg0, %c0_i32, %c0_i32_0, %c0_i32_1 : i32, i32, i32, i32
  }
  func.func @transform_1(%arg0: i32, %arg1: i32) -> (i32, i32, i32) {
    %c0_i32 = arith.constant 0 : i32
    %c0_i32_0 = arith.constant 0 : i32
    %c0_i32_1 = arith.constant 0 : i32
    return %c0_i32, %c0_i32_0, %arg1 : i32, i32, i32
  }
  func.func @transform_2(%arg0: i32, %arg1: i32) -> (i32, i32) {
    %c0_i32 = arith.constant 0 : i32
    %c0_i32_0 = arith.constant 0 : i32
    return %c0_i32, %arg1 : i32, i32
  }
  func.func @transform_3(%arg0: i32, %arg1: i32) -> (i32, i32, i32, i32) {
    %c0_i32 = arith.constant 0 : i32
    %c0_i32_0 = arith.constant 0 : i32
    %c0_i32_1 = arith.constant 0 : i32
    return %arg0, %c0_i32, %c0_i32_0, %arg1 : i32, i32, i32, i32
  }
  func.func @transform_4(%arg0: i32, %arg1: i32) -> (i32, i32, i32) {
    %c0_i32 = arith.constant 0 : i32
    %c0_i32_0 = arith.constant 0 : i32
    return %arg0, %c0_i32, %arg1 : i32, i32, i32
  }
}

module attributes {stable_mosaic.version = 11 : i64} {
  func.func @_mm_kernel(%arg0: i32, %arg1: i32, %arg2: i32, %arg3: memref<128x128xbf16, #tpu.memory_space<vmem>>, %arg4: memref<128x128xbf16, #tpu.memory_space<vmem>>, %arg5: memref<1x128xf32, #tpu.memory_space<vmem>>, %arg6: memref<128x128xbf16, #tpu.memory_space<vmem>>, %arg7: memref<1x8x128xf32, #tpu.memory_space<vmem>>) attributes {dimension_semantics = [#tpu.dimension_semantics<parallel>, #tpu.dimension_semantics<parallel>, #tpu.dimension_semantics<arbitrary>], iteration_bounds = array<i64: 1, 1, 1>, scalar_prefetch = 0 : i64, scratch_operands = 0 : i64, tpu.core_type = #tpu.core_type<tc>, window_params = [{transform_indices = @transform_0, window_bounds = array<i64: 128, 128>}, {transform_indices = @transform_1, window_bounds = array<i64: 128, 128>}, {transform_indices = @transform_2, window_bounds = array<i64: 1, 128>}, {transform_indices = @transform_3, window_bounds = array<i64: 128, 128>}, {transform_indices = @transform_4, window_bounds = array<i64: 1, 8, 128>}]} {
    %c0 = arith.constant 0 : index
    %c0_0 = arith.constant 0 : index
    %0 = vector.load %arg3[%c0, %c0_0] : memref<128x128xbf16, #tpu.memory_space<vmem>>, vector<128x128xbf16>
    %c0_1 = arith.constant 0 : index
    %c0_2 = arith.constant 0 : index
    %1 = vector.load %arg4[%c0_1, %c0_2] : memref<128x128xbf16, #tpu.memory_space<vmem>>, vector<128x128xbf16>
    %cst = arith.constant dense<0.000000e+00> : vector<128x128xf32>
    %2 = tpu.matmul %0, %1, %cst {dimension_numbers = #tpu.dot_dimension_numbers<[1], [0], [0], [1], [0, 0, 1, 1], [], []>} : vector<128x128xbf16>, vector<128x128xbf16>, vector<128x128xf32> -> vector<128x128xf32>
    %c0_3 = arith.constant 0 : index
    %c0_4 = arith.constant 0 : index
    %3 = vector.load %arg5[%c0_3, %c0_4] : memref<1x128xf32, #tpu.memory_space<vmem>>, vector<1x128xf32>
    %4 = vector.broadcast %3 : vector<1x128xf32> to vector<128x128xf32>
    %5 = arith.addf %2, %4 : vector<128x128xf32>
    %c0_i32 = arith.constant 0 : i32
    %6 = arith.cmpi ne, %arg1, %c0_i32 : i32
    %7 = arith.extui %6 : i1 to i32
    %c0_i32_5 = arith.constant 0 : i32
    %8 = arith.cmpi ne, %7, %c0_i32_5 : i32
    scf.if %8 {
      %12 = arith.truncf %5 : vector<128x128xf32> to vector<128x128xbf16>
      %c0_8 = arith.constant 0 : index
      %c0_9 = arith.constant 0 : index
      %13 = vector.load %arg6[%c0_8, %c0_9] : memref<128x128xbf16, #tpu.memory_space<vmem>>, vector<128x128xbf16>
      tpu.vector_store %arg6[%c0_8, %c0_9], %12 {strides = array<i32>} : memref<128x128xbf16, #tpu.memory_space<vmem>>, vector<128x128xbf16>,
      %cst_10 = arith.constant dense<0.000000e+00> : vector<128xf32>
      %14 = vector.multi_reduction <add>, %5, %cst_10 [0] : vector<128x128xf32> to vector<128xf32>
      %15 = vector.shape_cast %14 : vector<128xf32> to vector<1x128xf32>
      %16 = arith.mulf %5, %5 : vector<128x128xf32>
      %cst_11 = arith.constant dense<0.000000e+00> : vector<128xf32>
      %17 = vector.multi_reduction <add>, %16, %cst_11 [0] : vector<128x128xf32> to vector<128xf32>
      %18 = vector.shape_cast %17 : vector<128xf32> to vector<1x128xf32>
      %19 = tpu.iota {dimensions = array<i32: 0>} : vector<8x128xi32>
      %c0_i32_12 = arith.constant 0 : i32
      %20 = vector.broadcast %c0_i32_12 : i32 to vector<8x128xi32>
      %21 = arith.cmpi eq, %19, %20 : vector<8x128xi32>
      %c1_i32 = arith.constant 1 : i32
      %22 = vector.broadcast %c1_i32 : i32 to vector<8x128xi32>
      %23 = arith.cmpi eq, %19, %22 : vector<8x128xi32>
      %cst_13 = arith.constant 0.000000e+00 : f32
      %24 = vector.shape_cast %18 : vector<1x128xf32> to vector<1x128xf32>
      %25 = vector.broadcast %24 : vector<1x128xf32> to vector<8x128xf32>
      %26 = vector.broadcast %cst_13 : f32 to vector<8x128xf32>
      %27 = arith.select %23, %25, %26 : vector<8x128xi1>, vector<8x128xf32>
      %28 = vector.shape_cast %15 : vector<1x128xf32> to vector<1x128xf32>
      %29 = vector.broadcast %28 : vector<1x128xf32> to vector<8x128xf32>
      %30 = arith.select %21, %29, %27 : vector<8x128xi1>, vector<8x128xf32>
      %31 = vector.shape_cast %30 : vector<8x128xf32> to vector<1x8x128xf32>
      %c0_14 = arith.constant 0 : index
      %c0_15 = arith.constant 0 : index
      %c0_16 = arith.constant 0 : index
      %32 = vector.load %arg7[%c0_14, %c0_15, %c0_16] : memref<1x8x128xf32, #tpu.memory_space<vmem>>, vector<1x8x128xf32>
      tpu.vector_store %arg7[%c0_14, %c0_15, %c0_16], %31 {strides = array<i32>} : memref<1x8x128xf32, #tpu.memory_space<vmem>>, vector<1x8x128xf32>,
    } else {
    }
    %c0_i32_6 = arith.constant 0 : i32
    %9 = arith.cmpi eq, %arg1, %c0_i32_6 : i32
    %10 = arith.extui %9 : i1 to i32
    %c0_i32_7 = arith.constant 0 : i32
    %11 = arith.cmpi ne, %10, %c0_i32_7 : i32
    scf.if %11 {
      %12 = tpu.iota {dimensions = array<i32: 0>} : vector<128x1xi32>
      %c8_i32 = arith.constant 8 : i32
      %13 = vector.broadcast %c8_i32 : i32 to vector<128x1xi32>
      %14 = arith.cmpi slt, %12, %13 : vector<128x1xi32>
      %cst_8 = arith.constant 0.000000e+00 : f32
      %15 = vector.shape_cast %14 : vector<128x1xi1> to vector<128x1xi1>
      %16 = vector.broadcast %15 : vector<128x1xi1> to vector<128x128xi1>
      %17 = vector.broadcast %cst_8 : f32 to vector<128x128xf32>
      %18 = arith.select %16, %5, %17 : vector<128x128xi1>, vector<128x128xf32>
      %19 = arith.truncf %18 : vector<128x128xf32> to vector<128x128xbf16>
      %c0_9 = arith.constant 0 : index
      %c0_10 = arith.constant 0 : index
      %20 = vector.load %arg6[%c0_9, %c0_10] : memref<128x128xbf16, #tpu.memory_space<vmem>>, vector<128x128xbf16>
      tpu.vector_store %arg6[%c0_9, %c0_10], %19 {strides = array<i32>} : memref<128x128xbf16, #tpu.memory_space<vmem>>, vector<128x128xbf16>,
      %cst_11 = arith.constant dense<0.000000e+00> : vector<128xf32>
      %21 = vector.multi_reduction <add>, %18, %cst_11 [0] : vector<128x128xf32> to vector<128xf32>
      %22 = vector.shape_cast %21 : vector<128xf32> to vector<1x128xf32>
      %23 = arith.mulf %18, %18 : vector<128x128xf32>
      %cst_12 = arith.constant dense<0.000000e+00> : vector<128xf32>
      %24 = vector.multi_reduction <add>, %23, %cst_12 [0] : vector<128x128xf32> to vector<128xf32>
      %25 = vector.shape_cast %24 : vector<128xf32> to vector<1x128xf32>
      %26 = tpu.iota {dimensions = array<i32: 0>} : vector<8x128xi32>
      %c0_i32_13 = arith.constant 0 : i32
      %27 = vector.broadcast %c0_i32_13 : i32 to vector<8x128xi32>
      %28 = arith.cmpi eq, %26, %27 : vector<8x128xi32>
      %c1_i32 = arith.constant 1 : i32
      %29 = vector.broadcast %c1_i32 : i32 to vector<8x128xi32>
      %30 = arith.cmpi eq, %26, %29 : vector<8x128xi32>
      %cst_14 = arith.constant 0.000000e+00 : f32
      %31 = vector.shape_cast %25 : vector<1x128xf32> to vector<1x128xf32>
      %32 = vector.broadcast %31 : vector<1x128xf32> to vector<8x128xf32>
      %33 = vector.broadcast %cst_14 : f32 to vector<8x128xf32>
      %34 = arith.select %30, %32, %33 : vector<8x128xi1>, vector<8x128xf32>
      %35 = vector.shape_cast %22 : vector<1x128xf32> to vector<1x128xf32>
      %36 = vector.broadcast %35 : vector<1x128xf32> to vector<8x128xf32>
      %37 = arith.select %28, %36, %34 : vector<8x128xi1>, vector<8x128xf32>
      %38 = vector.shape_cast %37 : vector<8x128xf32> to vector<1x8x128xf32>
      %c0_15 = arith.constant 0 : index
      %c0_16 = arith.constant 0 : index
      %c0_17 = arith.constant 0 : index
      %39 = vector.load %arg7[%c0_15, %c0_16, %c0_17] : memref<1x8x128xf32, #tpu.memory_space<vmem>>, vector<1x8x128xf32>
      tpu.vector_store %arg7[%c0_15, %c0_16, %c0_17], %38 {strides = array<i32>} : memref<1x8x128xf32, #tpu.memory_space<vmem>>, vector<1x8x128xf32>,
    } else {
    }
    return
  }
  func.func @transform_0(%arg0: i32, %arg1: i32, %arg2: i32) -> (i32, i32) {
    %c0_i32 = arith.constant 0 : i32
    return %arg1, %arg2 : i32, i32
  }
  func.func @transform_1(%arg0: i32, %arg1: i32, %arg2: i32) -> (i32, i32) {
    %c0_i32 = arith.constant 0 : i32
    return %arg2, %arg0 : i32, i32
  }
  func.func @transform_2(%arg0: i32, %arg1: i32, %arg2: i32) -> (i32, i32) {
    %c0_i32 = arith.constant 0 : i32
    %c0_i32_0 = arith.constant 0 : i32
    return %c0_i32, %arg0 : i32, i32
  }
  func.func @transform_3(%arg0: i32, %arg1: i32, %arg2: i32) -> (i32, i32) {
    %c0_i32 = arith.constant 0 : i32
    return %arg1, %arg0 : i32, i32
  }
  func.func @transform_4(%arg0: i32, %arg1: i32, %arg2: i32) -> (i32, i32, i32) {
    %c0_i32 = arith.constant 0 : i32
    %c0_i32_0 = arith.constant 0 : i32
    return %arg1, %c0_i32, %arg0 : i32, i32, i32
  }
}

module attributes {stable_mosaic.version = 11 : i64} {
  func.func @kern(%arg0: i32, %arg1: i32, %arg2: memref<1x4x4x128xbf16, #tpu.memory_space<vmem>>, %arg3: memref<9x128x128xbf16, #tpu.memory_space<vmem>>, %arg4: memref<1x128xf32, #tpu.memory_space<vmem>>, %arg5: memref<1x2x2x128xbf16, #tpu.memory_space<vmem>>, %arg6: memref<1x8x128xf32, #tpu.memory_space<vmem>>) attributes {dimension_semantics = [#tpu.dimension_semantics<parallel>, #tpu.dimension_semantics<parallel>], iteration_bounds = array<i64: 2, 1>, scalar_prefetch = 0 : i64, scratch_operands = 0 : i64, tpu.core_type = #tpu.core_type<tc>, window_params = [{transform_indices = @transform_0, window_bounds = array<i64: 1, 4, 4, 128>}, {transform_indices = @transform_1, window_bounds = array<i64: 9, 128, 128>}, {transform_indices = @transform_2, window_bounds = array<i64: 1, 128>}, {transform_indices = @transform_3, window_bounds = array<i64: 1, 2, 2, 128>}, {transform_indices = @transform_4, window_bounds = array<i64: 1, 8, 128>}]} {
    %cst = arith.constant 0.000000e+00 : f32
    %0 = vector.broadcast %cst : f32 to vector<4x128xf32>
    %c0 = arith.constant 0 : index
    %c0_0 = arith.constant 0 : index
    %c0_1 = arith.constant 0 : index
    %c0_2 = arith.constant 0 : index
    %1 = vector.load %arg2[%c0, %c0_0, %c0_1, %c0_2] : memref<1x4x4x128xbf16, #tpu.memory_space<vmem>>, vector<1x2x2x128xbf16>
    %2 = vector.shape_cast %1 : vector<1x2x2x128xbf16> to vector<2x2x128xbf16>
    %3 = vector.shape_cast %2 : vector<2x2x128xbf16> to vector<4x128xbf16>
    %c0_3 = arith.constant 0 : index
    %c0_4 = arith.constant 0 : index
    %c0_5 = arith.constant 0 : index
    %4 = vector.load %arg3[%c0_3, %c0_4, %c0_5] : memref<9x128x128xbf16, #tpu.memory_space<vmem>>, vector<1x128x128xbf16>
    %5 = vector.shape_cast %4 : vector<1x128x128xbf16> to vector<128x128xbf16>
    %cst_6 = arith.constant dense<0.000000e+00> : vector<4x128xf32>
    %6 = tpu.matmul %3, %5, %cst_6 {dimension_numbers = #tpu.dot_dimension_numbers<[1], [0], [0], [1], [0, 0, 1, 1], [], []>} : vector<4x128xbf16>, vector<128x128xbf16>, vector<4x128xf32> -> vector<4x128xf32>
    %7 = arith.addf %0, %6 : vector<4x128xf32>
    %c0_7 = arith.constant 0 : index
    %c0_8 = arith.constant 0 : index
    %c1 = arith.constant 1 : index
    %c0_9 = arith.constant 0 : index
    %8 = vector.load %arg2[%c0_7, %c0_8, %c1, %c0_9] : memref<1x4x4x128xbf16, #tpu.memory_space<vmem>>, vector<1x2x2x128xbf16>
    %9 = vector.shape_cast %8 : vector<1x2x2x128xbf16> to vector<2x2x128xbf16>
    %10 = vector.shape_cast %9 : vector<2x2x128xbf16> to vector<4x128xbf16>
    %c1_10 = arith.constant 1 : index
    %c0_11 = arith.constant 0 : index
    %c0_12 = arith.constant 0 : index
    %11 = vector.load %arg3[%c1_10, %c0_11, %c0_12] : memref<9x128x128xbf16, #tpu.memory_space<vmem>>, vector<1x128x128xbf16>
    %12 = vector.shape_cast %11 : vector<1x128x128xbf16> to vector<128x128xbf16>
    %cst_13 = arith.constant dense<0.000000e+00> : vector<4x128xf32>
    %13 = tpu.matmul %10, %12, %cst_13 {dimension_numbers = #tpu.dot_dimension_numbers<[1], [0], [0], [1], [0, 0, 1, 1], [], []>} : vector<4x128xbf16>, vector<128x128xbf16>, vector<4x128xf32> -> vector<4x128xf32>
    %14 = arith.addf %7, %13 : vector<4x128xf32>
    %c0_14 = arith.constant 0 : index
    %c0_15 = arith.constant 0 : index
    %c2 = arith.constant 2 : index
    %c0_16 = arith.constant 0 : index
    %15 = vector.load %arg2[%c0_14, %c0_15, %c2, %c0_16] : memref<1x4x4x128xbf16, #tpu.memory_space<vmem>>, vector<1x2x2x128xbf16>
    %16 = vector.shape_cast %15 : vector<1x2x2x128xbf16> to vector<2x2x128xbf16>
    %17 = vector.shape_cast %16 : vector<2x2x128xbf16> to vector<4x128xbf16>
    %c2_17 = arith.constant 2 : index
    %c0_18 = arith.constant 0 : index
    %c0_19 = arith.constant 0 : index
    %18 = vector.load %arg3[%c2_17, %c0_18, %c0_19] : memref<9x128x128xbf16, #tpu.memory_space<vmem>>, vector<1x128x128xbf16>
    %19 = vector.shape_cast %18 : vector<1x128x128xbf16> to vector<128x128xbf16>
    %cst_20 = arith.constant dense<0.000000e+00> : vector<4x128xf32>
    %20 = tpu.matmul %17, %19, %cst_20 {dimension_numbers = #tpu.dot_dimension_numbers<[1], [0], [0], [1], [0, 0, 1, 1], [], []>} : vector<4x128xbf16>, vector<128x128xbf16>, vector<4x128xf32> -> vector<4x128xf32>
    %21 = arith.addf %14, %20 : vector<4x128xf32>
    %c0_21 = arith.constant 0 : index
    %c1_22 = arith.constant 1 : index
    %c0_23 = arith.constant 0 : index
    %c0_24 = arith.constant 0 : index
    %22 = vector.load %arg2[%c0_21, %c1_22, %c0_23, %c0_24] : memref<1x4x4x128xbf16, #tpu.memory_space<vmem>>, vector<1x2x2x128xbf16>
    %23 = vector.shape_cast %22 : vector<1x2x2x128xbf16> to vector<2x2x128xbf16>
    %24 = vector.shape_cast %23 : vector<2x2x128xbf16> to vector<4x128xbf16>
    %c3 = arith.constant 3 : index
    %c0_25 = arith.constant 0 : index
    %c0_26 = arith.constant 0 : index
    %25 = vector.load %arg3[%c3, %c0_25, %c0_26] : memref<9x128x128xbf16, #tpu.memory_space<vmem>>, vector<1x128x128xbf16>
    %26 = vector.shape_cast %25 : vector<1x128x128xbf16> to vector<128x128xbf16>
    %cst_27 = arith.constant dense<0.000000e+00> : vector<4x128xf32>
    %27 = tpu.matmul %24, %26, %cst_27 {dimension_numbers = #tpu.dot_dimension_numbers<[1], [0], [0], [1], [0, 0, 1, 1], [], []>} : vector<4x128xbf16>, vector<128x128xbf16>, vector<4x128xf32> -> vector<4x128xf32>
    %28 = arith.addf %21, %27 : vector<4x128xf32>
    %c0_28 = arith.constant 0 : index
    %c1_29 = arith.constant 1 : index
    %c1_30 = arith.constant 1 : index
    %c0_31 = arith.constant 0 : index
    %29 = vector.load %arg2[%c0_28, %c1_29, %c1_30, %c0_31] : memref<1x4x4x128xbf16, #tpu.memory_space<vmem>>, vector<1x2x2x128xbf16>
    %30 = vector.shape_cast %29 : vector<1x2x2x128xbf16> to vector<2x2x128xbf16>
    %31 = vector.shape_cast %30 : vector<2x2x128xbf16> to vector<4x128xbf16>
    %c4 = arith.constant 4 : index
    %c0_32 = arith.constant 0 : index
    %c0_33 = arith.constant 0 : index
    %32 = vector.load %arg3[%c4, %c0_32, %c0_33] : memref<9x128x128xbf16, #tpu.memory_space<vmem>>, vector<1x128x128xbf16>
    %33 = vector.shape_cast %32 : vector<1x128x128xbf16> to vector<128x128xbf16>
    %cst_34 = arith.constant dense<0.000000e+00> : vector<4x128xf32>
    %34 = tpu.matmul %31, %33, %cst_34 {dimension_numbers = #tpu.dot_dimension_numbers<[1], [0], [0], [1], [0, 0, 1, 1], [], []>} : vector<4x128xbf16>, vector<128x128xbf16>, vector<4x128xf32> -> vector<4x128xf32>
    %35 = arith.addf %28, %34 : vector<4x128xf32>
    %c0_35 = arith.constant 0 : index
    %c1_36 = arith.constant 1 : index
    %c2_37 = arith.constant 2 : index
    %c0_38 = arith.constant 0 : index
    %36 = vector.load %arg2[%c0_35, %c1_36, %c2_37, %c0_38] : memref<1x4x4x128xbf16, #tpu.memory_space<vmem>>, vector<1x2x2x128xbf16>
    %37 = vector.shape_cast %36 : vector<1x2x2x128xbf16> to vector<2x2x128xbf16>
    %38 = vector.shape_cast %37 : vector<2x2x128xbf16> to vector<4x128xbf16>
    %c5 = arith.constant 5 : index
    %c0_39 = arith.constant 0 : index
    %c0_40 = arith.constant 0 : index
    %39 = vector.load %arg3[%c5, %c0_39, %c0_40] : memref<9x128x128xbf16, #tpu.memory_space<vmem>>, vector<1x128x128xbf16>
    %40 = vector.shape_cast %39 : vector<1x128x128xbf16> to vector<128x128xbf16>
    %cst_41 = arith.constant dense<0.000000e+00> : vector<4x128xf32>
    %41 = tpu.matmul %38, %40, %cst_41 {dimension_numbers = #tpu.dot_dimension_numbers<[1], [0], [0], [1], [0, 0, 1, 1], [], []>} : vector<4x128xbf16>, vector<128x128xbf16>, vector<4x128xf32> -> vector<4x128xf32>
    %42 = arith.addf %35, %41 : vector<4x128xf32>
    %c0_42 = arith.constant 0 : index
    %c2_43 = arith.constant 2 : index
    %c0_44 = arith.constant 0 : index
    %c0_45 = arith.constant 0 : index
    %43 = vector.load %arg2[%c0_42, %c2_43, %c0_44, %c0_45] : memref<1x4x4x128xbf16, #tpu.memory_space<vmem>>, vector<1x2x2x128xbf16>
    %44 = vector.shape_cast %43 : vector<1x2x2x128xbf16> to vector<2x2x128xbf16>
    %45 = vector.shape_cast %44 : vector<2x2x128xbf16> to vector<4x128xbf16>
    %c6 = arith.constant 6 : index
    %c0_46 = arith.constant 0 : index
    %c0_47 = arith.constant 0 : index
    %46 = vector.load %arg3[%c6, %c0_46, %c0_47] : memref<9x128x128xbf16, #tpu.memory_space<vmem>>, vector<1x128x128xbf16>
    %47 = vector.shape_cast %46 : vector<1x128x128xbf16> to vector<128x128xbf16>
    %cst_48 = arith.constant dense<0.000000e+00> : vector<4x128xf32>
    %48 = tpu.matmul %45, %47, %cst_48 {dimension_numbers = #tpu.dot_dimension_numbers<[1], [0], [0], [1], [0, 0, 1, 1], [], []>} : vector<4x128xbf16>, vector<128x128xbf16>, vector<4x128xf32> -> vector<4x128xf32>
    %49 = arith.addf %42, %48 : vector<4x128xf32>
    %c0_49 = arith.constant 0 : index
    %c2_50 = arith.constant 2 : index
    %c1_51 = arith.constant 1 : index
    %c0_52 = arith.constant 0 : index
    %50 = vector.load %arg2[%c0_49, %c2_50, %c1_51, %c0_52] : memref<1x4x4x128xbf16, #tpu.memory_space<vmem>>, vector<1x2x2x128xbf16>
    %51 = vector.shape_cast %50 : vector<1x2x2x128xbf16> to vector<2x2x128xbf16>
    %52 = vector.shape_cast %51 : vector<2x2x128xbf16> to vector<4x128xbf16>
    %c7 = arith.constant 7 : index
    %c0_53 = arith.constant 0 : index
    %c0_54 = arith.constant 0 : index
    %53 = vector.load %arg3[%c7, %c0_53, %c0_54] : memref<9x128x128xbf16, #tpu.memory_space<vmem>>, vector<1x128x128xbf16>
    %54 = vector.shape_cast %53 : vector<1x128x128xbf16> to vector<128x128xbf16>
    %cst_55 = arith.constant dense<0.000000e+00> : vector<4x128xf32>
    %55 = tpu.matmul %52, %54, %cst_55 {dimension_numbers = #tpu.dot_dimension_numbers<[1], [0], [0], [1], [0, 0, 1, 1], [], []>} : vector<4x128xbf16>, vector<128x128xbf16>, vector<4x128xf32> -> vector<4x128xf32>
    %56 = arith.addf %49, %55 : vector<4x128xf32>
    %c0_56 = arith.constant 0 : index
    %c2_57 = arith.constant 2 : index
    %c2_58 = arith.constant 2 : index
    %c0_59 = arith.constant 0 : index
    %57 = vector.load %arg2[%c0_56, %c2_57, %c2_58, %c0_59] : memref<1x4x4x128xbf16, #tpu.memory_space<vmem>>, vector<1x2x2x128xbf16>
    %58 = vector.shape_cast %57 : vector<1x2x2x128xbf16> to vector<2x2x128xbf16>
    %59 = vector.shape_cast %58 : vector<2x2x128xbf16> to vector<4x128xbf16>
    %c8 = arith.constant 8 : index
    %c0_60 = arith.constant 0 : index
    %c0_61 = arith.constant 0 : index
    %60 = vector.load %arg3[%c8, %c0_60, %c0_61] : memref<9x128x128xbf16, #tpu.memory_space<vmem>>, vector<1x128x128xbf16>
    %61 = vector.shape_cast %60 : vector<1x128x128xbf16> to vector<128x128xbf16>
    %cst_62 = arith.constant dense<0.000000e+00> : vector<4x128xf32>
    %62 = tpu.matmul %59, %61, %cst_62 {dimension_numbers = #tpu.dot_dimension_numbers<[1], [0], [0], [1], [0, 0, 1, 1], [], []>} : vector<4x128xbf16>, vector<128x128xbf16>, vector<4x128xf32> -> vector<4x128xf32>
    %63 = arith.addf %56, %62 : vector<4x128xf32>
    %c0_63 = arith.constant 0 : index
    %c0_64 = arith.constant 0 : index
    %64 = vector.load %arg4[%c0_63, %c0_64] : memref<1x128xf32, #tpu.memory_space<vmem>>, vector<1x128xf32>
    %65 = vector.broadcast %64 : vector<1x128xf32> to vector<4x128xf32>
    %66 = arith.addf %63, %65 : vector<4x128xf32>
    %67 = vector.shape_cast %66 : vector<4x128xf32> to vector<1x2x2x128xf32>
    %68 = arith.truncf %67 : vector<1x2x2x128xf32> to vector<1x2x2x128xbf16>
    %c0_65 = arith.constant 0 : index
    %c0_66 = arith.constant 0 : index
    %c0_67 = arith.constant 0 : index
    %c0_68 = arith.constant 0 : index
    %69 = vector.load %arg5[%c0_65, %c0_66, %c0_67, %c0_68] : memref<1x2x2x128xbf16, #tpu.memory_space<vmem>>, vector<1x2x2x128xbf16>
    tpu.vector_store %arg5[%c0_65, %c0_66, %c0_67, %c0_68], %68 {strides = array<i32>} : memref<1x2x2x128xbf16, #tpu.memory_space<vmem>>, vector<1x2x2x128xbf16>,
    %cst_69 = arith.constant dense<0.000000e+00> : vector<128xf32>
    %70 = vector.multi_reduction <add>, %66, %cst_69 [0] : vector<4x128xf32> to vector<128xf32>
    %71 = vector.shape_cast %70 : vector<128xf32> to vector<1x128xf32>
    %72 = arith.mulf %66, %66 : vector<4x128xf32>
    %cst_70 = arith.constant dense<0.000000e+00> : vector<128xf32>
    %73 = vector.multi_reduction <add>, %72, %cst_70 [0] : vector<4x128xf32> to vector<128xf32>
    %74 = vector.shape_cast %73 : vector<128xf32> to vector<1x128xf32>
    %75 = tpu.iota {dimensions = array<i32: 0>} : vector<8x128xi32>
    %c0_i32 = arith.constant 0 : i32
    %76 = vector.broadcast %c0_i32 : i32 to vector<8x128xi32>
    %77 = arith.cmpi eq, %75, %76 : vector<8x128xi32>
    %c1_i32 = arith.constant 1 : i32
    %78 = vector.broadcast %c1_i32 : i32 to vector<8x128xi32>
    %79 = arith.cmpi eq, %75, %78 : vector<8x128xi32>
    %cst_71 = arith.constant 0.000000e+00 : f32
    %80 = vector.shape_cast %74 : vector<1x128xf32> to vector<1x128xf32>
    %81 = vector.broadcast %80 : vector<1x128xf32> to vector<8x128xf32>
    %82 = vector.broadcast %cst_71 : f32 to vector<8x128xf32>
    %83 = arith.select %79, %81, %82 : vector<8x128xi1>, vector<8x128xf32>
    %84 = vector.shape_cast %71 : vector<1x128xf32> to vector<1x128xf32>
    %85 = vector.broadcast %84 : vector<1x128xf32> to vector<8x128xf32>
    %86 = arith.select %77, %85, %83 : vector<8x128xi1>, vector<8x128xf32>
    %87 = vector.shape_cast %86 : vector<8x128xf32> to vector<1x8x128xf32>
    %c0_72 = arith.constant 0 : index
    %c0_73 = arith.constant 0 : index
    %c0_74 = arith.constant 0 : index
    %88 = vector.load %arg6[%c0_72, %c0_73, %c0_74] : memref<1x8x128xf32, #tpu.memory_space<vmem>>, vector<1x8x128xf32>
    tpu.vector_store %arg6[%c0_72, %c0_73, %c0_74], %87 {strides = array<i32>} : memref<1x8x128xf32, #tpu.memory_space<vmem>>, vector<1x8x128xf32>,
    return
  }
  func.func @transform_0(%arg0: i32, %arg1: i32) -> (i32, i32, i32, i32) {
    %c0_i32 = arith.constant 0 : i32
    %c0_i32_0 = arith.constant 0 : i32
    %c0_i32_1 = arith.constant 0 : i32
    %c0_i32_2 = arith.constant 0 : i32
    return %arg0, %c0_i32, %c0_i32_0, %c0_i32_1 : i32, i32, i32, i32
  }
  func.func @transform_1(%arg0: i32, %arg1: i32) -> (i32, i32, i32) {
    %c0_i32 = arith.constant 0 : i32
    %c0_i32_0 = arith.constant 0 : i32
    %c0_i32_1 = arith.constant 0 : i32
    return %c0_i32, %c0_i32_0, %arg1 : i32, i32, i32
  }
  func.func @transform_2(%arg0: i32, %arg1: i32) -> (i32, i32) {
    %c0_i32 = arith.constant 0 : i32
    %c0_i32_0 = arith.constant 0 : i32
    return %c0_i32, %arg1 : i32, i32
  }
  func.func @transform_3(%arg0: i32, %arg1: i32) -> (i32, i32, i32, i32) {
    %c0_i32 = arith.constant 0 : i32
    %c0_i32_0 = arith.constant 0 : i32
    %c0_i32_1 = arith.constant 0 : i32
    return %arg0, %c0_i32, %c0_i32_0, %arg1 : i32, i32, i32, i32
  }
  func.func @transform_4(%arg0: i32, %arg1: i32) -> (i32, i32, i32) {
    %c0_i32 = arith.constant 0 : i32
    %c0_i32_0 = arith.constant 0 : i32
    return %arg0, %c0_i32, %arg1 : i32, i32, i32
  }
}

module attributes {stable_mosaic.version = 11 : i64} {
  func.func @_mm_kernel(%arg0: i32, %arg1: i32, %arg2: i32, %arg3: memref<128x128xbf16, #tpu.memory_space<vmem>>, %arg4: memref<128x128xbf16, #tpu.memory_space<vmem>>, %arg5: memref<1x128xf32, #tpu.memory_space<vmem>>, %arg6: memref<128x128xbf16, #tpu.memory_space<vmem>>, %arg7: memref<1x8x128xf32, #tpu.memory_space<vmem>>) attributes {dimension_semantics = [#tpu.dimension_semantics<parallel>, #tpu.dimension_semantics<parallel>, #tpu.dimension_semantics<arbitrary>], iteration_bounds = array<i64: 1, 1, 1>, scalar_prefetch = 0 : i64, scratch_operands = 0 : i64, tpu.core_type = #tpu.core_type<tc>, window_params = [{transform_indices = @transform_0, window_bounds = array<i64: 128, 128>}, {transform_indices = @transform_1, window_bounds = array<i64: 128, 128>}, {transform_indices = @transform_2, window_bounds = array<i64: 1, 128>}, {transform_indices = @transform_3, window_bounds = array<i64: 128, 128>}, {transform_indices = @transform_4, window_bounds = array<i64: 1, 8, 128>}]} {
    %c0 = arith.constant 0 : index
    %c0_0 = arith.constant 0 : index
    %0 = vector.load %arg3[%c0, %c0_0] : memref<128x128xbf16, #tpu.memory_space<vmem>>, vector<128x128xbf16>
    %c0_1 = arith.constant 0 : index
    %c0_2 = arith.constant 0 : index
    %1 = vector.load %arg4[%c0_1, %c0_2] : memref<128x128xbf16, #tpu.memory_space<vmem>>, vector<128x128xbf16>
    %cst = arith.constant dense<0.000000e+00> : vector<128x128xf32>
    %2 = tpu.matmul %0, %1, %cst {dimension_numbers = #tpu.dot_dimension_numbers<[1], [0], [0], [1], [0, 0, 1, 1], [], []>} : vector<128x128xbf16>, vector<128x128xbf16>, vector<128x128xf32> -> vector<128x128xf32>
    %c0_3 = arith.constant 0 : index
    %c0_4 = arith.constant 0 : index
    %3 = vector.load %arg5[%c0_3, %c0_4] : memref<1x128xf32, #tpu.memory_space<vmem>>, vector<1x128xf32>
    %4 = vector.broadcast %3 : vector<1x128xf32> to vector<128x128xf32>
    %5 = arith.addf %2, %4 : vector<128x128xf32>
    %c0_i32 = arith.constant 0 : i32
    %6 = arith.cmpi ne, %arg1, %c0_i32 : i32
    %7 = arith.extui %6 : i1 to i32
    %c0_i32_5 = arith.constant 0 : i32
    %8 = arith.cmpi ne, %7, %c0_i32_5 : i32
    scf.if %8 {
      %12 = arith.truncf %5 : vector<128x128xf32> to vector<128x128xbf16>
      %c0_8 = arith.constant 0 : index
      %c0_9 = arith.constant 0 : index
      %13 = vector.load %arg6[%c0_8, %c0_9] : memref<128x128xbf16, #tpu.memory_space<vmem>>, vector<128x128xbf16>
      tpu.vector_store %arg6[%c0_8, %c0_9], %12 {strides = array<i32>} : memref<128x128xbf16, #tpu.memory_space<vmem>>, vector<128x128xbf16>,
      %cst_10 = arith.constant dense<0.000000e+00> : vector<128xf32>
      %14 = vector.multi_reduction <add>, %5, %cst_10 [0] : vector<128x128xf32> to vector<128xf32>
      %15 = vector.shape_cast %14 : vector<128xf32> to vector<1x128xf32>
      %16 = arith.mulf %5, %5 : vector<128x128xf32>
      %cst_11 = arith.constant dense<0.000000e+00> : vector<128xf32>
      %17 = vector.multi_reduction <add>, %16, %cst_11 [0] : vector<128x128xf32> to vector<128xf32>
      %18 = vector.shape_cast %17 : vector<128xf32> to vector<1x128xf32>
      %19 = tpu.iota {dimensions = array<i32: 0>} : vector<8x128xi32>
      %c0_i32_12 = arith.constant 0 : i32
      %20 = vector.broadcast %c0_i32_12 : i32 to vector<8x128xi32>
      %21 = arith.cmpi eq, %19, %20 : vector<8x128xi32>
      %c1_i32 = arith.constant 1 : i32
      %22 = vector.broadcast %c1_i32 : i32 to vector<8x128xi32>
      %23 = arith.cmpi eq, %19, %22 : vector<8x128xi32>
      %cst_13 = arith.constant 0.000000e+00 : f32
      %24 = vector.shape_cast %18 : vector<1x128xf32> to vector<1x128xf32>
      %25 = vector.broadcast %24 : vector<1x128xf32> to vector<8x128xf32>
      %26 = vector.broadcast %cst_13 : f32 to vector<8x128xf32>
      %27 = arith.select %23, %25, %26 : vector<8x128xi1>, vector<8x128xf32>
      %28 = vector.shape_cast %15 : vector<1x128xf32> to vector<1x128xf32>
      %29 = vector.broadcast %28 : vector<1x128xf32> to vector<8x128xf32>
      %30 = arith.select %21, %29, %27 : vector<8x128xi1>, vector<8x128xf32>
      %31 = vector.shape_cast %30 : vector<8x128xf32> to vector<1x8x128xf32>
      %c0_14 = arith.constant 0 : index
      %c0_15 = arith.constant 0 : index
      %c0_16 = arith.constant 0 : index
      %32 = vector.load %arg7[%c0_14, %c0_15, %c0_16] : memref<1x8x128xf32, #tpu.memory_space<vmem>>, vector<1x8x128xf32>
      tpu.vector_store %arg7[%c0_14, %c0_15, %c0_16], %31 {strides = array<i32>} : memref<1x8x128xf32, #tpu.memory_space<vmem>>, vector<1x8x128xf32>,
    } else {
    }
    %c0_i32_6 = arith.constant 0 : i32
    %9 = arith.cmpi eq, %arg1, %c0_i32_6 : i32
    %10 = arith.extui %9 : i1 to i32
    %c0_i32_7 = arith.constant 0 : i32
    %11 = arith.cmpi ne, %10, %c0_i32_7 : i32
    scf.if %11 {
      %12 = tpu.iota {dimensions = array<i32: 0>} : vector<128x1xi32>
      %c2_i32 = arith.constant 2 : i32
      %13 = vector.broadcast %c2_i32 : i32 to vector<128x1xi32>
      %14 = arith.cmpi slt, %12, %13 : vector<128x1xi32>
      %cst_8 = arith.constant 0.000000e+00 : f32
      %15 = vector.shape_cast %14 : vector<128x1xi1> to vector<128x1xi1>
      %16 = vector.broadcast %15 : vector<128x1xi1> to vector<128x128xi1>
      %17 = vector.broadcast %cst_8 : f32 to vector<128x128xf32>
      %18 = arith.select %16, %5, %17 : vector<128x128xi1>, vector<128x128xf32>
      %19 = arith.truncf %18 : vector<128x128xf32> to vector<128x128xbf16>
      %c0_9 = arith.constant 0 : index
      %c0_10 = arith.constant 0 : index
      %20 = vector.load %arg6[%c0_9, %c0_10] : memref<128x128xbf16, #tpu.memory_space<vmem>>, vector<128x128xbf16>
      tpu.vector_store %arg6[%c0_9, %c0_10], %19 {strides = array<i32>} : memref<128x128xbf16, #tpu.memory_space<vmem>>, vector<128x128xbf16>,
      %cst_11 = arith.constant dense<0.000000e+00> : vector<128xf32>
      %21 = vector.multi_reduction <add>, %18, %cst_11 [0] : vector<128x128xf32> to vector<128xf32>
      %22 = vector.shape_cast %21 : vector<128xf32> to vector<1x128xf32>
      %23 = arith.mulf %18, %18 : vector<128x128xf32>
      %cst_12 = arith.constant dense<0.000000e+00> : vector<128xf32>
      %24 = vector.multi_reduction <add>, %23, %cst_12 [0] : vector<128x128xf32> to vector<128xf32>
      %25 = vector.shape_cast %24 : vector<128xf32> to vector<1x128xf32>
      %26 = tpu.iota {dimensions = array<i32: 0>} : vector<8x128xi32>
      %c0_i32_13 = arith.constant 0 : i32
      %27 = vector.broadcast %c0_i32_13 : i32 to vector<8x128xi32>
      %28 = arith.cmpi eq, %26, %27 : vector<8x128xi32>
      %c1_i32 = arith.constant 1 : i32
      %29 = vector.broadcast %c1_i32 : i32 to vector<8x128xi32>
      %30 = arith.cmpi eq, %26, %29 : vector<8x128xi32>
      %cst_14 = arith.constant 0.000000e+00 : f32
      %31 = vector.shape_cast %25 : vector<1x128xf32> to vector<1x128xf32>
      %32 = vector.broadcast %31 : vector<1x128xf32> to vector<8x128xf32>
      %33 = vector.broadcast %cst_14 : f32 to vector<8x128xf32>
      %34 = arith.select %30, %32, %33 : vector<8x128xi1>, vector<8x128xf32>
      %35 = vector.shape_cast %22 : vector<1x128xf32> to vector<1x128xf32>
      %36 = vector.broadcast %35 : vector<1x128xf32> to vector<8x128xf32>
      %37 = arith.select %28, %36, %34 : vector<8x128xi1>, vector<8x128xf32>
      %38 = vector.shape_cast %37 : vector<8x128xf32> to vector<1x8x128xf32>
      %c0_15 = arith.constant 0 : index
      %c0_16 = arith.constant 0 : index
      %c0_17 = arith.constant 0 : index
      %39 = vector.load %arg7[%c0_15, %c0_16, %c0_17] : memref<1x8x128xf32, #tpu.memory_space<vmem>>, vector<1x8x128xf32>
      tpu.vector_store %arg7[%c0_15, %c0_16, %c0_17], %38 {strides = array<i32>} : memref<1x8x128xf32, #tpu.memory_space<vmem>>, vector<1x8x128xf32>,
    } else {
    }
    return
  }
  func.func @transform_0(%arg0: i32, %arg1: i32, %arg2: i32) -> (i32, i32) {
    %c0_i32 = arith.constant 0 : i32
    return %arg1, %arg2 : i32, i32
  }
  func.func @transform_1(%arg0: i32, %arg1: i32, %arg2: i32) -> (i32, i32) {
    %c0_i32 = arith.constant 0 : i32
    return %arg2, %arg0 : i32, i32
  }
  func.func @transform_2(%arg0: i32, %arg1: i32, %arg2: i32) -> (i32, i32) {
    %c0_i32 = arith.constant 0 : i32
    %c0_i32_0 = arith.constant 0 : i32
    return %c0_i32, %arg0 : i32, i32
  }
  func.func @transform_3(%arg0: i32, %arg1: i32, %arg2: i32) -> (i32, i32) {
    %c0_i32 = arith.constant 0 : i32
    return %arg1, %arg0 : i32, i32
  }
  func.func @transform_4(%arg0: i32, %arg1: i32, %arg2: i32) -> (i32, i32, i32) {
    %c0_i32 = arith.constant 0 : i32
    %c0_i32_0 = arith.constant 0 : i32
    return %arg1, %c0_i32, %arg0 : i32, i32, i32
  }
}

module attributes {stable_mosaic.version = 11 : i64} {
  func.func @_mm_kernel(%arg0: i32, %arg1: i32, %arg2: i32, %arg3: memref<128x128xbf16, #tpu.memory_space<vmem>>, %arg4: memref<128x256xbf16, #tpu.memory_space<vmem>>, %arg5: memref<1x256xf32, #tpu.memory_space<vmem>>, %arg6: memref<128x256xbf16, #tpu.memory_space<vmem>>) attributes {dimension_semantics = [#tpu.dimension_semantics<parallel>, #tpu.dimension_semantics<parallel>, #tpu.dimension_semantics<arbitrary>], iteration_bounds = array<i64: 1, 1, 1>, scalar_prefetch = 0 : i64, scratch_operands = 0 : i64, tpu.core_type = #tpu.core_type<tc>, window_params = [{transform_indices = @transform_0, window_bounds = array<i64: 128, 128>}, {transform_indices = @transform_1, window_bounds = array<i64: 128, 256>}, {transform_indices = @transform_2, window_bounds = array<i64: 1, 256>}, {transform_indices = @transform_3, window_bounds = array<i64: 128, 256>}]} {
    %c0 = arith.constant 0 : index
    %c0_0 = arith.constant 0 : index
    %0 = vector.load %arg3[%c0, %c0_0] : memref<128x128xbf16, #tpu.memory_space<vmem>>, vector<128x128xbf16>
    %c0_1 = arith.constant 0 : index
    %c0_2 = arith.constant 0 : index
    %1 = vector.load %arg4[%c0_1, %c0_2] : memref<128x256xbf16, #tpu.memory_space<vmem>>, vector<128x256xbf16>
    %cst = arith.constant dense<0.000000e+00> : vector<128x256xf32>
    %2 = tpu.matmul %0, %1, %cst {dimension_numbers = #tpu.dot_dimension_numbers<[1], [0], [0], [1], [0, 0, 1, 1], [], []>} : vector<128x128xbf16>, vector<128x256xbf16>, vector<128x256xf32> -> vector<128x256xf32>
    %c0_3 = arith.constant 0 : index
    %c0_4 = arith.constant 0 : index
    %3 = vector.load %arg5[%c0_3, %c0_4] : memref<1x256xf32, #tpu.memory_space<vmem>>, vector<1x256xf32>
    %4 = vector.broadcast %3 : vector<1x256xf32> to vector<128x256xf32>
    %5 = arith.addf %2, %4 : vector<128x256xf32>
    %6 = arith.truncf %5 : vector<128x256xf32> to vector<128x256xbf16>
    %c0_5 = arith.constant 0 : index
    %c0_6 = arith.constant 0 : index
    %7 = vector.load %arg6[%c0_5, %c0_6] : memref<128x256xbf16, #tpu.memory_space<vmem>>, vector<128x256xbf16>
    tpu.vector_store %arg6[%c0_5, %c0_6], %6 {strides = array<i32>} : memref<128x256xbf16, #tpu.memory_space<vmem>>, vector<128x256xbf16>,
    return
  }
  func.func @transform_0(%arg0: i32, %arg1: i32, %arg2: i32) -> (i32, i32) {
    %c0_i32 = arith.constant 0 : i32
    return %arg1, %arg2 : i32, i32
  }
  func.func @transform_1(%arg0: i32, %arg1: i32, %arg2: i32) -> (i32, i32) {
    %c0_i32 = arith.constant 0 : i32
    return %arg2, %arg0 : i32, i32
  }
  func.func @transform_2(%arg0: i32, %arg1: i32, %arg2: i32) -> (i32, i32) {
    %c0_i32 = arith.constant 0 : i32
    %c0_i32_0 = arith.constant 0 : i32
    return %c0_i32, %arg0 : i32, i32
  }
  func.func @transform_3(%arg0: i32, %arg1: i32, %arg2: i32) -> (i32, i32) {
    %c0_i32 = arith.constant 0 : i32
    return %arg1, %arg0 : i32, i32
  }
}

module attributes {stable_mosaic.version = 11 : i64} {
  func.func @kern(%arg0: i32, %arg1: i32, %arg2: memref<1x3x3x128xbf16, #tpu.memory_space<vmem>>, %arg3: memref<9x128x128xbf16, #tpu.memory_space<vmem>>, %arg4: memref<1x128xf32, #tpu.memory_space<vmem>>, %arg5: memref<1x1x1x128xbf16, #tpu.memory_space<vmem>>, %arg6: memref<1x8x128xf32, #tpu.memory_space<vmem>>) attributes {dimension_semantics = [#tpu.dimension_semantics<parallel>, #tpu.dimension_semantics<parallel>], iteration_bounds = array<i64: 2, 1>, scalar_prefetch = 0 : i64, scratch_operands = 0 : i64, tpu.core_type = #tpu.core_type<tc>, window_params = [{transform_indices = @transform_0, window_bounds = array<i64: 1, 3, 3, 128>}, {transform_indices = @transform_1, window_bounds = array<i64: 9, 128, 128>}, {transform_indices = @transform_2, window_bounds = array<i64: 1, 128>}, {transform_indices = @transform_3, window_bounds = array<i64: 1, 1, 1, 128>}, {transform_indices = @transform_4, window_bounds = array<i64: 1, 8, 128>}]} {
    %cst = arith.constant 0.000000e+00 : f32
    %0 = vector.broadcast %cst : f32 to vector<1x128xf32>
    %c0 = arith.constant 0 : index
    %c0_0 = arith.constant 0 : index
    %c0_1 = arith.constant 0 : index
    %c0_2 = arith.constant 0 : index
    %1 = vector.load %arg2[%c0, %c0_0, %c0_1, %c0_2] : memref<1x3x3x128xbf16, #tpu.memory_space<vmem>>, vector<1x1x1x128xbf16>
    %2 = vector.shape_cast %1 : vector<1x1x1x128xbf16> to vector<1x1x128xbf16>
    %3 = vector.shape_cast %2 : vector<1x1x128xbf16> to vector<1x128xbf16>
    %c0_3 = arith.constant 0 : index
    %c0_4 = arith.constant 0 : index
    %c0_5 = arith.constant 0 : index
    %4 = vector.load %arg3[%c0_3, %c0_4, %c0_5] : memref<9x128x128xbf16, #tpu.memory_space<vmem>>, vector<1x128x128xbf16>
    %5 = vector.shape_cast %4 : vector<1x128x128xbf16> to vector<128x128xbf16>
    %cst_6 = arith.constant dense<0.000000e+00> : vector<1x128xf32>
    %6 = tpu.matmul %3, %5, %cst_6 {dimension_numbers = #tpu.dot_dimension_numbers<[1], [0], [0], [1], [0, 0, 1, 1], [], []>} : vector<1x128xbf16>, vector<128x128xbf16>, vector<1x128xf32> -> vector<1x128xf32>
    %7 = arith.addf %0, %6 : vector<1x128xf32>
    %c0_7 = arith.constant 0 : index
    %c0_8 = arith.constant 0 : index
    %c1 = arith.constant 1 : index
    %c0_9 = arith.constant 0 : index
    %8 = vector.load %arg2[%c0_7, %c0_8, %c1, %c0_9] : memref<1x3x3x128xbf16, #tpu.memory_space<vmem>>, vector<1x1x1x128xbf16>
    %9 = vector.shape_cast %8 : vector<1x1x1x128xbf16> to vector<1x1x128xbf16>
    %10 = vector.shape_cast %9 : vector<1x1x128xbf16> to vector<1x128xbf16>
    %c1_10 = arith.constant 1 : index
    %c0_11 = arith.constant 0 : index
    %c0_12 = arith.constant 0 : index
    %11 = vector.load %arg3[%c1_10, %c0_11, %c0_12] : memref<9x128x128xbf16, #tpu.memory_space<vmem>>, vector<1x128x128xbf16>
    %12 = vector.shape_cast %11 : vector<1x128x128xbf16> to vector<128x128xbf16>
    %cst_13 = arith.constant dense<0.000000e+00> : vector<1x128xf32>
    %13 = tpu.matmul %10, %12, %cst_13 {dimension_numbers = #tpu.dot_dimension_numbers<[1], [0], [0], [1], [0, 0, 1, 1], [], []>} : vector<1x128xbf16>, vector<128x128xbf16>, vector<1x128xf32> -> vector<1x128xf32>
    %14 = arith.addf %7, %13 : vector<1x128xf32>
    %c0_14 = arith.constant 0 : index
    %c0_15 = arith.constant 0 : index
    %c2 = arith.constant 2 : index
    %c0_16 = arith.constant 0 : index
    %15 = vector.load %arg2[%c0_14, %c0_15, %c2, %c0_16] : memref<1x3x3x128xbf16, #tpu.memory_space<vmem>>, vector<1x1x1x128xbf16>
    %16 = vector.shape_cast %15 : vector<1x1x1x128xbf16> to vector<1x1x128xbf16>
    %17 = vector.shape_cast %16 : vector<1x1x128xbf16> to vector<1x128xbf16>
    %c2_17 = arith.constant 2 : index
    %c0_18 = arith.constant 0 : index
    %c0_19 = arith.constant 0 : index
    %18 = vector.load %arg3[%c2_17, %c0_18, %c0_19] : memref<9x128x128xbf16, #tpu.memory_space<vmem>>, vector<1x128x128xbf16>
    %19 = vector.shape_cast %18 : vector<1x128x128xbf16> to vector<128x128xbf16>
    %cst_20 = arith.constant dense<0.000000e+00> : vector<1x128xf32>
    %20 = tpu.matmul %17, %19, %cst_20 {dimension_numbers = #tpu.dot_dimension_numbers<[1], [0], [0], [1], [0, 0, 1, 1], [], []>} : vector<1x128xbf16>, vector<128x128xbf16>, vector<1x128xf32> -> vector<1x128xf32>
    %21 = arith.addf %14, %20 : vector<1x128xf32>
    %c0_21 = arith.constant 0 : index
    %c1_22 = arith.constant 1 : index
    %c0_23 = arith.constant 0 : index
    %c0_24 = arith.constant 0 : index
    %22 = vector.load %arg2[%c0_21, %c1_22, %c0_23, %c0_24] : memref<1x3x3x128xbf16, #tpu.memory_space<vmem>>, vector<1x1x1x128xbf16>
    %23 = vector.shape_cast %22 : vector<1x1x1x128xbf16> to vector<1x1x128xbf16>
    %24 = vector.shape_cast %23 : vector<1x1x128xbf16> to vector<1x128xbf16>
    %c3 = arith.constant 3 : index
    %c0_25 = arith.constant 0 : index
    %c0_26 = arith.constant 0 : index
    %25 = vector.load %arg3[%c3, %c0_25, %c0_26] : memref<9x128x128xbf16, #tpu.memory_space<vmem>>, vector<1x128x128xbf16>
    %26 = vector.shape_cast %25 : vector<1x128x128xbf16> to vector<128x128xbf16>
    %cst_27 = arith.constant dense<0.000000e+00> : vector<1x128xf32>
    %27 = tpu.matmul %24, %26, %cst_27 {dimension_numbers = #tpu.dot_dimension_numbers<[1], [0], [0], [1], [0, 0, 1, 1], [], []>} : vector<1x128xbf16>, vector<128x128xbf16>, vector<1x128xf32> -> vector<1x128xf32>
    %28 = arith.addf %21, %27 : vector<1x128xf32>
    %c0_28 = arith.constant 0 : index
    %c1_29 = arith.constant 1 : index
    %c1_30 = arith.constant 1 : index
    %c0_31 = arith.constant 0 : index
    %29 = vector.load %arg2[%c0_28, %c1_29, %c1_30, %c0_31] : memref<1x3x3x128xbf16, #tpu.memory_space<vmem>>, vector<1x1x1x128xbf16>
    %30 = vector.shape_cast %29 : vector<1x1x1x128xbf16> to vector<1x1x128xbf16>
    %31 = vector.shape_cast %30 : vector<1x1x128xbf16> to vector<1x128xbf16>
    %c4 = arith.constant 4 : index
    %c0_32 = arith.constant 0 : index
    %c0_33 = arith.constant 0 : index
    %32 = vector.load %arg3[%c4, %c0_32, %c0_33] : memref<9x128x128xbf16, #tpu.memory_space<vmem>>, vector<1x128x128xbf16>
    %33 = vector.shape_cast %32 : vector<1x128x128xbf16> to vector<128x128xbf16>
    %cst_34 = arith.constant dense<0.000000e+00> : vector<1x128xf32>
    %34 = tpu.matmul %31, %33, %cst_34 {dimension_numbers = #tpu.dot_dimension_numbers<[1], [0], [0], [1], [0, 0, 1, 1], [], []>} : vector<1x128xbf16>, vector<128x128xbf16>, vector<1x128xf32> -> vector<1x128xf32>
    %35 = arith.addf %28, %34 : vector<1x128xf32>
    %c0_35 = arith.constant 0 : index
    %c1_36 = arith.constant 1 : index
    %c2_37 = arith.constant 2 : index
    %c0_38 = arith.constant 0 : index
    %36 = vector.load %arg2[%c0_35, %c1_36, %c2_37, %c0_38] : memref<1x3x3x128xbf16, #tpu.memory_space<vmem>>, vector<1x1x1x128xbf16>
    %37 = vector.shape_cast %36 : vector<1x1x1x128xbf16> to vector<1x1x128xbf16>
    %38 = vector.shape_cast %37 : vector<1x1x128xbf16> to vector<1x128xbf16>
    %c5 = arith.constant 5 : index
    %c0_39 = arith.constant 0 : index
    %c0_40 = arith.constant 0 : index
    %39 = vector.load %arg3[%c5, %c0_39, %c0_40] : memref<9x128x128xbf16, #tpu.memory_space<vmem>>, vector<1x128x128xbf16>
    %40 = vector.shape_cast %39 : vector<1x128x128xbf16> to vector<128x128xbf16>
    %cst_41 = arith.constant dense<0.000000e+00> : vector<1x128xf32>
    %41 = tpu.matmul %38, %40, %cst_41 {dimension_numbers = #tpu.dot_dimension_numbers<[1], [0], [0], [1], [0, 0, 1, 1], [], []>} : vector<1x128xbf16>, vector<128x128xbf16>, vector<1x128xf32> -> vector<1x128xf32>
    %42 = arith.addf %35, %41 : vector<1x128xf32>
    %c0_42 = arith.constant 0 : index
    %c2_43 = arith.constant 2 : index
    %c0_44 = arith.constant 0 : index
    %c0_45 = arith.constant 0 : index
    %43 = vector.load %arg2[%c0_42, %c2_43, %c0_44, %c0_45] : memref<1x3x3x128xbf16, #tpu.memory_space<vmem>>, vector<1x1x1x128xbf16>
    %44 = vector.shape_cast %43 : vector<1x1x1x128xbf16> to vector<1x1x128xbf16>
    %45 = vector.shape_cast %44 : vector<1x1x128xbf16> to vector<1x128xbf16>
    %c6 = arith.constant 6 : index
    %c0_46 = arith.constant 0 : index
    %c0_47 = arith.constant 0 : index
    %46 = vector.load %arg3[%c6, %c0_46, %c0_47] : memref<9x128x128xbf16, #tpu.memory_space<vmem>>, vector<1x128x128xbf16>
    %47 = vector.shape_cast %46 : vector<1x128x128xbf16> to vector<128x128xbf16>
    %cst_48 = arith.constant dense<0.000000e+00> : vector<1x128xf32>
    %48 = tpu.matmul %45, %47, %cst_48 {dimension_numbers = #tpu.dot_dimension_numbers<[1], [0], [0], [1], [0, 0, 1, 1], [], []>} : vector<1x128xbf16>, vector<128x128xbf16>, vector<1x128xf32> -> vector<1x128xf32>
    %49 = arith.addf %42, %48 : vector<1x128xf32>
    %c0_49 = arith.constant 0 : index
    %c2_50 = arith.constant 2 : index
    %c1_51 = arith.constant 1 : index
    %c0_52 = arith.constant 0 : index
    %50 = vector.load %arg2[%c0_49, %c2_50, %c1_51, %c0_52] : memref<1x3x3x128xbf16, #tpu.memory_space<vmem>>, vector<1x1x1x128xbf16>
    %51 = vector.shape_cast %50 : vector<1x1x1x128xbf16> to vector<1x1x128xbf16>
    %52 = vector.shape_cast %51 : vector<1x1x128xbf16> to vector<1x128xbf16>
    %c7 = arith.constant 7 : index
    %c0_53 = arith.constant 0 : index
    %c0_54 = arith.constant 0 : index
    %53 = vector.load %arg3[%c7, %c0_53, %c0_54] : memref<9x128x128xbf16, #tpu.memory_space<vmem>>, vector<1x128x128xbf16>
    %54 = vector.shape_cast %53 : vector<1x128x128xbf16> to vector<128x128xbf16>
    %cst_55 = arith.constant dense<0.000000e+00> : vector<1x128xf32>
    %55 = tpu.matmul %52, %54, %cst_55 {dimension_numbers = #tpu.dot_dimension_numbers<[1], [0], [0], [1], [0, 0, 1, 1], [], []>} : vector<1x128xbf16>, vector<128x128xbf16>, vector<1x128xf32> -> vector<1x128xf32>
    %56 = arith.addf %49, %55 : vector<1x128xf32>
    %c0_56 = arith.constant 0 : index
    %c2_57 = arith.constant 2 : index
    %c2_58 = arith.constant 2 : index
    %c0_59 = arith.constant 0 : index
    %57 = vector.load %arg2[%c0_56, %c2_57, %c2_58, %c0_59] : memref<1x3x3x128xbf16, #tpu.memory_space<vmem>>, vector<1x1x1x128xbf16>
    %58 = vector.shape_cast %57 : vector<1x1x1x128xbf16> to vector<1x1x128xbf16>
    %59 = vector.shape_cast %58 : vector<1x1x128xbf16> to vector<1x128xbf16>
    %c8 = arith.constant 8 : index
    %c0_60 = arith.constant 0 : index
    %c0_61 = arith.constant 0 : index
    %60 = vector.load %arg3[%c8, %c0_60, %c0_61] : memref<9x128x128xbf16, #tpu.memory_space<vmem>>, vector<1x128x128xbf16>
    %61 = vector.shape_cast %60 : vector<1x128x128xbf16> to vector<128x128xbf16>
    %cst_62 = arith.constant dense<0.000000e+00> : vector<1x128xf32>
    %62 = tpu.matmul %59, %61, %cst_62 {dimension_numbers = #tpu.dot_dimension_numbers<[1], [0], [0], [1], [0, 0, 1, 1], [], []>} : vector<1x128xbf16>, vector<128x128xbf16>, vector<1x128xf32> -> vector<1x128xf32>
    %63 = arith.addf %56, %62 : vector<1x128xf32>
    %c0_63 = arith.constant 0 : index
    %c0_64 = arith.constant 0 : index
    %64 = vector.load %arg4[%c0_63, %c0_64] : memref<1x128xf32, #tpu.memory_space<vmem>>, vector<1x128xf32>
    %65 = arith.addf %63, %64 : vector<1x128xf32>
    %66 = vector.shape_cast %65 : vector<1x128xf32> to vector<1x1x1x128xf32>
    %67 = arith.truncf %66 : vector<1x1x1x128xf32> to vector<1x1x1x128xbf16>
    %c0_65 = arith.constant 0 : index
    %c0_66 = arith.constant 0 : index
    %c0_67 = arith.constant 0 : index
    %c0_68 = arith.constant 0 : index
    %68 = vector.load %arg5[%c0_65, %c0_66, %c0_67, %c0_68] : memref<1x1x1x128xbf16, #tpu.memory_space<vmem>>, vector<1x1x1x128xbf16>
    tpu.vector_store %arg5[%c0_65, %c0_66, %c0_67, %c0_68], %67 {strides = array<i32>} : memref<1x1x1x128xbf16, #tpu.memory_space<vmem>>, vector<1x1x1x128xbf16>,
    %cst_69 = arith.constant dense<0.000000e+00> : vector<128xf32>
    %69 = vector.multi_reduction <add>, %65, %cst_69 [0] : vector<1x128xf32> to vector<128xf32>
    %70 = vector.shape_cast %69 : vector<128xf32> to vector<1x128xf32>
    %71 = arith.mulf %65, %65 : vector<1x128xf32>
    %cst_70 = arith.constant dense<0.000000e+00> : vector<128xf32>
    %72 = vector.multi_reduction <add>, %71, %cst_70 [0] : vector<1x128xf32> to vector<128xf32>
    %73 = vector.shape_cast %72 : vector<128xf32> to vector<1x128xf32>
    %74 = tpu.iota {dimensions = array<i32: 0>} : vector<8x128xi32>
    %c0_i32 = arith.constant 0 : i32
    %75 = vector.broadcast %c0_i32 : i32 to vector<8x128xi32>
    %76 = arith.cmpi eq, %74, %75 : vector<8x128xi32>
    %c1_i32 = arith.constant 1 : i32
    %77 = vector.broadcast %c1_i32 : i32 to vector<8x128xi32>
    %78 = arith.cmpi eq, %74, %77 : vector<8x128xi32>
    %cst_71 = arith.constant 0.000000e+00 : f32
    %79 = vector.shape_cast %73 : vector<1x128xf32> to vector<1x128xf32>
    %80 = vector.broadcast %79 : vector<1x128xf32> to vector<8x128xf32>
    %81 = vector.broadcast %cst_71 : f32 to vector<8x128xf32>
    %82 = arith.select %78, %80, %81 : vector<8x128xi1>, vector<8x128xf32>
    %83 = vector.shape_cast %70 : vector<1x128xf32> to vector<1x128xf32>
    %84 = vector.broadcast %83 : vector<1x128xf32> to vector<8x128xf32>
    %85 = arith.select %76, %84, %82 : vector<8x128xi1>, vector<8x128xf32>
    %86 = vector.shape_cast %85 : vector<8x128xf32> to vector<1x8x128xf32>
    %c0_72 = arith.constant 0 : index
    %c0_73 = arith.constant 0 : index
    %c0_74 = arith.constant 0 : index
    %87 = vector.load %arg6[%c0_72, %c0_73, %c0_74] : memref<1x8x128xf32, #tpu.memory_space<vmem>>, vector<1x8x128xf32>
    tpu.vector_store %arg6[%c0_72, %c0_73, %c0_74], %86 {strides = array<i32>} : memref<1x8x128xf32, #tpu.memory_space<vmem>>, vector<1x8x128xf32>,
    return
  }
  func.func @transform_0(%arg0: i32, %arg1: i32) -> (i32, i32, i32, i32) {
    %c0_i32 = arith.constant 0 : i32
    %c0_i32_0 = arith.constant 0 : i32
    %c0_i32_1 = arith.constant 0 : i32
    %c0_i32_2 = arith.constant 0 : i32
    return %arg0, %c0_i32, %c0_i32_0, %c0_i32_1 : i32, i32, i32, i32
  }
  func.func @transform_1(%arg0: i32, %arg1: i32) -> (i32, i32, i32) {
    %c0_i32 = arith.constant 0 : i32
    %c0_i32_0 = arith.constant 0 : i32
    %c0_i32_1 = arith.constant 0 : i32
    return %c0_i32, %c0_i32_0, %arg1 : i32, i32, i32
  }
  func.func @transform_2(%arg0: i32, %arg1: i32) -> (i32, i32) {
    %c0_i32 = arith.constant 0 : i32
    %c0_i32_0 = arith.constant 0 : i32
    return %c0_i32, %arg1 : i32, i32
  }
  func.func @transform_3(%arg0: i32, %arg1: i32) -> (i32, i32, i32, i32) {
    %c0_i32 = arith.constant 0 : i32
    %c0_i32_0 = arith.constant 0 : i32
    %c0_i32_1 = arith.constant 0 : i32
    return %arg0, %c0_i32, %c0_i32_0, %arg1 : i32, i32, i32, i32
  }
  func.func @transform_4(%arg0: i32, %arg1: i32) -> (i32, i32, i32) {
    %c0_i32 = arith.constant 0 : i32
    %c0_i32_0 = arith.constant 0 : i32
    return %arg0, %c0_i32, %arg1 : i32, i32, i32
  }
}

module attributes {stable_mosaic.version = 11 : i64} {
  func.func @_mm_kernel(%arg0: i32, %arg1: i32, %arg2: i32, %arg3: memref<128x256xbf16, #tpu.memory_space<vmem>>, %arg4: memref<256x128xbf16, #tpu.memory_space<vmem>>, %arg5: memref<1x128xf32, #tpu.memory_space<vmem>>, %arg6: memref<128x128xbf16, #tpu.memory_space<vmem>>, %arg7: memref<1x8x128xf32, #tpu.memory_space<vmem>>) attributes {dimension_semantics = [#tpu.dimension_semantics<parallel>, #tpu.dimension_semantics<parallel>, #tpu.dimension_semantics<arbitrary>], iteration_bounds = array<i64: 1, 1, 1>, scalar_prefetch = 0 : i64, scratch_operands = 0 : i64, tpu.core_type = #tpu.core_type<tc>, window_params = [{transform_indices = @transform_0, window_bounds = array<i64: 128, 256>}, {transform_indices = @transform_1, window_bounds = array<i64: 256, 128>}, {transform_indices = @transform_2, window_bounds = array<i64: 1, 128>}, {transform_indices = @transform_3, window_bounds = array<i64: 128, 128>}, {transform_indices = @transform_4, window_bounds = array<i64: 1, 8, 128>}]} {
    %c0 = arith.constant 0 : index
    %c0_0 = arith.constant 0 : index
    %0 = vector.load %arg3[%c0, %c0_0] : memref<128x256xbf16, #tpu.memory_space<vmem>>, vector<128x256xbf16>
    %c0_1 = arith.constant 0 : index
    %c0_2 = arith.constant 0 : index
    %1 = vector.load %arg4[%c0_1, %c0_2] : memref<256x128xbf16, #tpu.memory_space<vmem>>, vector<256x128xbf16>
    %cst = arith.constant dense<0.000000e+00> : vector<128x128xf32>
    %2 = tpu.matmul %0, %1, %cst {dimension_numbers = #tpu.dot_dimension_numbers<[1], [0], [0], [1], [0, 0, 1, 1], [], []>} : vector<128x256xbf16>, vector<256x128xbf16>, vector<128x128xf32> -> vector<128x128xf32>
    %c0_3 = arith.constant 0 : index
    %c0_4 = arith.constant 0 : index
    %3 = vector.load %arg5[%c0_3, %c0_4] : memref<1x128xf32, #tpu.memory_space<vmem>>, vector<1x128xf32>
    %4 = vector.broadcast %3 : vector<1x128xf32> to vector<128x128xf32>
    %5 = arith.addf %2, %4 : vector<128x128xf32>
    %c0_i32 = arith.constant 0 : i32
    %6 = arith.cmpi ne, %arg1, %c0_i32 : i32
    %7 = arith.extui %6 : i1 to i32
    %c0_i32_5 = arith.constant 0 : i32
    %8 = arith.cmpi ne, %7, %c0_i32_5 : i32
    scf.if %8 {
      %12 = arith.truncf %5 : vector<128x128xf32> to vector<128x128xbf16>
      %c0_8 = arith.constant 0 : index
      %c0_9 = arith.constant 0 : index
      %13 = vector.load %arg6[%c0_8, %c0_9] : memref<128x128xbf16, #tpu.memory_space<vmem>>, vector<128x128xbf16>
      tpu.vector_store %arg6[%c0_8, %c0_9], %12 {strides = array<i32>} : memref<128x128xbf16, #tpu.memory_space<vmem>>, vector<128x128xbf16>,
      %cst_10 = arith.constant dense<0.000000e+00> : vector<128xf32>
      %14 = vector.multi_reduction <add>, %5, %cst_10 [0] : vector<128x128xf32> to vector<128xf32>
      %15 = vector.shape_cast %14 : vector<128xf32> to vector<1x128xf32>
      %16 = arith.mulf %5, %5 : vector<128x128xf32>
      %cst_11 = arith.constant dense<0.000000e+00> : vector<128xf32>
      %17 = vector.multi_reduction <add>, %16, %cst_11 [0] : vector<128x128xf32> to vector<128xf32>
      %18 = vector.shape_cast %17 : vector<128xf32> to vector<1x128xf32>
      %19 = tpu.iota {dimensions = array<i32: 0>} : vector<8x128xi32>
      %c0_i32_12 = arith.constant 0 : i32
      %20 = vector.broadcast %c0_i32_12 : i32 to vector<8x128xi32>
      %21 = arith.cmpi eq, %19, %20 : vector<8x128xi32>
      %c1_i32 = arith.constant 1 : i32
      %22 = vector.broadcast %c1_i32 : i32 to vector<8x128xi32>
      %23 = arith.cmpi eq, %19, %22 : vector<8x128xi32>
      %cst_13 = arith.constant 0.000000e+00 : f32
      %24 = vector.shape_cast %18 : vector<1x128xf32> to vector<1x128xf32>
      %25 = vector.broadcast %24 : vector<1x128xf32> to vector<8x128xf32>
      %26 = vector.broadcast %cst_13 : f32 to vector<8x128xf32>
      %27 = arith.select %23, %25, %26 : vector<8x128xi1>, vector<8x128xf32>
      %28 = vector.shape_cast %15 : vector<1x128xf32> to vector<1x128xf32>
      %29 = vector.broadcast %28 : vector<1x128xf32> to vector<8x128xf32>
      %30 = arith.select %21, %29, %27 : vector<8x128xi1>, vector<8x128xf32>
      %31 = vector.shape_cast %30 : vector<8x128xf32> to vector<1x8x128xf32>
      %c0_14 = arith.constant 0 : index
      %c0_15 = arith.constant 0 : index
      %c0_16 = arith.constant 0 : index
      %32 = vector.load %arg7[%c0_14, %c0_15, %c0_16] : memref<1x8x128xf32, #tpu.memory_space<vmem>>, vector<1x8x128xf32>
      tpu.vector_store %arg7[%c0_14, %c0_15, %c0_16], %31 {strides = array<i32>} : memref<1x8x128xf32, #tpu.memory_space<vmem>>, vector<1x8x128xf32>,
    } else {
    }
    %c0_i32_6 = arith.constant 0 : i32
    %9 = arith.cmpi eq, %arg1, %c0_i32_6 : i32
    %10 = arith.extui %9 : i1 to i32
    %c0_i32_7 = arith.constant 0 : i32
    %11 = arith.cmpi ne, %10, %c0_i32_7 : i32
    scf.if %11 {
      %12 = tpu.iota {dimensions = array<i32: 0>} : vector<128x1xi32>
      %c2_i32 = arith.constant 2 : i32
      %13 = vector.broadcast %c2_i32 : i32 to vector<128x1xi32>
      %14 = arith.cmpi slt, %12, %13 : vector<128x1xi32>
      %cst_8 = arith.constant 0.000000e+00 : f32
      %15 = vector.shape_cast %14 : vector<128x1xi1> to vector<128x1xi1>
      %16 = vector.broadcast %15 : vector<128x1xi1> to vector<128x128xi1>
      %17 = vector.broadcast %cst_8 : f32 to vector<128x128xf32>
      %18 = arith.select %16, %5, %17 : vector<128x128xi1>, vector<128x128xf32>
      %19 = arith.truncf %18 : vector<128x128xf32> to vector<128x128xbf16>
      %c0_9 = arith.constant 0 : index
      %c0_10 = arith.constant 0 : index
      %20 = vector.load %arg6[%c0_9, %c0_10] : memref<128x128xbf16, #tpu.memory_space<vmem>>, vector<128x128xbf16>
      tpu.vector_store %arg6[%c0_9, %c0_10], %19 {strides = array<i32>} : memref<128x128xbf16, #tpu.memory_space<vmem>>, vector<128x128xbf16>,
      %cst_11 = arith.constant dense<0.000000e+00> : vector<128xf32>
      %21 = vector.multi_reduction <add>, %18, %cst_11 [0] : vector<128x128xf32> to vector<128xf32>
      %22 = vector.shape_cast %21 : vector<128xf32> to vector<1x128xf32>
      %23 = arith.mulf %18, %18 : vector<128x128xf32>
      %cst_12 = arith.constant dense<0.000000e+00> : vector<128xf32>
      %24 = vector.multi_reduction <add>, %23, %cst_12 [0] : vector<128x128xf32> to vector<128xf32>
      %25 = vector.shape_cast %24 : vector<128xf32> to vector<1x128xf32>
      %26 = tpu.iota {dimensions = array<i32: 0>} : vector<8x128xi32>
      %c0_i32_13 = arith.constant 0 : i32
      %27 = vector.broadcast %c0_i32_13 : i32 to vector<8x128xi32>
      %28 = arith.cmpi eq, %26, %27 : vector<8x128xi32>
      %c1_i32 = arith.constant 1 : i32
      %29 = vector.broadcast %c1_i32 : i32 to vector<8x128xi32>
      %30 = arith.cmpi eq, %26, %29 : vector<8x128xi32>
      %cst_14 = arith.constant 0.000000e+00 : f32
      %31 = vector.shape_cast %25 : vector<1x128xf32> to vector<1x128xf32>
      %32 = vector.broadcast %31 : vector<1x128xf32> to vector<8x128xf32>
      %33 = vector.broadcast %cst_14 : f32 to vector<8x128xf32>
      %34 = arith.select %30, %32, %33 : vector<8x128xi1>, vector<8x128xf32>
      %35 = vector.shape_cast %22 : vector<1x128xf32> to vector<1x128xf32>
      %36 = vector.broadcast %35 : vector<1x128xf32> to vector<8x128xf32>
      %37 = arith.select %28, %36, %34 : vector<8x128xi1>, vector<8x128xf32>
      %38 = vector.shape_cast %37 : vector<8x128xf32> to vector<1x8x128xf32>
      %c0_15 = arith.constant 0 : index
      %c0_16 = arith.constant 0 : index
      %c0_17 = arith.constant 0 : index
      %39 = vector.load %arg7[%c0_15, %c0_16, %c0_17] : memref<1x8x128xf32, #tpu.memory_space<vmem>>, vector<1x8x128xf32>
      tpu.vector_store %arg7[%c0_15, %c0_16, %c0_17], %38 {strides = array<i32>} : memref<1x8x128xf32, #tpu.memory_space<vmem>>, vector<1x8x128xf32>,
    } else {
    }
    return
  }
  func.func @transform_0(%arg0: i32, %arg1: i32, %arg2: i32) -> (i32, i32) {
    %c0_i32 = arith.constant 0 : i32
    return %arg1, %arg2 : i32, i32
  }
  func.func @transform_1(%arg0: i32, %arg1: i32, %arg2: i32) -> (i32, i32) {
    %c0_i32 = arith.constant 0 : i32
    return %arg2, %arg0 : i32, i32
  }
  func.func @transform_2(%arg0: i32, %arg1: i32, %arg2: i32) -> (i32, i32) {
    %c0_i32 = arith.constant 0 : i32
    %c0_i32_0 = arith.constant 0 : i32
    return %c0_i32, %arg0 : i32, i32
  }
  func.func @transform_3(%arg0: i32, %arg1: i32, %arg2: i32) -> (i32, i32) {
    %c0_i32 = arith.constant 0 : i32
    return %arg1, %arg0 : i32, i32
  }
  func.func @transform_4(%arg0: i32, %arg1: i32, %arg2: i32) -> (i32, i32, i32) {
    %c0_i32 = arith.constant 0 : i32
    %c0_i32_0 = arith.constant 0 : i32
    return %arg1, %c0_i32, %arg0 : i32, i32, i32
  }
}

module attributes {stable_mosaic.version = 11 : i64} {
  func.func @_mm_kernel(%arg0: i32, %arg1: i32, %arg2: i32, %arg3: memref<128x128xbf16, #tpu.memory_space<vmem>>, %arg4: memref<128x256xbf16, #tpu.memory_space<vmem>>, %arg5: memref<1x256xf32, #tpu.memory_space<vmem>>, %arg6: memref<128x256xbf16, #tpu.memory_space<vmem>>, %arg7: memref<1x8x256xf32, #tpu.memory_space<vmem>>) attributes {dimension_semantics = [#tpu.dimension_semantics<parallel>, #tpu.dimension_semantics<parallel>, #tpu.dimension_semantics<arbitrary>], iteration_bounds = array<i64: 1, 1, 1>, scalar_prefetch = 0 : i64, scratch_operands = 0 : i64, tpu.core_type = #tpu.core_type<tc>, window_params = [{transform_indices = @transform_0, window_bounds = array<i64: 128, 128>}, {transform_indices = @transform_1, window_bounds = array<i64: 128, 256>}, {transform_indices = @transform_2, window_bounds = array<i64: 1, 256>}, {transform_indices = @transform_3, window_bounds = array<i64: 128, 256>}, {transform_indices = @transform_4, window_bounds = array<i64: 1, 8, 256>}]} {
    %c0 = arith.constant 0 : index
    %c0_0 = arith.constant 0 : index
    %0 = vector.load %arg3[%c0, %c0_0] : memref<128x128xbf16, #tpu.memory_space<vmem>>, vector<128x128xbf16>
    %c0_1 = arith.constant 0 : index
    %c0_2 = arith.constant 0 : index
    %1 = vector.load %arg4[%c0_1, %c0_2] : memref<128x256xbf16, #tpu.memory_space<vmem>>, vector<128x256xbf16>
    %cst = arith.constant dense<0.000000e+00> : vector<128x256xf32>
    %2 = tpu.matmul %0, %1, %cst {dimension_numbers = #tpu.dot_dimension_numbers<[1], [0], [0], [1], [0, 0, 1, 1], [], []>} : vector<128x128xbf16>, vector<128x256xbf16>, vector<128x256xf32> -> vector<128x256xf32>
    %c0_3 = arith.constant 0 : index
    %c0_4 = arith.constant 0 : index
    %3 = vector.load %arg5[%c0_3, %c0_4] : memref<1x256xf32, #tpu.memory_space<vmem>>, vector<1x256xf32>
    %4 = vector.broadcast %3 : vector<1x256xf32> to vector<128x256xf32>
    %5 = arith.addf %2, %4 : vector<128x256xf32>
    %c0_i32 = arith.constant 0 : i32
    %6 = arith.cmpi ne, %arg1, %c0_i32 : i32
    %7 = arith.extui %6 : i1 to i32
    %c0_i32_5 = arith.constant 0 : i32
    %8 = arith.cmpi ne, %7, %c0_i32_5 : i32
    scf.if %8 {
      %12 = arith.truncf %5 : vector<128x256xf32> to vector<128x256xbf16>
      %c0_8 = arith.constant 0 : index
      %c0_9 = arith.constant 0 : index
      %13 = vector.load %arg6[%c0_8, %c0_9] : memref<128x256xbf16, #tpu.memory_space<vmem>>, vector<128x256xbf16>
      tpu.vector_store %arg6[%c0_8, %c0_9], %12 {strides = array<i32>} : memref<128x256xbf16, #tpu.memory_space<vmem>>, vector<128x256xbf16>,
      %cst_10 = arith.constant dense<0.000000e+00> : vector<256xf32>
      %14 = vector.multi_reduction <add>, %5, %cst_10 [0] : vector<128x256xf32> to vector<256xf32>
      %15 = vector.shape_cast %14 : vector<256xf32> to vector<1x256xf32>
      %16 = arith.mulf %5, %5 : vector<128x256xf32>
      %cst_11 = arith.constant dense<0.000000e+00> : vector<256xf32>
      %17 = vector.multi_reduction <add>, %16, %cst_11 [0] : vector<128x256xf32> to vector<256xf32>
      %18 = vector.shape_cast %17 : vector<256xf32> to vector<1x256xf32>
      %19 = tpu.iota {dimensions = array<i32: 0>} : vector<8x256xi32>
      %c0_i32_12 = arith.constant 0 : i32
      %20 = vector.broadcast %c0_i32_12 : i32 to vector<8x256xi32>
      %21 = arith.cmpi eq, %19, %20 : vector<8x256xi32>
      %c1_i32 = arith.constant 1 : i32
      %22 = vector.broadcast %c1_i32 : i32 to vector<8x256xi32>
      %23 = arith.cmpi eq, %19, %22 : vector<8x256xi32>
      %cst_13 = arith.constant 0.000000e+00 : f32
      %24 = vector.shape_cast %18 : vector<1x256xf32> to vector<1x256xf32>
      %25 = vector.broadcast %24 : vector<1x256xf32> to vector<8x256xf32>
      %26 = vector.broadcast %cst_13 : f32 to vector<8x256xf32>
      %27 = arith.select %23, %25, %26 : vector<8x256xi1>, vector<8x256xf32>
      %28 = vector.shape_cast %15 : vector<1x256xf32> to vector<1x256xf32>
      %29 = vector.broadcast %28 : vector<1x256xf32> to vector<8x256xf32>
      %30 = arith.select %21, %29, %27 : vector<8x256xi1>, vector<8x256xf32>
      %31 = vector.shape_cast %30 : vector<8x256xf32> to vector<1x8x256xf32>
      %c0_14 = arith.constant 0 : index
      %c0_15 = arith.constant 0 : index
      %c0_16 = arith.constant 0 : index
      %32 = vector.load %arg7[%c0_14, %c0_15, %c0_16] : memref<1x8x256xf32, #tpu.memory_space<vmem>>, vector<1x8x256xf32>
      tpu.vector_store %arg7[%c0_14, %c0_15, %c0_16], %31 {strides = array<i32>} : memref<1x8x256xf32, #tpu.memory_space<vmem>>, vector<1x8x256xf32>,
    } else {
    }
    %c0_i32_6 = arith.constant 0 : i32
    %9 = arith.cmpi eq, %arg1, %c0_i32_6 : i32
    %10 = arith.extui %9 : i1 to i32
    %c0_i32_7 = arith.constant 0 : i32
    %11 = arith.cmpi ne, %10, %c0_i32_7 : i32
    scf.if %11 {
      %12 = tpu.iota {dimensions = array<i32: 0>} : vector<128x1xi32>
      %c2_i32 = arith.constant 2 : i32
      %13 = vector.broadcast %c2_i32 : i32 to vector<128x1xi32>
      %14 = arith.cmpi slt, %12, %13 : vector<128x1xi32>
      %cst_8 = arith.constant 0.000000e+00 : f32
      %15 = vector.shape_cast %14 : vector<128x1xi1> to vector<128x1xi1>
      %16 = vector.broadcast %15 : vector<128x1xi1> to vector<128x256xi1>
      %17 = vector.broadcast %cst_8 : f32 to vector<128x256xf32>
      %18 = arith.select %16, %5, %17 : vector<128x256xi1>, vector<128x256xf32>
      %19 = arith.truncf %18 : vector<128x256xf32> to vector<128x256xbf16>
      %c0_9 = arith.constant 0 : index
      %c0_10 = arith.constant 0 : index
      %20 = vector.load %arg6[%c0_9, %c0_10] : memref<128x256xbf16, #tpu.memory_space<vmem>>, vector<128x256xbf16>
      tpu.vector_store %arg6[%c0_9, %c0_10], %19 {strides = array<i32>} : memref<128x256xbf16, #tpu.memory_space<vmem>>, vector<128x256xbf16>,
      %cst_11 = arith.constant dense<0.000000e+00> : vector<256xf32>
      %21 = vector.multi_reduction <add>, %18, %cst_11 [0] : vector<128x256xf32> to vector<256xf32>
      %22 = vector.shape_cast %21 : vector<256xf32> to vector<1x256xf32>
      %23 = arith.mulf %18, %18 : vector<128x256xf32>
      %cst_12 = arith.constant dense<0.000000e+00> : vector<256xf32>
      %24 = vector.multi_reduction <add>, %23, %cst_12 [0] : vector<128x256xf32> to vector<256xf32>
      %25 = vector.shape_cast %24 : vector<256xf32> to vector<1x256xf32>
      %26 = tpu.iota {dimensions = array<i32: 0>} : vector<8x256xi32>
      %c0_i32_13 = arith.constant 0 : i32
      %27 = vector.broadcast %c0_i32_13 : i32 to vector<8x256xi32>
      %28 = arith.cmpi eq, %26, %27 : vector<8x256xi32>
      %c1_i32 = arith.constant 1 : i32
      %29 = vector.broadcast %c1_i32 : i32 to vector<8x256xi32>
      %30 = arith.cmpi eq, %26, %29 : vector<8x256xi32>
      %cst_14 = arith.constant 0.000000e+00 : f32
      %31 = vector.shape_cast %25 : vector<1x256xf32> to vector<1x256xf32>
      %32 = vector.broadcast %31 : vector<1x256xf32> to vector<8x256xf32>
      %33 = vector.broadcast %cst_14 : f32 to vector<8x256xf32>
      %34 = arith.select %30, %32, %33 : vector<8x256xi1>, vector<8x256xf32>
      %35 = vector.shape_cast %22 : vector<1x256xf32> to vector<1x256xf32>
      %36 = vector.broadcast %35 : vector<1x256xf32> to vector<8x256xf32>
      %37 = arith.select %28, %36, %34 : vector<8x256xi1>, vector<8x256xf32>
      %38 = vector.shape_cast %37 : vector<8x256xf32> to vector<1x8x256xf32>
      %c0_15 = arith.constant 0 : index
      %c0_16 = arith.constant 0 : index
      %c0_17 = arith.constant 0 : index
      %39 = vector.load %arg7[%c0_15, %c0_16, %c0_17] : memref<1x8x256xf32, #tpu.memory_space<vmem>>, vector<1x8x256xf32>
      tpu.vector_store %arg7[%c0_15, %c0_16, %c0_17], %38 {strides = array<i32>} : memref<1x8x256xf32, #tpu.memory_space<vmem>>, vector<1x8x256xf32>,
    } else {
    }
    return
  }
  func.func @transform_0(%arg0: i32, %arg1: i32, %arg2: i32) -> (i32, i32) {
    %c0_i32 = arith.constant 0 : i32
    return %arg1, %arg2 : i32, i32
  }
  func.func @transform_1(%arg0: i32, %arg1: i32, %arg2: i32) -> (i32, i32) {
    %c0_i32 = arith.constant 0 : i32
    return %arg2, %arg0 : i32, i32
  }
  func.func @transform_2(%arg0: i32, %arg1: i32, %arg2: i32) -> (i32, i32) {
    %c0_i32 = arith.constant 0 : i32
    %c0_i32_0 = arith.constant 0 : i32
    return %c0_i32, %arg0 : i32, i32
  }
  func.func @transform_3(%arg0: i32, %arg1: i32, %arg2: i32) -> (i32, i32) {
    %c0_i32 = arith.constant 0 : i32
    return %arg1, %arg0 : i32, i32
  }
  func.func @transform_4(%arg0: i32, %arg1: i32, %arg2: i32) -> (i32, i32, i32) {
    %c0_i32 = arith.constant 0 : i32
    %c0_i32_0 = arith.constant 0 : i32
    return %arg1, %c0_i32, %arg0 : i32, i32, i32
  }
}

module attributes {stable_mosaic.version = 11 : i64} {
  func.func @_bn_kernel(%arg0: i32, %arg1: memref<128x256xbf16, #tpu.memory_space<vmem>>, %arg2: memref<1x256xf32, #tpu.memory_space<vmem>>, %arg3: memref<1x256xf32, #tpu.memory_space<vmem>>, %arg4: memref<128x256xbf16, #tpu.memory_space<vmem>>, %arg5: memref<128x256xbf16, #tpu.memory_space<vmem>>) attributes {dimension_semantics = [#tpu.dimension_semantics<parallel>], iteration_bounds = array<i64: 1>, scalar_prefetch = 0 : i64, scratch_operands = 0 : i64, tpu.core_type = #tpu.core_type<tc>, window_params = [{transform_indices = @transform_0, window_bounds = array<i64: 128, 256>}, {pipeline_mode = #tpu.pipeline_mode<synchronous>, transform_indices = @transform_1, window_bounds = array<i64: 1, 256>}, {pipeline_mode = #tpu.pipeline_mode<synchronous>, transform_indices = @transform_2, window_bounds = array<i64: 1, 256>}, {transform_indices = @transform_3, window_bounds = array<i64: 128, 256>}, {transform_indices = @transform_4, window_bounds = array<i64: 128, 256>}]} {
    %c0 = arith.constant 0 : index
    %c0_0 = arith.constant 0 : index
    %0 = vector.load %arg1[%c0, %c0_0] : memref<128x256xbf16, #tpu.memory_space<vmem>>, vector<128x256xbf16>
    %1 = arith.extf %0 : vector<128x256xbf16> to vector<128x256xf32>
    %c0_1 = arith.constant 0 : index
    %c0_2 = arith.constant 0 : index
    %2 = vector.load %arg2[%c0_1, %c0_2] : memref<1x256xf32, #tpu.memory_space<vmem>>, vector<1x256xf32>
    %3 = vector.broadcast %2 : vector<1x256xf32> to vector<128x256xf32>
    %4 = arith.subf %1, %3 : vector<128x256xf32>
    %c0_3 = arith.constant 0 : index
    %c0_4 = arith.constant 0 : index
    %5 = vector.load %arg3[%c0_3, %c0_4] : memref<1x256xf32, #tpu.memory_space<vmem>>, vector<1x256xf32>
    %6 = vector.broadcast %5 : vector<1x256xf32> to vector<128x256xf32>
    %7 = arith.mulf %4, %6 : vector<128x256xf32>
    %cst = arith.constant 0.000000e+00 : f32
    %8 = vector.broadcast %cst : f32 to vector<128x256xf32>
    %9 = arith.maximumf %7, %8 : vector<128x256xf32>
    %c0_5 = arith.constant 0 : index
    %c0_6 = arith.constant 0 : index
    %10 = vector.load %arg4[%c0_5, %c0_6] : memref<128x256xbf16, #tpu.memory_space<vmem>>, vector<128x256xbf16>
    %11 = arith.extf %10 : vector<128x256xbf16> to vector<128x256xf32>
    %12 = arith.addf %9, %11 : vector<128x256xf32>
    %13 = arith.truncf %12 : vector<128x256xf32> to vector<128x256xbf16>
    %c0_7 = arith.constant 0 : index
    %c0_8 = arith.constant 0 : index
    %14 = vector.load %arg5[%c0_7, %c0_8] : memref<128x256xbf16, #tpu.memory_space<vmem>>, vector<128x256xbf16>
    tpu.vector_store %arg5[%c0_7, %c0_8], %13 {strides = array<i32>} : memref<128x256xbf16, #tpu.memory_space<vmem>>, vector<128x256xbf16>,
    return
  }
  func.func @transform_0(%arg0: i32) -> (i32, i32) {
    %c0_i32 = arith.constant 0 : i32
    %c0_i32_0 = arith.constant 0 : i32
    return %arg0, %c0_i32 : i32, i32
  }
  func.func @transform_1(%arg0: i32) -> (i32, i32) {
    %c0_i32 = arith.constant 0 : i32
    %c0_i32_0 = arith.constant 0 : i32
    %c0_i32_1 = arith.constant 0 : i32
    return %c0_i32, %c0_i32_0 : i32, i32
  }
  func.func @transform_2(%arg0: i32) -> (i32, i32) {
    %c0_i32 = arith.constant 0 : i32
    %c0_i32_0 = arith.constant 0 : i32
    %c0_i32_1 = arith.constant 0 : i32
    return %c0_i32, %c0_i32_0 : i32, i32
  }
  func.func @transform_3(%arg0: i32) -> (i32, i32) {
    %c0_i32 = arith.constant 0 : i32
    %c0_i32_0 = arith.constant 0 : i32
    return %arg0, %c0_i32 : i32, i32
  }
  func.func @transform_4(%arg0: i32) -> (i32, i32) {
    %c0_i32 = arith.constant 0 : i32
    %c0_i32_0 = arith.constant 0 : i32
    return %arg0, %c0_i32 : i32, i32
  }
}

module attributes {stable_mosaic.version = 11 : i64} {
  func.func @_mm_kernel(%arg0: i32, %arg1: i32, %arg2: i32, %arg3: memref<128x256xbf16, #tpu.memory_space<vmem>>, %arg4: memref<256x256xbf16, #tpu.memory_space<vmem>>, %arg5: memref<1x256xf32, #tpu.memory_space<vmem>>, %arg6: memref<128x256xbf16, #tpu.memory_space<vmem>>) attributes {dimension_semantics = [#tpu.dimension_semantics<parallel>, #tpu.dimension_semantics<parallel>, #tpu.dimension_semantics<arbitrary>], iteration_bounds = array<i64: 1, 1, 1>, scalar_prefetch = 0 : i64, scratch_operands = 0 : i64, tpu.core_type = #tpu.core_type<tc>, window_params = [{transform_indices = @transform_0, window_bounds = array<i64: 128, 256>}, {transform_indices = @transform_1, window_bounds = array<i64: 256, 256>}, {transform_indices = @transform_2, window_bounds = array<i64: 1, 256>}, {transform_indices = @transform_3, window_bounds = array<i64: 128, 256>}]} {
    %c0 = arith.constant 0 : index
    %c0_0 = arith.constant 0 : index
    %0 = vector.load %arg3[%c0, %c0_0] : memref<128x256xbf16, #tpu.memory_space<vmem>>, vector<128x256xbf16>
    %c0_1 = arith.constant 0 : index
    %c0_2 = arith.constant 0 : index
    %1 = vector.load %arg4[%c0_1, %c0_2] : memref<256x256xbf16, #tpu.memory_space<vmem>>, vector<256x256xbf16>
    %cst = arith.constant dense<0.000000e+00> : vector<128x256xf32>
    %2 = tpu.matmul %0, %1, %cst {dimension_numbers = #tpu.dot_dimension_numbers<[1], [0], [0], [1], [0, 0, 1, 1], [], []>} : vector<128x256xbf16>, vector<256x256xbf16>, vector<128x256xf32> -> vector<128x256xf32>
    %c0_3 = arith.constant 0 : index
    %c0_4 = arith.constant 0 : index
    %3 = vector.load %arg5[%c0_3, %c0_4] : memref<1x256xf32, #tpu.memory_space<vmem>>, vector<1x256xf32>
    %4 = vector.broadcast %3 : vector<1x256xf32> to vector<128x256xf32>
    %5 = arith.addf %2, %4 : vector<128x256xf32>
    %6 = arith.truncf %5 : vector<128x256xf32> to vector<128x256xbf16>
    %c0_5 = arith.constant 0 : index
    %c0_6 = arith.constant 0 : index
    %7 = vector.load %arg6[%c0_5, %c0_6] : memref<128x256xbf16, #tpu.memory_space<vmem>>, vector<128x256xbf16>
    tpu.vector_store %arg6[%c0_5, %c0_6], %6 {strides = array<i32>} : memref<128x256xbf16, #tpu.memory_space<vmem>>, vector<128x256xbf16>,
    return
  }
  func.func @transform_0(%arg0: i32, %arg1: i32, %arg2: i32) -> (i32, i32) {
    %c0_i32 = arith.constant 0 : i32
    return %arg1, %arg2 : i32, i32
  }
  func.func @transform_1(%arg0: i32, %arg1: i32, %arg2: i32) -> (i32, i32) {
    %c0_i32 = arith.constant 0 : i32
    return %arg2, %arg0 : i32, i32
  }
  func.func @transform_2(%arg0: i32, %arg1: i32, %arg2: i32) -> (i32, i32) {
    %c0_i32 = arith.constant 0 : i32
    %c0_i32_0 = arith.constant 0 : i32
    return %c0_i32, %arg0 : i32, i32
  }
  func.func @transform_3(%arg0: i32, %arg1: i32, %arg2: i32) -> (i32, i32) {
    %c0_i32 = arith.constant 0 : i32
    return %arg1, %arg0 : i32, i32
  }
}

module attributes {stable_mosaic.version = 11 : i64} {
  func.func @_mm_kernel(%arg0: i32, %arg1: i32, %arg2: i32, %arg3: memref<128x256xbf16, #tpu.memory_space<vmem>>, %arg4: memref<256x128xbf16, #tpu.memory_space<vmem>>, %arg5: memref<1x128xf32, #tpu.memory_space<vmem>>, %arg6: memref<128x128xf32, #tpu.memory_space<vmem>>) attributes {dimension_semantics = [#tpu.dimension_semantics<parallel>, #tpu.dimension_semantics<parallel>, #tpu.dimension_semantics<arbitrary>], iteration_bounds = array<i64: 1, 1, 1>, scalar_prefetch = 0 : i64, scratch_operands = 0 : i64, tpu.core_type = #tpu.core_type<tc>, window_params = [{transform_indices = @transform_0, window_bounds = array<i64: 128, 256>}, {transform_indices = @transform_1, window_bounds = array<i64: 256, 128>}, {transform_indices = @transform_2, window_bounds = array<i64: 1, 128>}, {transform_indices = @transform_3, window_bounds = array<i64: 128, 128>}]} {
    %c0 = arith.constant 0 : index
    %c0_0 = arith.constant 0 : index
    %0 = vector.load %arg3[%c0, %c0_0] : memref<128x256xbf16, #tpu.memory_space<vmem>>, vector<128x256xbf16>
    %c0_1 = arith.constant 0 : index
    %c0_2 = arith.constant 0 : index
    %1 = vector.load %arg4[%c0_1, %c0_2] : memref<256x128xbf16, #tpu.memory_space<vmem>>, vector<256x128xbf16>
    %cst = arith.constant dense<0.000000e+00> : vector<128x128xf32>
    %2 = tpu.matmul %0, %1, %cst {dimension_numbers = #tpu.dot_dimension_numbers<[1], [0], [0], [1], [0, 0, 1, 1], [], []>} : vector<128x256xbf16>, vector<256x128xbf16>, vector<128x128xf32> -> vector<128x128xf32>
    %c0_3 = arith.constant 0 : index
    %c0_4 = arith.constant 0 : index
    %3 = vector.load %arg5[%c0_3, %c0_4] : memref<1x128xf32, #tpu.memory_space<vmem>>, vector<1x128xf32>
    %4 = vector.broadcast %3 : vector<1x128xf32> to vector<128x128xf32>
    %5 = arith.addf %2, %4 : vector<128x128xf32>
    %c0_5 = arith.constant 0 : index
    %c0_6 = arith.constant 0 : index
    %6 = vector.load %arg6[%c0_5, %c0_6] : memref<128x128xf32, #tpu.memory_space<vmem>>, vector<128x128xf32>
    tpu.vector_store %arg6[%c0_5, %c0_6], %5 {strides = array<i32>} : memref<128x128xf32, #tpu.memory_space<vmem>>, vector<128x128xf32>,
    return
  }
  func.func @transform_0(%arg0: i32, %arg1: i32, %arg2: i32) -> (i32, i32) {
    %c0_i32 = arith.constant 0 : i32
    return %arg1, %arg2 : i32, i32
  }
  func.func @transform_1(%arg0: i32, %arg1: i32, %arg2: i32) -> (i32, i32) {
    %c0_i32 = arith.constant 0 : i32
    return %arg2, %arg0 : i32, i32
  }
  func.func @transform_2(%arg0: i32, %arg1: i32, %arg2: i32) -> (i32, i32) {
    %c0_i32 = arith.constant 0 : i32
    %c0_i32_0 = arith.constant 0 : i32
    return %c0_i32, %arg0 : i32, i32
  }
  func.func @transform_3(%arg0: i32, %arg1: i32, %arg2: i32) -> (i32, i32) {
    %c0_i32 = arith.constant 0 : i32
    return %arg1, %arg0 : i32, i32
  }
}

</mosaic_0001>

<bundles_post_ra>
// kernel: resnet_forward.115
= control target key start
LH: loop header
LB: loop body
LE: loop exit
PB: predicated region body
PF: predicated region fallthrough
CT: control target
= control target key end

     0   :  { %s602_s1 = inlined_call_operand.vmem [shape: bf16[128,128], index: 1, kind: input, shape index: {}]   ;;  %s603_s0 = inlined_call_operand.vmem [shape: bf16[128,128], index: 0, kind: input, shape index: {}]   ;;  %s604_s2 = inlined_call_operand.vmem [shape: f32[1,128], index: 2, kind: input, shape index: {}]   ;;  %s605_s3 = inlined_call_operand.vmem [shape: bf16[128,128], index: 3, kind: output, shape index: {}]  }
   0x1   :  { %v491_v0 = vld [vmem:[%s602_s1 + $0x38] sm:$0xff]   ;;  %v492_v1 = vld [vmem:[%s602_s1 + $0x30] sm:$0xff]   ;;  %v493_v2 = vld [vmem:[%s602_s1 + $0x28] sm:$0xff]  }
   0x2   :  { %443 = vmatprep.subr.bf16.mxu0 %v491_v0  ;;  %475 = vmatprep.subr.bf16.mxu1 %v491_v0  ;;  %v494_v3 = vld [vmem:[%s602_s1 + $0x20] sm:$0xff]   ;;  %v495_v6 = vld [vmem:[%s602_s1 + $0x18] sm:$0xff]   ;;  %v496_v7 = vld [vmem:[%s602_s1 + $0x10] sm:$0xff]  }
   0x3   :  { %444 = vmatpush3.bf16.msra.mxu0 %v491_v0  ;;  %483 = vmatpush3.bf16.msra.mxu1 %v491_v0  ;;  %v499_v4 = vld [vmem:[%s603_s0] sm:$0xff]   ;;  %v497_v8 = vld [vmem:[%s602_s1 + $0x8] sm:$0xff]   ;;  %v503_v12 = vld [vmem:[%s603_s0 + $0x10] sm:$0xff]  }
   0x4   :  { %445 = vmatprep.subr.bf16.mxu0 %v492_v1  ;;  %476 = vmatprep.subr.bf16.mxu1 %v492_v1  ;;  %v500_v5 = vld [vmem:[%s603_s0 + $0x20] sm:$0xff]   ;;  %v501_v10 = vld [vmem:[%s603_s0 + $0x8] sm:$0xff]   ;;  %v504_v13 = vld [vmem:[%s603_s0 + $0x30] sm:$0xff]  }
   0x5   :  { %459 = vmatprep.mubr.bf16.mxu0 %v499_v4  ;;  %467 = vmatprep.mubr.bf16.mxu1 %v500_v5  ;;  %v498_v9 = vld [vmem:[%s602_s1] sm:$0xff]   ;;  %v502_v11 = vld [vmem:[%s603_s0 + $0x28] sm:$0xff]   ;;  %v505_v14 = vld [vmem:[%s603_s0 + $0x18] sm:$0xff]  }
   0x6   :  { %v506_v15 = vld [vmem:[%s603_s0 + $0x38] sm:$0xff]   ;;  %v331_v18 = vld [vmem:[%s604_s2] ss:$0 sm:$0xff] }
   0x7   :  { %446 = vmatpush3.bf16.msra.mxu0 %v492_v1  ;;  %484 = vmatpush3.bf16.msra.mxu1 %v492_v1 }
   0x8   :  { %447 = vmatprep.subr.bf16.mxu0 %v493_v2  ;;  %477 = vmatprep.subr.bf16.mxu1 %v493_v2 }
   0xb   :  { %448 = vmatpush3.bf16.msra.mxu0 %v493_v2  ;;  %485 = vmatpush3.bf16.msra.mxu1 %v493_v2 }
   0xc   :  { %449 = vmatprep.subr.bf16.mxu0 %v494_v3  ;;  %478 = vmatprep.subr.bf16.mxu1 %v494_v3 }
   0xf   :  { %450 = vmatpush3.bf16.msra.mxu0 %v494_v3  ;;  %486 = vmatpush3.bf16.msra.mxu1 %v494_v3 }
  0x10   :  { %451 = vmatprep.subr.bf16.mxu0 %v495_v6  ;;  %479 = vmatprep.subr.bf16.mxu1 %v495_v6 }
  0x13   :  { %452 = vmatpush3.bf16.msra.mxu0 %v495_v6  ;;  %487 = vmatpush3.bf16.msra.mxu1 %v495_v6 }
  0x14   :  { %453 = vmatprep.subr.bf16.mxu0 %v496_v7  ;;  %480 = vmatprep.subr.bf16.mxu1 %v496_v7 }
  0x17   :  { %454 = vmatpush3.bf16.msra.mxu0 %v496_v7  ;;  %488 = vmatpush3.bf16.msra.mxu1 %v496_v7 }
  0x18   :  { %455 = vmatprep.subr.bf16.mxu0 %v497_v8  ;;  %481 = vmatprep.subr.bf16.mxu1 %v497_v8 }
  0x1b   :  { %456 = vmatpush3.bf16.msra.mxu0 %v497_v8  ;;  %489 = vmatpush3.bf16.msra.mxu1 %v497_v8 }
  0x1c   :  { %457 = vmatprep.subr.bf16.mxu0 %v498_v9  ;;  %482 = vmatprep.subr.bf16.mxu1 %v498_v9 }
  0x1f   :  { %458 = vmatpush3.bf16.msra.mxu0 %v498_v9  ;;  %490 = vmatpush3.bf16.msra.mxu1 %v498_v9 }
  0x22   :  { %460 = vmatmul.mubr.bf16.vlgmr.msra.gmra.mxu0 %v501_v10  ;;  %468 = vmatmul.mubr.bf16.vlgmr.msra.gmra.mxu1 %v502_v11 }
  0x23   :  { %463 = vmatprep.mubr.bf16.mxu0 %v503_v12  ;;  %471 = vmatprep.mubr.bf16.mxu1 %v504_v13 }
  0x2a   :  { %464 = vmatmul.mubr.bf16.gmra.mxu0 %v505_v14  ;;  %472 = vmatmul.mubr.bf16.gmra.mxu1 %v506_v15 }
  0xe2   :  { %v461_v16 = vpop.f32.mrf.mxu0  ;;  %v469_v17 = vpop.f32.mrf.mxu1 }
  0xe3   :  { %v193_v23 = vadd.f32 %v461_v16, %v331_v18  ;;  %v225_v24 = vadd.f32 %v469_v17, %v331_v18 }
  0xe4   :  { %v184_v19 = vpop.f32.mrf.mxu0  ;;  %v216_v20 = vpop.f32.mrf.mxu1 }
  0xe5   :  { %v185_v27 = vadd.f32 %v331_v18, %v184_v19  ;;  %v217_v28 = vadd.f32 %v331_v18, %v216_v20 }
  0xe6   :  { %v462_v21 = vpop.f32.mrf.mxu0  ;;  %v470_v22 = vpop.f32.mrf.mxu1 }
  0xe7   :  { %v196_v25 = vadd.f32 %v462_v21, %v331_v18  ;;  %v228_v26 = vadd.f32 %v470_v22, %v331_v18 }
  0xe8   :  { %v187_v29 = vpop.f32.mrf.mxu0  ;;  %v219_v30 = vpop.f32.mrf.mxu1 }
  0xe9   :  { %v388_v31 = vpack.c.bf16 %v196_v25, %v193_v23  ;;  %v408_v32 = vpack.c.bf16 %v228_v26, %v225_v24  ;;  %v188_v33 = vadd.f32 %v331_v18, %v187_v29  ;;  %v220_v34 = vadd.f32 %v331_v18, %v219_v30 }
  0xea   :  { %v465_v35 = vpop.f32.mrf.mxu0  ;;  %v473_v36 = vpop.f32.mrf.mxu1 }
  0xeb   :  { %420 = vst [vmem:[%s605_s3 + $0x8] sm:$0xff] %v388_v31   ;;  %424 = vst [vmem:[%s605_s3 + $0x28] sm:$0xff] %v408_v32   ;;  %v383_v37 = vpack.c.bf16 %v188_v33, %v185_v27  ;;  %v403_v38 = vpack.c.bf16 %v220_v34, %v217_v28  ;;  %v209_v43 = vadd.f32 %v465_v35, %v331_v18 }
  0xec   :  { %v200_v39 = vpop.f32.mrf.mxu0  ;;  %v232_v40 = vpop.f32.mrf.mxu1  ;;  %v241_v44 = vadd.f32 %v473_v36, %v331_v18 }
  0xed   :  { %384 = vst [vmem:[%s605_s3] sm:$0xff] %v383_v37   ;;  %423 = vst [vmem:[%s605_s3 + $0x20] sm:$0xff] %v403_v38   ;;  %v201_v47 = vadd.f32 %v331_v18, %v200_v39  ;;  %v233_v48 = vadd.f32 %v331_v18, %v232_v40 }
  0xee   :  { %v466_v41 = vpop.f32.mrf.mxu0  ;;  %v474_v42 = vpop.f32.mrf.mxu1 }
  0xef   :  { %v212_v45 = vadd.f32 %v466_v41, %v331_v18  ;;  %v244_v46 = vadd.f32 %v474_v42, %v331_v18 }
  0xf0   :  { %v203_v49 = vpop.f32.mrf.mxu0  ;;  %v235_v50 = vpop.f32.mrf.mxu1 }
  0xf1   :  { %v398_v51 = vpack.c.bf16 %v212_v45, %v209_v43  ;;  %v418_v52 = vpack.c.bf16 %v244_v46, %v241_v44  ;;  %v204_v53 = vadd.f32 %v331_v18, %v203_v49  ;;  %v236_v54 = vadd.f32 %v331_v18, %v235_v50 }
  0xf3   :  { %422 = vst [vmem:[%s605_s3 + $0x18] sm:$0xff] %v398_v51   ;;  %426 = vst [vmem:[%s605_s3 + $0x38] sm:$0xff] %v418_v52   ;;  %v393_v55 = vpack.c.bf16 %v204_v53, %v201_v47  ;;  %v413_v56 = vpack.c.bf16 %v236_v54, %v233_v48 }
  0xf5   :  { %421 = vst [vmem:[%s605_s3 + $0x10] sm:$0xff] %v393_v55   ;;  %425 = vst [vmem:[%s605_s3 + $0x30] sm:$0xff] %v413_v56  }

// kernel: resnet_forward.114
= control target key start
LH: loop header
LB: loop body
LE: loop exit
PB: predicated region body
PF: predicated region fallthrough
CT: control target
= control target key end

     0   :  { %s1545_s12 = smov 0   ;;  %s1547_s13 = smov 0   ;;  %s1719_s0 = inlined_call_operand.vmem [shape: bf16[512,256], index: 0, kind: input, shape index: {}]   ;;  %s1720_s1 = inlined_call_operand.vmem [shape: bf16[256,128], index: 1, kind: input, shape index: {}]   ;;  %s1721_s2 = inlined_call_operand.vmem [shape: f32[1,128], index: 2, kind: input, shape index: {}]   ;;  %s1722_s3 = inlined_call_operand.vmem [shape: bf16[512,128], index: 3, kind: output, shape index: {}]  }
   0x1   :  { %s1549_s14 = smov 0  }
   0x2 LB: > { %s28_s15 = sadd.s32 1, %s1519_s13  ;;  %p1068_p0 = scmp.ge.s32.totalorder %s1523_s14, 1  ;;  %s1523_s14 = sphi %s1549_s14, %s13_s14   ;;  %s1519_s13 = sphi %s1547_s13, %s1724_s13   ;;  %s1515_s12 = sphi %s1545_s12, %s1723_s12  }
   0x3   : > { %p30_p1 = scmp.ge.s32.totalorder %s28_s15, 2  ;;  %p191_p2 = scmp.lt.s32.totalorder %s1523_s14, 3 }
   0x5   : > { %s1726_s15 = smov (%p30_p1, %s28_s15), 0  ;;  %p192_p3 = pnand %p1068_p0, %p191_p2 }
   0x6   : > { %s1069_s18 = sshll.u32 (!%p192_p3), %s1515_s12, 5 }
   0x7   : > { %195 = sbr.rel (%p192_p3) target bundleno = 309 (0x135), region = 32  ;;  %p236_p4 = scmp.lt.s32.totalorder (!%p192_p3), %s1069_s18, 63 }
   0xc   : > { %v1437_v0 = vld [vmem:[%s1720_s1 + $0x78] sm:$0xff]   ;;  %v1439_v2 = vld [vmem:[%s1720_s1 + $0x70] sm:$0xff]   ;;  %v1441_v4 = vld [vmem:[%s1720_s1 + $0x68] sm:$0xff]   ;;  %s1728_s18 = smov (!%p236_p4, %s1069_s18), 63 }
   0xd   : > { %v1438_v1 = vld [vmem:[%s1720_s1 + $0x38] sm:$0xff]   ;;  %1285 = vmatprep.subr.bf16.mxu0 %v1437_v0  ;;  %1397 = vmatprep.subr.bf16.mxu1 %v1437_v0  ;;  %v1440_v3 = vld [vmem:[%s1720_s1 + $0x30] sm:$0xff]   ;;  %v1442_v5 = vld [vmem:[%s1720_s1 + $0x28] sm:$0xff]   ;;  %s1157_s6 = sshll.u32 %s1728_s18, 3  ;;  %s1073_s5 = sshll.u32 %s1728_s18, 2 }
   0xe   : > { %1286 = vmatpush3.bf16.msra.mxu0 %v1438_v1  ;;  %1405 = vmatpush3.bf16.msra.mxu1 %v1438_v1  ;;  %v1443_v6 = vld [vmem:[%s1720_s1 + $0x60] sm:$0xff]   ;;  %v1445_v8 = vld [vmem:[%s1720_s1 + $0x58] sm:$0xff]   ;;  %s1596_s11 = scalar_lea.vmem %s1719_s0, %s1157_s6  ;;  %v1447_v10 = vld [vmem:[%s1720_s1 + $0x50] sm:$0xff]   ;;  %s1664_s8 = scalar_lea.vmem %s1722_s3, %s1073_s5 }
   0xf   : > { %1287 = vmatprep.subr.bf16.mxu0 %v1439_v2  ;;  %1398 = vmatprep.subr.bf16.mxu1 %v1439_v2  ;;  %v1444_v7 = vld [vmem:[%s1720_s1 + $0x20] sm:$0xff]   ;;  %v1446_v9 = vld [vmem:[%s1720_s1 + $0x18] sm:$0xff]   ;;  %v1448_v13 = vld [vmem:[%s1720_s1 + $0x10] sm:$0xff]  }
  0x10   : > { %v1455_v11 = vld [vmem:[%s1596_s11 + $0x4] ss:$8 sps:$4 sm:$0xff]   ;;  %v1453_v18 = vld [vmem:[%s1596_s11] ss:$8 sps:$4 sm:$0xff]   ;;  %v1459_v20 = vld [vmem:[%s1596_s11 + $0x14] ss:$8 sps:$4 sm:$0xff]  }
  0x11   : > { %v1458_v12 = vld [vmem:[%s1596_s11 + $0x84] ss:$8 sps:$4 sm:$0xff]   ;;  %627 = vmatprep.mubr.bf16.mxu0 %v1455_v11  ;;  %v1456_v19 = vld [vmem:[%s1596_s11 + $0x80] ss:$8 sps:$4 sm:$0xff]   ;;  %v1461_v21 = vld [vmem:[%s1596_s11 + $0x94] ss:$8 sps:$4 sm:$0xff]  }
  0x12   : > { %1288 = vmatpush3.bf16.msra.mxu0 %v1440_v3  ;;  %1406 = vmatpush3.bf16.msra.mxu1 %v1440_v3  ;;  %v1449_v14 = vld [vmem:[%s1720_s1 + $0x48] sm:$0xff]   ;;  %v1451_v16 = vld [vmem:[%s1720_s1 + $0x40] sm:$0xff]   ;;  %v1463_v22 = vld [vmem:[%s1596_s11 + $0x10] ss:$8 sps:$4 sm:$0xff]  }
  0x13   : > { %1289 = vmatprep.subr.bf16.mxu0 %v1441_v4  ;;  %1399 = vmatprep.subr.bf16.mxu1 %v1441_v4  ;;  %v1450_v15 = vld [vmem:[%s1720_s1 + $0x8] sm:$0xff]   ;;  %v1452_v17 = vld [vmem:[%s1720_s1] sm:$0xff]   ;;  %v1464_v23 = vld [vmem:[%s1596_s11 + $0x90] ss:$8 sps:$4 sm:$0xff]  }
  0x14   : > { %691 = vmatprep.mubr.bf16.mxu1 %v1458_v12  ;;  %v1465_v24 = vld [vmem:[%s1596_s11 + $0x24] ss:$8 sps:$4 sm:$0xff]   ;;  %v1469_v26 = vld [vmem:[%s1596_s11 + $0x20] ss:$8 sps:$4 sm:$0xff]   ;;  %v1471_v28 = vld [vmem:[%s1596_s11 + $0x34] ss:$8 sps:$4 sm:$0xff]  }
  0x15   : > { %v1467_v25 = vld [vmem:[%s1596_s11 + $0xa4] ss:$8 sps:$4 sm:$0xff]   ;;  %v1470_v27 = vld [vmem:[%s1596_s11 + $0xa0] ss:$8 sps:$4 sm:$0xff]   ;;  %v1473_v29 = vld [vmem:[%s1596_s11 + $0xb4] ss:$8 sps:$4 sm:$0xff]  }
  0x16   : > { %1290 = vmatpush3.bf16.msra.mxu0 %v1442_v5  ;;  %1407 = vmatpush3.bf16.msra.mxu1 %v1442_v5  ;;  %v1475_v30 = vld [vmem:[%s1596_s11 + $0x30] ss:$8 sps:$4 sm:$0xff]   ;;  %v1477_v32 = vld [vmem:[%s1596_s11 + $0x44] ss:$8 sps:$4 sm:$0xff]   ;;  %v1481_v34 = vld [vmem:[%s1596_s11 + $0x40] ss:$8 sps:$4 sm:$0xff]  }
  0x17   : > { %1291 = vmatprep.subr.bf16.mxu0 %v1443_v6  ;;  %1400 = vmatprep.subr.bf16.mxu1 %v1443_v6  ;;  %v1476_v31 = vld [vmem:[%s1596_s11 + $0xb0] ss:$8 sps:$4 sm:$0xff]   ;;  %v1479_v33 = vld [vmem:[%s1596_s11 + $0xc4] ss:$8 sps:$4 sm:$0xff]   ;;  %v1482_v35 = vld [vmem:[%s1596_s11 + $0xc0] ss:$8 sps:$4 sm:$0xff]  }
  0x18   : > { %v1483_v36 = vld [vmem:[%s1596_s11 + $0x54] ss:$8 sps:$4 sm:$0xff]   ;;  %v1487_v38 = vld [vmem:[%s1596_s11 + $0x50] ss:$8 sps:$4 sm:$0xff]   ;;  %v1489_v40 = vld [vmem:[%s1596_s11 + $0x64] ss:$8 sps:$4 sm:$0xff]  }
  0x19   : > { %v1485_v37 = vld [vmem:[%s1596_s11 + $0xd4] ss:$8 sps:$4 sm:$0xff]   ;;  %v1488_v39 = vld [vmem:[%s1596_s11 + $0xd0] ss:$8 sps:$4 sm:$0xff]   ;;  %v1491_v41 = vld [vmem:[%s1596_s11 + $0xe4] ss:$8 sps:$4 sm:$0xff]  }
  0x1a   : > { %1292 = vmatpush3.bf16.msra.mxu0 %v1444_v7  ;;  %1408 = vmatpush3.bf16.msra.mxu1 %v1444_v7  ;;  %v1493_v42 = vld [vmem:[%s1596_s11 + $0x60] ss:$8 sps:$4 sm:$0xff]   ;;  %v1495_v44 = vld [vmem:[%s1596_s11 + $0x74] ss:$8 sps:$4 sm:$0xff]   ;;  %v1499_v46 = vld [vmem:[%s1596_s11 + $0x70] ss:$8 sps:$4 sm:$0xff]  }
  0x1b   : > { %1293 = vmatprep.subr.bf16.mxu0 %v1445_v8  ;;  %1401 = vmatprep.subr.bf16.mxu1 %v1445_v8  ;;  %v1494_v43 = vld [vmem:[%s1596_s11 + $0xe0] ss:$8 sps:$4 sm:$0xff]   ;;  %v1497_v45 = vld [vmem:[%s1596_s11 + $0xf4] ss:$8 sps:$4 sm:$0xff]   ;;  %v1500_v47 = vld [vmem:[%s1596_s11 + $0xf0] ss:$8 sps:$4 sm:$0xff]  }
  0x1c   : > { %v1654_v52 = vld [vmem:[%s1721_s2] ss:$0 sm:$0xff] }
  0x1e   : > { %1294 = vmatpush3.bf16.msra.mxu0 %v1446_v9  ;;  %1409 = vmatpush3.bf16.msra.mxu1 %v1446_v9 }
  0x1f   : > { %1295 = vmatprep.subr.bf16.mxu0 %v1447_v10  ;;  %1402 = vmatprep.subr.bf16.mxu1 %v1447_v10 }
  0x22   : > { %1296 = vmatpush3.bf16.msra.mxu0 %v1448_v13  ;;  %1410 = vmatpush3.bf16.msra.mxu1 %v1448_v13 }
  0x23   : > { %1297 = vmatprep.subr.bf16.mxu0 %v1449_v14  ;;  %1403 = vmatprep.subr.bf16.mxu1 %v1449_v14 }
  0x26   : > { %1298 = vmatpush3.bf16.msra.mxu0 %v1450_v15  ;;  %1411 = vmatpush3.bf16.msra.mxu1 %v1450_v15 }
  0x27   : > { %1299 = vmatprep.subr.bf16.mxu0 %v1451_v16  ;;  %1404 = vmatprep.subr.bf16.mxu1 %v1451_v16 }
  0x2a   : > { %1300 = vmatpush3.bf16.msra.mxu0 %v1452_v17  ;;  %1412 = vmatpush3.bf16.msra.mxu1 %v1452_v17 }
  0x2d   : > { %628 = vmatmul.mubr.bf16.vlgmr.msra.gmra.mxu0 %v1453_v18  ;;  %692 = vmatmul.mubr.bf16.vlgmr.msra.gmra.mxu1 %v1456_v19 }
  0x2e   : > { %635 = vmatprep.mubr.bf16.mxu0 %v1459_v20  ;;  %699 = vmatprep.mubr.bf16.mxu1 %v1461_v21 }
  0x35   : > { %636 = vmatmul.mubr.bf16.gmra.mxu0 %v1463_v22  ;;  %700 = vmatmul.mubr.bf16.gmra.mxu1 %v1464_v23 }
  0x36   : > { %643 = vmatprep.mubr.bf16.mxu0 %v1465_v24  ;;  %707 = vmatprep.mubr.bf16.mxu1 %v1467_v25 }
  0x3d   : > { %644 = vmatmul.mubr.bf16.gmra.mxu0 %v1469_v26  ;;  %708 = vmatmul.mubr.bf16.gmra.mxu1 %v1470_v27 }
  0x3e   : > { %651 = vmatprep.mubr.bf16.mxu0 %v1471_v28  ;;  %715 = vmatprep.mubr.bf16.mxu1 %v1473_v29 }
  0x45   : > { %652 = vmatmul.mubr.bf16.gmra.mxu0 %v1475_v30  ;;  %716 = vmatmul.mubr.bf16.gmra.mxu1 %v1476_v31 }
  0x46   : > { %659 = vmatprep.mubr.bf16.mxu0 %v1477_v32  ;;  %723 = vmatprep.mubr.bf16.mxu1 %v1479_v33 }
  0x4d   : > { %660 = vmatmul.mubr.bf16.gmra.mxu0 %v1481_v34  ;;  %724 = vmatmul.mubr.bf16.gmra.mxu1 %v1482_v35 }
  0x4e   : > { %667 = vmatprep.mubr.bf16.mxu0 %v1483_v36  ;;  %731 = vmatprep.mubr.bf16.mxu1 %v1485_v37 }
  0x55   : > { %668 = vmatmul.mubr.bf16.gmra.mxu0 %v1487_v38  ;;  %732 = vmatmul.mubr.bf16.gmra.mxu1 %v1488_v39 }
  0x56   : > { %675 = vmatprep.mubr.bf16.mxu0 %v1489_v40  ;;  %739 = vmatprep.mubr.bf16.mxu1 %v1491_v41 }
  0x5d   : > { %676 = vmatmul.mubr.bf16.gmra.mxu0 %v1493_v42  ;;  %740 = vmatmul.mubr.bf16.gmra.mxu1 %v1494_v43 }
  0x5e   : > { %683 = vmatprep.mubr.bf16.mxu0 %v1495_v44  ;;  %747 = vmatprep.mubr.bf16.mxu1 %v1497_v45 }
  0x65   : > { %684 = vmatmul.mubr.bf16.gmra.mxu0 %v1499_v46  ;;  %748 = vmatmul.mubr.bf16.gmra.mxu1 %v1500_v47 }
  0xed   : > { %v1301_v48 = vpop.f32.mrf.mxu0  ;;  %v1349_v49 = vpop.f32.mrf.mxu1 }
  0xef   : > { %v1302_v50 = vpop.f32.mrf.mxu0  ;;  %v1350_v51 = vpop.f32.mrf.mxu1 }
  0xf0   : > { %v1303_v53 = vadd.f32 %v1302_v50, %v1301_v48  ;;  %v1351_v54 = vadd.f32 %v1350_v51, %v1349_v49 }
  0xf1   : > { %v1304_v55 = vpop.f32.mrf.mxu0  ;;  %v1352_v56 = vpop.f32.mrf.mxu1 }
  0xf2   : > { %v630_v57 = vadd.f32 %v1303_v53, %v1654_v52  ;;  %v694_v58 = vadd.f32 %v1351_v54, %v1654_v52 }
  0xf3   : > { %v1305_v59 = vpop.f32.mrf.mxu0  ;;  %v1353_v60 = vpop.f32.mrf.mxu1 }
  0xf4   : > { %v1306_v61 = vadd.f32 %v1305_v59, %v1304_v55  ;;  %v1354_v62 = vadd.f32 %v1353_v60, %v1352_v56  ;;  %v756_v3 = vmax.f32 %v630_v57, 0.0  ;;  %v772_v4 = vmax.f32 %v694_v58, 0.0 }
  0xf5   : > { %v1307_v63 = vpop.f32.mrf.mxu0  ;;  %v1355_v0 = vpop.f32.mrf.mxu1 }
  0xf6   : > { %v633_v1 = vadd.f32 %v1306_v61, %v1654_v52  ;;  %v697_v2 = vadd.f32 %v1354_v62, %v1654_v52 }
  0xf7   : > { %v1308_v5 = vpop.f32.mrf.mxu0  ;;  %v1356_v6 = vpop.f32.mrf.mxu1 }
  0xf8   : > { %v757_v7 = vmax.f32 %v633_v1, 0.0  ;;  %v773_v8 = vmax.f32 %v697_v2, 0.0  ;;  %v1309_v9 = vadd.f32 %v1308_v5, %v1307_v63  ;;  %v1357_v10 = vadd.f32 %v1356_v6, %v1355_v0 }
  0xf9   : > { %v1310_v11 = vpop.f32.mrf.mxu0  ;;  %v1358_v12 = vpop.f32.mrf.mxu1 }
  0xfa   : > { %v1193_v13 = vpack.c.bf16 %v757_v7, %v756_v3  ;;  %v1233_v14 = vpack.c.bf16 %v773_v8, %v772_v4  ;;  %v638_v15 = vadd.f32 %v1309_v9, %v1654_v52  ;;  %v702_v16 = vadd.f32 %v1357_v10, %v1654_v52 }
  0xfb   : > { %v1311_v17 = vpop.f32.mrf.mxu0  ;;  %v1359_v18 = vpop.f32.mrf.mxu1 }
  0xfc   : > { %1194 = vst [vmem:[%s1664_s8] sm:$0xff] %v1193_v13   ;;  %1277 = vst [vmem:[%s1664_s8 + $0x40] sm:$0xff] %v1233_v14   ;;  %v1312_v19 = vadd.f32 %v1311_v17, %v1310_v11  ;;  %v1360_v20 = vadd.f32 %v1359_v18, %v1358_v12  ;;  %v758_v25 = vmax.f32 %v638_v15, 0.0  ;;  %v774_v26 = vmax.f32 %v702_v16, 0.0 }
  0xfd   : > { %v1313_v21 = vpop.f32.mrf.mxu0  ;;  %v1361_v22 = vpop.f32.mrf.mxu1 }
  0xfe   : > { %v641_v23 = vadd.f32 %v1312_v19, %v1654_v52  ;;  %v705_v24 = vadd.f32 %v1360_v20, %v1654_v52 }
  0xff   : > { %v1314_v27 = vpop.f32.mrf.mxu0  ;;  %v1362_v28 = vpop.f32.mrf.mxu1 }
 0x100   : > { %v759_v29 = vmax.f32 %v641_v23, 0.0  ;;  %v775_v30 = vmax.f32 %v705_v24, 0.0  ;;  %v1315_v31 = vadd.f32 %v1314_v27, %v1313_v21  ;;  %v1363_v32 = vadd.f32 %v1362_v28, %v1361_v22 }
 0x101   : > { %v1316_v33 = vpop.f32.mrf.mxu0  ;;  %v1364_v34 = vpop.f32.mrf.mxu1 }
 0x102   : > { %v1198_v35 = vpack.c.bf16 %v759_v29, %v758_v25  ;;  %v1238_v36 = vpack.c.bf16 %v775_v30, %v774_v26  ;;  %v646_v37 = vadd.f32 %v1315_v31, %v1654_v52  ;;  %v710_v38 = vadd.f32 %v1363_v32, %v1654_v52 }
 0x103   : > { %v1317_v39 = vpop.f32.mrf.mxu0  ;;  %v1365_v40 = vpop.f32.mrf.mxu1 }
 0x104   : > { %1270 = vst [vmem:[%s1664_s8 + $0x8] sm:$0xff] %v1198_v35   ;;  %1278 = vst [vmem:[%s1664_s8 + $0x48] sm:$0xff] %v1238_v36   ;;  %v1318_v41 = vadd.f32 %v1317_v39, %v1316_v33  ;;  %v1366_v42 = vadd.f32 %v1365_v40, %v1364_v34  ;;  %v760_v47 = vmax.f32 %v646_v37, 0.0  ;;  %v776_v48 = vmax.f32 %v710_v38, 0.0 }
 0x105   : > { %v1319_v43 = vpop.f32.mrf.mxu0  ;;  %v1367_v44 = vpop.f32.mrf.mxu1 }
 0x106   : > { %v649_v45 = vadd.f32 %v1318_v41, %v1654_v52  ;;  %v713_v46 = vadd.f32 %v1366_v42, %v1654_v52 }
 0x107   : > { %v1320_v49 = vpop.f32.mrf.mxu0  ;;  %v1368_v50 = vpop.f32.mrf.mxu1 }
 0x108   : > { %v761_v51 = vmax.f32 %v649_v45, 0.0  ;;  %v777_v53 = vmax.f32 %v713_v46, 0.0  ;;  %v1321_v54 = vadd.f32 %v1320_v49, %v1319_v43  ;;  %v1369_v55 = vadd.f32 %v1368_v50, %v1367_v44 }
 0x109   : > { %v1322_v56 = vpop.f32.mrf.mxu0  ;;  %v1370_v57 = vpop.f32.mrf.mxu1 }
 0x10a   : > { %v1203_v58 = vpack.c.bf16 %v761_v51, %v760_v47  ;;  %v1243_v59 = vpack.c.bf16 %v777_v53, %v776_v48  ;;  %v654_v60 = vadd.f32 %v1321_v54, %v1654_v52  ;;  %v718_v61 = vadd.f32 %v1369_v55, %v1654_v52 }
 0x10b   : > { %v1323_v62 = vpop.f32.mrf.mxu0  ;;  %v1371_v63 = vpop.f32.mrf.mxu1 }
 0x10c   : > { %1271 = vst [vmem:[%s1664_s8 + $0x10] sm:$0xff] %v1203_v58   ;;  %1279 = vst [vmem:[%s1664_s8 + $0x50] sm:$0xff] %v1243_v59   ;;  %v1324_v0 = vadd.f32 %v1323_v62, %v1322_v56  ;;  %v1372_v1 = vadd.f32 %v1371_v63, %v1370_v57  ;;  %v762_v6 = vmax.f32 %v654_v60, 0.0  ;;  %v778_v7 = vmax.f32 %v718_v61, 0.0 }
 0x10d   : > { %v1325_v2 = vpop.f32.mrf.mxu0  ;;  %v1373_v3 = vpop.f32.mrf.mxu1 }
 0x10e   : > { %v657_v4 = vadd.f32 %v1324_v0, %v1654_v52  ;;  %v721_v5 = vadd.f32 %v1372_v1, %v1654_v52 }
 0x10f   : > { %v1326_v8 = vpop.f32.mrf.mxu0  ;;  %v1374_v9 = vpop.f32.mrf.mxu1 }
 0x110   : > { %v763_v10 = vmax.f32 %v657_v4, 0.0  ;;  %v779_v11 = vmax.f32 %v721_v5, 0.0  ;;  %v1327_v12 = vadd.f32 %v1326_v8, %v1325_v2  ;;  %v1375_v13 = vadd.f32 %v1374_v9, %v1373_v3 }
 0x111   : > { %v1328_v14 = vpop.f32.mrf.mxu0  ;;  %v1376_v15 = vpop.f32.mrf.mxu1 }
 0x112   : > { %v1208_v16 = vpack.c.bf16 %v763_v10, %v762_v6  ;;  %v1248_v17 = vpack.c.bf16 %v779_v11, %v778_v7  ;;  %v662_v18 = vadd.f32 %v1327_v12, %v1654_v52  ;;  %v726_v19 = vadd.f32 %v1375_v13, %v1654_v52 }
 0x113   : > { %v1329_v20 = vpop.f32.mrf.mxu0  ;;  %v1377_v21 = vpop.f32.mrf.mxu1 }
 0x114   : > { %1272 = vst [vmem:[%s1664_s8 + $0x18] sm:$0xff] %v1208_v16   ;;  %1280 = vst [vmem:[%s1664_s8 + $0x58] sm:$0xff] %v1248_v17   ;;  %v1330_v22 = vadd.f32 %v1329_v20, %v1328_v14  ;;  %v1378_v23 = vadd.f32 %v1377_v21, %v1376_v15  ;;  %v764_v28 = vmax.f32 %v662_v18, 0.0  ;;  %v780_v29 = vmax.f32 %v726_v19, 0.0 }
 0x115   : > { %v1331_v24 = vpop.f32.mrf.mxu0  ;;  %v1379_v25 = vpop.f32.mrf.mxu1 }
 0x116   : > { %v665_v26 = vadd.f32 %v1330_v22, %v1654_v52  ;;  %v729_v27 = vadd.f32 %v1378_v23, %v1654_v52 }
 0x117   : > { %v1332_v30 = vpop.f32.mrf.mxu0  ;;  %v1380_v31 = vpop.f32.mrf.mxu1 }
 0x118   : > { %v765_v32 = vmax.f32 %v665_v26, 0.0  ;;  %v781_v33 = vmax.f32 %v729_v27, 0.0  ;;  %v1333_v34 = vadd.f32 %v1332_v30, %v1331_v24  ;;  %v1381_v35 = vadd.f32 %v1380_v31, %v1379_v25 }
 0x119   : > { %v1334_v36 = vpop.f32.mrf.mxu0  ;;  %v1382_v37 = vpop.f32.mrf.mxu1 }
 0x11a   : > { %v1213_v38 = vpack.c.bf16 %v765_v32, %v764_v28  ;;  %v1253_v39 = vpack.c.bf16 %v781_v33, %v780_v29  ;;  %v670_v40 = vadd.f32 %v1333_v34, %v1654_v52  ;;  %v734_v41 = vadd.f32 %v1381_v35, %v1654_v52 }
 0x11b   : > { %v1335_v42 = vpop.f32.mrf.mxu0  ;;  %v1383_v43 = vpop.f32.mrf.mxu1 }
 0x11c   : > { %1273 = vst [vmem:[%s1664_s8 + $0x20] sm:$0xff] %v1213_v38   ;;  %1281 = vst [vmem:[%s1664_s8 + $0x60] sm:$0xff] %v1253_v39   ;;  %v1336_v44 = vadd.f32 %v1335_v42, %v1334_v36  ;;  %v1384_v45 = vadd.f32 %v1383_v43, %v1382_v37  ;;  %v766_v50 = vmax.f32 %v670_v40, 0.0  ;;  %v782_v51 = vmax.f32 %v734_v41, 0.0 }
 0x11d   : > { %v1337_v46 = vpop.f32.mrf.mxu0  ;;  %v1385_v47 = vpop.f32.mrf.mxu1 }
 0x11e   : > { %v673_v48 = vadd.f32 %v1336_v44, %v1654_v52  ;;  %v737_v49 = vadd.f32 %v1384_v45, %v1654_v52 }
 0x11f   : > { %v1338_v53 = vpop.f32.mrf.mxu0  ;;  %v1386_v54 = vpop.f32.mrf.mxu1 }
 0x120   : > { %v767_v55 = vmax.f32 %v673_v48, 0.0  ;;  %v783_v56 = vmax.f32 %v737_v49, 0.0  ;;  %v1339_v57 = vadd.f32 %v1338_v53, %v1337_v46  ;;  %v1387_v58 = vadd.f32 %v1386_v54, %v1385_v47 }
 0x121   : > { %v1340_v59 = vpop.f32.mrf.mxu0  ;;  %v1388_v60 = vpop.f32.mrf.mxu1 }
 0x122   : > { %v1218_v61 = vpack.c.bf16 %v767_v55, %v766_v50  ;;  %v1258_v62 = vpack.c.bf16 %v783_v56, %v782_v51  ;;  %v678_v63 = vadd.f32 %v1339_v57, %v1654_v52  ;;  %v742_v0 = vadd.f32 %v1387_v58, %v1654_v52 }
 0x123   : > { %v1341_v1 = vpop.f32.mrf.mxu0  ;;  %v1389_v2 = vpop.f32.mrf.mxu1 }
 0x124   : > { %1274 = vst [vmem:[%s1664_s8 + $0x28] sm:$0xff] %v1218_v61   ;;  %1282 = vst [vmem:[%s1664_s8 + $0x68] sm:$0xff] %v1258_v62   ;;  %v1342_v3 = vadd.f32 %v1341_v1, %v1340_v59  ;;  %v1390_v4 = vadd.f32 %v1389_v2, %v1388_v60  ;;  %v768_v9 = vmax.f32 %v678_v63, 0.0  ;;  %v784_v10 = vmax.f32 %v742_v0, 0.0 }
 0x125   : > { %v1343_v5 = vpop.f32.mrf.mxu0  ;;  %v1391_v6 = vpop.f32.mrf.mxu1 }
 0x126   : > { %v681_v7 = vadd.f32 %v1342_v3, %v1654_v52  ;;  %v745_v8 = vadd.f32 %v1390_v4, %v1654_v52 }
 0x127   : > { %v1344_v11 = vpop.f32.mrf.mxu0  ;;  %v1392_v12 = vpop.f32.mrf.mxu1 }
 0x128   : > { %v769_v13 = vmax.f32 %v681_v7, 0.0  ;;  %v785_v14 = vmax.f32 %v745_v8, 0.0  ;;  %v1345_v15 = vadd.f32 %v1344_v11, %v1343_v5  ;;  %v1393_v16 = vadd.f32 %v1392_v12, %v1391_v6 }
 0x129   : > { %v1346_v17 = vpop.f32.mrf.mxu0  ;;  %v1394_v18 = vpop.f32.mrf.mxu1 }
 0x12a   : > { %v1223_v19 = vpack.c.bf16 %v769_v13, %v768_v9  ;;  %v1263_v20 = vpack.c.bf16 %v785_v14, %v784_v10  ;;  %v686_v23 = vadd.f32 %v1345_v15, %v1654_v52  ;;  %v750_v24 = vadd.f32 %v1393_v16, %v1654_v52 }
 0x12b   : > { %v1347_v21 = vpop.f32.mrf.mxu0  ;;  %v1395_v22 = vpop.f32.mrf.mxu1 }
 0x12c   : > { %1275 = vst [vmem:[%s1664_s8 + $0x30] sm:$0xff] %v1223_v19   ;;  %1283 = vst [vmem:[%s1664_s8 + $0x70] sm:$0xff] %v1263_v20   ;;  %v1348_v25 = vadd.f32 %v1347_v21, %v1346_v17  ;;  %v1396_v26 = vadd.f32 %v1395_v22, %v1394_v18  ;;  %v770_v29 = vmax.f32 %v686_v23, 0.0  ;;  %v786_v30 = vmax.f32 %v750_v24, 0.0 }
 0x12e   : > { %v689_v27 = vadd.f32 %v1348_v25, %v1654_v52  ;;  %v753_v28 = vadd.f32 %v1396_v26, %v1654_v52 }
 0x130   : > { %v771_v31 = vmax.f32 %v689_v27, 0.0  ;;  %v787_v32 = vmax.f32 %v753_v28, 0.0 }
 0x132   : > { %v1228_v33 = vpack.c.bf16 %v771_v31, %v770_v29  ;;  %v1268_v34 = vpack.c.bf16 %v787_v32, %v786_v30 }
 0x134   : > { %1276 = vst [vmem:[%s1664_s8 + $0x38] sm:$0xff] %v1228_v33   ;;  %1284 = vst [vmem:[%s1664_s8 + $0x78] sm:$0xff] %v1268_v34  }
 0x135 PF: > { %s13_s14 = sadd.s32 1, %s1523_s14   ;;  %s1723_s12 = smov %s1519_s13 }
 0x136   : > { %p10_p5 = scmp.ge.s32.totalorder %s13_s14, 4   ;;  %s1724_s13 = smov %s1726_s15 }
 0x138   :  { %12 = sbr.rel (!%p10_p5) target bundleno = 2 (0x2), region = 68 }

// kernel: resnet_forward.117
= control target key start
LH: loop header
LB: loop body
LE: loop exit
PB: predicated region body
PF: predicated region fallthrough
CT: control target
= control target key end

     0   :  { %s422_s0 = inlined_call_operand.vmem [shape: bf16[128,128], index: 0, kind: input, shape index: {}]   ;;  %s423_s1 = inlined_call_operand.vmem [shape: f32[1,128], index: 1, kind: input, shape index: {}]   ;;  %s424_s2 = inlined_call_operand.vmem [shape: f32[1,128], index: 2, kind: input, shape index: {}]   ;;  %s425_s3 = inlined_call_operand.vmem [shape: bf16[128,128], index: 3, kind: output, shape index: {}]  }
   0x1   :  { %v227_v0 = vld [vmem:[%s422_s0] sm:$0xff]   ;;  %v298_v4 = vld [vmem:[%s422_s0 + $0x8] sm:$0xff]   ;;  %v299_v5 = vld [vmem:[%s422_s0 + $0x10] sm:$0xff]  }
   0x2   :  { %v338_v1 = vld [vmem:[%s423_s1] ss:$0 sm:$0xff]  ;;  %v228_v2 = vunpack.c.l.bf16 %v227_v0  ;;  %v229_v3 = vunpack.c.h.bf16 %v227_v0  ;;  %v300_v6 = vld [vmem:[%s422_s0 + $0x18] sm:$0xff]   ;;  %v232_v8 = vunpack.c.l.bf16 %v298_v4  ;;  %v233_v9 = vunpack.c.h.bf16 %v298_v4  ;;  %v302_v33 = vld [vmem:[%s422_s0 + $0x28] sm:$0xff]  }
   0x3   :  { %v352_v7 = vld [vmem:[%s424_s2] ss:$0 sm:$0xff]  ;;  %v236_v10 = vunpack.c.l.bf16 %v299_v5  ;;  %v237_v11 = vunpack.c.h.bf16 %v299_v5  ;;  %v240_v14 = vunpack.c.l.bf16 %v300_v6  ;;  %v241_v15 = vunpack.c.h.bf16 %v300_v6  ;;  %v303_v38 = vld [vmem:[%s422_s0 + $0x30] sm:$0xff]   ;;  %v304_v43 = vld [vmem:[%s422_s0 + $0x38] sm:$0xff]  }
   0x4   :  { %v53_v12 = vsub.f32 %v228_v2, %v338_v1  ;;  %v54_v13 = vsub.f32 %v229_v3, %v338_v1  ;;  %v55_v16 = vsub.f32 %v232_v8, %v338_v1  ;;  %v56_v17 = vsub.f32 %v233_v9, %v338_v1  ;;  %v301_v28 = vld [vmem:[%s422_s0 + $0x20] sm:$0xff]  }
   0x5   :  { %v57_v18 = vsub.f32 %v236_v10, %v338_v1  ;;  %v58_v19 = vsub.f32 %v237_v11, %v338_v1  ;;  %v59_v22 = vsub.f32 %v240_v14, %v338_v1  ;;  %v60_v23 = vsub.f32 %v241_v15, %v338_v1 }
   0x6   :  { %v76_v20 = vmul.f32 %v352_v7, %v53_v12  ;;  %v77_v21 = vmul.f32 %v352_v7, %v54_v13  ;;  %v78_v24 = vmul.f32 %v352_v7, %v55_v16  ;;  %v79_v25 = vmul.f32 %v352_v7, %v56_v17 }
   0x7   :  { %v80_v26 = vmul.f32 %v352_v7, %v57_v18  ;;  %v81_v27 = vmul.f32 %v352_v7, %v58_v19  ;;  %v82_v31 = vmul.f32 %v352_v7, %v59_v22  ;;  %v83_v32 = vmul.f32 %v352_v7, %v60_v23 }
   0x8   :  { %v92_v29 = vmax.f32 %v76_v20, 0.0  ;;  %v93_v30 = vmax.f32 %v77_v21, 0.0  ;;  %v94_v34 = vmax.f32 %v78_v24, 0.0  ;;  %v95_v35 = vmax.f32 %v79_v25, 0.0 }
   0x9   :  { %v96_v36 = vmax.f32 %v80_v26, 0.0  ;;  %v97_v37 = vmax.f32 %v81_v27, 0.0  ;;  %v98_v40 = vmax.f32 %v82_v31, 0.0  ;;  %v99_v41 = vmax.f32 %v83_v32, 0.0 }
   0xa   :  { %v261_v39 = vpack.c.bf16 %v93_v30, %v92_v29  ;;  %v244_v42 = vunpack.c.l.bf16 %v301_v28  ;;  %v266_v44 = vpack.c.bf16 %v95_v35, %v94_v34  ;;  %v245_v46 = vunpack.c.h.bf16 %v301_v28 }
   0xb   :  { %v271_v45 = vpack.c.bf16 %v97_v37, %v96_v36  ;;  %v248_v47 = vunpack.c.l.bf16 %v302_v33  ;;  %v276_v48 = vpack.c.bf16 %v99_v41, %v98_v40  ;;  %v249_v50 = vunpack.c.h.bf16 %v302_v33 }
   0xc   :  { %262 = vst [vmem:[%s425_s3] sm:$0xff] %v261_v39   ;;  %v61_v49 = vsub.f32 %v244_v42, %v338_v1  ;;  %v252_v51 = vunpack.c.l.bf16 %v303_v38  ;;  %305 = vst [vmem:[%s425_s3 + $0x8] sm:$0xff] %v266_v44   ;;  %v62_v52 = vsub.f32 %v245_v46, %v338_v1  ;;  %v253_v54 = vunpack.c.h.bf16 %v303_v38 }
   0xd   :  { %306 = vst [vmem:[%s425_s3 + $0x10] sm:$0xff] %v271_v45   ;;  %v63_v53 = vsub.f32 %v248_v47, %v338_v1  ;;  %v256_v55 = vunpack.c.l.bf16 %v304_v43  ;;  %307 = vst [vmem:[%s425_s3 + $0x18] sm:$0xff] %v276_v48   ;;  %v64_v57 = vsub.f32 %v249_v50, %v338_v1  ;;  %v257_v59 = vunpack.c.h.bf16 %v304_v43 }
   0xe   :  { %v84_v56 = vmul.f32 %v352_v7, %v61_v49  ;;  %v65_v58 = vsub.f32 %v252_v51, %v338_v1  ;;  %v85_v60 = vmul.f32 %v352_v7, %v62_v52  ;;  %v66_v62 = vsub.f32 %v253_v54, %v338_v1 }
   0xf   :  { %v86_v61 = vmul.f32 %v352_v7, %v63_v53  ;;  %v67_v63 = vsub.f32 %v256_v55, %v338_v1  ;;  %v87_v2 = vmul.f32 %v352_v7, %v64_v57  ;;  %v68_v4 = vsub.f32 %v257_v59, %v338_v1 }
  0x10   :  { %v100_v0 = vmax.f32 %v84_v56, 0.0  ;;  %v88_v3 = vmul.f32 %v352_v7, %v65_v58  ;;  %v101_v5 = vmax.f32 %v85_v60, 0.0  ;;  %v89_v8 = vmul.f32 %v352_v7, %v66_v62 }
  0x11   :  { %v102_v6 = vmax.f32 %v86_v61, 0.0  ;;  %v90_v9 = vmul.f32 %v352_v7, %v67_v63  ;;  %v103_v10 = vmax.f32 %v87_v2, 0.0  ;;  %v91_v12 = vmul.f32 %v352_v7, %v68_v4 }
  0x12   :  { %v104_v11 = vmax.f32 %v88_v3, 0.0  ;;  %v281_v13 = vpack.c.bf16 %v101_v5, %v100_v0  ;;  %v105_v14 = vmax.f32 %v89_v8, 0.0 }
  0x13   :  { %v106_v15 = vmax.f32 %v90_v9, 0.0  ;;  %v286_v16 = vpack.c.bf16 %v103_v10, %v102_v6  ;;  %v107_v17 = vmax.f32 %v91_v12, 0.0 }
  0x14   :  { %308 = vst [vmem:[%s425_s3 + $0x20] sm:$0xff] %v281_v13   ;;  %v291_v1 = vpack.c.bf16 %v105_v14, %v104_v11 }
  0x15   :  { %309 = vst [vmem:[%s425_s3 + $0x28] sm:$0xff] %v286_v16   ;;  %v296_v18 = vpack.c.bf16 %v107_v17, %v106_v15 }
  0x16   :  { %310 = vst [vmem:[%s425_s3 + $0x30] sm:$0xff] %v291_v1  }
  0x17   :  { %311 = vst [vmem:[%s425_s3 + $0x38] sm:$0xff] %v296_v18  }

// kernel: resnet_forward.116
= control target key start
LH: loop header
LB: loop body
LE: loop exit
PB: predicated region body
PF: predicated region fallthrough
CT: control target
= control target key end

     0   :  { %s693_s1 = inlined_call_operand.vmem [shape: bf16[128,128], index: 1, kind: input, shape index: {}]   ;;  %s694_s0 = inlined_call_operand.vmem [shape: bf16[128,128], index: 0, kind: input, shape index: {}]   ;;  %s695_s2 = inlined_call_operand.vmem [shape: f32[1,128], index: 2, kind: input, shape index: {}]   ;;  %s696_s3 = inlined_call_operand.vmem [shape: bf16[128,128], index: 3, kind: output, shape index: {0}]   ;;  %s697_s4 = inlined_call_operand.vmem [shape: f32[1,8,128], index: 4, kind: output, shape index: {1}]  }
   0x1   :  { %v562_v0 = vld [vmem:[%s693_s1 + $0x38] sm:$0xff]   ;;  %v563_v1 = vld [vmem:[%s693_s1 + $0x30] sm:$0xff]   ;;  %v564_v2 = vld [vmem:[%s693_s1 + $0x28] sm:$0xff]  }
   0x2   :  { %514 = vmatprep.subr.bf16.mxu0 %v562_v0  ;;  %546 = vmatprep.subr.bf16.mxu1 %v562_v0  ;;  %v565_v3 = vld [vmem:[%s693_s1 + $0x20] sm:$0xff]   ;;  %v566_v5 = vld [vmem:[%s693_s1 + $0x18] sm:$0xff]   ;;  %v567_v7 = vld [vmem:[%s693_s1 + $0x10] sm:$0xff]  }
   0x3   :  { %515 = vmatpush3.bf16.msra.mxu0 %v562_v0  ;;  %554 = vmatpush3.bf16.msra.mxu1 %v562_v0  ;;  %v570_v4 = vld [vmem:[%s694_s0] sm:$0xff]   ;;  %v568_v8 = vld [vmem:[%s693_s1 + $0x8] sm:$0xff]   ;;  %v572_v12 = vld [vmem:[%s694_s0 + $0x10] sm:$0xff]  }
   0x4   :  { %516 = vmatprep.subr.bf16.mxu0 %v563_v1  ;;  %547 = vmatprep.subr.bf16.mxu1 %v563_v1  ;;  %v574_v6 = vld [vmem:[%s694_s0 + $0x20] sm:$0xff]   ;;  %v571_v10 = vld [vmem:[%s694_s0 + $0x8] sm:$0xff]   ;;  %v576_v13 = vld [vmem:[%s694_s0 + $0x30] sm:$0xff]  }
   0x5   :  { %530 = vmatprep.mubr.bf16.mxu0 %v570_v4  ;;  %538 = vmatprep.mubr.bf16.mxu1 %v574_v6  ;;  %v569_v9 = vld [vmem:[%s693_s1] sm:$0xff]   ;;  %v575_v11 = vld [vmem:[%s694_s0 + $0x28] sm:$0xff]   ;;  %v573_v14 = vld [vmem:[%s694_s0 + $0x18] sm:$0xff]  }
   0x6   :  { %v577_v15 = vld [vmem:[%s694_s0 + $0x38] sm:$0xff]   ;;  %v402_v18 = vld [vmem:[%s695_s2] ss:$0 sm:$0xff] }
   0x7   :  { %517 = vmatpush3.bf16.msra.mxu0 %v563_v1  ;;  %555 = vmatpush3.bf16.msra.mxu1 %v563_v1 }
   0x8   :  { %518 = vmatprep.subr.bf16.mxu0 %v564_v2  ;;  %548 = vmatprep.subr.bf16.mxu1 %v564_v2 }
   0xb   :  { %519 = vmatpush3.bf16.msra.mxu0 %v564_v2  ;;  %556 = vmatpush3.bf16.msra.mxu1 %v564_v2 }
   0xc   :  { %520 = vmatprep.subr.bf16.mxu0 %v565_v3  ;;  %549 = vmatprep.subr.bf16.mxu1 %v565_v3 }
   0xf   :  { %521 = vmatpush3.bf16.msra.mxu0 %v565_v3  ;;  %557 = vmatpush3.bf16.msra.mxu1 %v565_v3 }
  0x10   :  { %522 = vmatprep.subr.bf16.mxu0 %v566_v5  ;;  %550 = vmatprep.subr.bf16.mxu1 %v566_v5 }
  0x13   :  { %523 = vmatpush3.bf16.msra.mxu0 %v566_v5  ;;  %558 = vmatpush3.bf16.msra.mxu1 %v566_v5 }
  0x14   :  { %524 = vmatprep.subr.bf16.mxu0 %v567_v7  ;;  %551 = vmatprep.subr.bf16.mxu1 %v567_v7 }
  0x17   :  { %525 = vmatpush3.bf16.msra.mxu0 %v567_v7  ;;  %559 = vmatpush3.bf16.msra.mxu1 %v567_v7 }
  0x18   :  { %526 = vmatprep.subr.bf16.mxu0 %v568_v8  ;;  %552 = vmatprep.subr.bf16.mxu1 %v568_v8 }
  0x1b   :  { %527 = vmatpush3.bf16.msra.mxu0 %v568_v8  ;;  %560 = vmatpush3.bf16.msra.mxu1 %v568_v8 }
  0x1c   :  { %528 = vmatprep.subr.bf16.mxu0 %v569_v9  ;;  %553 = vmatprep.subr.bf16.mxu1 %v569_v9 }
  0x1f   :  { %529 = vmatpush3.bf16.msra.mxu0 %v569_v9  ;;  %561 = vmatpush3.bf16.msra.mxu1 %v569_v9 }
  0x22   :  { %531 = vmatmul.mubr.bf16.vlgmr.msra.gmra.mxu0 %v571_v10  ;;  %539 = vmatmul.mubr.bf16.vlgmr.msra.gmra.mxu1 %v575_v11 }
  0x23   :  { %534 = vmatprep.mubr.bf16.mxu0 %v572_v12  ;;  %542 = vmatprep.mubr.bf16.mxu1 %v576_v13 }
  0x2a   :  { %535 = vmatmul.mubr.bf16.gmra.mxu0 %v573_v14  ;;  %543 = vmatmul.mubr.bf16.gmra.mxu1 %v577_v15 }
  0xe2   :  { %v532_v16 = vpop.f32.mrf.mxu0  ;;  %v540_v17 = vpop.f32.mrf.mxu1 }
  0xe3   :  { %v654_v21 = vadd.f32 %v540_v17, %v402_v18  ;;  %v195_v24 = vadd.f32 %v532_v16, %v402_v18 }
  0xe4   :  { %v186_v19 = vpop.f32.mrf.mxu0  ;;  %v218_v20 = vpop.f32.mrf.mxu1 }
  0xe5   :  { %v187_v25 = vadd.f32 %v402_v18, %v186_v19  ;;  %v219_v29 = vadd.f32 %v402_v18, %v218_v20  ;;  %v352_v44 = vmul.f32 %v195_v24, %v195_v24  ;;  %v360_v20 = vmul.f32 %v654_v21, %v654_v21 }
  0xe6   :  { %v533_v22 = vpop.f32.mrf.mxu0  ;;  %v541_v23 = vpop.f32.mrf.mxu1 }
  0xe7   :  { %v198_v26 = vadd.f32 %v533_v22, %v402_v18  ;;  %v656_v27 = vadd.f32 %v541_v23, %v402_v18  ;;  %v350_v37 = vmul.f32 %v187_v25, %v187_v25  ;;  %v358_v14 = vmul.f32 %v219_v29, %v219_v29 }
  0xe8   :  { %v189_v28 = vpop.f32.mrf.mxu0  ;;  %v221_v30 = vpop.f32.mrf.mxu1 }
  0xe9   :  { %v459_v31 = vpack.c.bf16 %v198_v26, %v195_v24  ;;  %v190_v32 = vadd.f32 %v402_v18, %v189_v28  ;;  %v479_v33 = vpack.c.bf16 %v656_v27, %v654_v21  ;;  %v222_v35 = vadd.f32 %v402_v18, %v221_v30 }
  0xea   :  { %v536_v34 = vpop.f32.mrf.mxu0  ;;  %v544_v36 = vpop.f32.mrf.mxu1  ;;  %v353_v48 = vmul.f32 %v198_v26, %v198_v26 }
  0xeb   :  { %491 = vst [vmem:[%s696_s3 + $0x8] sm:$0xff] %v459_v31   ;;  %v454_v38 = vpack.c.bf16 %v190_v32, %v187_v25  ;;  %v329_v39 = vadd.f32 %v190_v32, %v187_v25  ;;  %v351_v40 = vmul.f32 %v190_v32, %v190_v32  ;;  %495 = vst [vmem:[%s696_s3 + $0x28] sm:$0xff] %v479_v33  }
  0xec   :  { %v202_v41 = vpop.f32.mrf.mxu0  ;;  %v474_v42 = vpack.c.bf16 %v222_v35, %v219_v29  ;;  %v234_v43 = vpop.f32.mrf.mxu1  ;;  %v243_v50 = vadd.f32 %v544_v36, %v402_v18  ;;  %v211_v53 = vadd.f32 %v536_v34, %v402_v18 }
  0xed   :  { %455 = vst [vmem:[%s696_s3] sm:$0xff] %v454_v38   ;;  %v330_v45 = vadd.f32 %v329_v39, %v195_v24  ;;  %v366_v46 = vadd.f32 %v351_v40, %v350_v37  ;;  %v203_v47 = vadd.f32 %v402_v18, %v202_v41  ;;  %v235_v57 = vadd.f32 %v402_v18, %v234_v43 }
  0xee   :  { %v537_v49 = vpop.f32.mrf.mxu0  ;;  %494 = vst [vmem:[%s696_s3 + $0x20] sm:$0xff] %v474_v42   ;;  %v545_v51 = vpop.f32.mrf.mxu1  ;;  %v356_v8 = vmul.f32 %v211_v53, %v211_v53  ;;  %v361_v24 = vmul.f32 %v656_v27, %v656_v27  ;;  %v364_v34 = vmul.f32 %v243_v50, %v243_v50  ;;  %v387_v43 = vlaneseq }
  0xef   :  { %v367_v52 = vadd.f32 %v366_v46, %v352_v44  ;;  %v331_v54 = vadd.f32 %v330_v45, %v198_v26  ;;  %v214_v55 = vadd.f32 %v537_v49, %v402_v18  ;;  %v246_v58 = vadd.f32 %v545_v51, %v402_v18 }
  0xf0   :  { %v205_v56 = vpop.f32.mrf.mxu0  ;;  %v237_v59 = vpop.f32.mrf.mxu1  ;;  %v354_v61 = vmul.f32 %v203_v47, %v203_v47  ;;  %v362_v30 = vmul.f32 %v235_v57, %v235_v57 }
  0xf1   :  { %v332_v60 = vadd.f32 %v331_v54, %v203_v47  ;;  %v368_v62 = vadd.f32 %v367_v52, %v353_v48  ;;  %v469_v63 = vpack.c.bf16 %v214_v55, %v211_v53  ;;  %v206_v0 = vadd.f32 %v402_v18, %v205_v56 }
  0xf2   :  { %v489_v1 = vpack.c.bf16 %v246_v58, %v243_v50  ;;  %v238_v2 = vadd.f32 %v402_v18, %v237_v59  ;;  %v357_v11 = vmul.f32 %v214_v55, %v214_v55  ;;  %v359_v18 = vmul.f32 %v222_v35, %v222_v35 }
  0xf3   :  { %v369_v3 = vadd.f32 %v368_v62, %v354_v61  ;;  %493 = vst [vmem:[%s696_s3 + $0x18] sm:$0xff] %v469_v63   ;;  %v464_v4 = vpack.c.bf16 %v206_v0, %v203_v47  ;;  %v333_v5 = vadd.f32 %v332_v60, %v206_v0  ;;  %v355_v6 = vmul.f32 %v206_v0, %v206_v0 }
  0xf4   :  { %497 = vst [vmem:[%s696_s3 + $0x38] sm:$0xff] %v489_v1   ;;  %v484_v7 = vpack.c.bf16 %v238_v2, %v235_v57  ;;  %v363_v33 = vmul.f32 %v238_v2, %v238_v2  ;;  %v365_v37 = vmul.f32 %v246_v58, %v246_v58  ;;  %v388_v47 = vshrl.u32 %v387_v43, 7 }
  0xf5   :  { %492 = vst [vmem:[%s696_s3 + $0x10] sm:$0xff] %v464_v4   ;;  %v334_v9 = vadd.f32 %v333_v5, %v211_v53  ;;  %v370_v10 = vadd.f32 %v369_v3, %v355_v6 }
  0xf6   :  { %496 = vst [vmem:[%s696_s3 + $0x30] sm:$0xff] %v484_v7   ;;  %vm390_vm0 = vcmp.eq.s32.totalorder %v388_v47, 1  ;;  %vm389_vm1 = vcmp.eq.s32.totalorder %v388_v47, 0 }
  0xf7   :  { %v371_v12 = vadd.f32 %v370_v10, %v356_v8  ;;  %v335_v13 = vadd.f32 %v334_v9, %v214_v55 }
  0xf9   :  { %v336_v15 = vadd.f32 %v335_v13, %v219_v29  ;;  %v372_v16 = vadd.f32 %v371_v12, %v357_v11 }
  0xfb   :  { %v337_v17 = vadd.f32 %v336_v15, %v222_v35  ;;  %v373_v19 = vadd.f32 %v372_v16, %v358_v14 }
  0xfd   :  { %v338_v22 = vadd.f32 %v337_v17, %v654_v21  ;;  %v374_v23 = vadd.f32 %v373_v19, %v359_v18 }
  0xff   :  { %v375_v25 = vadd.f32 %v374_v23, %v360_v20  ;;  %v339_v26 = vadd.f32 %v338_v22, %v656_v27 }
 0x101   :  { %v340_v28 = vadd.f32 %v339_v26, %v235_v57  ;;  %v376_v31 = vadd.f32 %v375_v25, %v361_v24 }
 0x103   :  { %v377_v29 = vadd.f32 %v376_v31, %v362_v30  ;;  %v341_v32 = vadd.f32 %v340_v28, %v238_v2 }
 0x105   :  { %v342_v35 = vadd.f32 %v341_v32, %v243_v50  ;;  %v378_v36 = vadd.f32 %v377_v29, %v363_v33 }
 0x107   :  { %v343_v38 = vadd.f32 %v342_v35, %v246_v58  ;;  %v379_v39 = vadd.f32 %v378_v36, %v364_v34 }
 0x109   :  { %v344_v21 = vrot.slane %v343_v38, 4  ;;  %v380_v40 = vadd.f32 %v379_v39, %v365_v37 }
 0x10b   :  { %v345_v41 = vadd.f32 %v344_v21, %v343_v38  ;;  %v381_v42 = vrot.slane %v380_v40, 4 }
 0x10d   :  { %v346_v44 = vrot.slane %v345_v41, 2  ;;  %v382_v45 = vadd.f32 %v381_v42, %v380_v40 }
 0x10f   :  { %v347_v27 = vadd.f32 %v346_v44, %v345_v41  ;;  %v383_v46 = vrot.slane %v382_v45, 2 }
 0x111   :  { %v384_v48 = vadd.f32 %v383_v46, %v382_v45  ;;  %v348_v49 = vrot.slane %v347_v27, 1 }
 0x113   :  { %v385_v51 = vrot.slane %v384_v48, 1  ;;  %v349_v50 = vadd.f32 %v348_v49, %v347_v27 }
 0x115   :  { %v386_v52 = vadd.f32 %v385_v51, %v384_v48 }
 0x117   :  { %v391_v53 = vsel %vm390_vm0, %v386_v52, 0.0 }
 0x118   :  { %v392_v54 = vsel %vm389_vm1, %v349_v50, %v391_v53 }
 0x119   :  { %393 = vst [vmem:[%s697_s4] sm:$0xff] %v392_v54 }

// kernel: resnet_forward.121
= control target key start
LH: loop header
LB: loop body
LE: loop exit
PB: predicated region body
PF: predicated region fallthrough
CT: control target
= control target key end

     0   :  { %s541_s0 = inlined_call_operand.vmem [shape: bf16[128,128], index: 0, kind: input, shape index: {}]   ;;  %s542_s1 = inlined_call_operand.vmem [shape: f32[1,128], index: 1, kind: input, shape index: {}]   ;;  %s543_s2 = inlined_call_operand.vmem [shape: f32[1,128], index: 2, kind: input, shape index: {}]   ;;  %s544_s3 = inlined_call_operand.vmem [shape: bf16[128,128], index: 3, kind: input, shape index: {}]   ;;  %s545_s4 = inlined_call_operand.vmem [shape: bf16[128,128], index: 4, kind: output, shape index: {}]  }
   0x1   :  { %v278_v0 = vld [vmem:[%s541_s0] sm:$0xff]   ;;  %v381_v5 = vld [vmem:[%s541_s0 + $0x8] sm:$0xff]   ;;  %v382_v12 = vld [vmem:[%s541_s0 + $0x10] sm:$0xff]  }
   0x2   :  { %v433_v1 = vld [vmem:[%s542_s1] ss:$0 sm:$0xff]  ;;  %v279_v2 = vunpack.c.l.bf16 %v278_v0  ;;  %v280_v3 = vunpack.c.h.bf16 %v278_v0  ;;  %v388_v6 = vld [vmem:[%s544_s3 + $0x8] sm:$0xff]   ;;  %v283_v10 = vunpack.c.l.bf16 %v381_v5  ;;  %v284_v11 = vunpack.c.h.bf16 %v381_v5  ;;  %v389_v13 = vld [vmem:[%s544_s3 + $0x10] sm:$0xff]  }
   0x3   :  { %v310_v4 = vld [vmem:[%s544_s3] sm:$0xff]   ;;  %v315_v16 = vunpack.c.l.bf16 %v388_v6  ;;  %v316_v17 = vunpack.c.h.bf16 %v388_v6  ;;  %v287_v20 = vunpack.c.l.bf16 %v382_v12  ;;  %v288_v21 = vunpack.c.h.bf16 %v382_v12  ;;  %v383_v22 = vld [vmem:[%s541_s0 + $0x18] sm:$0xff]   ;;  %v385_v54 = vld [vmem:[%s541_s0 + $0x28] sm:$0xff]  }
   0x4   :  { %v447_v7 = vld [vmem:[%s543_s2] ss:$0 sm:$0xff]  ;;  %v311_v8 = vunpack.c.l.bf16 %v310_v4  ;;  %v312_v9 = vunpack.c.h.bf16 %v310_v4  ;;  %v56_v14 = vsub.f32 %v279_v2, %v433_v1  ;;  %v57_v15 = vsub.f32 %v280_v3, %v433_v1  ;;  %v390_v39 = vld [vmem:[%s544_s3 + $0x18] sm:$0xff]   ;;  %v392_v63 = vld [vmem:[%s544_s3 + $0x28] sm:$0xff]  }
   0x5   :  { %v58_v18 = vsub.f32 %v283_v10, %v433_v1  ;;  %v59_v19 = vsub.f32 %v284_v11, %v433_v1  ;;  %v319_v25 = vunpack.c.l.bf16 %v389_v13  ;;  %v320_v26 = vunpack.c.h.bf16 %v389_v13  ;;  %v384_v48 = vld [vmem:[%s541_s0 + $0x20] sm:$0xff]   ;;  %v386_v5 = vld [vmem:[%s541_s0 + $0x30] sm:$0xff]  }
   0x6   :  { %v79_v23 = vmul.f32 %v447_v7, %v56_v14  ;;  %v80_v24 = vmul.f32 %v447_v7, %v57_v15  ;;  %v60_v29 = vsub.f32 %v287_v20, %v433_v1  ;;  %v61_v30 = vsub.f32 %v288_v21, %v433_v1  ;;  %v391_v53 = vld [vmem:[%s544_s3 + $0x20] sm:$0xff]   ;;  %v393_v11 = vld [vmem:[%s544_s3 + $0x30] sm:$0xff]   ;;  %v387_v20 = vld [vmem:[%s541_s0 + $0x38] sm:$0xff]  }
   0x7   :  { %v81_v27 = vmul.f32 %v447_v7, %v58_v18  ;;  %v82_v28 = vmul.f32 %v447_v7, %v59_v19  ;;  %v291_v33 = vunpack.c.l.bf16 %v383_v22  ;;  %v292_v34 = vunpack.c.h.bf16 %v383_v22 }
   0x8   :  { %v95_v31 = vmax.f32 %v79_v23, 0.0  ;;  %v96_v32 = vmax.f32 %v80_v24, 0.0  ;;  %v83_v37 = vmul.f32 %v447_v7, %v60_v29  ;;  %v84_v38 = vmul.f32 %v447_v7, %v61_v30 }
   0x9   :  { %v97_v35 = vmax.f32 %v81_v27, 0.0  ;;  %v98_v36 = vmax.f32 %v82_v28, 0.0  ;;  %v62_v42 = vsub.f32 %v291_v33, %v433_v1  ;;  %v63_v43 = vsub.f32 %v292_v34, %v433_v1 }
   0xa   :  { %v143_v40 = vadd.f32 %v311_v8, %v95_v31  ;;  %v144_v41 = vadd.f32 %v312_v9, %v96_v32  ;;  %v99_v46 = vmax.f32 %v83_v37, 0.0  ;;  %v100_v47 = vmax.f32 %v84_v38, 0.0  ;;  %v394_v37 = vld [vmem:[%s544_s3 + $0x38] sm:$0xff]  }
   0xb   :  { %v145_v44 = vadd.f32 %v315_v16, %v97_v35  ;;  %v146_v45 = vadd.f32 %v316_v17, %v98_v36  ;;  %v85_v50 = vmul.f32 %v447_v7, %v62_v42  ;;  %v86_v51 = vmul.f32 %v447_v7, %v63_v43 }
   0xc   :  { %v344_v49 = vpack.c.bf16 %v144_v41, %v143_v40  ;;  %v323_v52 = vunpack.c.l.bf16 %v390_v39  ;;  %v147_v56 = vadd.f32 %v319_v25, %v99_v46  ;;  %v148_v57 = vadd.f32 %v320_v26, %v100_v47 }
   0xd   :  { %v349_v55 = vpack.c.bf16 %v146_v45, %v145_v44  ;;  %v324_v58 = vunpack.c.h.bf16 %v390_v39  ;;  %v101_v59 = vmax.f32 %v85_v50, 0.0  ;;  %v102_v60 = vmax.f32 %v86_v51, 0.0 }
   0xe   :  { %345 = vst [vmem:[%s545_s4] sm:$0xff] %v344_v49   ;;  %v295_v61 = vunpack.c.l.bf16 %v384_v48  ;;  %v296_v62 = vunpack.c.h.bf16 %v384_v48  ;;  %v354_v0 = vpack.c.bf16 %v148_v57, %v147_v56  ;;  %v327_v2 = vunpack.c.l.bf16 %v391_v53 }
   0xf   :  { %395 = vst [vmem:[%s545_s4 + $0x8] sm:$0xff] %v349_v55   ;;  %v328_v3 = vunpack.c.h.bf16 %v391_v53  ;;  %v299_v4 = vunpack.c.l.bf16 %v385_v54  ;;  %v149_v6 = vadd.f32 %v323_v52, %v101_v59  ;;  %v150_v8 = vadd.f32 %v324_v58, %v102_v60 }
  0x10   :  { %v64_v9 = vsub.f32 %v295_v61, %v433_v1  ;;  %v65_v10 = vsub.f32 %v296_v62, %v433_v1  ;;  %396 = vst [vmem:[%s545_s4 + $0x10] sm:$0xff] %v354_v0   ;;  %v300_v12 = vunpack.c.h.bf16 %v385_v54  ;;  %v331_v14 = vunpack.c.l.bf16 %v392_v63 }
  0x11   :  { %v66_v13 = vsub.f32 %v299_v4, %v433_v1  ;;  %v332_v15 = vunpack.c.h.bf16 %v392_v63  ;;  %v359_v16 = vpack.c.bf16 %v150_v8, %v149_v6  ;;  %v303_v19 = vunpack.c.l.bf16 %v386_v5 }
  0x12   :  { %v87_v17 = vmul.f32 %v447_v7, %v64_v9  ;;  %v88_v18 = vmul.f32 %v447_v7, %v65_v10  ;;  %v67_v21 = vsub.f32 %v300_v12, %v433_v1  ;;  %v304_v23 = vunpack.c.h.bf16 %v386_v5 }
  0x13   :  { %v89_v22 = vmul.f32 %v447_v7, %v66_v13  ;;  %v335_v24 = vunpack.c.l.bf16 %v393_v11  ;;  %397 = vst [vmem:[%s545_s4 + $0x18] sm:$0xff] %v359_v16   ;;  %v68_v27 = vsub.f32 %v303_v19, %v433_v1  ;;  %v336_v28 = vunpack.c.h.bf16 %v393_v11 }
  0x14   :  { %v103_v25 = vmax.f32 %v87_v17, 0.0  ;;  %v104_v26 = vmax.f32 %v88_v18, 0.0  ;;  %v90_v29 = vmul.f32 %v447_v7, %v67_v21  ;;  %v69_v31 = vsub.f32 %v304_v23, %v433_v1 }
  0x15   :  { %v105_v30 = vmax.f32 %v89_v22, 0.0  ;;  %v307_v32 = vunpack.c.l.bf16 %v387_v20  ;;  %v91_v35 = vmul.f32 %v447_v7, %v68_v27  ;;  %v308_v36 = vunpack.c.h.bf16 %v387_v20 }
  0x16   :  { %v151_v33 = vadd.f32 %v327_v2, %v103_v25  ;;  %v152_v34 = vadd.f32 %v328_v3, %v104_v26  ;;  %v106_v38 = vmax.f32 %v90_v29, 0.0  ;;  %v92_v40 = vmul.f32 %v447_v7, %v69_v31 }
  0x17   :  { %v153_v39 = vadd.f32 %v331_v14, %v105_v30  ;;  %v70_v41 = vsub.f32 %v307_v32, %v433_v1  ;;  %v107_v43 = vmax.f32 %v91_v35, 0.0  ;;  %v71_v44 = vsub.f32 %v308_v36, %v433_v1 }
  0x18   :  { %v364_v42 = vpack.c.bf16 %v152_v34, %v151_v33  ;;  %v154_v45 = vadd.f32 %v332_v15, %v106_v38  ;;  %v108_v46 = vmax.f32 %v92_v40, 0.0  ;;  %v339_v48 = vunpack.c.l.bf16 %v394_v37 }
  0x19   :  { %v93_v47 = vmul.f32 %v447_v7, %v70_v41  ;;  %v155_v49 = vadd.f32 %v335_v24, %v107_v43  ;;  %v94_v50 = vmul.f32 %v447_v7, %v71_v44  ;;  %v340_v51 = vunpack.c.h.bf16 %v394_v37 }
  0x1a   :  { %398 = vst [vmem:[%s545_s4 + $0x20] sm:$0xff] %v364_v42   ;;  %v369_v52 = vpack.c.bf16 %v154_v45, %v153_v39  ;;  %v156_v53 = vadd.f32 %v336_v28, %v108_v46 }
  0x1b   :  { %v109_v54 = vmax.f32 %v93_v47, 0.0  ;;  %v110_v55 = vmax.f32 %v94_v50, 0.0 }
  0x1c   :  { %399 = vst [vmem:[%s545_s4 + $0x28] sm:$0xff] %v369_v52   ;;  %v374_v1 = vpack.c.bf16 %v156_v53, %v155_v49 }
  0x1d   :  { %v157_v56 = vadd.f32 %v339_v48, %v109_v54  ;;  %v158_v57 = vadd.f32 %v340_v51, %v110_v55 }
  0x1e   :  { %400 = vst [vmem:[%s545_s4 + $0x30] sm:$0xff] %v374_v1  }
  0x1f   :  { %v379_v58 = vpack.c.bf16 %v158_v57, %v157_v56 }
  0x21   :  { %401 = vst [vmem:[%s545_s4 + $0x38] sm:$0xff] %v379_v58  }

// kernel: resnet_forward.130
= control target key start
LH: loop header
LB: loop body
LE: loop exit
PB: predicated region body
PF: predicated region fallthrough
CT: control target
= control target key end

     0   :  { %v795_v16 = vmov 0.0|0.0   ;;  %v402_v55 = vlaneseq  ;;  %s917_s1 = inlined_call_operand.vmem [shape: bf16[128,128], index: 1, kind: input, shape index: {}]   ;;  %s918_s0 = inlined_call_operand.vmem [shape: bf16[128,128], index: 0, kind: input, shape index: {}]   ;;  %s919_s3 = inlined_call_operand.vmem [shape: bf16[128,128], index: 3, kind: output, shape index: {0}]   ;;  %s920_s2 = inlined_call_operand.vmem [shape: f32[1,128], index: 2, kind: input, shape index: {}]   ;;  %s921_s4 = inlined_call_operand.vmem [shape: f32[1,8,128], index: 4, kind: output, shape index: {1}]  }
   0x1   :  { %v779_v0 = vld [vmem:[%s917_s1 + $0x38] sm:$0xff]   ;;  %v780_v1 = vld [vmem:[%s917_s1 + $0x30] sm:$0xff]   ;;  %v781_v2 = vld [vmem:[%s917_s1 + $0x28] sm:$0xff]   ;;  %v671_v17 = vcombine.low %v795_v16, %v795_v16  ;;  %v672_v18 = vcombine.high %v795_v16, %v795_v16 }
   0x2   :  { %730 = vmatprep.subr.bf16.mxu0 %v779_v0  ;;  %762 = vmatprep.subr.bf16.mxu1 %v779_v0  ;;  %v782_v3 = vld [vmem:[%s917_s1 + $0x20] sm:$0xff]   ;;  %v783_v6 = vld [vmem:[%s917_s1 + $0x18] sm:$0xff]   ;;  %v784_v7 = vld [vmem:[%s917_s1 + $0x10] sm:$0xff]   ;;  %v403_v60 = vshrl.u32 %v402_v55, 7 }
   0x3   :  { %731 = vmatpush3.bf16.msra.mxu0 %v779_v0  ;;  %770 = vmatpush3.bf16.msra.mxu1 %v779_v0  ;;  %v787_v4 = vld [vmem:[%s918_s0] sm:$0xff]   ;;  %v785_v8 = vld [vmem:[%s917_s1 + $0x8] sm:$0xff]   ;;  %v791_v12 = vld [vmem:[%s918_s0 + $0x10] sm:$0xff]   ;;  %551 = vst [vmem:[%s919_s3 + $0x10] sm:$0xf] %v671_v17 }
   0x4   :  { %732 = vmatprep.subr.bf16.mxu0 %v780_v1  ;;  %763 = vmatprep.subr.bf16.mxu1 %v780_v1  ;;  %v789_v5 = vld [vmem:[%s918_s0 + $0x20] sm:$0xff]   ;;  %v788_v10 = vld [vmem:[%s918_s0 + $0x8] sm:$0xff]   ;;  %v792_v13 = vld [vmem:[%s918_s0 + $0x30] sm:$0xff]   ;;  %552 = vst [vmem:[%s919_s3 + $0x14] sm:$0xf] %v672_v18  ;;  %vm622_vm0 = vcmp.eq.s32.totalorder %v403_v60, 1 }
   0x5   :  { %746 = vmatprep.mubr.bf16.mxu0 %v787_v4  ;;  %754 = vmatprep.mubr.bf16.mxu1 %v789_v5  ;;  %v786_v9 = vld [vmem:[%s917_s1] sm:$0xff]   ;;  %v790_v11 = vld [vmem:[%s918_s0 + $0x28] sm:$0xff]   ;;  %v793_v14 = vld [vmem:[%s918_s0 + $0x18] sm:$0xff]   ;;  %553 = vst [vmem:[%s919_s3 + $0x18] sm:$0xf] %v671_v17  ;;  %vm621_vm1 = vcmp.eq.s32.totalorder %v403_v60, 0 }
   0x6   :  { %v794_v15 = vld [vmem:[%s918_s0 + $0x38] sm:$0xff]   ;;  %554 = vst [vmem:[%s919_s3 + $0x1c] sm:$0xf] %v672_v18  ;;  %555 = vst [vmem:[%s919_s3 + $0x20] sm:$0xf] %v671_v17 }
   0x7   :  { %733 = vmatpush3.bf16.msra.mxu0 %v780_v1  ;;  %771 = vmatpush3.bf16.msra.mxu1 %v780_v1  ;;  %556 = vst [vmem:[%s919_s3 + $0x24] sm:$0xf] %v672_v18  ;;  %557 = vst [vmem:[%s919_s3 + $0x28] sm:$0xf] %v671_v17  ;;  %v634_v21 = vld [vmem:[%s920_s2] ss:$0 sm:$0xff] }
   0x8   :  { %734 = vmatprep.subr.bf16.mxu0 %v781_v2  ;;  %764 = vmatprep.subr.bf16.mxu1 %v781_v2  ;;  %558 = vst [vmem:[%s919_s3 + $0x2c] sm:$0xf] %v672_v18  ;;  %559 = vst [vmem:[%s919_s3 + $0x30] sm:$0xf] %v671_v17 }
   0x9   :  { %560 = vst [vmem:[%s919_s3 + $0x34] sm:$0xf] %v672_v18  ;;  %561 = vst [vmem:[%s919_s3 + $0x38] sm:$0xf] %v671_v17 }
   0xa   :  { %562 = vst [vmem:[%s919_s3 + $0x3c] sm:$0xf] %v672_v18 }
   0xb   :  { %735 = vmatpush3.bf16.msra.mxu0 %v781_v2  ;;  %772 = vmatpush3.bf16.msra.mxu1 %v781_v2 }
   0xc   :  { %736 = vmatprep.subr.bf16.mxu0 %v782_v3  ;;  %765 = vmatprep.subr.bf16.mxu1 %v782_v3 }
   0xf   :  { %737 = vmatpush3.bf16.msra.mxu0 %v782_v3  ;;  %773 = vmatpush3.bf16.msra.mxu1 %v782_v3 }
  0x10   :  { %738 = vmatprep.subr.bf16.mxu0 %v783_v6  ;;  %766 = vmatprep.subr.bf16.mxu1 %v783_v6 }
  0x13   :  { %739 = vmatpush3.bf16.msra.mxu0 %v783_v6  ;;  %774 = vmatpush3.bf16.msra.mxu1 %v783_v6 }
  0x14   :  { %740 = vmatprep.subr.bf16.mxu0 %v784_v7  ;;  %767 = vmatprep.subr.bf16.mxu1 %v784_v7 }
  0x17   :  { %741 = vmatpush3.bf16.msra.mxu0 %v784_v7  ;;  %775 = vmatpush3.bf16.msra.mxu1 %v784_v7 }
  0x18   :  { %742 = vmatprep.subr.bf16.mxu0 %v785_v8  ;;  %768 = vmatprep.subr.bf16.mxu1 %v785_v8 }
  0x1b   :  { %743 = vmatpush3.bf16.msra.mxu0 %v785_v8  ;;  %776 = vmatpush3.bf16.msra.mxu1 %v785_v8 }
  0x1c   :  { %744 = vmatprep.subr.bf16.mxu0 %v786_v9  ;;  %769 = vmatprep.subr.bf16.mxu1 %v786_v9 }
  0x1f   :  { %745 = vmatpush3.bf16.msra.mxu0 %v786_v9  ;;  %777 = vmatpush3.bf16.msra.mxu1 %v786_v9 }
  0x22   :  { %747 = vmatmul.mubr.bf16.vlgmr.msra.gmra.mxu0 %v788_v10  ;;  %755 = vmatmul.mubr.bf16.vlgmr.msra.gmra.mxu1 %v790_v11 }
  0x23   :  { %750 = vmatprep.mubr.bf16.mxu0 %v791_v12  ;;  %758 = vmatprep.mubr.bf16.mxu1 %v792_v13 }
  0x2a   :  { %751 = vmatmul.mubr.bf16.gmra.mxu0 %v793_v14  ;;  %759 = vmatmul.mubr.bf16.gmra.mxu1 %v794_v15 }
  0xe2   :  { %v748_v19 = vpop.f32.mrf.mxu0  ;;  %v756_v20 = vpop.f32.mrf.mxu1 }
  0xe3   :  { %v195_v26 = vadd.f32 %v748_v19, %v634_v21 }
  0xe4   :  { %v186_v22 = vpop.f32.mrf.mxu0  ;;  %v218_v23 = vpop.f32.mrf.mxu1 }
  0xe5   :  { %v187_v27 = vadd.f32 %v634_v21, %v186_v22  ;;  %v586_v41 = vmul.f32 %v195_v26, %v195_v26 }
  0xe6   :  { %v749_v24 = vpop.f32.mrf.mxu0  ;;  %v757_v25 = vpop.f32.mrf.mxu1 }
  0xe7   :  { %v198_v28 = vadd.f32 %v749_v24, %v634_v21  ;;  %v584_v35 = vmul.f32 %v187_v27, %v187_v27 }
  0xe8   :  { %v189_v29 = vpop.f32.mrf.mxu0  ;;  %v221_v30 = vpop.f32.mrf.mxu1 }
  0xe9   :  { %v711_v31 = vpack.c.bf16 %v198_v28, %v195_v26  ;;  %v190_v32 = vadd.f32 %v634_v21, %v189_v29  ;;  %v587_v46 = vmul.f32 %v198_v28, %v198_v28 }
  0xea   :  { %v752_v33 = vpop.f32.mrf.mxu0  ;;  %v760_v34 = vpop.f32.mrf.mxu1 }
  0xeb   :  { %713 = vst [vmem:[%s919_s3 + $0x8] sm:$0xff] %v711_v31   ;;  %v706_v36 = vpack.c.bf16 %v190_v32, %v187_v27  ;;  %v563_v37 = vadd.f32 %v190_v32, %v187_v27  ;;  %v585_v38 = vmul.f32 %v190_v32, %v190_v32 }
  0xec   :  { %v202_v39 = vpop.f32.mrf.mxu0  ;;  %v234_v40 = vpop.f32.mrf.mxu1 }
  0xed   :  { %707 = vst [vmem:[%s919_s3] sm:$0xff] %v706_v36   ;;  %v564_v42 = vadd.f32 %v563_v37, %v195_v26  ;;  %v600_v43 = vadd.f32 %v585_v38, %v584_v35 }
  0xee   :  { %v753_v44 = vpop.f32.mrf.mxu0  ;;  %v761_v45 = vpop.f32.mrf.mxu1 }
  0xef   :  { %v565_v47 = vadd.f32 %v564_v42, %v198_v28  ;;  %v601_v48 = vadd.f32 %v600_v43, %v586_v41 }
  0xf0   :  { %v205_v49 = vpop.f32.mrf.mxu0  ;;  %v237_v50 = vpop.f32.mrf.mxu1 }
  0xf1   :  { %v578_v51 = vrot.slane %v565_v47, 4  ;;  %v602_v52 = vadd.f32 %v601_v48, %v587_v46 }
  0xf3   :  { %v579_v53 = vadd.f32 %v578_v51, %v565_v47  ;;  %v615_v54 = vrot.slane %v602_v52, 4 }
  0xf5   :  { %v580_v56 = vrot.slane %v579_v53, 2  ;;  %v616_v57 = vadd.f32 %v615_v54, %v602_v52 }
  0xf7   :  { %v581_v58 = vadd.f32 %v580_v56, %v579_v53  ;;  %v617_v59 = vrot.slane %v616_v57, 2 }
  0xf9   :  { %v618_v61 = vadd.f32 %v617_v59, %v616_v57  ;;  %v582_v62 = vrot.slane %v581_v58, 1 }
  0xfb   :  { %v619_v63 = vrot.slane %v618_v61, 1  ;;  %v583_v1 = vadd.f32 %v582_v62, %v581_v58 }
  0xfd   :  { %v620_v0 = vadd.f32 %v619_v63, %v618_v61 }
  0xff   :  { %v623_v2 = vsel %vm622_vm0, %v620_v0, 0.0 }
 0x100   :  { %v624_v3 = vsel %vm621_vm1, %v583_v1, %v623_v2 }
 0x101   :  { %625 = vst [vmem:[%s921_s4] sm:$0xff] %v624_v3 }

// kernel: resnet_forward.118
= control target key start
LH: loop header
LB: loop body
LE: loop exit
PB: predicated region body
PF: predicated region fallthrough
CT: control target
= control target key end

     0   :  { %s3316_s15 = smov 0   ;;  %s3318_s16 = smov 0   ;;  %s3892_s0 = inlined_call_operand.vmem [shape: bf16[2,10,10,128], index: 0, kind: input, shape index: {}]   ;;  %s3893_s1 = inlined_call_operand.vmem [shape: bf16[9,128,128], index: 1, kind: input, shape index: {}]   ;;  %s3894_s2 = inlined_call_operand.vmem [shape: f32[1,128], index: 2, kind: input, shape index: {}]   ;;  %s3895_s3 = inlined_call_operand.vmem [shape: bf16[2,8,8,128], index: 3, kind: output, shape index: {0}]   ;;  %s3896_s4 = inlined_call_operand.vmem [shape: f32[2,8,128], index: 4, kind: output, shape index: {1}]  }
   0x1   :  { %s3320_s17 = smov 0  }
   0x2 LB: > { %s27_s18 = sadd.s32 1, %s3285_s16  ;;  %p2462_p0 = scmp.ge.s32.totalorder %s3289_s17, 1  ;;  %s3289_s17 = sphi %s3320_s17, %s15_s17   ;;  %s3285_s16 = sphi %s3318_s16, %s3908_s16   ;;  %s3281_s15 = sphi %s3316_s15, %s3907_s15  }
   0x3   : > { %p29_p1 = scmp.ge.s32.totalorder %s27_s18, 2  ;;  %p198_p2 = scmp.lt.s32.totalorder %s3289_s17, 3 }
   0x5   : > { %s3910_s18 = smov (%p29_p1, %s27_s18), 0  ;;  %p199_p3 = pnand %p2462_p0, %p198_p2 }
   0x7   : > { %202 = sbr.rel (%p199_p3) target bundleno = 407 (0x197), region = 32 }
   0xc   : > { %v3183_v0 = vld [vmem:[%s3893_s1 + $0x78] sm:$0xff]   ;;  %p241_p4 = scmp.lt.s32.totalorder %s3281_s15, 1  ;;  %v3185_v2 = vld [vmem:[%s3893_s1 + $0x70] sm:$0xff]   ;;  %v3187_v4 = vld [vmem:[%s3893_s1 + $0x68] sm:$0xff]   ;;  %vm301_vm0 = vsmask.f32 3328 }
   0xd   : > { %v3184_v1 = vld [vmem:[%s3893_s1 + $0x38] sm:$0xff]   ;;  %2926 = vmatprep.subr.bf16.mxu0 %v3183_v0  ;;  %v3186_v3 = vld [vmem:[%s3893_s1 + $0x30] sm:$0xff]   ;;  %v3188_v5 = vld [vmem:[%s3893_s1 + $0x28] sm:$0xff]   ;;  %vm302_vm1 = vsmask.f32 7440  ;;  %vm723_vm3 = vcmask 1042432  }
   0xe   : > { %2950 = vmatprep.subr.bf16.mxu1 %v3184_v1  ;;  %2927 = vmatpush3.bf16.msra.mxu0 %v3183_v0  ;;  %s3912_s15 = smov (!%p241_p4, %s3281_s15), 1  ;;  %v3189_v6 = vld [vmem:[%s3893_s1 + $0x60] sm:$0xff]   ;;  %v3191_v8 = vld [vmem:[%s3893_s1 + $0x58] sm:$0xff]   ;;  %v3193_v10 = vld [vmem:[%s3893_s1 + $0x50] sm:$0xff]   ;;  %vm724_vm4 = vcmask 1046532  }
   0xf   : > { %2951 = vmatpush3.bf16.msra.mxu1 %v3184_v1  ;;  %2928 = vmatprep.subr.bf16.mxu0 %v3185_v2  ;;  %v3190_v7 = vld [vmem:[%s3893_s1 + $0x20] sm:$0xff]   ;;  %s3158_s9 = smul.u32 80, %s3912_s15  ;;  %v3192_v9 = vld [vmem:[%s3893_s1 + $0x18] sm:$0xff]   ;;  %v3194_v14 = vld [vmem:[%s3893_s1 + $0x10] sm:$0xff]   ;;  %s2794_s19 = sshll.u32 %s3912_s15, 5 }
  0x10   : > { %2952 = vmatprep.subr.bf16.mxu1 %v3186_v3  ;;  %v3195_v17 = vld [vmem:[%s3893_s1 + $0x48] sm:$0xff]   ;;  %vm3413_vm2 = vmor %vm301_vm0, %vm302_vm1  ;;  %v3197_v46 = vld [vmem:[%s3893_s1 + $0x40] sm:$0xff]   ;;  %s260_s23 = scalar_lea.vmem %s3895_s3, %s2794_s19  ;;  %s2466_s24 = sshll.u32 %s3912_s15, 3 }
  0x11   : > { %s3370_s20 = scalar_lea.vmem %s3892_s0, %s3158_s9  ;;  %v3196_v23 = vld [vmem:[%s3893_s1 + $0x8] sm:$0xff]   ;;  %v3198_v50 = vld [vmem:[%s3893_s1] sm:$0xff]   ;;  %v3201_v59 = vld [vmem:[%s3893_s1 + $0xb8] sm:$0xff]   ;;  %s267_s27 = scalar_lea.vmem %s3896_s4, %s2466_s24 }
  0x12   : > { %2929 = vmatpush3.bf16.msra.mxu0 %v3185_v2  ;;  %v269_v11 = vld [vmem:[%s3370_s20] sm:$0xf]  ;;  %v270_v12 = vld [vmem:[%s3370_s20 + $0x8] sm:$0xf]  ;;  %v3378_v13 = vld [vmem:[%s3370_s20 + $0x4] sm:$0x1] }
  0x13   : > { %2953 = vmatpush3.bf16.msra.mxu1 %v3186_v3  ;;  %2930 = vmatprep.subr.bf16.mxu0 %v3187_v4  ;;  %v3384_v15 = vld [vmem:[%s3370_s20 + $0xc] sm:$0x1]  ;;  %v2495_v16 = vcombine.low %v269_v11, %v270_v12  ;;  %v305_v18 = vshrl.u32 %v269_v11, 16  ;;  %v308_v19 = vshll.u32 %v269_v11, 16  ;;  %v314_v20 = vshll.u32 %v3378_v13, 16  ;;  %v3202_v62 = vld [vmem:[%s3893_s1 + $0xf8] sm:$0xff]   ;;  %vm3496_vm5 = vmor %vm723_vm3, %vm724_vm4 }
  0x14   : > { %2954 = vmatprep.subr.bf16.mxu1 %v3188_v5  ;;  %v319_v21 = vshrl.u32 %v270_v12, 16  ;;  %v3391_v22 = vld [vmem:[%s3370_s20 + $0x10] sm:$0xf]  ;;  %v322_v24 = vshll.u32 %v270_v12, 16  ;;  %v328_v25 = vshll.u32 %v3384_v15, 16  ;;  %v3206_v11 = vld [vmem:[%s3893_s1 + $0xe8] sm:$0xff]  }
  0x15   : > { %2966 = vmatprep.mubr.bf16.mxu1 %v2495_v16  ;;  %v3398_v26 = vld [vmem:[%s3370_s20 + $0x18] sm:$0xf]  ;;  %v307_v27 = vrot.slane %v305_v18, 4  ;;  %v310_v28 = vrot.slane %v308_v19, 5  ;;  %v316_v29 = vrot.slane %v314_v20, 5  ;;  %v333_v35 = vshrl.u32 %v3391_v22, 16 }
  0x16   : > { %2931 = vmatpush3.bf16.msra.mxu0 %v3187_v4  ;;  %v321_v30 = vrot.slane %v319_v21, 4  ;;  %v3401_v31 = vld [vmem:[%s3370_s20 + $0x14] sm:$0x1]  ;;  %v324_v32 = vrot.slane %v322_v24, 5  ;;  %v330_v33 = vrot.slane %v328_v25, 5  ;;  %v336_v36 = vshll.u32 %v3391_v22, 16 }
  0x17   : > { %2955 = vmatpush3.bf16.msra.mxu1 %v3188_v5  ;;  %2932 = vmatprep.subr.bf16.mxu0 %v3189_v6  ;;  %v3404_v34 = vld [vmem:[%s3370_s20 + $0x1c] sm:$0x1]  ;;  %v311_v37 = vor.u32 %v310_v28, %v307_v27  ;;  %v342_v38 = vshll.u32 %v3401_v31, 16  ;;  %v347_v39 = vshrl.u32 %v3398_v26, 16  ;;  %v350_v40 = vshll.u32 %v3398_v26, 16  ;;  %v3203_v3 = vld [vmem:[%s3893_s1 + $0xb0] sm:$0xff]  }
  0x18   : > { %2956 = vmatprep.subr.bf16.mxu1 %v3190_v7  ;;  %v325_v42 = vor.u32 %v324_v32, %v321_v30  ;;  %v335_v43 = vrot.slane %v333_v35, 4  ;;  %v338_v44 = vrot.slane %v336_v36, 5  ;;  %v356_v45 = vshll.u32 %v3404_v34, 16  ;;  %v3204_v5 = vld [vmem:[%s3893_s1 + $0xf0] sm:$0xff]   ;;  %v3469_v28 = vld [vmem:[%s3370_s20 + $0x3c] sm:$0x1] }
  0x19   : > { %v312_v47 = vrot.slane %v311_v37, 4  ;;  %v349_v48 = vrot.slane %v347_v39, 4  ;;  %v352_v49 = vrot.slane %v350_v40, 5  ;;  %v344_v53 = vrot.slane %v342_v38, 5  ;;  %v275_v18 = vld [vmem:[%s3370_s20 + $0x30] sm:$0xf] }
  0x1a   : > { %2933 = vmatpush3.bf16.msra.mxu0 %v3189_v6  ;;  %v326_v51 = vrot.slane %v325_v42, 4  ;;  %v339_v52 = vor.u32 %v338_v44, %v335_v43  ;;  %v358_v56 = vrot.slane %v356_v45, 5  ;;  %v2496_v2 = vcombine.low %v3391_v22, %v3398_v26  ;;  %v273_v6 = vld [vmem:[%s3370_s20 + $0x20] sm:$0xf]  ;;  %v276_v22 = vld [vmem:[%s3370_s20 + $0x38] sm:$0xf] }
  0x1b   : > { %2957 = vmatpush3.bf16.msra.mxu1 %v3190_v7  ;;  %2934 = vmatprep.subr.bf16.mxu0 %v3191_v8  ;;  %v317_v54 = vsel %vm3413_vm2, %v312_v47, %v316_v29  ;;  %v353_v55 = vor.u32 %v352_v49, %v349_v48  ;;  %v728_v4 = vrot.slane %v3378_v13, 5  ;;  %v3205_v7 = vld [vmem:[%s3893_s1 + $0xa8] sm:$0xff]   ;;  %v361_v12 = vshrl.u32 %v273_v6, 16  ;;  %v3207_v39 = vld [vmem:[%s3893_s1 + $0xa0] sm:$0xff]   ;;  %v702_v13 = vld [vmem:[%s3370_s20 + $0x18] sm:$0xe] }
  0x1c   : > { %2958 = vmatprep.subr.bf16.mxu1 %v3192_v9  ;;  %v331_v57 = vsel %vm3413_vm2, %v326_v51, %v330_v33  ;;  %v340_v58 = vrot.slane %v339_v52, 4  ;;  %v389_v32 = vshrl.u32 %v275_v18, 16  ;;  %v392_v33 = vshll.u32 %v275_v18, 16  ;;  %v3208_v45 = vld [vmem:[%s3893_s1 + $0xe0] sm:$0xff]  }
  0x1d   : > { %v2483_v60 = vcombine.low %v317_v54, %v331_v57  ;;  %v354_v61 = vrot.slane %v353_v55, 4  ;;  %v363_v24 = vrot.slane %v361_v12, 4  ;;  %v403_v37 = vshrl.u32 %v276_v22, 16  ;;  %v3209_v57 = vld [vmem:[%s3893_s1 + $0x98] sm:$0xff]   ;;  %v3262_v41 = vld [vmem:[%s3893_s1 + $0x220] sm:$0xff]  }
  0x1e   : > { %2935 = vmatpush3.bf16.msra.mxu0 %v3191_v8  ;;  %v345_v63 = vsel %vm3413_vm2, %v340_v58, %v344_v53  ;;  %v274_v8 = vld [vmem:[%s3370_s20 + $0x28] sm:$0xf]  ;;  %v406_v38 = vshll.u32 %v276_v22, 16  ;;  %v391_v42 = vrot.slane %v389_v32, 4  ;;  %v394_v43 = vrot.slane %v392_v33, 5 }
  0x1f   : > { %2959 = vmatpush3.bf16.msra.mxu1 %v3192_v9  ;;  %2936 = vmatprep.subr.bf16.mxu0 %v3193_v10  ;;  %v359_v0 = vsel %vm3413_vm2, %v354_v61, %v358_v56  ;;  %v3453_v9 = vld [vmem:[%s3370_s20 + $0x24] sm:$0x1]  ;;  %v378_v19 = vshll.u32 %v274_v8, 16  ;;  %v2497_v21 = vcombine.low %v273_v6, %v274_v8  ;;  %v412_v44 = vshll.u32 %v3469_v28, 16 }
  0x20   : > { %2960 = vmatprep.subr.bf16.mxu1 %v3194_v14  ;;  %2942 = vmatprep.mubr.bf16.mxu0 %v2483_v60  ;;  %v2484_v1 = vcombine.low %v345_v63, %v359_v0  ;;  %v370_v16 = vshll.u32 %v3453_v9, 16  ;;  %v405_v47 = vrot.slane %v403_v37, 4  ;;  %v408_v48 = vrot.slane %v406_v38, 5  ;;  %v699_v63 = vld [vmem:[%s3370_s20] sm:$0xe] }
  0x21   : > { %v380_v29 = vrot.slane %v378_v19, 5  ;;  %v2498_v52 = vcombine.low %v275_v18, %v276_v22  ;;  %v732_v53 = vrot.slane %v3384_v15, 5  ;;  %v414_v56 = vrot.slane %v412_v44, 5  ;;  %v3210_v15 = vld [vmem:[%s3893_s1 + $0xd8] sm:$0xff]   ;;  %v700_v0 = vld [vmem:[%s3370_s20 + $0x8] sm:$0xe] }
  0x22   : > { %2937 = vmatpush3.bf16.msra.mxu0 %v3193_v10  ;;  %v3456_v10 = vld [vmem:[%s3370_s20 + $0x2c] sm:$0x1]  ;;  %v372_v26 = vrot.slane %v370_v16, 5  ;;  %v409_v55 = vor.u32 %v408_v48, %v405_v47  ;;  %v701_v18 = vld [vmem:[%s3370_s20 + $0x10] sm:$0xe]  ;;  %v736_v19 = vrot.slane %v3401_v31, 5 }
  0x23   : > { %2961 = vmatpush3.bf16.msra.mxu1 %v3194_v14  ;;  %2938 = vmatprep.subr.bf16.mxu0 %v3195_v17  ;;  %v364_v14 = vshll.u32 %v273_v6, 16  ;;  %v384_v20 = vshll.u32 %v3456_v10, 16  ;;  %v2508_v6 = vrot.slane %v700_v0, 9  ;;  %v3215_v16 = vld [vmem:[%s3893_s1 + $0x88] sm:$0xff]   ;;  %v2509_v22 = vrot.slane %v701_v18, 9 }
  0x24   : > { %2962 = vmatprep.subr.bf16.mxu1 %v3196_v23  ;;  %v410_v61 = vrot.slane %v409_v55, 4  ;;  %v744_v31 = vrot.slane %v3453_v9, 5  ;;  %v705_v9 = vld [vmem:[%s3370_s20 + $0x30] sm:$0xe]  ;;  %v756_v37 = vrot.slane %v3469_v28, 5 }
  0x25   : > { %v366_v25 = vrot.slane %v364_v14, 5  ;;  %v386_v30 = vrot.slane %v384_v20, 5  ;;  %v733_v12 = vsel %vm3496_vm5, %v2508_v6, %v732_v53  ;;  %v3219_v14 = vld [vmem:[%s3370_s20 + $0x8] ss:$8 sps:$4 sm:$0xff]   ;;  %v740_v20 = vrot.slane %v3404_v34, 5 }
  0x26   : > { %2939 = vmatpush3.bf16.msra.mxu0 %v3195_v17  ;;  %v375_v17 = vshrl.u32 %v274_v8, 16  ;;  %v3214_v8 = vld [vmem:[%s3893_s1 + $0xd0] sm:$0xff]   ;;  %v748_v34 = vrot.slane %v3456_v10, 5  ;;  %v706_v10 = vld [vmem:[%s3370_s20 + $0x38] sm:$0xe] }
  0x27   : > { %2963 = vmatpush3.bf16.msra.mxu1 %v3196_v23  ;;  %2940 = vmatprep.subr.bf16.mxu0 %v3197_v46  ;;  %v3466_v23 = vld [vmem:[%s3370_s20 + $0x34] sm:$0x1]  ;;  %v367_v35 = vor.u32 %v366_v25, %v363_v24  ;;  %v2510_v24 = vrot.slane %v702_v13, 9  ;;  %v703_v25 = vld [vmem:[%s3370_s20 + $0x20] sm:$0xe]  ;;  %v2514_v44 = vrot.slane %v706_v10, 9 }
  0x28   : > { %2964 = vmatprep.subr.bf16.mxu1 %v3198_v50  ;;  %v377_v27 = vrot.slane %v375_v17, 4  ;;  %v398_v36 = vshll.u32 %v3466_v23, 16  ;;  %v2511_v32 = vrot.slane %v703_v25, 9  ;;  %v3224_v28 = vld [vmem:[%s3893_s1 + $0x170] sm:$0xff]   ;;  %v2579_v55 = vld [vmem:[%s3370_s20 + $0x8] sm:$0xf] }
  0x29   : > { %v3227_v47 = vld [vmem:[%s3370_s20 + $0x28] ss:$8 sps:$4 sm:$0xff]   ;;  %v3590_v6 = vld [vmem:[%s3370_s20 + $0x1c] sm:$0x1] }
  0x2a   : > { %2941 = vmatpush3.bf16.msra.mxu0 %v3197_v46  ;;  %v381_v40 = vor.u32 %v380_v29, %v377_v27  ;;  %v368_v46 = vrot.slane %v367_v35, 4  ;;  %v400_v51 = vrot.slane %v398_v36, 5  ;;  %v3218_v27 = vld [vmem:[%s3893_s1 + $0xc0] sm:$0xff]   ;;  %v752_v29 = vrot.slane %v3466_v23, 5  ;;  %v3221_v23 = vld [vmem:[%s3893_s1 + $0x178] sm:$0xff]   ;;  %v3234_v10 = vld [vmem:[%s3893_s1 + $0x150] sm:$0xff]  }
  0x2b   : > { %2965 = vmatpush3.bf16.msra.mxu1 %v3198_v50  ;;  %2974 = vmatprep.subr.bf16.mxu0 %v3201_v59  ;;  %v395_v50 = vor.u32 %v394_v43, %v391_v42  ;;  %v737_v35 = vsel %vm3496_vm5, %v2509_v22, %v736_v19  ;;  %v741_v36 = vsel %vm3496_vm5, %v2510_v24, %v740_v20  ;;  %v2513_v43 = vrot.slane %v705_v9, 9  ;;  %v2623_v20 = vld [vmem:[%s3370_s20 + $0x8] sm:$0xe] }
  0x2c   : > { %2998 = vmatprep.subr.bf16.mxu1 %v3202_v62  ;;  %v382_v49 = vrot.slane %v381_v40, 4  ;;  %v373_v54 = vsel %vm3413_vm2, %v368_v46, %v372_v26  ;;  %v704_v26 = vld [vmem:[%s3370_s20 + $0x28] sm:$0xe]  ;;  %v2532_v38 = vcombine.low %v737_v35, %v741_v36  ;;  %v745_v40 = vsel %vm3496_vm5, %v2511_v32, %v744_v31  ;;  %v3233_v32 = vld [vmem:[%s3893_s1 + $0x110] sm:$0xff]  }
  0x2d   : > { %2943 = vmatmul.mubr.bf16.vlgmr.msra.gmra.mxu0 %v2484_v1  ;;  %v2512_v33 = vrot.slane %v704_v26, 9  ;;  %v753_v48 = vsel %vm3496_vm5, %v2513_v43, %v752_v29  ;;  %v1137_v19 = vshll.u32 %v3590_v6, 16 }
  0x2e   : > { %2967 = vmatmul.mubr.bf16.vlgmr.msra.gmra.mxu1 %v2496_v2  ;;  %2975 = vmatpush3.bf16.msra.mxu0 %v3201_v59  ;;  %v387_v58 = vsel %vm3413_vm2, %v382_v49, %v386_v30  ;;  %v396_v59 = vrot.slane %v395_v50, 4  ;;  %v415_v2 = vsel %vm3413_vm2, %v410_v61, %v414_v56  ;;  %v3220_v30 = vld [vmem:[%s3893_s1 + $0x138] sm:$0xff]   ;;  %v757_v49 = vsel %vm3496_vm5, %v2514_v44, %v756_v37  ;;  %v3225_v50 = vld [vmem:[%s3893_s1 + $0x128] sm:$0xff]  }
  0x2f   : > { %2999 = vmatpush3.bf16.msra.mxu1 %v3202_v62  ;;  %2976 = vmatprep.subr.bf16.mxu0 %v3203_v3  ;;  %v2485_v60 = vcombine.low %v373_v54, %v387_v58  ;;  %v749_v42 = vsel %vm3496_vm5, %v2512_v33, %v748_v34  ;;  %v2534_v53 = vcombine.low %v753_v48, %v757_v49  ;;  %v3229_v54 = vld [vmem:[%s3893_s1 + $0x120] sm:$0xff]   ;;  %v3577_v56 = vld [vmem:[%s3370_s20 + $0xc] sm:$0x1]  ;;  %v2581_v58 = vld [vmem:[%s3370_s20 + $0x10] sm:$0xf] }
  0x30   : > { %3000 = vmatprep.subr.bf16.mxu1 %v3204_v5  ;;  %2970 = vmatprep.mubr.bf16.mxu1 %v2497_v21  ;;  %v401_v62 = vsel %vm3413_vm2, %v396_v59, %v400_v51  ;;  %v3217_v21 = vld [vmem:[%s3893_s1 + $0x80] sm:$0xff]   ;;  %v2533_v46 = vcombine.low %v745_v40, %v749_v42  ;;  %v3226_v51 = vld [vmem:[%s3893_s1 + $0x168] sm:$0xff]   ;;  %v3584_v59 = vld [vmem:[%s3370_s20 + $0x14] sm:$0x1]  ;;  %v1109_v61 = vshll.u32 %v3577_v56, 16 }
  0x31   : > { %2946 = vmatprep.mubr.bf16.mxu0 %v2485_v60  ;;  %v1103_v60 = vshll.u32 %v2579_v55, 16  ;;  %v1123_v0 = vshll.u32 %v3584_v59, 16  ;;  %v1395_v44 = vrot.slane %v3584_v59, 5  ;;  %v2587_v59 = vld [vmem:[%s3370_s20 + $0x28] sm:$0xf] }
  0x32   : > { %2977 = vmatpush3.bf16.msra.mxu0 %v3203_v3  ;;  %v3213_v3 = vld [vmem:[%s3893_s1 + $0x90] sm:$0xff]  }
  0x33   : > { %3001 = vmatpush3.bf16.msra.mxu1 %v3204_v5  ;;  %2978 = vmatprep.subr.bf16.mxu0 %v3205_v7  ;;  %v2507_v5 = vrot.slane %v699_v63, 9  ;;  %v1117_v63 = vshll.u32 %v2581_v58, 16 }
  0x34   : > { %3002 = vmatprep.subr.bf16.mxu1 %v3206_v11 }
  0x36   : > { %2979 = vmatpush3.bf16.msra.mxu0 %v3205_v7  ;;  %2971 = vmatmul.mubr.bf16.gmra.mxu1 %v2498_v52  ;;  %v2486_v7 = vcombine.low %v401_v62, %v415_v2  ;;  %v3228_v52 = vld [vmem:[%s3370_s20 + $0x38] ss:$8 sps:$4 sm:$0xff]   ;;  %v1114_v62 = vshrl.u32 %v2581_v58, 16 }
  0x37   : > { %3003 = vmatpush3.bf16.msra.mxu1 %v3206_v11  ;;  %2980 = vmatprep.subr.bf16.mxu0 %v3207_v39  ;;  %v729_v11 = vsel %vm3496_vm5, %v2507_v5, %v728_v4  ;;  %v3216_v4 = vld [vmem:[%s3893_s1 + $0xc8] sm:$0xff]   ;;  %v2583_v2 = vld [vmem:[%s3370_s20 + $0x18] sm:$0xf]  ;;  %v1105_v5 = vrot.slane %v1103_v60, 5 }
  0x38   : > { %3004 = vmatprep.subr.bf16.mxu1 %v3208_v45  ;;  %2947 = vmatmul.mubr.bf16.gmra.mxu0 %v2486_v7  ;;  %v2531_v17 = vcombine.low %v729_v11, %v733_v12  ;;  %v2585_v7 = vld [vmem:[%s3370_s20 + $0x20] sm:$0xf]  ;;  %v1116_v11 = vrot.slane %v1114_v62, 4  ;;  %v1119_v12 = vrot.slane %v1117_v63, 5  ;;  %v1128_v13 = vshrl.u32 %v2583_v2, 16 }
  0x39   : > { %3014 = vmatprep.mubr.bf16.mxu1 %v3219_v14  ;;  %v1125_v14 = vrot.slane %v1123_v0, 5  ;;  %v1142_v24 = vshrl.u32 %v2585_v7, 16  ;;  %v1145_v25 = vshll.u32 %v2585_v7, 16  ;;  %v3638_v60 = vld [vmem:[%s3370_s20 + $0x2c] sm:$0x1]  ;;  %v3237_v7 = vld [vmem:[%s3893_s1 + $0x100] sm:$0xff]  }
  0x3a   : > { %2981 = vmatpush3.bf16.msra.mxu0 %v3207_v39  ;;  %2990 = vmatprep.mubr.bf16.mxu0 %v2531_v17  ;;  %v3222_v39 = vld [vmem:[%s3370_s20 + $0x18] ss:$8 sps:$4 sm:$0xff]   ;;  %v1120_v22 = vor.u32 %v1119_v12, %v1116_v11  ;;  %v1130_v34 = vrot.slane %v1128_v13, 4  ;;  %v3642_v62 = vld [vmem:[%s3370_s20 + $0x34] sm:$0x1]  ;;  %v1165_v11 = vshll.u32 %v3638_v60, 16 }
  0x3b   : > { %3005 = vmatpush3.bf16.msra.mxu1 %v3208_v45  ;;  %2982 = vmatprep.subr.bf16.mxu0 %v3209_v57  ;;  %v3223_v45 = vld [vmem:[%s3893_s1 + $0x130] sm:$0xff]   ;;  %v3231_v17 = vld [vmem:[%s3893_s1 + $0x118] sm:$0xff]   ;;  %v1144_v35 = vrot.slane %v1142_v24, 4  ;;  %v1147_v36 = vrot.slane %v1145_v25, 5  ;;  %v1179_v13 = vshll.u32 %v3642_v62, 16  ;;  %v3238_v25 = vld [vmem:[%s3893_s1 + $0x140] sm:$0xff]  }
  0x3c   : > { %3006 = vmatprep.subr.bf16.mxu1 %v3210_v15  ;;  %v1121_v33 = vrot.slane %v1120_v22, 4 }
  0x3d   : > { %v1148_v42 = vor.u32 %v1147_v36, %v1144_v35 }
  0x3e   : > { %2983 = vmatpush3.bf16.msra.mxu0 %v3209_v57  ;;  %v3230_v57 = vld [vmem:[%s3893_s1 + $0x160] sm:$0xff]   ;;  %v1126_v40 = vsel %vm3413_vm2, %v1121_v33, %v1125_v14 }
  0x3f   : > { %3007 = vmatpush3.bf16.msra.mxu1 %v3210_v15  ;;  %2984 = vmatprep.subr.bf16.mxu0 %v3213_v3  ;;  %v1100_v15 = vshrl.u32 %v2579_v55, 16  ;;  %v3236_v55 = vld [vmem:[%s3893_s1 + $0x148] sm:$0xff]  }
  0x40   : > { %3008 = vmatprep.subr.bf16.mxu1 %v3214_v8 }
  0x42   : > { %2985 = vmatpush3.bf16.msra.mxu0 %v3213_v3  ;;  %v1102_v3 = vrot.slane %v1100_v15, 4 }
  0x43   : > { %3009 = vmatpush3.bf16.msra.mxu1 %v3214_v8  ;;  %2986 = vmatprep.subr.bf16.mxu0 %v3215_v16  ;;  %v1111_v8 = vrot.slane %v1109_v61, 5  ;;  %v2589_v61 = vld [vmem:[%s3370_s20 + $0x30] sm:$0xf] }
  0x44   : > { %3010 = vmatprep.subr.bf16.mxu1 %v3216_v4  ;;  %v1106_v18 = vor.u32 %v1105_v5, %v1102_v3  ;;  %v1159_v3 = vshll.u32 %v2587_v59, 16  ;;  %v2591_v5 = vld [vmem:[%s3370_s20 + $0x38] sm:$0xf]  ;;  %v1170_v12 = vshrl.u32 %v2589_v61, 16  ;;  %v1173_v14 = vshll.u32 %v2589_v61, 16  ;;  %v3242_v61 = vld [vmem:[%s3893_s1 + $0x1f0] sm:$0xff]  }
  0x45   : > { %v1187_v24 = vshll.u32 %v2591_v5, 16 }
  0x46   : > { %2987 = vmatpush3.bf16.msra.mxu0 %v3215_v16  ;;  %v3594_v16 = vld [vmem:[%s3370_s20 + $0x24] sm:$0x1]  ;;  %v1107_v31 = vrot.slane %v1106_v18, 4  ;;  %v1161_v18 = vrot.slane %v1159_v3, 5  ;;  %v1175_v22 = vrot.slane %v1173_v14, 5 }
  0x47   : > { %3011 = vmatpush3.bf16.msra.mxu1 %v3216_v4  ;;  %2988 = vmatprep.subr.bf16.mxu0 %v3217_v21  ;;  %v1131_v4 = vshll.u32 %v2583_v2, 16  ;;  %v1151_v26 = vshll.u32 %v3594_v16, 16  ;;  %v1403_v58 = vrot.slane %v3594_v16, 5  ;;  %v1156_v2 = vshrl.u32 %v2587_v59, 16  ;;  %v2593_v16 = vld [vmem:[%s3370_s20 + $0x40] sm:$0xf] }
  0x48   : > { %3012 = vmatprep.subr.bf16.mxu1 %v3218_v27  ;;  %v1201_v33 = vshll.u32 %v2593_v16, 16  ;;  %v3245_v14 = vld [vmem:[%s3893_s1 + $0x1a0] sm:$0xff]  }
  0x49   : > { %v1133_v29 = vrot.slane %v1131_v4, 5  ;;  %v1153_v9 = vrot.slane %v1151_v26, 5  ;;  %v3665_v4 = vld [vmem:[%s3370_s20 + $0x44] sm:$0x1] }
  0x4a   : > { %2989 = vmatpush3.bf16.msra.mxu0 %v3217_v21  ;;  %v3232_v21 = vld [vmem:[%s3893_s1 + $0x158] sm:$0xff]  }
  0x4b   : > { %3013 = vmatpush3.bf16.msra.mxu1 %v3218_v27  ;;  %3022 = vmatprep.subr.bf16.mxu0 %v3220_v30  ;;  %v2624_v27 = vld [vmem:[%s3370_s20 + $0x10] sm:$0xe]  ;;  %v1134_v37 = vor.u32 %v1133_v29, %v1130_v34 }
  0x4c   : > { %3046 = vmatprep.subr.bf16.mxu1 %v3221_v23  ;;  %v2632_v43 = vrot.slane %v2624_v27, 9  ;;  %v1181_v27 = vrot.slane %v1179_v13, 5  ;;  %v2703_v13 = vld [vmem:[%s3370_s20 + $0x10] sm:$0xf] }
  0x4d   : > { %2991 = vmatmul.mubr.bf16.vlgmr.msra.gmra.mxu0 %v2532_v38  ;;  %v2631_v38 = vrot.slane %v2623_v20, 9  ;;  %v1167_v20 = vrot.slane %v1165_v11, 5 }
  0x4e   : > { %3015 = vmatmul.mubr.bf16.vlgmr.msra.gmra.mxu1 %v3222_v39  ;;  %3023 = vmatpush3.bf16.msra.mxu0 %v3220_v30  ;;  %v1139_v30 = vrot.slane %v1137_v19, 5  ;;  %v1391_v39 = vrot.slane %v3577_v56, 5  ;;  %v1184_v19 = vshrl.u32 %v2591_v5, 16 }
  0x4f   : > { %3047 = vmatpush3.bf16.msra.mxu1 %v3221_v23  ;;  %3024 = vmatprep.subr.bf16.mxu0 %v3223_v45  ;;  %v1112_v23 = vsel %vm3413_vm2, %v1107_v31, %v1111_v8 }
  0x50   : > { %3048 = vmatprep.subr.bf16.mxu1 %v3224_v28  ;;  %2994 = vmatprep.mubr.bf16.mxu0 %v2533_v46  ;;  %v2611_v46 = vcombine.low %v1112_v23, %v1126_v40  ;;  %v1392_v48 = vsel %vm3496_vm5, %v2631_v38, %v1391_v39  ;;  %v1186_v31 = vrot.slane %v1184_v19, 4  ;;  %v3239_v23 = vld [vmem:[%s3893_s1 + $0x1b8] sm:$0xff]   ;;  %v1203_v40 = vrot.slane %v1201_v33, 5 }
  0x51   : > { %3018 = vmatprep.mubr.bf16.mxu1 %v3227_v47  ;;  %v1135_v47 = vrot.slane %v1134_v37, 4  ;;  %v2705_v19 = vld [vmem:[%s3370_s20 + $0x18] sm:$0xf] }
  0x52   : > { %3025 = vmatpush3.bf16.msra.mxu0 %v3223_v45  ;;  %v2625_v45 = vld [vmem:[%s3370_s20 + $0x18] sm:$0xe] }
  0x53   : > { %3049 = vmatpush3.bf16.msra.mxu1 %v3224_v28  ;;  %3026 = vmatprep.subr.bf16.mxu0 %v3225_v50  ;;  %v2626_v28 = vld [vmem:[%s3370_s20 + $0x20] sm:$0xe]  ;;  %v2633_v49 = vrot.slane %v2625_v45, 9  ;;  %v1140_v56 = vsel %vm3413_vm2, %v1135_v47, %v1139_v30  ;;  %v1189_v30 = vrot.slane %v1187_v24, 5  ;;  %v1411_v47 = vrot.slane %v3642_v62, 5 }
  0x54   : > { %3050 = vmatprep.subr.bf16.mxu1 %v3226_v51 }
  0x55   : > { %2995 = vmatmul.mubr.bf16.gmra.mxu0 %v2534_v53  ;;  %v1399_v53 = vrot.slane %v3590_v6, 5  ;;  %v3652_v6 = vld [vmem:[%s3370_s20 + $0x3c] sm:$0x1]  ;;  %v1190_v38 = vor.u32 %v1189_v30, %v1186_v31 }
  0x56   : > { %3027 = vmatpush3.bf16.msra.mxu0 %v3225_v50  ;;  %3019 = vmatmul.mubr.bf16.gmra.mxu1 %v3228_v52  ;;  %v3235_v50 = vld [vmem:[%s3893_s1 + $0x108] sm:$0xff]   ;;  %v1396_v52 = vsel %vm3496_vm5, %v2632_v43, %v1395_v44  ;;  %v1193_v34 = vshll.u32 %v3652_v6, 16  ;;  %v3240_v43 = vld [vmem:[%s3893_s1 + $0x1f8] sm:$0xff]  }
  0x57   : > { %3051 = vmatpush3.bf16.msra.mxu1 %v3226_v51  ;;  %3028 = vmatprep.subr.bf16.mxu0 %v3229_v54  ;;  %v1149_v51 = vrot.slane %v1148_v42, 4  ;;  %v3648_v0 = vsel %vm3496_vm5, %v2633_v49, %v1399_v53  ;;  %v2627_v42 = vld [vmem:[%s3370_s20 + $0x28] sm:$0xe]  ;;  %v2629_v53 = vld [vmem:[%s3370_s20 + $0x38] sm:$0xe] }
  0x58   : > { %3052 = vmatprep.subr.bf16.mxu1 %v3230_v57  ;;  %3038 = vmatprep.mubr.bf16.mxu0 %v2611_v46  ;;  %v1195_v36 = vrot.slane %v1193_v34, 5  ;;  %v2635_v46 = vrot.slane %v2627_v42, 9  ;;  %v3250_v42 = vld [vmem:[%s3893_s1 + $0x1d0] sm:$0xff]  }
  0x59   : > { %v1154_v15 = vsel %vm3413_vm2, %v1149_v51, %v1153_v9  ;;  %v1207_v9 = vshll.u32 %v3665_v4, 16 }
  0x5a   : > { %3029 = vmatpush3.bf16.msra.mxu0 %v3229_v54  ;;  %v2634_v54 = vrot.slane %v2626_v28, 9  ;;  %v3644_v63 = vcombine.low %v1140_v56, %v1154_v15  ;;  %v2628_v28 = vld [vmem:[%s3370_s20 + $0x30] sm:$0xe] }
  0x5b   : > { %3053 = vmatpush3.bf16.msra.mxu1 %v3230_v57  ;;  %3030 = vmatprep.subr.bf16.mxu0 %v3231_v17  ;;  %v2655_v57 = vcombine.low %v1392_v48, %v1396_v52  ;;  %v1209_v45 = vrot.slane %v1207_v9, 5  ;;  %v3241_v48 = vld [vmem:[%s3893_s1 + $0x1b0] sm:$0xff]   ;;  %v2636_v52 = vrot.slane %v2628_v28, 9  ;;  %v2709_v9 = vld [vmem:[%s3370_s20 + $0x28] sm:$0xf] }
  0x5c   : > { %3054 = vmatprep.subr.bf16.mxu1 %v3232_v21  ;;  %v3659_v8 = vsel %vm3496_vm5, %v2634_v54, %v1403_v58  ;;  %v2630_v54 = vld [vmem:[%s3370_s20 + $0x40] sm:$0xe]  ;;  %v1415_v58 = vrot.slane %v3652_v6, 5  ;;  %v3243_v6 = vld [vmem:[%s3893_s1 + $0x1a8] sm:$0xff]   ;;  %v1808_v28 = vshll.u32 %v2709_v9, 16 }
  0x5d   : > { %3062 = vmatprep.mubr.bf16.mxu1 %v2655_v57  ;;  %v2637_v57 = vrot.slane %v2629_v53, 9  ;;  %v1412_v15 = vsel %vm3496_vm5, %v2636_v52, %v1411_v47  ;;  %v3251_v53 = vld [vmem:[%s3893_s1 + $0x188] sm:$0xff]  }
  0x5e   : > { %3031 = vmatpush3.bf16.msra.mxu0 %v3231_v17  ;;  %v1158_v17 = vrot.slane %v1156_v2, 4  ;;  %v1810_v52 = vrot.slane %v1808_v28, 5  ;;  %v3259_v28 = vld [vmem:[%s3370_s20 + $0x30] ss:$8 sps:$4 sm:$0xff]  }
  0x5f   : > { %3055 = vmatpush3.bf16.msra.mxu1 %v3232_v21  ;;  %3032 = vmatprep.subr.bf16.mxu0 %v3233_v32  ;;  %v1172_v21 = vrot.slane %v1170_v12, 4 }
  0x60   : > { %3056 = vmatprep.subr.bf16.mxu1 %v3234_v10  ;;  %v1162_v26 = vor.u32 %v1161_v18, %v1158_v17  ;;  %v3255_v17 = vld [vmem:[%s3370_s20 + $0x10] ss:$8 sps:$4 sm:$0xff]  }
  0x61   : > { %v1176_v29 = vor.u32 %v1175_v22, %v1172_v21  ;;  %v3247_v18 = vld [vmem:[%s3893_s1 + $0x198] sm:$0xff]   ;;  %v1763_v21 = vshrl.u32 %v2703_v13, 16  ;;  %v1766_v22 = vshll.u32 %v2703_v13, 16 }
  0x62   : > { %3033 = vmatpush3.bf16.msra.mxu0 %v3233_v32  ;;  %v1198_v32 = vshrl.u32 %v2593_v16, 16  ;;  %v1163_v35 = vrot.slane %v1162_v26, 4  ;;  %v3246_v16 = vld [vmem:[%s3893_s1 + $0x1e0] sm:$0xff]   ;;  %v3248_v26 = vld [vmem:[%s3893_s1 + $0x1d8] sm:$0xff]  }
  0x63   : > { %3057 = vmatpush3.bf16.msra.mxu1 %v3234_v10  ;;  %3034 = vmatprep.subr.bf16.mxu0 %v3235_v50  ;;  %v1407_v10 = vrot.slane %v3638_v60, 5  ;;  %v1177_v37 = vrot.slane %v1176_v29, 4  ;;  %v2638_v60 = vrot.slane %v2630_v54, 9  ;;  %v1765_v34 = vrot.slane %v1763_v21, 4 }
  0x64   : > { %3058 = vmatprep.subr.bf16.mxu1 %v3236_v55  ;;  %v1200_v39 = vrot.slane %v1198_v32, 4  ;;  %v1168_v44 = vsel %vm3413_vm2, %v1163_v35, %v1167_v20  ;;  %v3733_v20 = vld [vmem:[%s3370_s20 + $0x1c] sm:$0x1]  ;;  %v1768_v29 = vrot.slane %v1766_v22, 5  ;;  %v2707_v32 = vld [vmem:[%s3370_s20 + $0x20] sm:$0xf] }
  0x65   : > { %v1182_v49 = vsel %vm3413_vm2, %v1177_v37, %v1181_v27  ;;  %v1408_v56 = vsel %vm3496_vm5, %v2635_v46, %v1407_v10  ;;  %v1780_v27 = vshll.u32 %v2705_v19, 16  ;;  %v1786_v31 = vshll.u32 %v3733_v20, 16  ;;  %v3249_v10 = vld [vmem:[%s3893_s1 + $0x190] sm:$0xff]   ;;  %v3784_v22 = vld [vmem:[%s3370_s20 + $0x44] sm:$0x1] }
  0x66   : > { %3035 = vmatpush3.bf16.msra.mxu0 %v3235_v50  ;;  %v1191_v50 = vrot.slane %v1190_v38, 4  ;;  %v1204_v51 = vor.u32 %v1203_v40, %v1200_v39  ;;  %v2613_v62 = vcombine.low %v1168_v44, %v1182_v49  ;;  %v2657_v2 = vcombine.low %v1408_v56, %v1412_v15  ;;  %v3749_v38 = vld [vmem:[%s3370_s20 + $0x2c] sm:$0x1] }
  0x67   : > { %3059 = vmatpush3.bf16.msra.mxu1 %v3236_v55  ;;  %3036 = vmatprep.subr.bf16.mxu0 %v3237_v7  ;;  %v2656_v55 = vcombine.low %v3648_v0, %v3659_v8  ;;  %v1419_v0 = vrot.slane %v3665_v4, 5  ;;  %v3244_v8 = vld [vmem:[%s3893_s1 + $0x1e8] sm:$0xff]   ;;  %v3729_v4 = vld [vmem:[%s3370_s20 + $0x14] sm:$0x1]  ;;  %v1782_v35 = vrot.slane %v1780_v27, 5  ;;  %v1788_v37 = vrot.slane %v1786_v31, 5 }
  0x68   : > { %3060 = vmatprep.subr.bf16.mxu1 %v3238_v25  ;;  %v1205_v59 = vrot.slane %v1204_v51, 4  ;;  %v1196_v3 = vsel %vm3413_vm2, %v1191_v50, %v1195_v36  ;;  %v1772_v24 = vshll.u32 %v3729_v4, 16  ;;  %v3742_v36 = vld [vmem:[%s3370_s20 + $0x24] sm:$0x1]  ;;  %v1791_v39 = vshrl.u32 %v2707_v32, 16  ;;  %v3252_v56 = vld [vmem:[%s3893_s1 + $0x1c8] sm:$0xff]  }
  0x69   : > { %v1794_v40 = vshll.u32 %v2707_v32, 16  ;;  %v1800_v44 = vshll.u32 %v3742_v36, 16  ;;  %v1814_v49 = vshll.u32 %v3749_v38, 16  ;;  %v2717_v31 = vld [vmem:[%s3370_s20 + $0x48] sm:$0xf] }
  0x6a   : > { %3037 = vmatpush3.bf16.msra.mxu0 %v3237_v7  ;;  %v1210_v5 = vsel %vm3413_vm2, %v1205_v59, %v1209_v45  ;;  %v1416_v7 = vsel %vm3496_vm5, %v2637_v57, %v1415_v58  ;;  %v1774_v33 = vrot.slane %v1772_v24, 5  ;;  %v1805_v45 = vshrl.u32 %v2709_v9, 16 }
  0x6b   : > { %3061 = vmatpush3.bf16.msra.mxu1 %v3238_v25  ;;  %3070 = vmatprep.subr.bf16.mxu0 %v3239_v23  ;;  %v2614_v11 = vcombine.low %v1196_v3, %v1210_v5  ;;  %v1777_v25 = vshrl.u32 %v2705_v19, 16  ;;  %v1793_v47 = vrot.slane %v1791_v39, 4  ;;  %v1802_v58 = vrot.slane %v1800_v44, 5  ;;  %v2713_v3 = vld [vmem:[%s3370_s20 + $0x38] sm:$0xf] }
  0x6c   : > { %3094 = vmatprep.subr.bf16.mxu1 %v3240_v43  ;;  %v1807_v51 = vrot.slane %v1805_v45, 4  ;;  %v1856_v9 = vshll.u32 %v3784_v22, 16  ;;  %v3258_v45 = vld [vmem:[%s3893_s1 + $0x230] sm:$0xff]  }
  0x6d   : > { %3039 = vmatmul.mubr.bf16.vlgmr.msra.gmra.mxu0 %v3644_v63  ;;  %v1420_v63 = vsel %vm3496_vm5, %v2638_v60, %v1419_v0  ;;  %v1779_v30 = vrot.slane %v1777_v25, 4 }
  0x6e   : > { %3063 = vmatmul.mubr.bf16.vlgmr.msra.gmra.mxu1 %v2656_v55  ;;  %3071 = vmatpush3.bf16.msra.mxu0 %v3239_v23  ;;  %v2658_v12 = vcombine.low %v1416_v7, %v1420_v63  ;;  %v1769_v23 = vor.u32 %v1768_v29, %v1765_v34  ;;  %v1811_v59 = vor.u32 %v1810_v52, %v1807_v51  ;;  %v3775_v7 = vld [vmem:[%s3370_s20 + $0x3c] sm:$0x1]  ;;  %v3792_v34 = vld [vmem:[%s3370_s20 + $0x4c] sm:$0x1]  ;;  %v3256_v29 = vld [vmem:[%s3370_s20 + $0x20] ss:$8 sps:$4 sm:$0xff]  }
  0x6f   : > { %3095 = vmatpush3.bf16.msra.mxu1 %v3240_v43  ;;  %3072 = vmatprep.subr.bf16.mxu0 %v3241_v48  ;;  %v1783_v43 = vor.u32 %v1782_v35, %v1779_v30  ;;  %v3257_v30 = vld [vmem:[%s3893_s1 + $0x238] sm:$0xff]   ;;  %v1870_v39 = vshll.u32 %v3792_v34, 16  ;;  %v1858_v51 = vrot.slane %v1856_v9, 5  ;;  %v2082_v9 = vrot.slane %v3792_v34, 5 }
  0x70   : > { %3096 = vmatprep.subr.bf16.mxu1 %v3242_v61  ;;  %3042 = vmatprep.mubr.bf16.mxu0 %v2613_v62  ;;  %v1770_v46 = vrot.slane %v1769_v23, 4  ;;  %v2711_v62 = vld [vmem:[%s3370_s20 + $0x30] sm:$0xf]  ;;  %v1812_v0 = vrot.slane %v1811_v59, 4  ;;  %v1861_v23 = vshrl.u32 %v2717_v31, 16  ;;  %v2054_v59 = vrot.slane %v3729_v4, 5 }
  0x71   : > { %3066 = vmatprep.mubr.bf16.mxu1 %v2657_v2  ;;  %v1784_v50 = vrot.slane %v1783_v43, 4  ;;  %v3768_v2 = vld [vmem:[%s3370_s20 + $0x34] sm:$0x1]  ;;  %v1819_v5 = vshrl.u32 %v2711_v62, 16  ;;  %v1822_v63 = vshll.u32 %v2711_v62, 16  ;;  %v1872_v52 = vrot.slane %v1870_v39, 5 }
  0x72   : > { %3073 = vmatpush3.bf16.msra.mxu0 %v3241_v48  ;;  %v1796_v48 = vrot.slane %v1794_v40, 5  ;;  %v1775_v54 = vsel %vm3413_vm2, %v1770_v46, %v1774_v33  ;;  %v2058_v62 = vrot.slane %v3733_v20, 5  ;;  %v2074_v4 = vrot.slane %v3775_v7, 5  ;;  %v3260_v20 = vld [vmem:[%s3370_s20 + $0x40] ss:$8 sps:$4 sm:$0xff]  }
  0x73   : > { %3097 = vmatpush3.bf16.msra.mxu1 %v3242_v61  ;;  %3074 = vmatprep.subr.bf16.mxu0 %v3243_v6  ;;  %v1789_v57 = vsel %vm3413_vm2, %v1784_v50, %v1788_v37  ;;  %v1816_v61 = vrot.slane %v1814_v49, 5  ;;  %v1824_v13 = vrot.slane %v1822_v63, 5  ;;  %v1864_v37 = vshll.u32 %v2717_v31, 16  ;;  %v2752_v63 = vld [vmem:[%s3370_s20 + $0x38] sm:$0xe] }
  0x74   : > { %3098 = vmatprep.subr.bf16.mxu1 %v3244_v8  ;;  %v1797_v55 = vor.u32 %v1796_v48, %v1793_v47  ;;  %v2735_v15 = vcombine.low %v1775_v54, %v1789_v57  ;;  %v1863_v47 = vrot.slane %v1861_v23, 4  ;;  %v2754_v31 = vld [vmem:[%s3370_s20 + $0x48] sm:$0xe] }
  0x75   : > { %3043 = vmatmul.mubr.bf16.gmra.mxu0 %v2614_v11  ;;  %v1833_v11 = vshrl.u32 %v2713_v3, 16  ;;  %v1817_v25 = vsel %vm3413_vm2, %v1812_v0, %v1816_v61  ;;  %v1866_v48 = vrot.slane %v1864_v37, 5  ;;  %v2070_v0 = vrot.slane %v3768_v2, 5 }
  0x76   : > { %3075 = vmatpush3.bf16.msra.mxu0 %v3243_v6  ;;  %3067 = vmatmul.mubr.bf16.gmra.mxu1 %v2658_v12  ;;  %v1798_v60 = vrot.slane %v1797_v55, 4  ;;  %v3253_v6 = vld [vmem:[%s3893_s1 + $0x180] sm:$0xff]   ;;  %v3261_v55 = vld [vmem:[%s3893_s1 + $0x228] sm:$0xff]   ;;  %v2762_v37 = vrot.slane %v2754_v31, 9 }
  0x77   : > { %3099 = vmatpush3.bf16.msra.mxu1 %v3244_v8  ;;  %3076 = vmatprep.subr.bf16.mxu0 %v3245_v14  ;;  %v1828_v8 = vshll.u32 %v3768_v2, 16  ;;  %v3254_v12 = vld [vmem:[%s3893_s1 + $0x1c0] sm:$0xff]   ;;  %v1835_v21 = vrot.slane %v1833_v11, 4  ;;  %v1867_v54 = vor.u32 %v1866_v48, %v1863_v47 }
  0x78   : > { %3100 = vmatprep.subr.bf16.mxu1 %v3246_v16  ;;  %3086 = vmatprep.mubr.bf16.mxu0 %v3255_v17  ;;  %v1842_v17 = vshll.u32 %v3775_v7, 16  ;;  %v1803_v24 = vsel %vm3413_vm2, %v1798_v60, %v1802_v58  ;;  %v2747_v58 = vld [vmem:[%s3370_s20 + $0x10] sm:$0xe]  ;;  %v2748_v60 = vld [vmem:[%s3370_s20 + $0x18] sm:$0xe]  ;;  %v2083_v34 = vsel %vm3496_vm5, %v2762_v37, %v2082_v9 }
  0x79   : > { %3110 = vmatprep.mubr.bf16.mxu1 %v2735_v15  ;;  %v1830_v19 = vrot.slane %v1828_v8, 5  ;;  %v2736_v44 = vcombine.low %v1803_v24, %v1817_v25  ;;  %v1868_v15 = vrot.slane %v1867_v54, 4  ;;  %v2755_v61 = vrot.slane %v2747_v58, 9  ;;  %v3265_v24 = vld [vmem:[%s3893_s1 + $0x208] sm:$0xff]   ;;  %v2749_v25 = vld [vmem:[%s3370_s20 + $0x20] sm:$0xe] }
  0x7a   : > { %3077 = vmatpush3.bf16.msra.mxu0 %v3245_v14  ;;  %v1821_v14 = vrot.slane %v1819_v5, 4  ;;  %v1844_v27 = vrot.slane %v1842_v17, 5  ;;  %v2756_v5 = vrot.slane %v2748_v60, 9 }
  0x7b   : > { %3101 = vmatpush3.bf16.msra.mxu1 %v3246_v16  ;;  %3078 = vmatprep.subr.bf16.mxu0 %v3247_v18  ;;  %v1836_v16 = vshll.u32 %v2713_v3, 16  ;;  %v1873_v8 = vsel %vm3413_vm2, %v1868_v15, %v1872_v52  ;;  %v2055_v2 = vsel %vm3496_vm5, %v2755_v61, %v2054_v59 }
  0x7c   : > { %3102 = vmatprep.subr.bf16.mxu1 %v3248_v26  ;;  %v1825_v32 = vor.u32 %v1824_v13, %v1821_v14  ;;  %v2059_v14 = vsel %vm3496_vm5, %v2756_v5, %v2058_v62 }
  0x7e   : > { %3079 = vmatpush3.bf16.msra.mxu0 %v3247_v18  ;;  %v2715_v18 = vld [vmem:[%s3370_s20 + $0x40] sm:$0xf]  ;;  %v1826_v40 = vrot.slane %v1825_v32, 4 }
  0x7f   : > { %3103 = vmatpush3.bf16.msra.mxu1 %v3248_v26  ;;  %3080 = vmatprep.subr.bf16.mxu0 %v3249_v10  ;;  %v1838_v26 = vrot.slane %v1836_v16, 5  ;;  %v1847_v33 = vshrl.u32 %v2715_v18, 16  ;;  %v1850_v35 = vshll.u32 %v2715_v18, 16  ;;  %v2779_v18 = vcombine.low %v2055_v2, %v2059_v14 }
  0x80   : > { %3104 = vmatprep.subr.bf16.mxu1 %v3250_v42  ;;  %v1831_v49 = vsel %vm3413_vm2, %v1826_v40, %v1830_v19  ;;  %v3263_v19 = vld [vmem:[%s3893_s1 + $0x218] sm:$0xff]  }
  0x81   : > { %v1852_v43 = vrot.slane %v1850_v35, 5  ;;  %v2078_v35 = vrot.slane %v3784_v22, 5 }
  0x82   : > { %3081 = vmatpush3.bf16.msra.mxu0 %v3249_v10  ;;  %v1839_v10 = vor.u32 %v1838_v26, %v1835_v21  ;;  %v3264_v21 = vld [vmem:[%s3893_s1 + $0x210] sm:$0xff]   ;;  %v2750_v26 = vld [vmem:[%s3370_s20 + $0x28] sm:$0xe] }
  0x83   : > { %3105 = vmatpush3.bf16.msra.mxu1 %v3250_v42  ;;  %3082 = vmatprep.subr.bf16.mxu0 %v3251_v53  ;;  %v1849_v42 = vrot.slane %v1847_v33, 4  ;;  %v2758_v32 = vrot.slane %v2750_v26, 9  ;;  %v2066_v33 = vrot.slane %v3749_v38, 5 }
  0x84   : > { %3106 = vmatprep.subr.bf16.mxu1 %v3252_v56  ;;  %v1840_v46 = vrot.slane %v1839_v10, 4  ;;  %v3266_v10 = vld [vmem:[%s3893_s1 + $0x200] sm:$0xff]  }
  0x85   : > { %v1853_v50 = vor.u32 %v1852_v43, %v1849_v42  ;;  %v2067_v38 = vsel %vm3496_vm5, %v2758_v32, %v2066_v33 }
  0x86   : > { %3083 = vmatpush3.bf16.msra.mxu0 %v3251_v53  ;;  %v1845_v53 = vsel %vm3413_vm2, %v1840_v46, %v1844_v27  ;;  %v2753_v27 = vld [vmem:[%s3370_s20 + $0x40] sm:$0xe] }
  0x87   : > { %3107 = vmatpush3.bf16.msra.mxu1 %v3252_v56  ;;  %3084 = vmatprep.subr.bf16.mxu0 %v3253_v6  ;;  %v2737_v56 = vcombine.low %v1831_v49, %v1845_v53  ;;  %v1854_v57 = vrot.slane %v1853_v50, 4  ;;  %v2761_v23 = vrot.slane %v2753_v27, 9 }
  0x88   : > { %3108 = vmatprep.subr.bf16.mxu1 %v3254_v12 }
  0x89   : > { %v1859_v3 = vsel %vm3413_vm2, %v1854_v57, %v1858_v51  ;;  %v2079_v22 = vsel %vm3496_vm5, %v2761_v23, %v2078_v35 }
  0x8a   : > { %3085 = vmatpush3.bf16.msra.mxu0 %v3253_v6  ;;  %v2751_v6 = vld [vmem:[%s3370_s20 + $0x30] sm:$0xe]  ;;  %v2738_v16 = vcombine.low %v1859_v3, %v1873_v8  ;;  %v2782_v40 = vcombine.low %v2079_v22, %v2083_v34 }
  0x8b   : > { %3109 = vmatpush3.bf16.msra.mxu1 %v3254_v12  ;;  %3118 = vmatprep.subr.bf16.mxu0 %v3257_v30  ;;  %v2759_v11 = vrot.slane %v2751_v6, 9  ;;  %v2760_v12 = vrot.slane %v2752_v63, 9 }
  0x8c   : > { %3142 = vmatprep.subr.bf16.mxu1 %v3257_v30 }
  0x8d   : > { %3087 = vmatmul.mubr.bf16.vlgmr.msra.gmra.mxu0 %v3256_v29  ;;  %v2071_v7 = vsel %vm3496_vm5, %v2759_v11, %v2070_v0  ;;  %v2075_v17 = vsel %vm3496_vm5, %v2760_v12, %v2074_v4  ;;  %v2757_v29 = vrot.slane %v2749_v25, 9 }
  0x8e   : > { %3111 = vmatmul.mubr.bf16.vlgmr.msra.gmra.mxu1 %v2736_v44  ;;  %3119 = vmatpush3.bf16.msra.mxu0 %v3257_v30  ;;  %v2781_v13 = vcombine.low %v2071_v7, %v2075_v17 }
  0x8f   : > { %3150 = vmatpush3.bf16.msra.mxu1 %v3257_v30  ;;  %3120 = vmatprep.subr.bf16.mxu0 %v3258_v45  ;;  %v2062_v30 = vrot.slane %v3742_v36, 5 }
  0x90   : > { %3143 = vmatprep.subr.bf16.mxu1 %v3258_v45  ;;  %3090 = vmatprep.mubr.bf16.mxu0 %v3259_v28 }
  0x91   : > { %3114 = vmatprep.mubr.bf16.mxu1 %v2737_v56  ;;  %v2063_v36 = vsel %vm3496_vm5, %v2757_v29, %v2062_v30 }
  0x92   : > { %3121 = vmatpush3.bf16.msra.mxu0 %v3258_v45  ;;  %v2780_v39 = vcombine.low %v2063_v36, %v2067_v38 }
  0x93   : > { %3151 = vmatpush3.bf16.msra.mxu1 %v3258_v45  ;;  %3122 = vmatprep.subr.bf16.mxu0 %v3261_v55 }
  0x94   : > { %3144 = vmatprep.subr.bf16.mxu1 %v3261_v55 }
  0x95   : > { %3091 = vmatmul.mubr.bf16.gmra.mxu0 %v3260_v20 }
  0x96   : > { %3123 = vmatpush3.bf16.msra.mxu0 %v3261_v55  ;;  %3115 = vmatmul.mubr.bf16.gmra.mxu1 %v2738_v16 }
  0x97   : > { %3152 = vmatpush3.bf16.msra.mxu1 %v3261_v55  ;;  %3124 = vmatprep.subr.bf16.mxu0 %v3262_v41 }
  0x98   : > { %3145 = vmatprep.subr.bf16.mxu1 %v3262_v41  ;;  %3134 = vmatprep.mubr.bf16.mxu0 %v2779_v18 }
  0x99   : > { %3138 = vmatprep.mubr.bf16.mxu1 %v2781_v13 }
  0x9a   : > { %3125 = vmatpush3.bf16.msra.mxu0 %v3262_v41 }
  0x9b   : > { %3153 = vmatpush3.bf16.msra.mxu1 %v3262_v41  ;;  %3126 = vmatprep.subr.bf16.mxu0 %v3263_v19 }
  0x9c   : > { %3146 = vmatprep.subr.bf16.mxu1 %v3263_v19 }
  0x9e   : > { %3127 = vmatpush3.bf16.msra.mxu0 %v3263_v19 }
  0x9f   : > { %3154 = vmatpush3.bf16.msra.mxu1 %v3263_v19  ;;  %3128 = vmatprep.subr.bf16.mxu0 %v3264_v21 }
  0xa0   : > { %3147 = vmatprep.subr.bf16.mxu1 %v3264_v21 }
  0xa2   : > { %3129 = vmatpush3.bf16.msra.mxu0 %v3264_v21 }
  0xa3   : > { %3155 = vmatpush3.bf16.msra.mxu1 %v3264_v21  ;;  %3130 = vmatprep.subr.bf16.mxu0 %v3265_v24 }
  0xa4   : > { %3148 = vmatprep.subr.bf16.mxu1 %v3265_v24 }
  0xa6   : > { %3131 = vmatpush3.bf16.msra.mxu0 %v3265_v24 }
  0xa7   : > { %3156 = vmatpush3.bf16.msra.mxu1 %v3265_v24  ;;  %3132 = vmatprep.subr.bf16.mxu0 %v3266_v10 }
  0xa8   : > { %3149 = vmatprep.subr.bf16.mxu1 %v3266_v10 }
  0xaa   : > { %3133 = vmatpush3.bf16.msra.mxu0 %v3266_v10 }
  0xab   : > { %3157 = vmatpush3.bf16.msra.mxu1 %v3266_v10 }
  0xad   : > { %3135 = vmatmul.mubr.bf16.vlgmr.msra.gmra.mxu0 %v2780_v39 }
  0xae   : > { %3139 = vmatmul.mubr.bf16.vlgmr.msra.gmra.mxu1 %v2782_v40 }
  0xed   : > { %v2944_v42 = vpop.f32.mrf.mxu0 }
  0xee   : > { %v2968_v43 = vpop.f32.mrf.mxu1 }
  0xef   : > { %v531_v44 = vpop.f32.mrf.mxu0  ;;  %v677_v10 = vadd.f32 %v2968_v43, %v2944_v42 }
  0xf0   : > { %v668_v45 = vpop.f32.mrf.mxu1 }
  0xf1   : > { %v2945_v28 = vpop.f32.mrf.mxu0  ;;  %v669_v23 = vadd.f32 %v668_v45, %v531_v44 }
  0xf2   : > { %v2969_v46 = vpop.f32.mrf.mxu1 }
  0xf3   : > { %v534_v47 = vpop.f32.mrf.mxu0  ;;  %v680_v38 = vadd.f32 %v2969_v46, %v2945_v28 }
  0xf4   : > { %v671_v48 = vpop.f32.mrf.mxu1 }
  0xf5   : > { %v672_v42 = vadd.f32 %v671_v48, %v534_v47 }
  0xf6   : > { %v2972_v50 = vpop.f32.mrf.mxu1 }
  0xf8   : > { %v2948_v49 = vpop.f32.mrf.mxu0  ;;  %v684_v1 = vpop.f32.mrf.mxu1 }
  0xf9   : > { %v693_v36 = vadd.f32 %v2972_v50, %v2948_v49 }
  0xfa   : > { %v547_v51 = vpop.f32.mrf.mxu0  ;;  %v2973_v53 = vpop.f32.mrf.mxu1 }
  0xfb   : > { %v685_v39 = vadd.f32 %v684_v1, %v547_v51 }
  0xfc   : > { %v2949_v52 = vpop.f32.mrf.mxu0  ;;  %v687_v55 = vpop.f32.mrf.mxu1 }
  0xfd   : > { %v696_v40 = vadd.f32 %v2973_v53, %v2949_v52 }
  0xfe   : > { %v550_v54 = vpop.f32.mrf.mxu0 }
  0xff   : > { %v688_v45 = vadd.f32 %v687_v55, %v550_v54 }
 0x10d   : > { %v2992_v56 = vpop.f32.mrf.mxu0 }
 0x10e   : > { %v3016_v57 = vpop.f32.mrf.mxu1  ;;  %v906_v22 = vadd.f32 %v2992_v56, %v677_v10 }
 0x10f   : > { %v873_v58 = vpop.f32.mrf.mxu0 }
 0x110   : > { %v1044_v59 = vpop.f32.mrf.mxu1  ;;  %v904_v34 = vadd.f32 %v873_v58, %v669_v23  ;;  %v1077_v50 = vadd.f32 %v3016_v57, %v906_v22 }
 0x111   : > { %v2993_v15 = vpop.f32.mrf.mxu0 }
 0x112   : > { %v3017_v60 = vpop.f32.mrf.mxu1  ;;  %v907_v43 = vadd.f32 %v2993_v15, %v680_v38  ;;  %v1075_v28 = vadd.f32 %v1044_v59, %v904_v34 }
 0x113   : > { %v876_v61 = vpop.f32.mrf.mxu0 }
 0x114   : > { %v1047_v62 = vpop.f32.mrf.mxu1  ;;  %v905_v46 = vadd.f32 %v876_v61, %v672_v42  ;;  %v1078_v58 = vadd.f32 %v3017_v60, %v907_v43 }
 0x115   : > { %v2996_v0 = vpop.f32.mrf.mxu0 }
 0x116   : > { %v3020_v3 = vpop.f32.mrf.mxu1  ;;  %v1076_v47 = vadd.f32 %v1047_v62, %v905_v46 }
 0x117   : > { %v889_v5 = vpop.f32.mrf.mxu0 }
 0x118   : > { %v1060_v6 = vpop.f32.mrf.mxu1 }
 0x119   : > { %v2997_v63 = vpop.f32.mrf.mxu0 }
 0x11a   : > { %v3021_v4 = vpop.f32.mrf.mxu1  ;;  %v911_v49 = vadd.f32 %v2997_v63, %v696_v40 }
 0x11b   : > { %v892_v8 = vpop.f32.mrf.mxu0 }
 0x11c   : > { %v1063_v11 = vpop.f32.mrf.mxu1  ;;  %v909_v56 = vadd.f32 %v892_v8, %v688_v45 }
 0x11e   : > { %v1080_v15 = vadd.f32 %v1063_v11, %v909_v56 }
 0x12d   : > { %v3040_v12 = vpop.f32.mrf.mxu0 }
 0x12e   : > { %v3064_v20 = vpop.f32.mrf.mxu1  ;;  %v1359_v1 = vadd.f32 %v3040_v12, %v1077_v50 }
 0x12f   : > { %v1326_v2 = vpop.f32.mrf.mxu0 }
 0x130   : > { %v1536_v14 = vpop.f32.mrf.mxu1  ;;  %v1357_v51 = vadd.f32 %v1326_v2, %v1075_v28 }
 0x131   : > { %v3041_v16 = vpop.f32.mrf.mxu0 }
 0x132   : > { %v3065_v7 = vpop.f32.mrf.mxu1  ;;  %v1360_v48 = vadd.f32 %v3041_v16, %v1078_v58  ;;  %v1567_v57 = vadd.f32 %v1536_v14, %v1357_v51 }
 0x133   : > { %v1329_v17 = vpop.f32.mrf.mxu0 }
 0x134   : > { %v3863_v41 = vpop.f32.mrf.mxu1  ;;  %v1358_v59 = vadd.f32 %v1329_v17, %v1076_v47  ;;  %v1570_v8 = vadd.f32 %v3065_v7, %v1360_v48 }
 0x135   : > { %3901 = vst [vmem:[#allocation2_spill] sm:$0xff] %v3863_v41  ;;  %v3044_v18 = vpop.f32.mrf.mxu0  ;;  %v910_v41 = vadd.f32 %v2996_v0, %v693_v36  ;;  %v1082_v0 = vadd.f32 %v3021_v4, %v911_v49 }
 0x136   : > { %v3068_v13 = vpop.f32.mrf.mxu1 }
 0x137   : > { %v1342_v19 = vpop.f32.mrf.mxu0  ;;  %v1081_v10 = vadd.f32 %v3020_v3, %v910_v41 }
 0x138   : > { %v1552_v21 = vpop.f32.mrf.mxu1 }
 0x139   : > { %v3045_v24 = vpop.f32.mrf.mxu0  ;;  %v1363_v36 = vadd.f32 %v3044_v18, %v1081_v10 }
 0x13a   : > { %v3069_v25 = vpop.f32.mrf.mxu1  ;;  %v1364_v54 = vadd.f32 %v3045_v24, %v1082_v0 }
 0x13b   : > { %v1345_v26 = vpop.f32.mrf.mxu0  ;;  %v1573_v3 = vadd.f32 %v3068_v13, %v1363_v36 }
 0x13c   : > { %v1555_v27 = vpop.f32.mrf.mxu1  ;;  %v1362_v63 = vadd.f32 %v1345_v26, %v1080_v15  ;;  %v1574_v41 = vadd.f32 %v3069_v25, %v1364_v54  ;;  %v3904_v18 = vld [vmem:[#allocation2_spill] sm:$0xff] }
 0x13d   : > { %v1568_v62 = vadd.f32 %v3904_v18, %v1358_v59 }
 0x14d   : > { %v3088_v31 = vpop.f32.mrf.mxu0 }
 0x14e   : > { %v3112_v29 = vpop.f32.mrf.mxu1 }
 0x14f   : > { %v1707_v30 = vpop.f32.mrf.mxu0 }
 0x150   : > { %v1989_v32 = vpop.f32.mrf.mxu1  ;;  %v1738_v12 = vadd.f32 %v1707_v30, %v1567_v57 }
 0x151   : > { %v3089_v33 = vpop.f32.mrf.mxu0 }
 0x152   : > { %v3865_v35 = vpop.f32.mrf.mxu1  ;;  %v1741_v16 = vadd.f32 %v3089_v33, %v1570_v8  ;;  %v2020_v17 = vadd.f32 %v1989_v32, %v1738_v12 }
 0x153   : > { %3902 = vst [vmem:[#allocation3_spill] sm:$0xff] %v3865_v35  ;;  %v1710_v9 = vpop.f32.mrf.mxu0 }
 0x154   : > { %v3867_v37 = vpop.f32.mrf.mxu1  ;;  %v1739_v13 = vadd.f32 %v1710_v9, %v1568_v62 }
 0x155   : > { %3903 = vst [vmem:[#allocation4_spill] sm:$0xff] %v3867_v37  ;;  %v3092_v35 = vpop.f32.mrf.mxu0  ;;  %v908_v37 = vadd.f32 %v889_v5, %v685_v39  ;;  %v1569_v5 = vadd.f32 %v3064_v20, %v1359_v1 }
 0x156   : > { %v3116_v44 = vpop.f32.mrf.mxu1 }
 0x157   : > { %v1723_v23 = vpop.f32.mrf.mxu0  ;;  %v1079_v53 = vadd.f32 %v1060_v6, %v908_v37  ;;  %v1740_v60 = vadd.f32 %v3088_v31, %v1569_v5  ;;  %v1744_v6 = vadd.f32 %v3092_v35, %v1573_v3 }
 0x158   : > { %v2005_v52 = vpop.f32.mrf.mxu1 }
 0x159   : > { %v1361_v38 = vadd.f32 %v1342_v19, %v1079_v53  ;;  %v3093_v55 = vpop.f32.mrf.mxu0  ;;  %v1572_v19 = vadd.f32 %v1555_v27, %v1362_v63  ;;  %v2022_v14 = vadd.f32 %v3112_v29, %v1740_v60  ;;  %v2026_v7 = vadd.f32 %v3116_v44, %v1744_v6  ;;  %v2791_v27 = vld [vmem:[%s3894_s2] ss:$0 sm:$0xff] }
 0x15a   : > { %v3117_v61 = vpop.f32.mrf.mxu1  ;;  %v1745_v37 = vadd.f32 %v3093_v55, %v1574_v41 }
 0x15b   : > { %v1571_v2 = vadd.f32 %v1552_v21, %v1361_v38  ;;  %v1726_v4 = vpop.f32.mrf.mxu0  ;;  %v3905_v21 = vld [vmem:[#allocation3_spill] sm:$0xff] }
 0x15c   : > { %v2008_v11 = vpop.f32.mrf.mxu1  ;;  %v1743_v31 = vadd.f32 %v1726_v4, %v1572_v19  ;;  %v2023_v25 = vadd.f32 %v3905_v21, %v1741_v16  ;;  %v2027_v33 = vadd.f32 %v3117_v61, %v1745_v37  ;;  %v3906_v32 = vld [vmem:[#allocation4_spill] sm:$0xff] }
 0x15d   : > { %v1742_v24 = vadd.f32 %v1723_v23, %v1571_v2  ;;  %v2021_v42 = vadd.f32 %v3906_v32, %v1739_v13 }
 0x15e   : > { %v2025_v44 = vadd.f32 %v2008_v11, %v1743_v31 }
 0x15f   : > { %v2024_v39 = vadd.f32 %v2005_v52, %v1742_v24 }
 0x16d   : > { %v3136_v20 = vpop.f32.mrf.mxu0 }
 0x16e   : > { %v3140_v26 = vpop.f32.mrf.mxu1  ;;  %v2232_v35 = vadd.f32 %v3136_v20, %v2022_v14 }
 0x16f   : > { %v2199_v30 = vpop.f32.mrf.mxu0  ;;  %v2236_v40 = vadd.f32 %v3140_v26, %v2026_v7 }
 0x170   : > { %v2230_v22 = vadd.f32 %v2199_v30, %v2020_v17  ;;  %v2215_v34 = vpop.f32.mrf.mxu1  ;;  %v2247_v28 = vadd.f32 %v2791_v27, %v2232_v35  ;;  %v2303_v17 = vlaneseq }
 0x171   : > { %v3137_v29 = vpop.f32.mrf.mxu0  ;;  %v2234_v45 = vadd.f32 %v2215_v34, %v2024_v39  ;;  %v2251_v58 = vadd.f32 %v2791_v27, %v2236_v40 }
 0x172   : > { %v2233_v9 = vadd.f32 %v3137_v29, %v2023_v25  ;;  %v3141_v43 = vpop.f32.mrf.mxu1  ;;  %v2245_v46 = vadd.f32 %v2791_v27, %v2230_v22  ;;  %v2284_v5 = vmul.f32 %v2247_v28, %v2247_v28  ;;  %v2304_v30 = vshrl.u32 %v2303_v17, 7 }
 0x173   : > { %v2237_v49 = vadd.f32 %v3141_v43, %v2027_v33  ;;  %v2202_v50 = vpop.f32.mrf.mxu0  ;;  %v2249_v0 = vadd.f32 %v2791_v27, %v2234_v45  ;;  %v2288_v4 = vmul.f32 %v2251_v58, %v2251_v58 }
 0x174   : > { %v2248_v10 = vadd.f32 %v2791_v27, %v2233_v9  ;;  %v2231_v56 = vadd.f32 %v2202_v50, %v2021_v42  ;;  %v2218_v23 = vpop.f32.mrf.mxu1  ;;  %v2282_v48 = vmul.f32 %v2245_v46, %v2245_v46  ;;  %vm2306_vm6 = vcmp.eq.s32.totalorder %v2304_v30, 1 }
 0x175   : > { %v2252_v1 = vadd.f32 %v2791_v27, %v2237_v49  ;;  %v2235_v51 = vadd.f32 %v2218_v23, %v2025_v44  ;;  %v2286_v8 = vmul.f32 %v2249_v0, %v2249_v0  ;;  %vm2305_vm7 = vcmp.eq.s32.totalorder %v2304_v30, 0 }
 0x176   : > { %v2803_v52 = vpack.c.bf16 %v2248_v10, %v2247_v28  ;;  %v2246_v53 = vadd.f32 %v2791_v27, %v2231_v56  ;;  %v2285_v61 = vmul.f32 %v2248_v10, %v2248_v10 }
 0x177   : > { %v2813_v36 = vpack.c.bf16 %v2252_v1, %v2251_v58  ;;  %v2250_v47 = vadd.f32 %v2791_v27, %v2235_v51  ;;  %v2289_v16 = vmul.f32 %v2252_v1, %v2252_v1 }
 0x178   : > { %2815 = vst [vmem:[%s260_s23 + $0x8] sm:$0xff] %v2803_v52   ;;  %v2798_v15 = vpack.c.bf16 %v2246_v53, %v2245_v46  ;;  %v2269_v38 = vadd.f32 %v2246_v53, %v2245_v46  ;;  %v2283_v54 = vmul.f32 %v2246_v53, %v2246_v53 }
 0x179   : > { %2817 = vst [vmem:[%s260_s23 + $0x18] sm:$0xff] %v2813_v36   ;;  %v2808_v55 = vpack.c.bf16 %v2250_v47, %v2249_v0  ;;  %v2287_v41 = vmul.f32 %v2250_v47, %v2250_v47 }
 0x17a   : > { %2799 = vst [vmem:[%s260_s23] sm:$0xff] %v2798_v15   ;;  %v2270_v57 = vadd.f32 %v2269_v38, %v2247_v28  ;;  %v2290_v59 = vadd.f32 %v2283_v54, %v2282_v48 }
 0x17b   : > { %2816 = vst [vmem:[%s260_s23 + $0x10] sm:$0xff] %v2808_v55  }
 0x17c   : > { %v2291_v3 = vadd.f32 %v2290_v59, %v2284_v5  ;;  %v2271_v63 = vadd.f32 %v2270_v57, %v2248_v10 }
 0x17e   : > { %v2272_v60 = vadd.f32 %v2271_v63, %v2249_v0  ;;  %v2292_v12 = vadd.f32 %v2291_v3, %v2285_v61 }
 0x180   : > { %v2273_v2 = vadd.f32 %v2272_v60, %v2250_v47  ;;  %v2293_v6 = vadd.f32 %v2292_v12, %v2286_v8 }
 0x182   : > { %v2274_v18 = vadd.f32 %v2273_v2, %v2251_v58  ;;  %v2294_v62 = vadd.f32 %v2293_v6, %v2287_v41 }
 0x184   : > { %v2275_v11 = vadd.f32 %v2274_v18, %v2252_v1  ;;  %v2295_v19 = vadd.f32 %v2294_v62, %v2288_v4 }
 0x186   : > { %v2276_v24 = vrot.slane %v2275_v11, 4  ;;  %v2296_v37 = vadd.f32 %v2295_v19, %v2289_v16 }
 0x188   : > { %v2277_v20 = vadd.f32 %v2276_v24, %v2275_v11  ;;  %v2297_v14 = vrot.slane %v2296_v37, 4 }
 0x18a   : > { %v2278_v13 = vrot.slane %v2277_v20, 2  ;;  %v2298_v26 = vadd.f32 %v2297_v14, %v2296_v37 }
 0x18c   : > { %v2279_v7 = vadd.f32 %v2278_v13, %v2277_v20  ;;  %v2299_v31 = vrot.slane %v2298_v26, 2 }
 0x18e   : > { %v2300_v21 = vadd.f32 %v2299_v31, %v2298_v26  ;;  %v2280_v25 = vrot.slane %v2279_v7, 1 }
 0x190   : > { %v2301_v35 = vrot.slane %v2300_v21, 1  ;;  %v2281_v34 = vadd.f32 %v2280_v25, %v2279_v7 }
 0x192   : > { %v2302_v22 = vadd.f32 %v2301_v35, %v2300_v21 }
 0x194   : > { %v2307_v39 = vsel %vm2306_vm6, %v2302_v22, 0.0 }
 0x195   : > { %v2308_v33 = vsel %vm2305_vm7, %v2281_v34, %v2307_v39 }
 0x196   : > { %2309 = vst [vmem:[%s267_s27] sm:$0xff] %v2308_v33 }
 0x197 PF: > { %s15_s17 = sadd.s32 1, %s3289_s17   ;;  %s3907_s15 = smov %s3285_s16 }
 0x198   : > { %p12_p5 = scmp.ge.s32.totalorder %s15_s17, 4   ;;  %s3908_s16 = smov %s3910_s18 }
 0x19a   :  { %14 = sbr.rel (!%p12_p5) target bundleno = 2 (0x2), region = 90 }

// kernel: resnet_forward.132
= control target key start
LH: loop header
LB: loop body
LE: loop exit
PB: predicated region body
PF: predicated region fallthrough
CT: control target
= control target key end

     0   :  { %s2786_s15 = smov 0   ;;  %s2788_s16 = smov 0   ;;  %s3278_s0 = inlined_call_operand.vmem [shape: bf16[2,6,6,128], index: 0, kind: input, shape index: {}]   ;;  %s3279_s1 = inlined_call_operand.vmem [shape: bf16[9,128,128], index: 1, kind: input, shape index: {}]   ;;  %s3280_s2 = inlined_call_operand.vmem [shape: f32[1,128], index: 2, kind: input, shape index: {}]   ;;  %s3281_s3 = inlined_call_operand.vmem [shape: bf16[2,4,4,128], index: 3, kind: output, shape index: {0}]   ;;  %s3282_s4 = inlined_call_operand.vmem [shape: f32[2,8,128], index: 4, kind: output, shape index: {1}]  }
   0x1   :  { %s2790_s17 = smov 0  }
   0x2 LB: > { %s27_s18 = sadd.s32 1, %s2752_s16  ;;  %p2092_p0 = scmp.ge.s32.totalorder %s2756_s17, 1  ;;  %s2756_s17 = sphi %s2790_s17, %s15_s17   ;;  %s2752_s16 = sphi %s2788_s16, %s3292_s16   ;;  %s2748_s15 = sphi %s2786_s15, %s3291_s15  }
   0x3   : > { %p29_p1 = scmp.ge.s32.totalorder %s27_s18, 2  ;;  %p198_p2 = scmp.lt.s32.totalorder %s2756_s17, 3 }
   0x5   : > { %s3294_s18 = smov (%p29_p1, %s27_s18), 0  ;;  %p199_p3 = pnand %p2092_p0, %p198_p2 }
   0x6   : > { %p241_p4 = scmp.lt.s32.totalorder (!%p199_p3), %s2748_s15, 1 }
   0x7   : > { %202 = sbr.rel (%p199_p3) target bundleno = 393 (0x189), region = 32 }
   0xc   : > { %v2650_v0 = vld [vmem:[%s3279_s1 + $0x78] sm:$0xff]   ;;  %v2758_v1 = vmov 0.0   ;;  %v2652_v3 = vld [vmem:[%s3279_s1 + $0x70] sm:$0xff]   ;;  %vm2759_vm0 = vmmov 0   ;;  %s3296_s15 = smov (!%p241_p4, %s2748_s15), 1  ;;  %v2654_v5 = vld [vmem:[%s3279_s1 + $0x68] sm:$0xff]   ;;  %v414_v9 = vlaneseq }
   0xd   : > { %2442 = vmatprep.subr.bf16.mxu0 %v2758_v1  ;;  %2462 = vmatprep.subr.bf16.mxu1 %v2758_v1  ;;  %v2651_v2 = vld [vmem:[%s3279_s1 + $0x38] sm:$0xff]   ;;  %v2653_v4 = vld [vmem:[%s3279_s1 + $0x30] sm:$0xff]   ;;  %v2655_v6 = vld [vmem:[%s3279_s1 + $0x28] sm:$0xff]   ;;  %s2622_s5 = smul.u32 24, %s3296_s15  ;;  %vm329_vm1 = vsmask.f32 1280 }
   0xe   : > { %2443 = vmatpush3.bf16.msra.mxu0 %v2650_v0  ;;  %2458 = vmatprep.mubr.msk.bf16.mxu0 %vm2759_vm0, %v2758_v1  ;;  %v2656_v7 = vld [vmem:[%s3279_s1 + $0x60] sm:$0xff]   ;;  %v2658_v10 = vld [vmem:[%s3279_s1 + $0x58] sm:$0xff]   ;;  %v2855_v12 = vshrl.u32 %v414_v9, 7  ;;  %v2660_v13 = vld [vmem:[%s3279_s1 + $0x50] sm:$0xff]   ;;  %vm330_vm2 = vsmask.f32 3336 }
   0xf   : > { %2463 = vmatpush3.bf16.msra.mxu1 %v2651_v2  ;;  %2444 = vmatprep.subr.bf16.mxu0 %v2758_v1  ;;  %v2657_v8 = vld [vmem:[%s3279_s1 + $0x20] sm:$0xff]   ;;  %s2846_s12 = scalar_lea.vmem %s3278_s0, %s2622_s5  ;;  %v2659_v11 = vld [vmem:[%s3279_s1 + $0x18] sm:$0xff]   ;;  %v2661_v15 = vld [vmem:[%s3279_s1 + $0x10] sm:$0xff]   ;;  %vm332_vm3 = vsmask.f32 5392  ;;  %vm667_vm8 = vcmask 1040384  }
  0x10   : > { %2464 = vmatprep.subr.bf16.mxu1 %v2758_v1  ;;  %2478 = vmatprep.mubr.msk.bf16.mxu1 %vm2759_vm0, %v2758_v1  ;;  %v2097_v14 = vld.sshfl [vmem:[%s2846_s12] sm:$0x13 pattern:$0x76325410]  ;;  %vm331_vm4 = vmor %vm329_vm1, %vm330_vm2  ;;  %vm334_vm5 = vsmask.f32 7448 }
  0x11   : > { %v2098_v16 = vld.sshfl [vmem:[%s2846_s12 + $0x4] sm:$0x13 pattern:$0x76325410]  ;;  %v304_v17 = vcombine.high %v2097_v14, %v2097_v14  ;;  %v2662_v22 = vld [vmem:[%s3279_s1 + $0x48] sm:$0xff]   ;;  %v337_v24 = vshrl.u32 %v2097_v14, 16  ;;  %vm2877_vm6 = vmor %vm331_vm4, %vm332_vm3 }
  0x12   : > { %2445 = vmatpush3.bf16.msra.mxu0 %v2652_v3  ;;  %v2099_v18 = vld.sshfl [vmem:[%s2846_s12 + $0x8] sm:$0x13 pattern:$0x76325410]  ;;  %v312_v19 = vcombine.high %v2098_v16, %v2098_v16  ;;  %v340_v25 = vshll.u32 %v2097_v14, 16  ;;  %v351_v28 = vshrl.u32 %v2098_v16, 16  ;;  %vm2889_vm7 = vmor %vm2877_vm6, %vm334_vm5 }
  0x13   : > { %2465 = vmatpush3.bf16.msra.mxu1 %v2653_v4  ;;  %2446 = vmatprep.subr.bf16.mxu0 %v2758_v1  ;;  %v2100_v20 = vld.sshfl [vmem:[%s2846_s12 + $0xc] sm:$0x13 pattern:$0x76325410]  ;;  %v320_v21 = vcombine.high %v2099_v18, %v2099_v18  ;;  %v346_v26 = vshll.u32 %v304_v17, 16  ;;  %v354_v29 = vshll.u32 %v2098_v16, 16 }
  0x14   : > { %2466 = vmatprep.subr.bf16.mxu1 %v2758_v1  ;;  %v328_v23 = vcombine.high %v2100_v20, %v2100_v20  ;;  %v2663_v27 = vld [vmem:[%s3279_s1 + $0x8] sm:$0xff]   ;;  %v360_v30 = vshll.u32 %v312_v19, 16  ;;  %v365_v31 = vshrl.u32 %v2099_v18, 16  ;;  %v339_v33 = vrot.slane %v337_v24, 6  ;;  %v2664_v45 = vld [vmem:[%s3279_s1 + $0x40] sm:$0xff]   ;;  %v2668_v16 = vld [vmem:[%s3279_s1 + $0xb8] sm:$0xff]  }
  0x15   : > { %v342_v34 = vrot.slane %v340_v25, 7  ;;  %v348_v35 = vrot.slane %v346_v26, 7  ;;  %v368_v36 = vshll.u32 %v2099_v18, 16  ;;  %v353_v37 = vrot.slane %v351_v28, 6  ;;  %v2665_v50 = vld [vmem:[%s3279_s1] sm:$0xff]   ;;  %v2671_v18 = vld [vmem:[%s3279_s1 + $0xf0] sm:$0xff]  }
  0x16   : > { %2447 = vmatpush3.bf16.msra.mxu0 %v2654_v5  ;;  %v356_v38 = vrot.slane %v354_v29, 7  ;;  %v362_v39 = vrot.slane %v360_v30, 7  ;;  %v367_v40 = vrot.slane %v365_v31, 6  ;;  %v374_v43 = vshll.u32 %v320_v21, 16  ;;  %v2670_v19 = vld [vmem:[%s3279_s1 + $0xb0] sm:$0xff]   ;;  %v2672_v24 = vld [vmem:[%s3279_s1 + $0xa8] sm:$0xff]  }
  0x17   : > { %2467 = vmatpush3.bf16.msra.mxu1 %v2655_v6  ;;  %2448 = vmatprep.subr.bf16.mxu0 %v2758_v1  ;;  %v343_v41 = vor.u32 %v342_v34, %v339_v33  ;;  %v370_v42 = vrot.slane %v368_v36, 7  ;;  %v379_v44 = vshrl.u32 %v2100_v20, 16  ;;  %v382_v48 = vshll.u32 %v2100_v20, 16  ;;  %v2673_v20 = vld [vmem:[%s3279_s1 + $0xe8] sm:$0xff]   ;;  %v2675_v28 = vld [vmem:[%s3279_s1 + $0xe0] sm:$0xff]   ;;  %v2677_v30 = vld [vmem:[%s3279_s1 + $0xd8] sm:$0xff]  }
  0x18   : > { %2468 = vmatprep.subr.bf16.mxu1 %v2758_v1  ;;  %v357_v47 = vor.u32 %v356_v38, %v353_v37  ;;  %v388_v49 = vshll.u32 %v328_v23, 16  ;;  %v376_v53 = vrot.slane %v374_v43, 7  ;;  %v2760_v57 = vmov 1983009808   ;;  %v2674_v29 = vld [vmem:[%s3279_s1 + $0xa0] sm:$0xff]   ;;  %v2676_v38 = vld [vmem:[%s3279_s1 + $0x98] sm:$0xff]  }
  0x19   : > { %v344_v51 = vrot.slane %v343_v41, 2  ;;  %v371_v52 = vor.u32 %v370_v42, %v367_v40  ;;  %v381_v54 = vrot.slane %v379_v44, 6  ;;  %v384_v56 = vrot.slane %v382_v48, 7  ;;  %v2679_v44 = vld [vmem:[%s3279_s1 + $0xd0] sm:$0xff]   ;;  %v2702_v41 = vld [vmem:[%s3279_s1 + $0x1b8] sm:$0xff]   ;;  %s2360_s20 = sshll.u32 %s3296_s15, 3 }
  0x1a   : > { %2449 = vmatpush3.bf16.msra.mxu0 %v2656_v7  ;;  %v358_v55 = vrot.slane %v357_v47, 2  ;;  %v412_v58 = vunpack.c.l.s4 %v2760_v57  ;;  %v2728_v59 = vld.sshfl [vmem:[%s2846_s12] sm:$0xf pattern:$0x76325410]  ;;  %v390_v63 = vrot.slane %v388_v49, 7  ;;  %s260_s23 = scalar_lea.vmem %s3281_s3, %s2360_s20  ;;  %s267_s25 = scalar_lea.vmem %s3282_s4, %s2360_s20 }
  0x1b   : > { %2469 = vmatpush3.bf16.msra.mxu1 %v2657_v8  ;;  %2450 = vmatprep.subr.bf16.mxu0 %v2758_v1  ;;  %v2729_v60 = vld.sshfl [vmem:[%s2846_s12 + $0x8] sm:$0xf pattern:$0x76325410]  ;;  %v349_v61 = vsel %vm2889_vm7, %v344_v51, %v348_v35  ;;  %v372_v62 = vrot.slane %v371_v52, 2  ;;  %v385_v2 = vor.u32 %v384_v56, %v381_v54  ;;  %vm668_vm9 = vcmask 1042434  }
  0x1c   : > { %2470 = vmatprep.subr.bf16.mxu1 %v2758_v1  ;;  %v2904_v0 = vsel %vm2889_vm7, %v358_v55, %v362_v39  ;;  %v413_v3 = vunpack.c.0.s8 %v412_v58  ;;  %v536_v14 = vcombine.low %v2728_v59, %v2729_v60  ;;  %v2133_v21 = vld.sshfl [vmem:[%s2846_s12] sm:$0x12 pattern:$0x76325410]  ;;  %vm2959_vm10 = vmor %vm667_vm8, %vm668_vm9  ;;  %vm670_vm11 = vcmask 1044484   ;;  %v2680_v56 = vld [vmem:[%s3279_s1 + $0x88] sm:$0xff]  }
  0x1d   : > { %v2908_v4 = vsel %vm2889_vm7, %v372_v62, %v376_v53  ;;  %v409_v5 = vcombine.low %v349_v61, %v2904_v0  ;;  %v386_v6 = vrot.slane %v385_v2, 2  ;;  %v2135_v23 = vld.sshfl [vmem:[%s2846_s12 + $0x8] sm:$0x12 pattern:$0x76325410]  ;;  %v642_v26 = vcombine.high %v2133_v21, %v2133_v21  ;;  %vm671_vm13 = vmor %vm2959_vm10, %vm670_vm11  ;;  %v2683_v57 = vld [vmem:[%s3279_s1 + $0xc0] sm:$0xff]  }
  0x1e   : > { %2451 = vmatpush3.bf16.msra.mxu0 %v2658_v10  ;;  %v2912_v7 = vsub.s32 %v413_v3, %v2855_v12  ;;  %v1064_v8 = vcombine.low %v2904_v0, %v2908_v4  ;;  %v2136_v25 = vld.sshfl [vmem:[%s2846_s12 + $0xc] sm:$0x12 pattern:$0x76325410]  ;;  %vm672_vm12 = vcmask 1046534   ;;  %v2137_v32 = vrot.slane %v2133_v21, 9 }
  0x1f   : > { %2471 = vmatpush3.bf16.msra.mxu1 %v2659_v11  ;;  %2452 = vmatprep.subr.bf16.mxu0 %v2758_v1  ;;  %v2920_v9 = vsel %vm2889_vm7, %v386_v6, %v390_v63  ;;  %v658_v34 = vcombine.high %v2135_v23, %v2135_v23  ;;  %v666_v35 = vcombine.high %v2136_v25, %v2136_v25  ;;  %v676_v36 = vrot.slane %v642_v26, 7  ;;  %vm2982_vm14 = vmor %vm671_vm13, %vm672_vm12  ;;  %v2730_v49 = vld.sshfl [vmem:[%s2846_s12 + $0x4] sm:$0xf pattern:$0x76325410]  ;;  %v2688_v21 = vld [vmem:[%s3279_s1 + $0x130] sm:$0xff]  }
  0x20   : > { %2472 = vmatprep.subr.bf16.mxu1 %v2758_v1  ;;  %v410_v10 = vcombine.low %v2908_v4, %v2920_v9  ;;  %v417_v11 = vrot.slane %v409_v5, %v2912_v7  ;;  %v2139_v37 = vrot.slane %v2135_v23, 9  ;;  %v2140_v40 = vrot.slane %v2136_v25, 9  ;;  %v2731_v52 = vld.sshfl [vmem:[%s2846_s12 + $0xc] sm:$0xf pattern:$0x76325410] }
  0x21   : > { %v684_v42 = vrot.slane %v658_v34, 7  ;;  %v688_v43 = vrot.slane %v666_v35, 7  ;;  %v677_v47 = vsel %vm2982_vm14, %v2137_v32, %v676_v36  ;;  %v2681_v53 = vld [vmem:[%s3279_s1 + $0xc8] sm:$0xff]   ;;  %v2682_v2 = vld [vmem:[%s3279_s1 + $0x80] sm:$0xff]   ;;  %v858_v3 = vcombine.low %v2730_v49, %v2731_v52  ;;  %v2687_v5 = vld [vmem:[%s3279_s1 + $0x178] sm:$0xff]  }
  0x22   : > { %2453 = vmatpush3.bf16.msra.mxu0 %v2660_v13  ;;  %v2669_v13 = vld [vmem:[%s3279_s1 + $0xf8] sm:$0xff]   ;;  %v2200_v59 = vld.sshfl [vmem:[%s2846_s12 + $0x10] sm:$0x13 pattern:$0x76325410]  ;;  %v3065_v23 = vrot.slane %v1064_v8, %v2912_v7  ;;  %v2691_v25 = vld [vmem:[%s3279_s1 + $0x168] sm:$0xff]  }
  0x23   : > { %2473 = vmatpush3.bf16.msra.mxu1 %v2661_v15  ;;  %2454 = vmatprep.subr.bf16.mxu0 %v2758_v1  ;;  %v2929_v15 = vrot.slane %v410_v10, %v2912_v7  ;;  %v3007_v51 = vsel %vm2982_vm14, %v2140_v40, %v688_v43  ;;  %v990_v61 = vcombine.high %v2200_v59, %v2200_v59  ;;  %v1034_v62 = vshrl.u32 %v2200_v59, 16  ;;  %v2690_v0 = vld [vmem:[%s3279_s1 + $0x128] sm:$0xff]   ;;  %v2693_v8 = vld [vmem:[%s3279_s1 + $0x160] sm:$0xff]   ;;  %v2697_v32 = vld [vmem:[%s3279_s1 + $0x150] sm:$0xff]  }
  0x24   : > { %2474 = vmatprep.subr.bf16.mxu1 %v2758_v1  ;;  %v1037_v63 = vshll.u32 %v2200_v59, 16  ;;  %v2696_v34 = vld [vmem:[%s3279_s1 + $0x110] sm:$0xff]   ;;  %v2732_v46 = vld.sshfl [vmem:[%s2846_s12 + $0x8] sm:$0xf pattern:$0x76325410] }
  0x25   : > { %v425_v17 = vcombine.low %v417_v11, %v2929_v15  ;;  %v1036_v6 = vrot.slane %v1034_v62, 6  ;;  %v1043_v11 = vshll.u32 %v990_v61, 16  ;;  %v2704_v59 = vld [vmem:[%s3279_s1 + $0x1b0] sm:$0xff]   ;;  %v2707_v61 = vld [vmem:[%s3279_s1 + $0x1e8] sm:$0xff]   ;;  %vm1936_vm15 = vcmp.eq.s32.totalorder %v2855_v12, 1 }
  0x26   : > { %2455 = vmatpush3.bf16.msra.mxu0 %v2662_v22  ;;  %v2134_v22 = vld.sshfl [vmem:[%s2846_s12 + $0x4] sm:$0x12 pattern:$0x76325410]  ;;  %v1039_v10 = vrot.slane %v1037_v63, 7 }
  0x27   : > { %2475 = vmatpush3.bf16.msra.mxu1 %v2663_v27  ;;  %2456 = vmatprep.subr.bf16.mxu0 %v2758_v1  ;;  %v650_v31 = vcombine.high %v2134_v22, %v2134_v22  ;;  %v2138_v33 = vrot.slane %v2134_v22, 9  ;;  %v2692_v27 = vld [vmem:[%s3279_s1 + $0x120] sm:$0xff]  }
  0x28   : > { %2476 = vmatprep.subr.bf16.mxu1 %v2758_v1 }
  0x29   : > { %v680_v39 = vrot.slane %v650_v31, 7  ;;  %v2694_v31 = vld [vmem:[%s3279_s1 + $0x118] sm:$0xff]  }
  0x2a   : > { %2457 = vmatpush3.bf16.msra.mxu0 %v2664_v45  ;;  %v2678_v45 = vld [vmem:[%s3279_s1 + $0x90] sm:$0xff]  }
  0x2b   : > { %2477 = vmatpush3.bf16.msra.mxu1 %v2665_v50  ;;  %2482 = vmatprep.subr.bf16.mxu0 %v2758_v1  ;;  %v2998_v48 = vsel %vm2982_vm14, %v2138_v33, %v680_v39  ;;  %v3003_v50 = vsel %vm2982_vm14, %v2139_v37, %v684_v42  ;;  %v2699_v37 = vld [vmem:[%s3279_s1 + $0x148] sm:$0xff]  }
  0x2c   : > { %2502 = vmatprep.subr.bf16.mxu1 %v2758_v1  ;;  %v707_v54 = vcombine.low %v677_v47, %v2998_v48  ;;  %v708_v55 = vcombine.low %v3003_v50, %v3007_v51  ;;  %v1246_v35 = vcombine.low %v2998_v48, %v3003_v50  ;;  %v2698_v39 = vld [vmem:[%s3279_s1 + $0x108] sm:$0xff]   ;;  %v2700_v48 = vld [vmem:[%s3279_s1 + $0x100] sm:$0xff]  }
  0x2d   : > { %2459 = vmatmul.mubr.bf16.vlgmr.msra.gmra.mxu0 %v425_v17  ;;  %v2684_v17 = vld [vmem:[%s3279_s1 + $0x138] sm:$0xff]  }
  0x2e   : > { %2479 = vmatmul.mubr.bf16.vlgmr.msra.gmra.mxu1 %v536_v14  ;;  %2483 = vmatpush3.bf16.msra.mxu0 %v2668_v16  ;;  %v715_v58 = vrot.slane %v707_v54, %v2912_v7  ;;  %v3029_v60 = vrot.slane %v708_v55, %v2912_v7  ;;  %v1040_v14 = vor.u32 %v1039_v10, %v1036_v6  ;;  %v1045_v16 = vrot.slane %v1043_v11, 7  ;;  %v2705_v55 = vld [vmem:[%s3279_s1 + $0x1f0] sm:$0xff]   ;;  %v2708_v11 = vld [vmem:[%s3279_s1 + $0x1a0] sm:$0xff]  }
  0x2f   : > { %2503 = vmatpush3.bf16.msra.mxu1 %v2669_v13  ;;  %2518 = vmatprep.mubr.msk.bf16.mxu1 %vm2759_vm0, %v2758_v1  ;;  %v1254_v40 = vrot.slane %v1246_v35, %v2912_v7 }
  0x30   : > { %2504 = vmatprep.subr.bf16.mxu1 %v2758_v1  ;;  %2498 = vmatprep.mubr.msk.bf16.mxu0 %vm2759_vm0, %v2758_v1  ;;  %v723_v13 = vcombine.low %v715_v58, %v3029_v60 }
  0x31   : > { %2484 = vmatprep.subr.bf16.mxu0 %v2758_v1 }
  0x32   : > { %2485 = vmatpush3.bf16.msra.mxu0 %v2670_v19  ;;  %v1041_v19 = vrot.slane %v1040_v14, 2 }
  0x33   : > { %2505 = vmatpush3.bf16.msra.mxu1 %v2671_v18  ;;  %2486 = vmatprep.subr.bf16.mxu0 %v2758_v1  ;;  %v2689_v18 = vld [vmem:[%s3279_s1 + $0x170] sm:$0xff]  }
  0x34   : > { %2506 = vmatprep.subr.bf16.mxu1 %v2758_v1 }
  0x36   : > { %2487 = vmatpush3.bf16.msra.mxu0 %v2672_v24  ;;  %v2232_v24 = vld.sshfl [vmem:[%s2846_s12 + $0x10] sm:$0x12 pattern:$0x76325410] }
  0x37   : > { %2507 = vmatpush3.bf16.msra.mxu1 %v2673_v20  ;;  %2488 = vmatprep.subr.bf16.mxu0 %v2758_v1  ;;  %v3052_v20 = vsel %vm2889_vm7, %v1041_v19, %v1045_v16 }
  0x38   : > { %2508 = vmatprep.subr.bf16.mxu1 %v2758_v1  ;;  %v1065_v22 = vcombine.low %v2920_v9, %v3052_v20  ;;  %v1212_v9 = vcombine.high %v2232_v24, %v2232_v24 }
  0x3a   : > { %2489 = vmatpush3.bf16.msra.mxu0 %v2674_v29  ;;  %v3074_v26 = vrot.slane %v1065_v22, %v2912_v7  ;;  %v2236_v29 = vrot.slane %v2232_v24, 9  ;;  %v2733_v24 = vld.sshfl [vmem:[%s2846_s12 + $0x10] sm:$0xf pattern:$0x76325410] }
  0x3b   : > { %2509 = vmatpush3.bf16.msra.mxu1 %v2675_v28  ;;  %2490 = vmatprep.subr.bf16.mxu0 %v2758_v1  ;;  %v2695_v28 = vld [vmem:[%s3279_s1 + $0x158] sm:$0xff]  }
  0x3c   : > { %2510 = vmatprep.subr.bf16.mxu1 %v2758_v1  ;;  %v1080_v4 = vcombine.low %v3065_v23, %v3074_v26  ;;  %v2715_v23 = vld [vmem:[%s3279_s1 + $0x1c8] sm:$0xff]  }
  0x3e   : > { %2491 = vmatpush3.bf16.msra.mxu0 %v2676_v38  ;;  %v2328_v38 = vld.sshfl [vmem:[%s2846_s12 + $0x14] sm:$0x12 pattern:$0x76325410] }
  0x3f   : > { %2511 = vmatpush3.bf16.msra.mxu1 %v2677_v30  ;;  %2492 = vmatprep.subr.bf16.mxu0 %v2758_v1  ;;  %v1227_v30 = vrot.slane %v1212_v9, 7  ;;  %v1751_v43 = vcombine.high %v2328_v38, %v2328_v38  ;;  %v2721_v9 = vld [vmem:[%s3279_s1 + $0x230] sm:$0xff]  }
  0x40   : > { %2512 = vmatprep.subr.bf16.mxu1 %v2758_v1 }
  0x41   : > { %v1228_v33 = vsel %vm2982_vm14, %v2236_v29, %v1227_v30  ;;  %v1766_v47 = vrot.slane %v1751_v43, 7  ;;  %v2725_v29 = vld [vmem:[%s3279_s1 + $0x210] sm:$0xff]   ;;  %v2726_v30 = vld [vmem:[%s3279_s1 + $0x208] sm:$0xff]  }
  0x42   : > { %2493 = vmatpush3.bf16.msra.mxu0 %v2678_v45  ;;  %v1247_v36 = vcombine.low %v3007_v51, %v1228_v33  ;;  %v2701_v45 = vld [vmem:[%s3279_s1 + $0x140] sm:$0xff]   ;;  %v2703_v51 = vld [vmem:[%s3279_s1 + $0x1f8] sm:$0xff]  }
  0x43   : > { %2513 = vmatpush3.bf16.msra.mxu1 %v2679_v44  ;;  %2494 = vmatprep.subr.bf16.mxu0 %v2758_v1  ;;  %v2332_v44 = vrot.slane %v2328_v38, 9 }
  0x44   : > { %2514 = vmatprep.subr.bf16.mxu1 %v2758_v1  ;;  %v1261_v42 = vrot.slane %v1247_v36, %v2912_v7 }
  0x45   : > { %v1767_v50 = vsel %vm2982_vm14, %v2332_v44, %v1766_v47 }
  0x46   : > { %2495 = vmatpush3.bf16.msra.mxu0 %v2680_v56  ;;  %v1262_v49 = vcombine.low %v1254_v40, %v1261_v42  ;;  %v1786_v52 = vcombine.low %v1228_v33, %v1767_v50 }
  0x47   : > { %2515 = vmatpush3.bf16.msra.mxu1 %v2681_v53  ;;  %2496 = vmatprep.subr.bf16.mxu0 %v2758_v1  ;;  %v2296_v53 = vld.sshfl [vmem:[%s2846_s12 + $0x14] sm:$0x13 pattern:$0x76325410] }
  0x48   : > { %2516 = vmatprep.subr.bf16.mxu1 %v2758_v1  ;;  %v3138_v54 = vrot.slane %v1786_v52, %v2912_v7  ;;  %v1573_v56 = vshrl.u32 %v2296_v53, 16  ;;  %v1529_v62 = vcombine.high %v2296_v53, %v2296_v53 }
  0x4a   : > { %2497 = vmatpush3.bf16.msra.mxu0 %v2682_v2  ;;  %v1801_v58 = vcombine.low %v3029_v60, %v3138_v54  ;;  %v1575_v63 = vrot.slane %v1573_v56, 6  ;;  %v1582_v10 = vshll.u32 %v1529_v62, 16 }
  0x4b   : > { %2517 = vmatpush3.bf16.msra.mxu1 %v2683_v57  ;;  %2522 = vmatprep.subr.bf16.mxu0 %v2758_v1  ;;  %v1576_v57 = vshll.u32 %v2296_v53, 16 }
  0x4c   : > { %2542 = vmatprep.subr.bf16.mxu1 %v2758_v1  ;;  %v1584_v16 = vrot.slane %v1582_v10, 7 }
  0x4d   : > { %2499 = vmatmul.mubr.bf16.vlgmr.msra.gmra.mxu0 %v723_v13  ;;  %v1578_v2 = vrot.slane %v1576_v57, 7  ;;  %v2711_v13 = vld [vmem:[%s3279_s1 + $0x1d8] sm:$0xff]  }
  0x4e   : > { %2519 = vmatmul.mubr.bf16.vlgmr.msra.gmra.mxu1 %v858_v3  ;;  %2523 = vmatpush3.bf16.msra.mxu0 %v2684_v17  ;;  %v2706_v3 = vld [vmem:[%s3279_s1 + $0x1a8] sm:$0xff]   ;;  %v2710_v17 = vld [vmem:[%s3279_s1 + $0x198] sm:$0xff]  }
  0x4f   : > { %2543 = vmatpush3.bf16.msra.mxu1 %v2687_v5  ;;  %2558 = vmatprep.mubr.msk.bf16.mxu1 %vm2759_vm0, %v2758_v1  ;;  %v2709_v5 = vld [vmem:[%s3279_s1 + $0x1e0] sm:$0xff]   ;;  %v1579_v6 = vor.u32 %v1578_v2, %v1575_v63 }
  0x50   : > { %2544 = vmatprep.subr.bf16.mxu1 %v2758_v1  ;;  %2538 = vmatprep.mubr.msk.bf16.mxu0 %vm2759_vm0, %v2758_v1 }
  0x51   : > { %2524 = vmatprep.subr.bf16.mxu0 %v2758_v1  ;;  %v1580_v14 = vrot.slane %v1579_v6, 2 }
  0x52   : > { %2525 = vmatpush3.bf16.msra.mxu0 %v2688_v21  ;;  %v2712_v21 = vld [vmem:[%s3279_s1 + $0x190] sm:$0xff]  }
  0x53   : > { %2545 = vmatpush3.bf16.msra.mxu1 %v2689_v18  ;;  %2526 = vmatprep.subr.bf16.mxu0 %v2758_v1  ;;  %v2713_v18 = vld [vmem:[%s3279_s1 + $0x1d0] sm:$0xff]   ;;  %v1585_v19 = vsel %vm2889_vm7, %v1580_v14, %v1584_v16 }
  0x54   : > { %2546 = vmatprep.subr.bf16.mxu1 %v2758_v1  ;;  %v1604_v22 = vcombine.low %v3052_v20, %v1585_v19  ;;  %v2717_v20 = vld [vmem:[%s3279_s1 + $0x1c0] sm:$0xff]  }
  0x56   : > { %2527 = vmatpush3.bf16.msra.mxu0 %v2690_v0  ;;  %v1618_v26 = vrot.slane %v1604_v22, %v2912_v7  ;;  %v2716_v0 = vld [vmem:[%s3279_s1 + $0x180] sm:$0xff]   ;;  %v1397_v7 = vcombine.low %v2732_v46, %v2733_v24 }
  0x57   : > { %2547 = vmatpush3.bf16.msra.mxu1 %v2691_v25  ;;  %2528 = vmatprep.subr.bf16.mxu0 %v2758_v1  ;;  %v2714_v25 = vld [vmem:[%s3279_s1 + $0x188] sm:$0xff]  }
  0x58   : > { %2548 = vmatprep.subr.bf16.mxu1 %v2758_v1 }
  0x5a   : > { %2529 = vmatpush3.bf16.msra.mxu0 %v2692_v27  ;;  %v2723_v27 = vld [vmem:[%s3279_s1 + $0x220] sm:$0xff]  }
  0x5b   : > { %2549 = vmatpush3.bf16.msra.mxu1 %v2693_v8  ;;  %2530 = vmatprep.subr.bf16.mxu0 %v2758_v1  ;;  %v2720_v8 = vld [vmem:[%s3279_s1 + $0x238] sm:$0xff]  }
  0x5c   : > { %2550 = vmatprep.subr.bf16.mxu1 %v2758_v1 }
  0x5e   : > { %2531 = vmatpush3.bf16.msra.mxu0 %v2694_v31  ;;  %v2727_v31 = vld [vmem:[%s3279_s1 + $0x200] sm:$0xff]  }
  0x5f   : > { %2551 = vmatpush3.bf16.msra.mxu1 %v2695_v28  ;;  %2532 = vmatprep.subr.bf16.mxu0 %v2758_v1  ;;  %v2724_v28 = vld [vmem:[%s3279_s1 + $0x218] sm:$0xff]  }
  0x60   : > { %2552 = vmatprep.subr.bf16.mxu1 %v2758_v1 }
  0x62   : > { %2533 = vmatpush3.bf16.msra.mxu0 %v2696_v34 }
  0x63   : > { %2553 = vmatpush3.bf16.msra.mxu1 %v2697_v32  ;;  %2534 = vmatprep.subr.bf16.mxu0 %v2758_v1 }
  0x64   : > { %2554 = vmatprep.subr.bf16.mxu1 %v2758_v1 }
  0x66   : > { %2535 = vmatpush3.bf16.msra.mxu0 %v2698_v39 }
  0x67   : > { %2555 = vmatpush3.bf16.msra.mxu1 %v2699_v37  ;;  %2536 = vmatprep.subr.bf16.mxu0 %v2758_v1 }
  0x68   : > { %2556 = vmatprep.subr.bf16.mxu1 %v2758_v1 }
  0x6a   : > { %2537 = vmatpush3.bf16.msra.mxu0 %v2700_v48 }
  0x6b   : > { %2557 = vmatpush3.bf16.msra.mxu1 %v2701_v45  ;;  %2562 = vmatprep.subr.bf16.mxu0 %v2758_v1 }
  0x6c   : > { %2582 = vmatprep.subr.bf16.mxu1 %v2758_v1 }
  0x6d   : > { %2539 = vmatmul.mubr.bf16.vlgmr.msra.gmra.mxu0 %v1080_v4  ;;  %v1619_v4 = vcombine.low %v2929_v15, %v1618_v26  ;;  %v2722_v15 = vld [vmem:[%s3279_s1 + $0x228] sm:$0xff]  }
  0x6e   : > { %2559 = vmatmul.mubr.bf16.vlgmr.msra.gmra.mxu1 %v1262_v49  ;;  %2563 = vmatpush3.bf16.msra.mxu0 %v2702_v41 }
  0x6f   : > { %2583 = vmatpush3.bf16.msra.mxu1 %v2703_v51  ;;  %2598 = vmatprep.mubr.msk.bf16.mxu1 %vm2759_vm0, %v2758_v1 }
  0x70   : > { %2584 = vmatprep.subr.bf16.mxu1 %v2758_v1  ;;  %2578 = vmatprep.mubr.msk.bf16.mxu0 %vm2759_vm0, %v2758_v1 }
  0x71   : > { %2564 = vmatprep.subr.bf16.mxu0 %v2758_v1 }
  0x72   : > { %2565 = vmatpush3.bf16.msra.mxu0 %v2704_v59 }
  0x73   : > { %2585 = vmatpush3.bf16.msra.mxu1 %v2705_v55  ;;  %2566 = vmatprep.subr.bf16.mxu0 %v2758_v1 }
  0x74   : > { %2586 = vmatprep.subr.bf16.mxu1 %v2758_v1 }
  0x76   : > { %2567 = vmatpush3.bf16.msra.mxu0 %v2706_v3 }
  0x77   : > { %2587 = vmatpush3.bf16.msra.mxu1 %v2707_v61  ;;  %2568 = vmatprep.subr.bf16.mxu0 %v2758_v1 }
  0x78   : > { %2588 = vmatprep.subr.bf16.mxu1 %v2758_v1 }
  0x7a   : > { %2569 = vmatpush3.bf16.msra.mxu0 %v2708_v11 }
  0x7b   : > { %2589 = vmatpush3.bf16.msra.mxu1 %v2709_v5  ;;  %2570 = vmatprep.subr.bf16.mxu0 %v2758_v1 }
  0x7c   : > { %2590 = vmatprep.subr.bf16.mxu1 %v2758_v1 }
  0x7e   : > { %2571 = vmatpush3.bf16.msra.mxu0 %v2710_v17 }
  0x7f   : > { %2591 = vmatpush3.bf16.msra.mxu1 %v2711_v13  ;;  %2572 = vmatprep.subr.bf16.mxu0 %v2758_v1 }
  0x80   : > { %2592 = vmatprep.subr.bf16.mxu1 %v2758_v1 }
  0x82   : > { %2573 = vmatpush3.bf16.msra.mxu0 %v2712_v21 }
  0x83   : > { %2593 = vmatpush3.bf16.msra.mxu1 %v2713_v18  ;;  %2574 = vmatprep.subr.bf16.mxu0 %v2758_v1 }
  0x84   : > { %2594 = vmatprep.subr.bf16.mxu1 %v2758_v1 }
  0x86   : > { %2575 = vmatpush3.bf16.msra.mxu0 %v2714_v25 }
  0x87   : > { %2595 = vmatpush3.bf16.msra.mxu1 %v2715_v23  ;;  %2576 = vmatprep.subr.bf16.mxu0 %v2758_v1  ;;  %v2357_v23 = vld [vmem:[%s3280_s2] ss:$0 sm:$0xff] }
  0x88   : > { %2596 = vmatprep.subr.bf16.mxu1 %v2758_v1 }
  0x8a   : > { %2577 = vmatpush3.bf16.msra.mxu0 %v2716_v0 }
  0x8b   : > { %2597 = vmatpush3.bf16.msra.mxu1 %v2717_v20  ;;  %2602 = vmatprep.subr.bf16.mxu0 %v2758_v1 }
  0x8d   : > { %2579 = vmatmul.mubr.bf16.vlgmr.msra.gmra.mxu0 %v1397_v7 }
  0x8e   : > { %2599 = vmatmul.mubr.bf16.vlgmr.msra.gmra.mxu1 %v1619_v4  ;;  %2603 = vmatpush3.bf16.msra.mxu0 %v2720_v8 }
  0x8f   : > { %2618 = vmatprep.mubr.msk.bf16.mxu0 %vm2759_vm0, %v2758_v1  ;;  %2604 = vmatprep.subr.bf16.mxu0 %v2758_v1  ;;  %vm1935_vm0 = vcmp.eq.s32.totalorder %v2855_v12, 0 }
  0x92   : > { %2605 = vmatpush3.bf16.msra.mxu0 %v2721_v9 }
  0x93   : > { %2606 = vmatprep.subr.bf16.mxu0 %v2758_v1 }
  0x96   : > { %2607 = vmatpush3.bf16.msra.mxu0 %v2722_v15 }
  0x97   : > { %2608 = vmatprep.subr.bf16.mxu0 %v2758_v1 }
  0x9a   : > { %2609 = vmatpush3.bf16.msra.mxu0 %v2723_v27 }
  0x9b   : > { %2610 = vmatprep.subr.bf16.mxu0 %v2758_v1 }
  0x9e   : > { %2611 = vmatpush3.bf16.msra.mxu0 %v2724_v28 }
  0x9f   : > { %2612 = vmatprep.subr.bf16.mxu0 %v2758_v1 }
  0xa2   : > { %2613 = vmatpush3.bf16.msra.mxu0 %v2725_v29 }
  0xa3   : > { %2614 = vmatprep.subr.bf16.mxu0 %v2758_v1 }
  0xa6   : > { %2615 = vmatpush3.bf16.msra.mxu0 %v2726_v30 }
  0xa7   : > { %2616 = vmatprep.subr.bf16.mxu0 %v2758_v1 }
  0xaa   : > { %2617 = vmatpush3.bf16.msra.mxu0 %v2727_v31 }
  0xad   : > { %2619 = vmatmul.mubr.bf16.vlgmr.msra.gmra.mxu0 %v1801_v58 }
  0xed   : > { %v509_v34 = vpop.f32.mrf.mxu0 }
  0xee   : > { %v620_v32 = vpop.f32.mrf.mxu1 }
  0xef   : > { %v621_v35 = vadd.f32 %v620_v32, %v509_v34  ;;  %v2460_v37 = vpop.f32.mrf.mxu0 }
  0xf0   : > { %v2480_v33 = vpop.f32.mrf.mxu1 }
  0xf1   : > { %v512_v39 = vpop.f32.mrf.mxu0 }
  0xf2   : > { %v623_v36 = vpop.f32.mrf.mxu1 }
  0xf3   : > { %v624_v40 = vadd.f32 %v623_v36, %v512_v39  ;;  %v2461_v42 = vpop.f32.mrf.mxu0 }
  0xf4   : > { %v2481_v38 = vpop.f32.mrf.mxu1 }
 0x10d   : > { %v807_v45 = vpop.f32.mrf.mxu0 }
 0x10e   : > { %v942_v43 = vpop.f32.mrf.mxu1  ;;  %v814_v47 = vadd.f32 %v807_v45, %v621_v35 }
 0x10f   : > { %v2500_v48 = vpop.f32.mrf.mxu0 }
 0x110   : > { %v2520_v44 = vpop.f32.mrf.mxu1  ;;  %v949_v49 = vadd.f32 %v942_v43, %v814_v47 }
 0x111   : > { %v810_v60 = vpop.f32.mrf.mxu0 }
 0x112   : > { %v945_v1 = vpop.f32.mrf.mxu1  ;;  %v815_v51 = vadd.f32 %v810_v60, %v624_v40 }
 0x113   : > { %v2501_v52 = vpop.f32.mrf.mxu0 }
 0x114   : > { %v2521_v50 = vpop.f32.mrf.mxu1  ;;  %v950_v53 = vadd.f32 %v945_v1, %v815_v51 }
 0x12d   : > { %v1164_v55 = vpop.f32.mrf.mxu0 }
 0x12e   : > { %v1346_v54 = vpop.f32.mrf.mxu1  ;;  %v1171_v13 = vadd.f32 %v1164_v55, %v949_v49 }
 0x12f   : > { %v2540_v57 = vpop.f32.mrf.mxu0 }
 0x130   : > { %v2560_v41 = vpop.f32.mrf.mxu1  ;;  %v1353_v14 = vadd.f32 %v1346_v54, %v1171_v13 }
 0x131   : > { %v1167_v59 = vpop.f32.mrf.mxu0 }
 0x132   : > { %v1349_v56 = vpop.f32.mrf.mxu1  ;;  %v1172_v16 = vadd.f32 %v1167_v59, %v950_v53 }
 0x133   : > { %v2541_v61 = vpop.f32.mrf.mxu0 }
 0x134   : > { %v2561_v58 = vpop.f32.mrf.mxu1  ;;  %v1354_v18 = vadd.f32 %v1349_v56, %v1172_v16 }
 0x14d   : > { %v1481_v2 = vpop.f32.mrf.mxu0 }
 0x14e   : > { %v1703_v62 = vpop.f32.mrf.mxu1  ;;  %v1488_v17 = vadd.f32 %v1481_v2, %v1353_v14 }
 0x14f   : > { %v2580_v5 = vpop.f32.mrf.mxu0 }
 0x150   : > { %v2600_v63 = vpop.f32.mrf.mxu1  ;;  %v1710_v19 = vadd.f32 %v1703_v62, %v1488_v17 }
 0x151   : > { %v1484_v10 = vpop.f32.mrf.mxu0 }
 0x152   : > { %v1706_v3 = vpop.f32.mrf.mxu1  ;;  %v1489_v21 = vadd.f32 %v1484_v10, %v1354_v18 }
 0x153   : > { %v2581_v11 = vpop.f32.mrf.mxu0 }
 0x154   : > { %v2601_v6 = vpop.f32.mrf.mxu1  ;;  %v1711_v25 = vadd.f32 %v1706_v3, %v1489_v21 }
 0x16d   : > { %v1885_v22 = vpop.f32.mrf.mxu0 }
 0x16e   : > { %v1892_v46 = vadd.f32 %v1885_v22, %v1710_v19 }
 0x16f   : > { %v2620_v24 = vpop.f32.mrf.mxu0 }
 0x170   : > { %v1901_v26 = vadd.f32 %v2357_v23, %v1892_v46 }
 0x171   : > { %v1888_v20 = vpop.f32.mrf.mxu0 }
 0x172   : > { %v1905_v0 = vcombine.high %v1901_v26, %v1901_v26  ;;  %v1909_v4 = vpack.c.bf16 %v1901_v26, %v1901_v26  ;;  %v1893_v7 = vadd.f32 %v1888_v20, %v1711_v25  ;;  %v1924_v27 = vmul.f32 %v1901_v26, %v1901_v26 }
 0x173   : > { %v2621_v8 = vpop.f32.mrf.mxu0 }
 0x174   : > { %v1910_v9 = vpack.c.bf16 %v1905_v0, %v1905_v0  ;;  %1913 = vst [vmem:[%s260_s23] sm:$0x3] %v1909_v4  ;;  %v1902_v15 = vadd.f32 %v2357_v23, %v1893_v7 }
 0x176   : > { %1914 = vst [vmem:[%s260_s23 + $0x2] sm:$0x3] %v1910_v9  ;;  %v1906_v28 = vcombine.high %v1902_v15, %v1902_v15  ;;  %v1911_v29 = vpack.c.bf16 %v1902_v15, %v1902_v15  ;;  %v1917_v30 = vadd.f32 %v1902_v15, %v1901_v26  ;;  %v1925_v31 = vmul.f32 %v1902_v15, %v1902_v15 }
 0x178   : > { %v1912_v32 = vpack.c.bf16 %v1906_v28, %v1906_v28  ;;  %1915 = vst [vmem:[%s260_s23 + $0x4] sm:$0x3] %v1911_v29  ;;  %v1918_v33 = vrot.slane %v1917_v30, 4  ;;  %v1926_v34 = vadd.f32 %v1925_v31, %v1924_v27 }
 0x17a   : > { %1916 = vst [vmem:[%s260_s23 + $0x6] sm:$0x3] %v1912_v32  ;;  %v1919_v35 = vadd.f32 %v1918_v33, %v1917_v30  ;;  %v1927_v36 = vrot.slane %v1926_v34, 4 }
 0x17c   : > { %v1920_v37 = vrot.slane %v1919_v35, 2  ;;  %v1928_v38 = vadd.f32 %v1927_v36, %v1926_v34 }
 0x17e   : > { %v1921_v39 = vadd.f32 %v1920_v37, %v1919_v35  ;;  %v1929_v40 = vrot.slane %v1928_v38, 2 }
 0x180   : > { %v1930_v42 = vadd.f32 %v1929_v40, %v1928_v38  ;;  %v1922_v43 = vrot.slane %v1921_v39, 1 }
 0x182   : > { %v1931_v44 = vrot.slane %v1930_v42, 1  ;;  %v1923_v47 = vadd.f32 %v1922_v43, %v1921_v39 }
 0x184   : > { %v1932_v45 = vadd.f32 %v1931_v44, %v1930_v42 }
 0x186   : > { %v1937_v1 = vsel %vm1936_vm15, %v1932_v45, 0.0 }
 0x187   : > { %v1938_v48 = vsel %vm1935_vm0, %v1923_v47, %v1937_v1 }
 0x188   : > { %1939 = vst [vmem:[%s267_s25] sm:$0xff] %v1938_v48 }
 0x189 PF: > { %s15_s17 = sadd.s32 1, %s2756_s17   ;;  %s3291_s15 = smov %s2752_s16 }
 0x18a   : > { %p12_p5 = scmp.ge.s32.totalorder %s15_s17, 4   ;;  %s3292_s16 = smov %s3294_s18 }
 0x18c   :  { %14 = sbr.rel (!%p12_p5) target bundleno = 2 (0x2), region = 90 }

// kernel: resnet_forward.158
= control target key start
LH: loop header
LB: loop body
LE: loop exit
PB: predicated region body
PF: predicated region fallthrough
CT: control target
= control target key end

     0   :  { %v787_v16 = vmov 0.0|0.0   ;;  %v788_v27 = vmov 0.0   ;;  %v402_v35 = vlaneseq  ;;  %s913_s1 = inlined_call_operand.vmem [shape: bf16[128,128], index: 1, kind: input, shape index: {}]   ;;  %s914_s0 = inlined_call_operand.vmem [shape: bf16[128,128], index: 0, kind: input, shape index: {}]   ;;  %s915_s3 = inlined_call_operand.vmem [shape: bf16[128,128], index: 3, kind: output, shape index: {0}]   ;;  %s916_s2 = inlined_call_operand.vmem [shape: f32[1,128], index: 2, kind: input, shape index: {}]   ;;  %s917_s4 = inlined_call_operand.vmem [shape: f32[1,8,128], index: 4, kind: output, shape index: {1}]  }
   0x1   :  { %v771_v0 = vld [vmem:[%s913_s1 + $0x38] sm:$0xff]   ;;  %v772_v1 = vld [vmem:[%s913_s1 + $0x30] sm:$0xff]   ;;  %v773_v2 = vld [vmem:[%s913_s1 + $0x28] sm:$0xff]   ;;  %v669_v17 = vcombine.low %v787_v16, %v787_v16  ;;  %v670_v18 = vcombine.high %v787_v16, %v787_v16 }
   0x2   :  { %721 = vmatprep.subr.bf16.mxu0 %v771_v0  ;;  %753 = vmatprep.subr.bf16.mxu1 %v771_v0  ;;  %v774_v3 = vld [vmem:[%s913_s1 + $0x20] sm:$0xff]   ;;  %v775_v6 = vld [vmem:[%s913_s1 + $0x18] sm:$0xff]   ;;  %v776_v7 = vld [vmem:[%s913_s1 + $0x10] sm:$0xff]   ;;  %v403_v44 = vshrl.u32 %v402_v35, 7 }
   0x3   :  { %722 = vmatpush3.bf16.msra.mxu0 %v771_v0  ;;  %761 = vmatpush3.bf16.msra.mxu1 %v771_v0  ;;  %v779_v4 = vld [vmem:[%s914_s0] sm:$0xff]   ;;  %v777_v8 = vld [vmem:[%s913_s1 + $0x8] sm:$0xff]   ;;  %v783_v12 = vld [vmem:[%s914_s0 + $0x10] sm:$0xff]   ;;  %549 = vst [vmem:[%s915_s3 + $0x8] sm:$0xf] %v669_v17 }
   0x4   :  { %723 = vmatprep.subr.bf16.mxu0 %v772_v1  ;;  %754 = vmatprep.subr.bf16.mxu1 %v772_v1  ;;  %v781_v5 = vld [vmem:[%s914_s0 + $0x20] sm:$0xff]   ;;  %v780_v10 = vld [vmem:[%s914_s0 + $0x8] sm:$0xff]   ;;  %v784_v13 = vld [vmem:[%s914_s0 + $0x30] sm:$0xff]   ;;  %550 = vst [vmem:[%s915_s3 + $0xc] sm:$0xf] %v670_v18  ;;  %vm622_vm0 = vcmp.eq.s32.totalorder %v403_v44, 1 }
   0x5   :  { %737 = vmatprep.mubr.bf16.mxu0 %v779_v4  ;;  %745 = vmatprep.mubr.bf16.mxu1 %v781_v5  ;;  %v778_v9 = vld [vmem:[%s913_s1] sm:$0xff]   ;;  %v782_v11 = vld [vmem:[%s914_s0 + $0x28] sm:$0xff]   ;;  %v785_v14 = vld [vmem:[%s914_s0 + $0x18] sm:$0xff]   ;;  %551 = vst [vmem:[%s915_s3 + $0x10] sm:$0xf] %v669_v17  ;;  %vm621_vm1 = vcmp.eq.s32.totalorder %v403_v44, 0 }
   0x6   :  { %v786_v15 = vld [vmem:[%s914_s0 + $0x38] sm:$0xff]   ;;  %552 = vst [vmem:[%s915_s3 + $0x14] sm:$0xf] %v670_v18  ;;  %553 = vst [vmem:[%s915_s3 + $0x18] sm:$0xf] %v669_v17 }
   0x7   :  { %724 = vmatpush3.bf16.msra.mxu0 %v772_v1  ;;  %762 = vmatpush3.bf16.msra.mxu1 %v772_v1  ;;  %554 = vst [vmem:[%s915_s3 + $0x1c] sm:$0xf] %v670_v18  ;;  %555 = vst [vmem:[%s915_s3 + $0x20] sm:$0xf] %v669_v17  ;;  %v634_v21 = vld [vmem:[%s916_s2] ss:$0 sm:$0xff] }
   0x8   :  { %725 = vmatprep.subr.bf16.mxu0 %v773_v2  ;;  %755 = vmatprep.subr.bf16.mxu1 %v773_v2  ;;  %556 = vst [vmem:[%s915_s3 + $0x24] sm:$0xf] %v670_v18  ;;  %557 = vst [vmem:[%s915_s3 + $0x28] sm:$0xf] %v669_v17 }
   0x9   :  { %558 = vst [vmem:[%s915_s3 + $0x2c] sm:$0xf] %v670_v18  ;;  %559 = vst [vmem:[%s915_s3 + $0x30] sm:$0xf] %v669_v17 }
   0xa   :  { %560 = vst [vmem:[%s915_s3 + $0x34] sm:$0xf] %v670_v18  ;;  %561 = vst [vmem:[%s915_s3 + $0x38] sm:$0xf] %v669_v17 }
   0xb   :  { %726 = vmatpush3.bf16.msra.mxu0 %v773_v2  ;;  %763 = vmatpush3.bf16.msra.mxu1 %v773_v2  ;;  %562 = vst [vmem:[%s915_s3 + $0x3c] sm:$0xf] %v670_v18 }
   0xc   :  { %727 = vmatprep.subr.bf16.mxu0 %v774_v3  ;;  %756 = vmatprep.subr.bf16.mxu1 %v774_v3 }
   0xf   :  { %728 = vmatpush3.bf16.msra.mxu0 %v774_v3  ;;  %764 = vmatpush3.bf16.msra.mxu1 %v774_v3 }
  0x10   :  { %729 = vmatprep.subr.bf16.mxu0 %v775_v6  ;;  %757 = vmatprep.subr.bf16.mxu1 %v775_v6 }
  0x13   :  { %730 = vmatpush3.bf16.msra.mxu0 %v775_v6  ;;  %765 = vmatpush3.bf16.msra.mxu1 %v775_v6 }
  0x14   :  { %731 = vmatprep.subr.bf16.mxu0 %v776_v7  ;;  %758 = vmatprep.subr.bf16.mxu1 %v776_v7 }
  0x17   :  { %732 = vmatpush3.bf16.msra.mxu0 %v776_v7  ;;  %766 = vmatpush3.bf16.msra.mxu1 %v776_v7 }
  0x18   :  { %733 = vmatprep.subr.bf16.mxu0 %v777_v8  ;;  %759 = vmatprep.subr.bf16.mxu1 %v777_v8 }
  0x1b   :  { %734 = vmatpush3.bf16.msra.mxu0 %v777_v8  ;;  %767 = vmatpush3.bf16.msra.mxu1 %v777_v8 }
  0x1c   :  { %735 = vmatprep.subr.bf16.mxu0 %v778_v9  ;;  %760 = vmatprep.subr.bf16.mxu1 %v778_v9 }
  0x1f   :  { %736 = vmatpush3.bf16.msra.mxu0 %v778_v9  ;;  %768 = vmatpush3.bf16.msra.mxu1 %v778_v9 }
  0x22   :  { %738 = vmatmul.mubr.bf16.vlgmr.msra.gmra.mxu0 %v780_v10  ;;  %746 = vmatmul.mubr.bf16.vlgmr.msra.gmra.mxu1 %v782_v11 }
  0x23   :  { %741 = vmatprep.mubr.bf16.mxu0 %v783_v12  ;;  %749 = vmatprep.mubr.bf16.mxu1 %v784_v13 }
  0x2a   :  { %742 = vmatmul.mubr.bf16.gmra.mxu0 %v785_v14  ;;  %750 = vmatmul.mubr.bf16.gmra.mxu1 %v786_v15 }
  0xe2   :  { %v739_v19 = vpop.f32.mrf.mxu0  ;;  %v747_v20 = vpop.f32.mrf.mxu1 }
  0xe4   :  { %v186_v22 = vpop.f32.mrf.mxu0  ;;  %v218_v23 = vpop.f32.mrf.mxu1 }
  0xe5   :  { %v187_v24 = vadd.f32 %v634_v21, %v186_v22 }
  0xe6   :  { %v740_v25 = vpop.f32.mrf.mxu0  ;;  %v748_v26 = vpop.f32.mrf.mxu1 }
  0xe7   :  { %v703_v28 = vpack.c.bf16 %v788_v27, %v187_v24  ;;  %v578_v29 = vrot.slane %v187_v24, 4  ;;  %v584_v30 = vmul.f32 %v187_v24, %v187_v24 }
  0xe8   :  { %v189_v31 = vpop.f32.mrf.mxu0  ;;  %v221_v32 = vpop.f32.mrf.mxu1 }
  0xe9   :  { %704 = vst [vmem:[%s915_s3] sm:$0xff] %v703_v28   ;;  %v579_v33 = vadd.f32 %v578_v29, %v187_v24  ;;  %v615_v34 = vrot.slane %v584_v30, 4 }
  0xea   :  { %v743_v36 = vpop.f32.mrf.mxu0  ;;  %v751_v37 = vpop.f32.mrf.mxu1 }
  0xeb   :  { %v580_v38 = vrot.slane %v579_v33, 2  ;;  %v616_v39 = vadd.f32 %v615_v34, %v584_v30 }
  0xec   :  { %v202_v40 = vpop.f32.mrf.mxu0  ;;  %v234_v41 = vpop.f32.mrf.mxu1 }
  0xed   :  { %v581_v42 = vadd.f32 %v580_v38, %v579_v33  ;;  %v617_v43 = vrot.slane %v616_v39, 2 }
  0xee   :  { %v744_v45 = vpop.f32.mrf.mxu0  ;;  %v752_v46 = vpop.f32.mrf.mxu1 }
  0xef   :  { %v618_v47 = vadd.f32 %v617_v43, %v616_v39  ;;  %v582_v48 = vrot.slane %v581_v42, 1 }
  0xf0   :  { %v205_v49 = vpop.f32.mrf.mxu0  ;;  %v237_v50 = vpop.f32.mrf.mxu1 }
  0xf1   :  { %v619_v51 = vrot.slane %v618_v47, 1  ;;  %v583_v53 = vadd.f32 %v582_v48, %v581_v42 }
  0xf3   :  { %v620_v52 = vadd.f32 %v619_v51, %v618_v47 }
  0xf5   :  { %v623_v54 = vsel %vm622_vm0, %v620_v52, 0.0 }
  0xf6   :  { %v624_v55 = vsel %vm621_vm1, %v583_v53, %v623_v54 }
  0xf7   :  { %625 = vst [vmem:[%s917_s4] sm:$0xff] %v624_v55 }

// kernel: resnet_forward.160
= control target key start
LH: loop header
LB: loop body
LE: loop exit
PB: predicated region body
PF: predicated region fallthrough
CT: control target
= control target key end

     0   :  { %s2413_s15 = smov 0   ;;  %s2415_s16 = smov 0   ;;  %s2845_s0 = inlined_call_operand.vmem [shape: bf16[2,4,4,128], index: 0, kind: input, shape index: {}]   ;;  %s2846_s1 = inlined_call_operand.vmem [shape: bf16[9,128,128], index: 1, kind: input, shape index: {}]   ;;  %s2847_s2 = inlined_call_operand.vmem [shape: f32[1,128], index: 2, kind: input, shape index: {}]   ;;  %s2848_s3 = inlined_call_operand.vmem [shape: bf16[2,2,2,128], index: 3, kind: output, shape index: {0}]   ;;  %s2849_s4 = inlined_call_operand.vmem [shape: f32[2,8,128], index: 4, kind: output, shape index: {1}]  }
   0x1   :  { %s2417_s17 = smov 0  }
   0x2 LB: > { %s27_s18 = sadd.s32 1, %s2378_s16  ;;  %p1757_p0 = scmp.ge.s32.totalorder %s2382_s17, 1  ;;  %s2382_s17 = sphi %s2417_s17, %s15_s17   ;;  %s2378_s16 = sphi %s2415_s16, %s2853_s16   ;;  %s2374_s15 = sphi %s2413_s15, %s2852_s15  }
   0x3   : > { %p29_p1 = scmp.ge.s32.totalorder %s27_s18, 2  ;;  %p198_p2 = scmp.lt.s32.totalorder %s2382_s17, 3 }
   0x5   : > { %s2855_s18 = smov (%p29_p1, %s27_s18), 0  ;;  %p199_p3 = pnand %p1757_p0, %p198_p2 }
   0x6   : > { %p240_p4 = scmp.lt.s32.totalorder (!%p199_p3), %s2374_s15, 1 }
   0x7   : > { %202 = sbr.rel (%p199_p3) target bundleno = 388 (0x184), region = 32 }
   0xc   : > { %v2288_v0 = vld [vmem:[%s2846_s1 + $0x78] sm:$0xff]   ;;  %v2384_v1 = vmov 0.0   ;;  %v2290_v3 = vld [vmem:[%s2846_s1 + $0x70] sm:$0xff]   ;;  %vm2385_vm0 = vmmov 0   ;;  %v2292_v5 = vld [vmem:[%s2846_s1 + $0x68] sm:$0xff]   ;;  %s2857_s15 = smov (!%p240_p4, %s2374_s15), 1  ;;  %v359_v16 = vlaneseq }
   0xd   : > { %2080 = vmatprep.subr.bf16.mxu0 %v2384_v1  ;;  %2100 = vmatprep.subr.bf16.mxu1 %v2384_v1  ;;  %v2289_v2 = vld [vmem:[%s2846_s1 + $0x38] sm:$0xff]   ;;  %v2291_v4 = vld [vmem:[%s2846_s1 + $0x30] sm:$0xff]   ;;  %v2293_v6 = vld [vmem:[%s2846_s1 + $0x28] sm:$0xff]   ;;  %s1998_s7 = sshll.u32 %s2857_s15, 3  ;;  %vm305_vm1 = vsmask.f32 256 }
   0xe   : > { %2081 = vmatpush3.bf16.msra.mxu0 %v2288_v0  ;;  %2096 = vmatprep.mubr.msk.bf16.mxu0 %vm2385_vm0, %v2384_v1  ;;  %v2294_v7 = vld [vmem:[%s2846_s1 + $0x60] sm:$0xff]   ;;  %s2475_s12 = scalar_lea.vmem %s2845_s0, %s1998_s7  ;;  %v2296_v9 = vld [vmem:[%s2846_s1 + $0x58] sm:$0xff]   ;;  %v2298_v11 = vld [vmem:[%s2846_s1 + $0x50] sm:$0xff]   ;;  %vm306_vm2 = vsmask.f32 1284  ;;  %v2505_v28 = vshrl.u32 %v359_v16, 7  ;;  %s265_s6 = scalar_lea.vmem %s2849_s4, %s1998_s7 }
   0xf   : > { %2101 = vmatpush3.bf16.msra.mxu1 %v2289_v2  ;;  %2082 = vmatprep.subr.bf16.mxu0 %v2384_v1  ;;  %v2295_v8 = vld [vmem:[%s2846_s1 + $0x20] sm:$0xff]   ;;  %v2297_v10 = vld [vmem:[%s2846_s1 + $0x18] sm:$0xff]   ;;  %v2299_v13 = vld [vmem:[%s2846_s1 + $0x10] sm:$0xff]   ;;  %vm308_vm4 = vsmask.f32 2312  ;;  %s1760_s26 = sshll.u32 %s2857_s15, 1 }
  0x10   : > { %2102 = vmatprep.subr.bf16.mxu1 %v2384_v1  ;;  %2116 = vmatprep.mubr.msk.bf16.mxu1 %vm2385_vm0, %v2384_v1  ;;  %v1762_v12 = vld.sshfl [vmem:[%s2475_s12] sm:$0x11 pattern:$0x75316420]  ;;  %vm307_vm3 = vmor %vm305_vm1, %vm306_vm2  ;;  %vm310_vm5 = vsmask.f32 3340  ;;  %s258_s29 = scalar_lea.vmem %s2848_s3, %s1760_s26 }
  0x11   : > { %v1763_v14 = vld.sshfl [vmem:[%s2475_s12 + $0x2] sm:$0x11 pattern:$0x75316420]  ;;  %v296_v15 = vcombine.high %v1762_v12, %v1762_v12  ;;  %vm312_vm6 = vsmask.f32 4368  ;;  %vm309_vm7 = vmor %vm307_vm3, %vm308_vm4 }
  0x12   : > { %2083 = vmatpush3.bf16.msra.mxu0 %v2290_v3  ;;  %v304_v17 = vcombine.high %v1763_v14, %v1763_v14  ;;  %vm314_vm8 = vsmask.f32 5396  ;;  %vm316_vm9 = vsmask.f32 6424  ;;  %vm318_vm10 = vsmask.f32 7452  ;;  %vm311_vm11 = vmor %vm309_vm7, %vm310_vm5 }
  0x13   : > { %2103 = vmatpush3.bf16.msra.mxu1 %v2291_v4  ;;  %2084 = vmatprep.subr.bf16.mxu0 %v2384_v1  ;;  %v2300_v18 = vld [vmem:[%s2846_s1 + $0x48] sm:$0xff]   ;;  %v321_v19 = vshrl.u32 %v1762_v12, 16  ;;  %v326_v20 = vshll.u32 %v296_v15, 16  ;;  %v330_v21 = vshrl.u32 %v1763_v14, 16  ;;  %v267_v23 = vld [vmem:[%s2475_s12] sm:$0x1]  ;;  %vm313_vm12 = vmor %vm311_vm11, %vm312_vm6 }
  0x14   : > { %2104 = vmatprep.subr.bf16.mxu1 %v2384_v1  ;;  %v335_v22 = vshll.u32 %v304_v17, 16  ;;  %v268_v24 = vld [vmem:[%s2475_s12 + $0x2] sm:$0x1]  ;;  %v2301_v25 = vld [vmem:[%s2846_s1 + $0x8] sm:$0xff]   ;;  %vm315_vm13 = vmor %vm313_vm12, %vm314_vm8  ;;  %v2386_v26 = vmov 1966171168  }
  0x15   : > { %v357_v27 = vunpack.c.l.s4 %v2386_v26  ;;  %vm317_vm14 = vmor %vm315_vm13, %vm316_vm9  ;;  %v461_v31 = vcombine.low %v267_v23, %v268_v24  ;;  %v2302_v34 = vld [vmem:[%s2846_s1 + $0x40] sm:$0xff]   ;;  %v2304_v42 = vld [vmem:[%s2846_s1 + $0xb8] sm:$0xff]   ;;  %vm1607_vm1 = vcmp.eq.s32.totalorder %v2505_v28, 1  ;;  %vm1606_vm2 = vcmp.eq.s32.totalorder %v2505_v28, 0 }
  0x16   : > { %2085 = vmatpush3.bf16.msra.mxu0 %v2292_v5  ;;  %vm2511_vm15 = vmor %vm317_vm14, %vm318_vm10  ;;  %v2303_v37 = vld [vmem:[%s2846_s1] sm:$0xff]   ;;  %v2305_v43 = vld [vmem:[%s2846_s1 + $0xf8] sm:$0xff]  }
  0x17   : > { %2105 = vmatpush3.bf16.msra.mxu1 %v2293_v6  ;;  %2086 = vmatprep.subr.bf16.mxu0 %v2384_v1  ;;  %v358_v30 = vunpack.c.0.s8 %v357_v27  ;;  %v328_v32 = vsel %vm2511_vm15, %v321_v19, %v326_v20  ;;  %v2519_v33 = vsel %vm2511_vm15, %v330_v21, %v335_v22  ;;  %v2306_v44 = vld [vmem:[%s2846_s1 + $0xb0] sm:$0xff]   ;;  %v2308_v46 = vld [vmem:[%s2846_s1 + $0xa8] sm:$0xff]   ;;  %v2310_v48 = vld [vmem:[%s2846_s1 + $0xa0] sm:$0xff]  }
  0x18   : > { %2106 = vmatprep.subr.bf16.mxu1 %v2384_v1  ;;  %v355_v35 = vcombine.low %v328_v32, %v2519_v33  ;;  %v2307_v45 = vld [vmem:[%s2846_s1 + $0xf0] sm:$0xff]   ;;  %v2309_v47 = vld [vmem:[%s2846_s1 + $0xe8] sm:$0xff]   ;;  %v2311_v49 = vld [vmem:[%s2846_s1 + $0xe0] sm:$0xff]  }
  0x19   : > { %v2526_v36 = vsub.s32 %v358_v30, %v2505_v28  ;;  %v2312_v50 = vld [vmem:[%s2846_s1 + $0x98] sm:$0xff]   ;;  %v2314_v52 = vld [vmem:[%s2846_s1 + $0x90] sm:$0xff]   ;;  %v1798_v53 = vld.sshfl [vmem:[%s2475_s12] sm:$0x10 pattern:$0x75316420] }
  0x1a   : > { %2087 = vmatpush3.bf16.msra.mxu0 %v2294_v7  ;;  %v2313_v51 = vld [vmem:[%s2846_s1 + $0xd8] sm:$0xff]   ;;  %v2586_v54 = vld.sshfl [vmem:[%s2475_s12 + $0x2] sm:$0x10 pattern:$0x75316420]  ;;  %v2315_v55 = vld [vmem:[%s2846_s1 + $0xd0] sm:$0xff]  }
  0x1b   : > { %2107 = vmatpush3.bf16.msra.mxu1 %v2295_v8  ;;  %2088 = vmatprep.subr.bf16.mxu0 %v2384_v1  ;;  %v362_v38 = vrot.slane %v355_v35, %v2526_v36  ;;  %v468_v39 = vrot.slane %v461_v31, %v2526_v36  ;;  %v1825_v56 = vld [vmem:[%s2475_s12 + $0x2] sm:$0x1]  ;;  %v1826_v57 = vld [vmem:[%s2475_s12 + $0x4] sm:$0x1]  ;;  %v1816_v58 = vcombine.high %v1798_v53, %v2586_v54  ;;  %v2316_v59 = vld [vmem:[%s2846_s1 + $0x88] sm:$0xff]  }
  0x1c   : > { %2108 = vmatprep.subr.bf16.mxu1 %v2384_v1  ;;  %v729_v60 = vcombine.low %v1825_v56, %v1826_v57  ;;  %v2317_v61 = vld [vmem:[%s2846_s1 + $0xc8] sm:$0xff]   ;;  %v1854_v62 = vld.sshfl [vmem:[%s2475_s12 + $0x4] sm:$0x11 pattern:$0x75316420]  ;;  %v2321_v12 = vld [vmem:[%s2846_s1 + $0x178] sm:$0xff]  }
  0x1d   : > { %v369_v40 = vrot.slane %v362_v38, %v2526_v36  ;;  %v475_v41 = vrot.slane %v468_v39, %v2526_v36  ;;  %v609_v63 = vrot.slane %v1816_v58, %v2526_v36  ;;  %v853_v0 = vcombine.high %v1854_v62, %v1854_v62  ;;  %v2318_v3 = vld [vmem:[%s2846_s1 + $0x80] sm:$0xff]   ;;  %v2322_v14 = vld [vmem:[%s2846_s1 + $0x130] sm:$0xff]   ;;  %v2324_v17 = vld [vmem:[%s2846_s1 + $0x128] sm:$0xff]  }
  0x1e   : > { %2089 = vmatpush3.bf16.msra.mxu0 %v2296_v9  ;;  %v864_v2 = vshrl.u32 %v1854_v62, 16  ;;  %v736_v4 = vrot.slane %v729_v60, %v2526_v36  ;;  %v2319_v5 = vld [vmem:[%s2846_s1 + $0xc0] sm:$0xff]   ;;  %v2320_v9 = vld [vmem:[%s2846_s1 + $0x138] sm:$0xff]   ;;  %v2323_v16 = vld [vmem:[%s2846_s1 + $0x170] sm:$0xff]  }
  0x1f   : > { %2109 = vmatpush3.bf16.msra.mxu1 %v2297_v10  ;;  %2090 = vmatprep.subr.bf16.mxu0 %v2384_v1  ;;  %v869_v6 = vshll.u32 %v853_v0, 16  ;;  %v616_v7 = vrot.slane %v609_v63, %v2526_v36  ;;  %v2326_v19 = vld [vmem:[%s2846_s1 + $0x120] sm:$0xff]   ;;  %v2328_v24 = vld [vmem:[%s2846_s1 + $0x118] sm:$0xff]   ;;  %v2330_v31 = vld [vmem:[%s2846_s1 + $0x110] sm:$0xff]  }
  0x20   : > { %2110 = vmatprep.subr.bf16.mxu1 %v2384_v1  ;;  %v743_v10 = vrot.slane %v736_v4, %v2526_v36  ;;  %v2327_v20 = vld [vmem:[%s2846_s1 + $0x160] sm:$0xff]   ;;  %v2329_v26 = vld [vmem:[%s2846_s1 + $0x158] sm:$0xff]   ;;  %v2331_v32 = vld [vmem:[%s2846_s1 + $0x150] sm:$0xff]  }
  0x21   : > { %v871_v8 = vsel %vm2511_vm15, %v864_v2, %v869_v6  ;;  %v1939_v21 = vld.sshfl [vmem:[%s2475_s12 + $0x6] sm:$0x11 pattern:$0x75316420]  ;;  %v2332_v35 = vld [vmem:[%s2846_s1 + $0x108] sm:$0xff]   ;;  %v2346_v53 = vld [vmem:[%s2846_s1 + $0x190] sm:$0xff]  }
  0x22   : > { %2091 = vmatpush3.bf16.msra.mxu0 %v2298_v11  ;;  %v889_v11 = vcombine.low %v2519_v33, %v871_v8  ;;  %v1282_v22 = vcombine.high %v1939_v21, %v1939_v21  ;;  %v1293_v23 = vshrl.u32 %v1939_v21, 16  ;;  %v2680_v33 = vld.sshfl [vmem:[%s2475_s12 + $0x4] sm:$0x10 pattern:$0x75316420]  ;;  %v2333_v38 = vld [vmem:[%s2846_s1 + $0x148] sm:$0xff]  }
  0x23   : > { %2111 = vmatpush3.bf16.msra.mxu1 %v2299_v13  ;;  %2092 = vmatprep.subr.bf16.mxu0 %v2384_v1  ;;  %v2334_v39 = vld [vmem:[%s2846_s1 + $0x100] sm:$0xff]   ;;  %v2347_v56 = vld [vmem:[%s2846_s1 + $0x1d0] sm:$0xff]   ;;  %v2348_v58 = vld [vmem:[%s2846_s1 + $0x188] sm:$0xff]  }
  0x24   : > { %2112 = vmatprep.subr.bf16.mxu1 %v2384_v1  ;;  %v2629_v13 = vrot.slane %v889_v11, %v2526_v36  ;;  %v2351_v62 = vld [vmem:[%s2846_s1 + $0x1c0] sm:$0xff]   ;;  %v2352_v0 = vld [vmem:[%s2846_s1 + $0x238] sm:$0xff]   ;;  %v2353_v2 = vld [vmem:[%s2846_s1 + $0x230] sm:$0xff]  }
  0x25   : > { %v2355_v4 = vld [vmem:[%s2846_s1 + $0x220] sm:$0xff]   ;;  %v2357_v6 = vld [vmem:[%s2846_s1 + $0x210] sm:$0xff]  }
  0x26   : > { %2093 = vmatpush3.bf16.msra.mxu0 %v2300_v18  ;;  %v903_v15 = vrot.slane %v2629_v13, %v2526_v36  ;;  %v2325_v18 = vld [vmem:[%s2846_s1 + $0x168] sm:$0xff]   ;;  %v2359_v11 = vld [vmem:[%s2846_s1 + $0x200] sm:$0xff]  }
  0x27   : > { %2113 = vmatpush3.bf16.msra.mxu1 %v2301_v25  ;;  %2094 = vmatprep.subr.bf16.mxu0 %v2384_v1  ;;  %v1298_v25 = vshll.u32 %v1282_v22, 16 }
  0x28   : > { %2114 = vmatprep.subr.bf16.mxu1 %v2384_v1 }
  0x29   : > { %v1300_v27 = vsel %vm2511_vm15, %v1293_v23, %v1298_v25 }
  0x2a   : > { %2095 = vmatpush3.bf16.msra.mxu0 %v2302_v34  ;;  %v1318_v30 = vcombine.low %v871_v8, %v1300_v27 }
  0x2b   : > { %2115 = vmatpush3.bf16.msra.mxu1 %v2303_v37  ;;  %2120 = vmatprep.subr.bf16.mxu0 %v2384_v1  ;;  %v1901_v37 = vcombine.high %v2586_v54, %v2680_v33  ;;  %v1910_v54 = vld [vmem:[%s2475_s12 + $0x4] sm:$0x1] }
  0x2c   : > { %2140 = vmatprep.subr.bf16.mxu1 %v2384_v1  ;;  %v2683_v34 = vrot.slane %v1318_v30, %v2526_v36 }
  0x2d   : > { %2097 = vmatmul.mubr.bf16.vlgmr.msra.gmra.mxu0 %v369_v40  ;;  %v1038_v40 = vrot.slane %v1901_v37, %v2526_v36 }
  0x2e   : > { %2117 = vmatmul.mubr.bf16.vlgmr.msra.gmra.mxu1 %v475_v41  ;;  %2121 = vmatpush3.bf16.msra.mxu0 %v2304_v42  ;;  %v1332_v29 = vrot.slane %v2683_v34, %v2526_v36  ;;  %v2335_v41 = vld [vmem:[%s2846_s1 + $0x140] sm:$0xff]   ;;  %v2336_v42 = vld [vmem:[%s2846_s1 + $0x1b8] sm:$0xff]  }
  0x2f   : > { %2141 = vmatpush3.bf16.msra.mxu1 %v2305_v43  ;;  %2122 = vmatprep.subr.bf16.mxu0 %v2384_v1  ;;  %v1045_v43 = vrot.slane %v1038_v40, %v2526_v36 }
  0x30   : > { %2142 = vmatprep.subr.bf16.mxu1 %v2384_v1  ;;  %2136 = vmatprep.mubr.msk.bf16.mxu0 %vm2385_vm0, %v2384_v1 }
  0x31   : > { %2156 = vmatprep.mubr.msk.bf16.mxu1 %vm2385_vm0, %v2384_v1 }
  0x32   : > { %2123 = vmatpush3.bf16.msra.mxu0 %v2306_v44  ;;  %v2337_v44 = vld [vmem:[%s2846_s1 + $0x1f8] sm:$0xff]  }
  0x33   : > { %2143 = vmatpush3.bf16.msra.mxu1 %v2307_v45  ;;  %2124 = vmatprep.subr.bf16.mxu0 %v2384_v1  ;;  %v2338_v45 = vld [vmem:[%s2846_s1 + $0x1b0] sm:$0xff]  }
  0x34   : > { %2144 = vmatprep.subr.bf16.mxu1 %v2384_v1 }
  0x36   : > { %2125 = vmatpush3.bf16.msra.mxu0 %v2308_v46  ;;  %v2339_v46 = vld [vmem:[%s2846_s1 + $0x1f0] sm:$0xff]  }
  0x37   : > { %2145 = vmatpush3.bf16.msra.mxu1 %v2309_v47  ;;  %2126 = vmatprep.subr.bf16.mxu0 %v2384_v1  ;;  %v2340_v47 = vld [vmem:[%s2846_s1 + $0x1a8] sm:$0xff]  }
  0x38   : > { %2146 = vmatprep.subr.bf16.mxu1 %v2384_v1 }
  0x3a   : > { %2127 = vmatpush3.bf16.msra.mxu0 %v2310_v48  ;;  %v2341_v48 = vld [vmem:[%s2846_s1 + $0x1e8] sm:$0xff]  }
  0x3b   : > { %2147 = vmatpush3.bf16.msra.mxu1 %v2311_v49  ;;  %2128 = vmatprep.subr.bf16.mxu0 %v2384_v1  ;;  %v2342_v49 = vld [vmem:[%s2846_s1 + $0x1a0] sm:$0xff]  }
  0x3c   : > { %2148 = vmatprep.subr.bf16.mxu1 %v2384_v1 }
  0x3e   : > { %2129 = vmatpush3.bf16.msra.mxu0 %v2312_v50  ;;  %v2343_v50 = vld [vmem:[%s2846_s1 + $0x1e0] sm:$0xff]  }
  0x3f   : > { %2149 = vmatpush3.bf16.msra.mxu1 %v2313_v51  ;;  %2130 = vmatprep.subr.bf16.mxu0 %v2384_v1  ;;  %v2344_v51 = vld [vmem:[%s2846_s1 + $0x198] sm:$0xff]  }
  0x40   : > { %2150 = vmatprep.subr.bf16.mxu1 %v2384_v1 }
  0x42   : > { %2131 = vmatpush3.bf16.msra.mxu0 %v2314_v52  ;;  %v2345_v52 = vld [vmem:[%s2846_s1 + $0x1d8] sm:$0xff]  }
  0x43   : > { %2151 = vmatpush3.bf16.msra.mxu1 %v2315_v55  ;;  %2132 = vmatprep.subr.bf16.mxu0 %v2384_v1  ;;  %v1911_v55 = vld [vmem:[%s2475_s12 + $0x6] sm:$0x1] }
  0x44   : > { %2152 = vmatprep.subr.bf16.mxu1 %v2384_v1  ;;  %v1158_v57 = vcombine.low %v1910_v54, %v1911_v55 }
  0x46   : > { %2133 = vmatpush3.bf16.msra.mxu0 %v2316_v59  ;;  %v2349_v59 = vld [vmem:[%s2846_s1 + $0x1c8] sm:$0xff]   ;;  %v1165_v60 = vrot.slane %v1158_v57, %v2526_v36 }
  0x47   : > { %2153 = vmatpush3.bf16.msra.mxu1 %v2317_v61  ;;  %2134 = vmatprep.subr.bf16.mxu0 %v2384_v1  ;;  %v2350_v61 = vld [vmem:[%s2846_s1 + $0x180] sm:$0xff]  }
  0x48   : > { %2154 = vmatprep.subr.bf16.mxu1 %v2384_v1  ;;  %v1172_v63 = vrot.slane %v1165_v60, %v2526_v36 }
  0x4a   : > { %2135 = vmatpush3.bf16.msra.mxu0 %v2318_v3  ;;  %v2354_v3 = vld [vmem:[%s2846_s1 + $0x228] sm:$0xff]  }
  0x4b   : > { %2155 = vmatpush3.bf16.msra.mxu1 %v2319_v5  ;;  %2160 = vmatprep.subr.bf16.mxu0 %v2384_v1  ;;  %v2356_v5 = vld [vmem:[%s2846_s1 + $0x218] sm:$0xff]  }
  0x4c   : > { %2180 = vmatprep.subr.bf16.mxu1 %v2384_v1 }
  0x4d   : > { %2137 = vmatmul.mubr.bf16.vlgmr.msra.gmra.mxu0 %v616_v7  ;;  %v1969_v7 = vld.sshfl [vmem:[%s2475_s12 + $0x6] sm:$0x10 pattern:$0x75316420] }
  0x4e   : > { %2161 = vmatpush3.bf16.msra.mxu0 %v2320_v9  ;;  %2157 = vmatmul.mubr.bf16.vlgmr.msra.gmra.mxu1 %v743_v10  ;;  %v1986_v8 = vcombine.high %v2680_v33, %v1969_v7  ;;  %v2358_v9 = vld [vmem:[%s2846_s1 + $0x208] sm:$0xff]  }
  0x4f   : > { %2181 = vmatpush3.bf16.msra.mxu1 %v2321_v12  ;;  %2162 = vmatprep.subr.bf16.mxu0 %v2384_v1 }
  0x50   : > { %2182 = vmatprep.subr.bf16.mxu1 %v2384_v1  ;;  %2176 = vmatprep.mubr.msk.bf16.mxu0 %vm2385_vm0, %v2384_v1  ;;  %v1467_v10 = vrot.slane %v1986_v8, %v2526_v36 }
  0x51   : > { %2196 = vmatprep.mubr.msk.bf16.mxu1 %vm2385_vm0, %v2384_v1 }
  0x52   : > { %2163 = vmatpush3.bf16.msra.mxu0 %v2322_v14  ;;  %v1474_v12 = vrot.slane %v1467_v10, %v2526_v36 }
  0x53   : > { %2183 = vmatpush3.bf16.msra.mxu1 %v2323_v16  ;;  %2164 = vmatprep.subr.bf16.mxu0 %v2384_v1 }
  0x54   : > { %2184 = vmatprep.subr.bf16.mxu1 %v2384_v1 }
  0x56   : > { %2165 = vmatpush3.bf16.msra.mxu0 %v2324_v17 }
  0x57   : > { %2185 = vmatpush3.bf16.msra.mxu1 %v2325_v18  ;;  %2166 = vmatprep.subr.bf16.mxu0 %v2384_v1 }
  0x58   : > { %2186 = vmatprep.subr.bf16.mxu1 %v2384_v1 }
  0x5a   : > { %2167 = vmatpush3.bf16.msra.mxu0 %v2326_v19 }
  0x5b   : > { %2187 = vmatpush3.bf16.msra.mxu1 %v2327_v20  ;;  %2168 = vmatprep.subr.bf16.mxu0 %v2384_v1 }
  0x5c   : > { %2188 = vmatprep.subr.bf16.mxu1 %v2384_v1 }
  0x5e   : > { %2169 = vmatpush3.bf16.msra.mxu0 %v2328_v24 }
  0x5f   : > { %2189 = vmatpush3.bf16.msra.mxu1 %v2329_v26  ;;  %2170 = vmatprep.subr.bf16.mxu0 %v2384_v1 }
  0x60   : > { %2190 = vmatprep.subr.bf16.mxu1 %v2384_v1 }
  0x62   : > { %2171 = vmatpush3.bf16.msra.mxu0 %v2330_v31 }
  0x63   : > { %2191 = vmatpush3.bf16.msra.mxu1 %v2331_v32  ;;  %2172 = vmatprep.subr.bf16.mxu0 %v2384_v1 }
  0x64   : > { %2192 = vmatprep.subr.bf16.mxu1 %v2384_v1 }
  0x66   : > { %2173 = vmatpush3.bf16.msra.mxu0 %v2332_v35 }
  0x67   : > { %2193 = vmatpush3.bf16.msra.mxu1 %v2333_v38  ;;  %2174 = vmatprep.subr.bf16.mxu0 %v2384_v1 }
  0x68   : > { %2194 = vmatprep.subr.bf16.mxu1 %v2384_v1 }
  0x6a   : > { %2175 = vmatpush3.bf16.msra.mxu0 %v2334_v39 }
  0x6b   : > { %2195 = vmatpush3.bf16.msra.mxu1 %v2335_v41  ;;  %2200 = vmatprep.subr.bf16.mxu0 %v2384_v1 }
  0x6c   : > { %2220 = vmatprep.subr.bf16.mxu1 %v2384_v1 }
  0x6d   : > { %2177 = vmatmul.mubr.bf16.vlgmr.msra.gmra.mxu0 %v903_v15 }
  0x6e   : > { %2201 = vmatpush3.bf16.msra.mxu0 %v2336_v42  ;;  %2197 = vmatmul.mubr.bf16.vlgmr.msra.gmra.mxu1 %v1045_v43 }
  0x6f   : > { %2221 = vmatpush3.bf16.msra.mxu1 %v2337_v44  ;;  %2202 = vmatprep.subr.bf16.mxu0 %v2384_v1 }
  0x70   : > { %2222 = vmatprep.subr.bf16.mxu1 %v2384_v1  ;;  %2216 = vmatprep.mubr.msk.bf16.mxu0 %vm2385_vm0, %v2384_v1 }
  0x71   : > { %2236 = vmatprep.mubr.msk.bf16.mxu1 %vm2385_vm0, %v2384_v1 }
  0x72   : > { %2203 = vmatpush3.bf16.msra.mxu0 %v2338_v45 }
  0x73   : > { %2223 = vmatpush3.bf16.msra.mxu1 %v2339_v46  ;;  %2204 = vmatprep.subr.bf16.mxu0 %v2384_v1 }
  0x74   : > { %2224 = vmatprep.subr.bf16.mxu1 %v2384_v1 }
  0x76   : > { %2205 = vmatpush3.bf16.msra.mxu0 %v2340_v47 }
  0x77   : > { %2225 = vmatpush3.bf16.msra.mxu1 %v2341_v48  ;;  %2206 = vmatprep.subr.bf16.mxu0 %v2384_v1 }
  0x78   : > { %2226 = vmatprep.subr.bf16.mxu1 %v2384_v1 }
  0x7a   : > { %2207 = vmatpush3.bf16.msra.mxu0 %v2342_v49 }
  0x7b   : > { %2227 = vmatpush3.bf16.msra.mxu1 %v2343_v50  ;;  %2208 = vmatprep.subr.bf16.mxu0 %v2384_v1  ;;  %v2387_v50 = vmov 1983009808  }
  0x7c   : > { %2228 = vmatprep.subr.bf16.mxu1 %v2384_v1 }
  0x7e   : > { %2209 = vmatpush3.bf16.msra.mxu0 %v2344_v51  ;;  %v1575_v51 = vunpack.c.l.s4 %v2387_v50 }
  0x7f   : > { %2229 = vmatpush3.bf16.msra.mxu1 %v2345_v52  ;;  %2210 = vmatprep.subr.bf16.mxu0 %v2384_v1 }
  0x80   : > { %2230 = vmatprep.subr.bf16.mxu1 %v2384_v1 }
  0x82   : > { %2211 = vmatpush3.bf16.msra.mxu0 %v2346_v53  ;;  %v1576_v53 = vunpack.c.0.s8 %v1575_v51 }
  0x83   : > { %2231 = vmatpush3.bf16.msra.mxu1 %v2347_v56  ;;  %2212 = vmatprep.subr.bf16.mxu0 %v2384_v1  ;;  %v1995_v56 = vld [vmem:[%s2847_s2] ss:$0 sm:$0xff] }
  0x84   : > { %2232 = vmatprep.subr.bf16.mxu1 %v2384_v1 }
  0x86   : > { %2213 = vmatpush3.bf16.msra.mxu0 %v2348_v58  ;;  %v1579_v58 = vsub.s32 %v1576_v53, %v2505_v28 }
  0x87   : > { %2233 = vmatpush3.bf16.msra.mxu1 %v2349_v59  ;;  %2214 = vmatprep.subr.bf16.mxu0 %v2384_v1 }
  0x88   : > { %2234 = vmatprep.subr.bf16.mxu1 %v2384_v1 }
  0x8a   : > { %2215 = vmatpush3.bf16.msra.mxu0 %v2350_v61 }
  0x8b   : > { %2235 = vmatpush3.bf16.msra.mxu1 %v2351_v62  ;;  %2240 = vmatprep.subr.bf16.mxu0 %v2384_v1 }
  0x8d   : > { %2217 = vmatmul.mubr.bf16.vlgmr.msra.gmra.mxu0 %v1172_v63 }
  0x8e   : > { %2241 = vmatpush3.bf16.msra.mxu0 %v2352_v0  ;;  %2237 = vmatmul.mubr.bf16.vlgmr.msra.gmra.mxu1 %v1332_v29 }
  0x8f   : > { %2242 = vmatprep.subr.bf16.mxu0 %v2384_v1  ;;  %2256 = vmatprep.mubr.msk.bf16.mxu0 %vm2385_vm0, %v2384_v1  ;;  %vm1588_vm0 = vcmask 1043456  }
  0x92   : > { %2243 = vmatpush3.bf16.msra.mxu0 %v2353_v2 }
  0x93   : > { %2244 = vmatprep.subr.bf16.mxu0 %v2384_v1 }
  0x96   : > { %2245 = vmatpush3.bf16.msra.mxu0 %v2354_v3 }
  0x97   : > { %2246 = vmatprep.subr.bf16.mxu0 %v2384_v1 }
  0x9a   : > { %2247 = vmatpush3.bf16.msra.mxu0 %v2355_v4 }
  0x9b   : > { %2248 = vmatprep.subr.bf16.mxu0 %v2384_v1 }
  0x9e   : > { %2249 = vmatpush3.bf16.msra.mxu0 %v2356_v5 }
  0x9f   : > { %2250 = vmatprep.subr.bf16.mxu0 %v2384_v1 }
  0xa2   : > { %2251 = vmatpush3.bf16.msra.mxu0 %v2357_v6 }
  0xa3   : > { %2252 = vmatprep.subr.bf16.mxu0 %v2384_v1 }
  0xa6   : > { %2253 = vmatpush3.bf16.msra.mxu0 %v2358_v9 }
  0xa7   : > { %2254 = vmatprep.subr.bf16.mxu0 %v2384_v1 }
  0xaa   : > { %2255 = vmatpush3.bf16.msra.mxu0 %v2359_v11 }
  0xad   : > { %2257 = vmatmul.mubr.bf16.vlgmr.msra.gmra.mxu0 %v1474_v12 }
  0xed   : > { %v453_v13 = vpop.f32.mrf.mxu0 }
  0xee   : > { %v559_v14 = vpop.f32.mrf.mxu1 }
  0xef   : > { %v560_v15 = vadd.f32 %v559_v14, %v453_v13  ;;  %v2098_v16 = vpop.f32.mrf.mxu0 }
  0xf0   : > { %v2118_v17 = vpop.f32.mrf.mxu1 }
  0xf1   : > { %v456_v18 = vpop.f32.mrf.mxu0 }
  0xf2   : > { %v562_v19 = vpop.f32.mrf.mxu1 }
  0xf3   : > { %v2099_v20 = vpop.f32.mrf.mxu0 }
  0xf4   : > { %v2119_v21 = vpop.f32.mrf.mxu1 }
 0x10d   : > { %v700_v22 = vpop.f32.mrf.mxu0 }
 0x10e   : > { %v706_v23 = vadd.f32 %v700_v22, %v560_v15  ;;  %v827_v24 = vpop.f32.mrf.mxu1 }
 0x10f   : > { %v2138_v25 = vpop.f32.mrf.mxu0 }
 0x110   : > { %v833_v26 = vadd.f32 %v827_v24, %v706_v23  ;;  %v2158_v27 = vpop.f32.mrf.mxu1 }
 0x111   : > { %v703_v1 = vpop.f32.mrf.mxu0 }
 0x112   : > { %v830_v30 = vpop.f32.mrf.mxu1 }
 0x113   : > { %v2139_v36 = vpop.f32.mrf.mxu0 }
 0x114   : > { %v2159_v31 = vpop.f32.mrf.mxu1 }
 0x12d   : > { %v987_v32 = vpop.f32.mrf.mxu0 }
 0x12e   : > { %v1129_v33 = vpop.f32.mrf.mxu1  ;;  %v993_v48 = vadd.f32 %v987_v32, %v833_v26 }
 0x12f   : > { %v2178_v34 = vpop.f32.mrf.mxu0 }
 0x130   : > { %v2198_v29 = vpop.f32.mrf.mxu1  ;;  %v1135_v49 = vadd.f32 %v1129_v33, %v993_v48 }
 0x131   : > { %v990_v35 = vpop.f32.mrf.mxu0 }
 0x132   : > { %v1132_v37 = vpop.f32.mrf.mxu1 }
 0x133   : > { %v2179_v38 = vpop.f32.mrf.mxu0 }
 0x134   : > { %v2199_v39 = vpop.f32.mrf.mxu1 }
 0x14d   : > { %v1256_v40 = vpop.f32.mrf.mxu0 }
 0x14e   : > { %v1416_v41 = vpop.f32.mrf.mxu1  ;;  %v1262_v52 = vadd.f32 %v1256_v40, %v1135_v49 }
 0x14f   : > { %v2218_v42 = vpop.f32.mrf.mxu0 }
 0x150   : > { %v2238_v43 = vpop.f32.mrf.mxu1  ;;  %v1422_v54 = vadd.f32 %v1416_v41, %v1262_v52 }
 0x151   : > { %v1259_v44 = vpop.f32.mrf.mxu0 }
 0x152   : > { %v1419_v45 = vpop.f32.mrf.mxu1 }
 0x153   : > { %v2219_v46 = vpop.f32.mrf.mxu0 }
 0x154   : > { %v2239_v47 = vpop.f32.mrf.mxu1 }
 0x16d   : > { %v1558_v55 = vpop.f32.mrf.mxu0 }
 0x16e   : > { %v1564_v57 = vadd.f32 %v1558_v55, %v1422_v54 }
 0x16f   : > { %v2258_v59 = vpop.f32.mrf.mxu0 }
 0x170   : > { %v1572_v60 = vadd.f32 %v1995_v56, %v1564_v57 }
 0x171   : > { %v1561_v61 = vpop.f32.mrf.mxu0 }
 0x172   : > { %v1580_v62 = vrot.slane %v1572_v60, %v1579_v58  ;;  %v1589_v63 = vsel %vm1588_vm0, %v1572_v60, 0.0  ;;  %v1596_v0 = vmul.f32 %v1572_v60, %v1572_v60 }
 0x173   : > { %v1590_v2 = vrot.slane %v1589_v63, 4  ;;  %v2259_v3 = vpop.f32.mrf.mxu0 }
 0x174   : > { %v1581_v4 = vcombine.high %v1580_v62, %v1580_v62  ;;  %v1584_v5 = vpack.c.bf16 %v1580_v62, %v1580_v62  ;;  %v1597_v6 = vsel %vm1588_vm0, %v1596_v0, 0.0 }
 0x175   : > { %v1591_v7 = vadd.f32 %v1590_v2, %v1589_v63  ;;  %v1598_v8 = vrot.slane %v1597_v6, 4 }
 0x176   : > { %v1585_v9 = vpack.c.bf16 %v1581_v4, %v1581_v4  ;;  %1586 = vst [vmem:[%s258_s29] sm:$0x1] %v1584_v5 }
 0x177   : > { %v1592_v10 = vrot.slane %v1591_v7, 2  ;;  %v1599_v11 = vadd.f32 %v1598_v8, %v1597_v6 }
 0x178   : > { %1587 = vst [vmem:[%s258_s29 + $0x1] sm:$0x1] %v1585_v9 }
 0x179   : > { %v1593_v12 = vadd.f32 %v1592_v10, %v1591_v7  ;;  %v1600_v13 = vrot.slane %v1599_v11, 2 }
 0x17b   : > { %v1601_v14 = vadd.f32 %v1600_v13, %v1599_v11  ;;  %v1594_v15 = vrot.slane %v1593_v12, 1 }
 0x17d   : > { %v1602_v16 = vrot.slane %v1601_v14, 1  ;;  %v1595_v18 = vadd.f32 %v1594_v15, %v1593_v12 }
 0x17f   : > { %v1603_v17 = vadd.f32 %v1602_v16, %v1601_v14 }
 0x181   : > { %v1608_v19 = vsel %vm1607_vm1, %v1603_v17, 0.0 }
 0x182   : > { %v1609_v20 = vsel %vm1606_vm2, %v1595_v18, %v1608_v19 }
 0x183   : > { %1610 = vst [vmem:[%s265_s6] sm:$0xff] %v1609_v20 }
 0x184 PF: > { %s15_s17 = sadd.s32 1, %s2382_s17   ;;  %s2852_s15 = smov %s2378_s16 }
 0x185   : > { %p12_p5 = scmp.ge.s32.totalorder %s15_s17, 4   ;;  %s2853_s16 = smov %s2855_s18 }
 0x187   :  { %14 = sbr.rel (!%p12_p5) target bundleno = 2 (0x2), region = 90 }

// kernel: resnet_forward.200
= control target key start
LH: loop header
LB: loop body
LE: loop exit
PB: predicated region body
PF: predicated region fallthrough
CT: control target
= control target key end

     0   :  { %v787_v16 = vmov 0.0|0.0   ;;  %v402_v19 = vlaneseq  ;;  %v788_v30 = vmov 0.0   ;;  %s913_s1 = inlined_call_operand.vmem [shape: bf16[128,128], index: 1, kind: input, shape index: {}]   ;;  %s914_s0 = inlined_call_operand.vmem [shape: bf16[128,128], index: 0, kind: input, shape index: {}]   ;;  %s915_s3 = inlined_call_operand.vmem [shape: bf16[128,128], index: 3, kind: output, shape index: {0}]   ;;  %s916_s2 = inlined_call_operand.vmem [shape: f32[1,128], index: 2, kind: input, shape index: {}]   ;;  %s917_s4 = inlined_call_operand.vmem [shape: f32[1,8,128], index: 4, kind: output, shape index: {1}]  }
   0x1   :  { %v771_v0 = vld [vmem:[%s913_s1 + $0x38] sm:$0xff]   ;;  %v772_v1 = vld [vmem:[%s913_s1 + $0x30] sm:$0xff]   ;;  %v773_v2 = vld [vmem:[%s913_s1 + $0x28] sm:$0xff]   ;;  %v669_v17 = vcombine.low %v787_v16, %v787_v16  ;;  %v670_v18 = vcombine.high %v787_v16, %v787_v16 }
   0x2   :  { %721 = vmatprep.subr.bf16.mxu0 %v771_v0  ;;  %753 = vmatprep.subr.bf16.mxu1 %v771_v0  ;;  %v774_v3 = vld [vmem:[%s913_s1 + $0x20] sm:$0xff]   ;;  %v775_v6 = vld [vmem:[%s913_s1 + $0x18] sm:$0xff]   ;;  %v776_v7 = vld [vmem:[%s913_s1 + $0x10] sm:$0xff]   ;;  %v403_v20 = vshrl.u32 %v402_v19, 7 }
   0x3   :  { %722 = vmatpush3.bf16.msra.mxu0 %v771_v0  ;;  %761 = vmatpush3.bf16.msra.mxu1 %v771_v0  ;;  %v779_v4 = vld [vmem:[%s914_s0] sm:$0xff]   ;;  %v777_v8 = vld [vmem:[%s913_s1 + $0x8] sm:$0xff]   ;;  %v783_v12 = vld [vmem:[%s914_s0 + $0x10] sm:$0xff]   ;;  %549 = vst [vmem:[%s915_s3 + $0x8] sm:$0xf] %v669_v17 }
   0x4   :  { %723 = vmatprep.subr.bf16.mxu0 %v772_v1  ;;  %754 = vmatprep.subr.bf16.mxu1 %v772_v1  ;;  %v781_v5 = vld [vmem:[%s914_s0 + $0x20] sm:$0xff]   ;;  %v780_v10 = vld [vmem:[%s914_s0 + $0x8] sm:$0xff]   ;;  %v784_v13 = vld [vmem:[%s914_s0 + $0x30] sm:$0xff]   ;;  %550 = vst [vmem:[%s915_s3 + $0xc] sm:$0xf] %v670_v18  ;;  %vm419_vm0 = vcmp.lt.s32.totalorder %v403_v20, 2 }
   0x5   :  { %737 = vmatprep.mubr.bf16.mxu0 %v779_v4  ;;  %745 = vmatprep.mubr.bf16.mxu1 %v781_v5  ;;  %v778_v9 = vld [vmem:[%s913_s1] sm:$0xff]   ;;  %v782_v11 = vld [vmem:[%s914_s0 + $0x28] sm:$0xff]   ;;  %v785_v14 = vld [vmem:[%s914_s0 + $0x18] sm:$0xff]   ;;  %551 = vst [vmem:[%s915_s3 + $0x10] sm:$0xf] %v669_v17  ;;  %vm622_vm1 = vcmp.eq.s32.totalorder %v403_v20, 1 }
   0x6   :  { %v786_v15 = vld [vmem:[%s914_s0 + $0x38] sm:$0xff]   ;;  %552 = vst [vmem:[%s915_s3 + $0x14] sm:$0xf] %v670_v18  ;;  %553 = vst [vmem:[%s915_s3 + $0x18] sm:$0xf] %v669_v17  ;;  %vm621_vm2 = vcmp.eq.s32.totalorder %v403_v20, 0 }
   0x7   :  { %724 = vmatpush3.bf16.msra.mxu0 %v772_v1  ;;  %762 = vmatpush3.bf16.msra.mxu1 %v772_v1  ;;  %554 = vst [vmem:[%s915_s3 + $0x1c] sm:$0xf] %v670_v18  ;;  %555 = vst [vmem:[%s915_s3 + $0x20] sm:$0xf] %v669_v17  ;;  %v634_v22 = vld [vmem:[%s916_s2] ss:$0 sm:$0xff] }
   0x8   :  { %725 = vmatprep.subr.bf16.mxu0 %v773_v2  ;;  %755 = vmatprep.subr.bf16.mxu1 %v773_v2  ;;  %556 = vst [vmem:[%s915_s3 + $0x24] sm:$0xf] %v670_v18  ;;  %557 = vst [vmem:[%s915_s3 + $0x28] sm:$0xf] %v669_v17 }
   0x9   :  { %558 = vst [vmem:[%s915_s3 + $0x2c] sm:$0xf] %v670_v18  ;;  %559 = vst [vmem:[%s915_s3 + $0x30] sm:$0xf] %v669_v17 }
   0xa   :  { %560 = vst [vmem:[%s915_s3 + $0x34] sm:$0xf] %v670_v18  ;;  %561 = vst [vmem:[%s915_s3 + $0x38] sm:$0xf] %v669_v17 }
   0xb   :  { %726 = vmatpush3.bf16.msra.mxu0 %v773_v2  ;;  %763 = vmatpush3.bf16.msra.mxu1 %v773_v2  ;;  %562 = vst [vmem:[%s915_s3 + $0x3c] sm:$0xf] %v670_v18 }
   0xc   :  { %727 = vmatprep.subr.bf16.mxu0 %v774_v3  ;;  %756 = vmatprep.subr.bf16.mxu1 %v774_v3 }
   0xf   :  { %728 = vmatpush3.bf16.msra.mxu0 %v774_v3  ;;  %764 = vmatpush3.bf16.msra.mxu1 %v774_v3 }
  0x10   :  { %729 = vmatprep.subr.bf16.mxu0 %v775_v6  ;;  %757 = vmatprep.subr.bf16.mxu1 %v775_v6 }
  0x13   :  { %730 = vmatpush3.bf16.msra.mxu0 %v775_v6  ;;  %765 = vmatpush3.bf16.msra.mxu1 %v775_v6 }
  0x14   :  { %731 = vmatprep.subr.bf16.mxu0 %v776_v7  ;;  %758 = vmatprep.subr.bf16.mxu1 %v776_v7 }
  0x17   :  { %732 = vmatpush3.bf16.msra.mxu0 %v776_v7  ;;  %766 = vmatpush3.bf16.msra.mxu1 %v776_v7 }
  0x18   :  { %733 = vmatprep.subr.bf16.mxu0 %v777_v8  ;;  %759 = vmatprep.subr.bf16.mxu1 %v777_v8 }
  0x1b   :  { %734 = vmatpush3.bf16.msra.mxu0 %v777_v8  ;;  %767 = vmatpush3.bf16.msra.mxu1 %v777_v8 }
  0x1c   :  { %735 = vmatprep.subr.bf16.mxu0 %v778_v9  ;;  %760 = vmatprep.subr.bf16.mxu1 %v778_v9 }
  0x1f   :  { %736 = vmatpush3.bf16.msra.mxu0 %v778_v9  ;;  %768 = vmatpush3.bf16.msra.mxu1 %v778_v9 }
  0x22   :  { %738 = vmatmul.mubr.bf16.vlgmr.msra.gmra.mxu0 %v780_v10  ;;  %746 = vmatmul.mubr.bf16.vlgmr.msra.gmra.mxu1 %v782_v11 }
  0x23   :  { %741 = vmatprep.mubr.bf16.mxu0 %v783_v12  ;;  %749 = vmatprep.mubr.bf16.mxu1 %v784_v13 }
  0x2a   :  { %742 = vmatmul.mubr.bf16.gmra.mxu0 %v785_v14  ;;  %750 = vmatmul.mubr.bf16.gmra.mxu1 %v786_v15 }
  0xe2   :  { %v739_v21 = vpop.f32.mrf.mxu0  ;;  %v747_v23 = vpop.f32.mrf.mxu1 }
  0xe4   :  { %v186_v24 = vpop.f32.mrf.mxu0  ;;  %v218_v25 = vpop.f32.mrf.mxu1 }
  0xe5   :  { %v187_v26 = vadd.f32 %v634_v22, %v186_v24 }
  0xe6   :  { %v740_v27 = vpop.f32.mrf.mxu0  ;;  %v748_v28 = vpop.f32.mrf.mxu1 }
  0xe7   :  { %v467_v29 = vsel %vm419_vm0, %v187_v26, 0.0 }
  0xe8   :  { %v703_v31 = vpack.c.bf16 %v788_v30, %v467_v29  ;;  %v578_v32 = vrot.slane %v467_v29, 4  ;;  %v584_v33 = vmul.f32 %v467_v29, %v467_v29  ;;  %v189_v34 = vpop.f32.mrf.mxu0  ;;  %v221_v35 = vpop.f32.mrf.mxu1 }
  0xea   :  { %704 = vst [vmem:[%s915_s3] sm:$0xff] %v703_v31   ;;  %v579_v36 = vadd.f32 %v578_v32, %v467_v29  ;;  %v615_v37 = vrot.slane %v584_v33, 4  ;;  %v743_v38 = vpop.f32.mrf.mxu0  ;;  %v751_v39 = vpop.f32.mrf.mxu1 }
  0xec   :  { %v580_v40 = vrot.slane %v579_v36, 2  ;;  %v616_v41 = vadd.f32 %v615_v37, %v584_v33  ;;  %v202_v42 = vpop.f32.mrf.mxu0  ;;  %v234_v43 = vpop.f32.mrf.mxu1 }
  0xee   :  { %v581_v44 = vadd.f32 %v580_v40, %v579_v36  ;;  %v617_v45 = vrot.slane %v616_v41, 2  ;;  %v744_v46 = vpop.f32.mrf.mxu0  ;;  %v752_v47 = vpop.f32.mrf.mxu1 }
  0xf0   :  { %v618_v48 = vadd.f32 %v617_v45, %v616_v41  ;;  %v205_v49 = vpop.f32.mrf.mxu0  ;;  %v237_v50 = vpop.f32.mrf.mxu1  ;;  %v582_v51 = vrot.slane %v581_v44, 1 }
  0xf2   :  { %v619_v52 = vrot.slane %v618_v48, 1  ;;  %v583_v54 = vadd.f32 %v582_v51, %v581_v44 }
  0xf4   :  { %v620_v53 = vadd.f32 %v619_v52, %v618_v48 }
  0xf6   :  { %v623_v55 = vsel %vm622_vm1, %v620_v53, 0.0 }
  0xf7   :  { %v624_v56 = vsel %vm621_vm2, %v583_v54, %v623_v55 }
  0xf8   :  { %625 = vst [vmem:[%s917_s4] sm:$0xff] %v624_v56 }

// kernel: resnet_forward.206
= control target key start
LH: loop header
LB: loop body
LE: loop exit
PB: predicated region body
PF: predicated region fallthrough
CT: control target
= control target key end

     0   :  { %v521_v1 = vmov 0   ;;  %v49_v25 = vlaneseq  ;;  %s709_s1 = inlined_call_operand.vmem [shape: bf16[128,256], index: 1, kind: input, shape index: {}]   ;;  %s710_s0 = inlined_call_operand.vmem [shape: bf16[128,128], index: 0, kind: input, shape index: {}]   ;;  %s711_s2 = inlined_call_operand.vmem [shape: f32[1,256], index: 2, kind: input, shape index: {}]   ;;  %s712_s3 = inlined_call_operand.vmem [shape: bf16[128,256], index: 3, kind: output, shape index: {}]  }
   0x1   :  { %v489_v0 = vld [vmem:[%s709_s1 + $0x74] ss:$8 sps:$4 sm:$0xff]   ;;  %219 = vmatprep.mubr.bf16.mxu0 %v521_v1  ;;  %259 = vmatprep.mubr.bf16.mxu1 %v521_v1  ;;  %v491_v2 = vld [vmem:[%s709_s1 + $0x70] ss:$8 sps:$4 sm:$0xff]   ;;  %v492_v3 = vld [vmem:[%s709_s1 + $0x64] ss:$8 sps:$4 sm:$0xff]  }
   0x2   :  { %187 = vmatprep.subr.bf16.mxu0 %v489_v0  ;;  %472 = vmatprep.subr.bf16.mxu1 %v489_v0  ;;  %v494_v4 = vld [vmem:[%s709_s1 + $0x60] ss:$8 sps:$4 sm:$0xff]   ;;  %v495_v5 = vld [vmem:[%s709_s1 + $0x54] ss:$8 sps:$4 sm:$0xff]   ;;  %v497_v6 = vld [vmem:[%s709_s1 + $0x50] ss:$8 sps:$4 sm:$0xff]  }
   0x3   :  { %188 = vmatpush1.bf16.msra.mxu0 %v491_v2  ;;  %480 = vmatpush1.bf16.msra.mxu1 %v491_v2  ;;  %v498_v7 = vld [vmem:[%s709_s1 + $0x44] ss:$8 sps:$4 sm:$0xff]   ;;  %v500_v8 = vld [vmem:[%s709_s1 + $0x40] ss:$8 sps:$4 sm:$0xff]   ;;  %v501_v9 = vld [vmem:[%s709_s1 + $0x34] ss:$8 sps:$4 sm:$0xff]  }
   0x4   :  { %189 = vmatprep.subr.bf16.mxu0 %v492_v3  ;;  %473 = vmatprep.subr.bf16.mxu1 %v492_v3  ;;  %v503_v10 = vld [vmem:[%s709_s1 + $0x30] ss:$8 sps:$4 sm:$0xff]   ;;  %v504_v11 = vld [vmem:[%s709_s1 + $0x24] ss:$8 sps:$4 sm:$0xff]   ;;  %v506_v12 = vld [vmem:[%s709_s1 + $0x20] ss:$8 sps:$4 sm:$0xff]  }
   0x5   :  { %v507_v13 = vld [vmem:[%s709_s1 + $0x14] ss:$8 sps:$4 sm:$0xff]   ;;  %v509_v14 = vld [vmem:[%s709_s1 + $0x10] ss:$8 sps:$4 sm:$0xff]   ;;  %v510_v15 = vld [vmem:[%s709_s1 + $0x4] ss:$8 sps:$4 sm:$0xff]  }
   0x6   :  { %v512_v16 = vld [vmem:[%s709_s1] ss:$8 sps:$4 sm:$0xff]   ;;  %v517_v21 = vld [vmem:[%s710_s0 + $0x10] sm:$0xff]   ;;  %v519_v23 = vld [vmem:[%s710_s0 + $0x18] sm:$0xff]   ;;  %v50_v26 = vshrl.u32 %v49_v25, 7 }
   0x7   :  { %190 = vmatpush1.bf16.msra.mxu0 %v494_v4  ;;  %481 = vmatpush1.bf16.msra.mxu1 %v494_v4  ;;  %v513_v17 = vld [vmem:[%s710_s0] sm:$0xff]   ;;  %v515_v19 = vld [vmem:[%s710_s0 + $0x8] sm:$0xff]   ;;  %v518_v22 = vld [vmem:[%s710_s0 + $0x30] sm:$0xff]  }
   0x8   :  { %191 = vmatprep.subr.bf16.mxu0 %v495_v5  ;;  %474 = vmatprep.subr.bf16.mxu1 %v495_v5  ;;  %v514_v18 = vld [vmem:[%s710_s0 + $0x20] sm:$0xff]   ;;  %v516_v20 = vld [vmem:[%s710_s0 + $0x28] sm:$0xff]   ;;  %v520_v24 = vld [vmem:[%s710_s0 + $0x38] sm:$0xff]   ;;  %v51_v27 = vsub.s32 0, %v50_v26  ;;  %v55_v28 = vsub.s32 1, %v50_v26 }
   0x9   :  { %v47_v29 = vld [vmem:[%s711_s2] sm:$0x3] }
   0xa   :  { %v625_v30 = vrot.slane %v47_v29, %v51_v27  ;;  %v627_v31 = vrot.slane %v47_v29, %v55_v28 }
   0xb   :  { %192 = vmatpush1.bf16.msra.mxu0 %v497_v6  ;;  %482 = vmatpush1.bf16.msra.mxu1 %v497_v6 }
   0xc   :  { %193 = vmatprep.subr.bf16.mxu0 %v498_v7  ;;  %475 = vmatprep.subr.bf16.mxu1 %v498_v7 }
   0xf   :  { %194 = vmatpush1.bf16.msra.mxu0 %v500_v8  ;;  %483 = vmatpush1.bf16.msra.mxu1 %v500_v8 }
  0x10   :  { %195 = vmatprep.subr.bf16.mxu0 %v501_v9  ;;  %476 = vmatprep.subr.bf16.mxu1 %v501_v9 }
  0x13   :  { %196 = vmatpush1.bf16.msra.mxu0 %v503_v10  ;;  %484 = vmatpush1.bf16.msra.mxu1 %v503_v10 }
  0x14   :  { %197 = vmatprep.subr.bf16.mxu0 %v504_v11  ;;  %477 = vmatprep.subr.bf16.mxu1 %v504_v11 }
  0x17   :  { %198 = vmatpush1.bf16.msra.mxu0 %v506_v12  ;;  %485 = vmatpush1.bf16.msra.mxu1 %v506_v12 }
  0x18   :  { %199 = vmatprep.subr.bf16.mxu0 %v507_v13  ;;  %478 = vmatprep.subr.bf16.mxu1 %v507_v13 }
  0x1b   :  { %200 = vmatpush1.bf16.msra.mxu0 %v509_v14  ;;  %486 = vmatpush1.bf16.msra.mxu1 %v509_v14 }
  0x1c   :  { %201 = vmatprep.subr.bf16.mxu0 %v510_v15  ;;  %479 = vmatprep.subr.bf16.mxu1 %v510_v15 }
  0x1f   :  { %202 = vmatpush1.bf16.msra.mxu0 %v512_v16  ;;  %487 = vmatpush1.bf16.msra.mxu1 %v512_v16 }
  0x22   :  { %220 = vmatmul.mubr.bf16.vlgmr.msra.gmra.mxu0 %v513_v17  ;;  %260 = vmatmul.mubr.bf16.vlgmr.msra.gmra.mxu1 %v514_v18 }
  0x23   :  { %229 = vmatprep.mubr.bf16.mxu0 %v521_v1  ;;  %269 = vmatprep.mubr.bf16.mxu1 %v521_v1 }
  0x2a   :  { %230 = vmatmul.mubr.bf16.gmra.mxu0 %v515_v19  ;;  %270 = vmatmul.mubr.bf16.gmra.mxu1 %v516_v20 }
  0x2b   :  { %239 = vmatprep.mubr.bf16.mxu0 %v521_v1  ;;  %279 = vmatprep.mubr.bf16.mxu1 %v521_v1 }
  0x32   :  { %240 = vmatmul.mubr.bf16.gmra.mxu0 %v517_v21  ;;  %280 = vmatmul.mubr.bf16.gmra.mxu1 %v518_v22 }
  0x33   :  { %249 = vmatprep.mubr.bf16.mxu0 %v521_v1  ;;  %289 = vmatprep.mubr.bf16.mxu1 %v521_v1 }
  0x3a   :  { %250 = vmatmul.mubr.bf16.gmra.mxu0 %v519_v23  ;;  %290 = vmatmul.mubr.bf16.gmra.mxu1 %v520_v24 }
  0xe2   :  { %v221_v32 = vpop.f32.mrf.mxu0  ;;  %v261_v33 = vpop.f32.mrf.mxu1 }
  0xe3   :  { %v222_v36 = vadd.f32 %v221_v32, %v625_v30  ;;  %v262_v37 = vadd.f32 %v261_v33, %v625_v30 }
  0xe4   :  { %v223_v34 = vpop.f32.mrf.mxu0  ;;  %v263_v35 = vpop.f32.mrf.mxu1 }
  0xe5   :  { %v224_v38 = vadd.f32 %v223_v34, %v627_v31  ;;  %v264_v39 = vadd.f32 %v263_v35, %v627_v31 }
  0xe6   :  { %v225_v40 = vpop.f32.mrf.mxu0  ;;  %v265_v41 = vpop.f32.mrf.mxu1 }
  0xe7   :  { %v456_v42 = vpack.c.bf16 %v224_v38, %v222_v36  ;;  %v464_v43 = vpack.c.bf16 %v264_v39, %v262_v37  ;;  %v226_v46 = vadd.f32 %v225_v40, %v625_v30  ;;  %v266_v47 = vadd.f32 %v265_v41, %v625_v30 }
  0xe8   :  { %v227_v44 = vpop.f32.mrf.mxu0  ;;  %v267_v45 = vpop.f32.mrf.mxu1 }
  0xe9   :  { %396 = vst [vmem:[%s712_s3] sm:$0xff] %v456_v42  ;;  %404 = vst [vmem:[%s712_s3 + $0x40] sm:$0xff] %v464_v43  ;;  %v228_v48 = vadd.f32 %v227_v44, %v627_v31  ;;  %v268_v49 = vadd.f32 %v267_v45, %v627_v31 }
  0xea   :  { %v231_v50 = vpop.f32.mrf.mxu0  ;;  %v271_v51 = vpop.f32.mrf.mxu1 }
  0xeb   :  { %v457_v52 = vpack.c.bf16 %v228_v48, %v226_v46  ;;  %v465_v53 = vpack.c.bf16 %v268_v49, %v266_v47  ;;  %v232_v56 = vadd.f32 %v231_v50, %v625_v30  ;;  %v272_v57 = vadd.f32 %v271_v51, %v625_v30 }
  0xec   :  { %v233_v54 = vpop.f32.mrf.mxu0  ;;  %v273_v55 = vpop.f32.mrf.mxu1 }
  0xed   :  { %397 = vst [vmem:[%s712_s3 + $0x8] sm:$0xff] %v457_v52  ;;  %405 = vst [vmem:[%s712_s3 + $0x48] sm:$0xff] %v465_v53  ;;  %v234_v58 = vadd.f32 %v233_v54, %v627_v31  ;;  %v274_v59 = vadd.f32 %v273_v55, %v627_v31 }
  0xee   :  { %v235_v60 = vpop.f32.mrf.mxu0  ;;  %v275_v61 = vpop.f32.mrf.mxu1 }
  0xef   :  { %v458_v62 = vpack.c.bf16 %v234_v58, %v232_v56  ;;  %v466_v63 = vpack.c.bf16 %v274_v59, %v272_v57  ;;  %v236_v2 = vadd.f32 %v235_v60, %v625_v30  ;;  %v276_v3 = vadd.f32 %v275_v61, %v625_v30 }
  0xf0   :  { %v237_v0 = vpop.f32.mrf.mxu0  ;;  %v277_v1 = vpop.f32.mrf.mxu1 }
  0xf1   :  { %398 = vst [vmem:[%s712_s3 + $0x10] sm:$0xff] %v458_v62  ;;  %406 = vst [vmem:[%s712_s3 + $0x50] sm:$0xff] %v466_v63  ;;  %v238_v4 = vadd.f32 %v237_v0, %v627_v31  ;;  %v278_v5 = vadd.f32 %v277_v1, %v627_v31 }
  0xf2   :  { %v241_v6 = vpop.f32.mrf.mxu0  ;;  %v281_v7 = vpop.f32.mrf.mxu1 }
  0xf3   :  { %v459_v8 = vpack.c.bf16 %v238_v4, %v236_v2  ;;  %v467_v9 = vpack.c.bf16 %v278_v5, %v276_v3  ;;  %v242_v12 = vadd.f32 %v241_v6, %v625_v30  ;;  %v282_v13 = vadd.f32 %v281_v7, %v625_v30 }
  0xf4   :  { %v243_v10 = vpop.f32.mrf.mxu0  ;;  %v283_v11 = vpop.f32.mrf.mxu1 }
  0xf5   :  { %399 = vst [vmem:[%s712_s3 + $0x18] sm:$0xff] %v459_v8  ;;  %407 = vst [vmem:[%s712_s3 + $0x58] sm:$0xff] %v467_v9  ;;  %v244_v14 = vadd.f32 %v243_v10, %v627_v31  ;;  %v284_v15 = vadd.f32 %v283_v11, %v627_v31 }
  0xf6   :  { %v245_v16 = vpop.f32.mrf.mxu0  ;;  %v285_v17 = vpop.f32.mrf.mxu1 }
  0xf7   :  { %v460_v18 = vpack.c.bf16 %v244_v14, %v242_v12  ;;  %v468_v19 = vpack.c.bf16 %v284_v15, %v282_v13  ;;  %v246_v22 = vadd.f32 %v245_v16, %v625_v30  ;;  %v286_v23 = vadd.f32 %v285_v17, %v625_v30 }
  0xf8   :  { %v247_v20 = vpop.f32.mrf.mxu0  ;;  %v287_v21 = vpop.f32.mrf.mxu1 }
  0xf9   :  { %400 = vst [vmem:[%s712_s3 + $0x20] sm:$0xff] %v460_v18  ;;  %408 = vst [vmem:[%s712_s3 + $0x60] sm:$0xff] %v468_v19  ;;  %v248_v24 = vadd.f32 %v247_v20, %v627_v31  ;;  %v288_v25 = vadd.f32 %v287_v21, %v627_v31 }
  0xfa   :  { %v251_v26 = vpop.f32.mrf.mxu0  ;;  %v291_v27 = vpop.f32.mrf.mxu1 }
  0xfb   :  { %v461_v28 = vpack.c.bf16 %v248_v24, %v246_v22  ;;  %v469_v29 = vpack.c.bf16 %v288_v25, %v286_v23  ;;  %v252_v34 = vadd.f32 %v251_v26, %v625_v30  ;;  %v292_v35 = vadd.f32 %v291_v27, %v625_v30 }
  0xfc   :  { %v253_v32 = vpop.f32.mrf.mxu0  ;;  %v293_v33 = vpop.f32.mrf.mxu1 }
  0xfd   :  { %401 = vst [vmem:[%s712_s3 + $0x28] sm:$0xff] %v461_v28  ;;  %409 = vst [vmem:[%s712_s3 + $0x68] sm:$0xff] %v469_v29  ;;  %v254_v36 = vadd.f32 %v253_v32, %v627_v31  ;;  %v294_v37 = vadd.f32 %v293_v33, %v627_v31 }
  0xfe   :  { %v255_v38 = vpop.f32.mrf.mxu0  ;;  %v295_v39 = vpop.f32.mrf.mxu1 }
  0xff   :  { %v462_v40 = vpack.c.bf16 %v254_v36, %v252_v34  ;;  %v470_v41 = vpack.c.bf16 %v294_v37, %v292_v35  ;;  %v256_v44 = vadd.f32 %v255_v38, %v625_v30  ;;  %v296_v45 = vadd.f32 %v295_v39, %v625_v30 }
 0x100   :  { %v257_v42 = vpop.f32.mrf.mxu0  ;;  %v297_v43 = vpop.f32.mrf.mxu1 }
 0x101   :  { %402 = vst [vmem:[%s712_s3 + $0x30] sm:$0xff] %v462_v40  ;;  %410 = vst [vmem:[%s712_s3 + $0x70] sm:$0xff] %v470_v41  ;;  %v258_v46 = vadd.f32 %v257_v42, %v627_v31  ;;  %v298_v47 = vadd.f32 %v297_v43, %v627_v31 }
 0x103   :  { %v463_v48 = vpack.c.bf16 %v258_v46, %v256_v44  ;;  %v471_v49 = vpack.c.bf16 %v298_v47, %v296_v45 }
 0x105   :  { %403 = vst [vmem:[%s712_s3 + $0x38] sm:$0xff] %v463_v48  ;;  %411 = vst [vmem:[%s712_s3 + $0x78] sm:$0xff] %v471_v49 }

// kernel: resnet_forward.202
= control target key start
LH: loop header
LB: loop body
LE: loop exit
PB: predicated region body
PF: predicated region fallthrough
CT: control target
= control target key end

     0   :  { %s2082_s15 = smov 0   ;;  %s2084_s16 = smov 0   ;;  %s2462_s0 = inlined_call_operand.vmem [shape: bf16[2,3,3,128], index: 0, kind: input, shape index: {}]   ;;  %s2463_s1 = inlined_call_operand.vmem [shape: bf16[9,128,128], index: 1, kind: input, shape index: {}]   ;;  %s2464_s2 = inlined_call_operand.vmem [shape: f32[1,128], index: 2, kind: input, shape index: {}]   ;;  %s2465_s3 = inlined_call_operand.vmem [shape: bf16[2,1,1,128], index: 3, kind: output, shape index: {0}]   ;;  %s2466_s4 = inlined_call_operand.vmem [shape: f32[2,8,128], index: 4, kind: output, shape index: {1}]  }
   0x1   :  { %s2086_s17 = smov 0  }
   0x2 LB: > { %s27_s18 = sadd.s32 1, %s2048_s16  ;;  %p1457_p0 = scmp.ge.s32.totalorder %s2052_s17, 1  ;;  %s2052_s17 = sphi %s2086_s17, %s15_s17   ;;  %s2048_s16 = sphi %s2084_s16, %s2468_s16   ;;  %s2044_s15 = sphi %s2082_s15, %s2467_s15  }
   0x3   : > { %p29_p1 = scmp.ge.s32.totalorder %s27_s18, 2  ;;  %p198_p2 = scmp.lt.s32.totalorder %s2052_s17, 3 }
   0x5   : > { %s2470_s18 = smov (%p29_p1, %s27_s18), 0  ;;  %p199_p3 = pnand %p1457_p0, %p198_p2 }
   0x6   : > { %p239_p4 = scmp.lt.s32.totalorder (!%p199_p3), %s2044_s15, 1 }
   0x7   : > { %202 = sbr.rel (%p199_p3) target bundleno = 377 (0x179), region = 32 }
   0xc   : > { %v1958_v0 = vld [vmem:[%s2463_s1 + $0x78] sm:$0xff]   ;;  %v2054_v1 = vmov 0.0   ;;  %v1960_v3 = vld [vmem:[%s2463_s1 + $0x70] sm:$0xff]   ;;  %vm2055_vm0 = vmmov 0   ;;  %v1962_v5 = vld [vmem:[%s2463_s1 + $0x68] sm:$0xff]   ;;  %s2472_s15 = smov (!%p239_p4, %s2044_s15), 1  ;;  %v303_v9 = vlaneseq }
   0xd   : > { %1750 = vmatprep.subr.bf16.mxu0 %v2054_v1  ;;  %1770 = vmatprep.subr.bf16.mxu1 %v2054_v1  ;;  %v1959_v2 = vld [vmem:[%s2463_s1 + $0x38] sm:$0xff]   ;;  %v1961_v4 = vld [vmem:[%s2463_s1 + $0x30] sm:$0xff]   ;;  %v1963_v6 = vld [vmem:[%s2463_s1 + $0x28] sm:$0xff]   ;;  %s1930_s13 = smul.u32 6, %s2472_s15  ;;  %v2056_v12 = vmov 1983009808   ;;  %s256_s21 = scalar_lea.vmem %s2465_s3, %s2472_s15 }
   0xe   : > { %1751 = vmatpush3.bf16.msra.mxu0 %v1958_v0  ;;  %1766 = vmatprep.mubr.msk.bf16.mxu0 %vm2055_vm0, %v2054_v1  ;;  %v1964_v7 = vld [vmem:[%s2463_s1 + $0x60] sm:$0xff]   ;;  %v1966_v10 = vld [vmem:[%s2463_s1 + $0x58] sm:$0xff]   ;;  %v301_v13 = vunpack.c.l.s4 %v2056_v12  ;;  %v2151_v14 = vshrl.u32 %v303_v9, 7  ;;  %v1968_v15 = vld [vmem:[%s2463_s1 + $0x50] sm:$0xff]   ;;  %vm1293_vm1 = vcmask 1040384   ;;  %s1459_s22 = sshll.u32 %s2472_s15, 3 }
   0xf   : > { %1771 = vmatpush3.bf16.msra.mxu1 %v1959_v2  ;;  %1752 = vmatprep.subr.bf16.mxu0 %v2054_v1  ;;  %v1965_v8 = vld [vmem:[%s2463_s1 + $0x20] sm:$0xff]   ;;  %v1967_v11 = vld [vmem:[%s2463_s1 + $0x18] sm:$0xff]   ;;  %v1969_v16 = vld [vmem:[%s2463_s1 + $0x10] sm:$0xff]   ;;  %s2163_s24 = scalar_lea.vmem %s2462_s0, %s1930_s13  ;;  %vm1294_vm2 = vsmask.f32 256  ;;  %s263_s26 = scalar_lea.vmem %s2466_s4, %s1459_s22 }
  0x10   : > { %1772 = vmatprep.subr.bf16.mxu1 %v2054_v1  ;;  %1786 = vmatprep.mubr.msk.bf16.mxu1 %vm2055_vm0, %v2054_v1  ;;  %v302_v17 = vunpack.c.0.s8 %v301_v13  ;;  %v1970_v18 = vld [vmem:[%s2463_s1 + $0x48] sm:$0xff]   ;;  %v265_v20 = vld [vmem:[%s2163_s24] sm:$0x1]  ;;  %v1974_v26 = vld [vmem:[%s2463_s1 + $0xb8] sm:$0xff]   ;;  %vm1305_vm4 = vcmp.eq.s32.totalorder %v2151_v14, 1  ;;  %vm1304_vm5 = vcmp.eq.s32.totalorder %v2151_v14, 0 }
  0x11   : > { %v1971_v21 = vld [vmem:[%s2463_s1 + $0x8] sm:$0xff]   ;;  %v1972_v23 = vld [vmem:[%s2463_s1 + $0x40] sm:$0xff]   ;;  %v1975_v27 = vld [vmem:[%s2463_s1 + $0xf8] sm:$0xff]  }
  0x12   : > { %1753 = vmatpush3.bf16.msra.mxu0 %v1960_v3  ;;  %v2170_v19 = vsub.s32 %v302_v17, %v2151_v14  ;;  %v1973_v24 = vld [vmem:[%s2463_s1] sm:$0xff]   ;;  %v1976_v28 = vld [vmem:[%s2463_s1 + $0xb0] sm:$0xff]   ;;  %v1978_v30 = vld [vmem:[%s2463_s1 + $0xa8] sm:$0xff]  }
  0x13   : > { %1773 = vmatpush3.bf16.msra.mxu1 %v1961_v4  ;;  %1754 = vmatprep.subr.bf16.mxu0 %v2054_v1  ;;  %v1977_v29 = vld [vmem:[%s2463_s1 + $0xf0] sm:$0xff]   ;;  %v1979_v31 = vld [vmem:[%s2463_s1 + $0xe8] sm:$0xff]   ;;  %v1980_v32 = vld [vmem:[%s2463_s1 + $0xa0] sm:$0xff]  }
  0x14   : > { %1774 = vmatprep.subr.bf16.mxu1 %v2054_v1  ;;  %v306_v22 = vrot.slane %v265_v20, %v2170_v19  ;;  %v1981_v33 = vld [vmem:[%s2463_s1 + $0xe0] sm:$0xff]   ;;  %v1982_v34 = vld [vmem:[%s2463_s1 + $0x98] sm:$0xff]   ;;  %v1984_v36 = vld [vmem:[%s2463_s1 + $0x90] sm:$0xff]  }
  0x15   : > { %v1983_v35 = vld [vmem:[%s2463_s1 + $0xd8] sm:$0xff]   ;;  %v1985_v37 = vld [vmem:[%s2463_s1 + $0xd0] sm:$0xff]   ;;  %v1986_v38 = vld [vmem:[%s2463_s1 + $0x88] sm:$0xff]  }
  0x16   : > { %1755 = vmatpush3.bf16.msra.mxu0 %v1962_v5  ;;  %v308_v25 = vshrl.u32 %v306_v22, 16  ;;  %v1987_v39 = vld [vmem:[%s2463_s1 + $0xc8] sm:$0xff]   ;;  %v1508_v40 = vld.sshfl [vmem:[%s2163_s24] sm:$0x2 pattern:$0x76325410]  ;;  %vm1295_vm3 = vmand %vm1293_vm1, %vm1294_vm2 }
  0x17   : > { %1775 = vmatpush3.bf16.msra.mxu1 %v1963_v6  ;;  %1756 = vmatprep.subr.bf16.mxu0 %v2054_v1  ;;  %v1988_v41 = vld [vmem:[%s2463_s1 + $0x80] sm:$0xff]   ;;  %v513_v43 = vrot.slane %v1508_v40, 1  ;;  %v1990_v44 = vld [vmem:[%s2463_s1 + $0x138] sm:$0xff]   ;;  %v1992_v47 = vld [vmem:[%s2463_s1 + $0x130] sm:$0xff]  }
  0x18   : > { %1776 = vmatprep.subr.bf16.mxu1 %v2054_v1  ;;  %v1989_v42 = vld [vmem:[%s2463_s1 + $0xc0] sm:$0xff]   ;;  %v1991_v46 = vld [vmem:[%s2463_s1 + $0x178] sm:$0xff]   ;;  %v1993_v49 = vld [vmem:[%s2463_s1 + $0x170] sm:$0xff]  }
  0x19   : > { %v1517_v45 = vld [vmem:[%s2163_s24 + $0x2] sm:$0x1]  ;;  %v2269_v48 = vld [vmem:[%s2163_s24 + $0x4] sm:$0x1]  ;;  %v1994_v51 = vld [vmem:[%s2463_s1 + $0x128] sm:$0xff]  }
  0x1a   : > { %1757 = vmatpush3.bf16.msra.mxu0 %v1964_v7  ;;  %v1079_v50 = vrot.slane %v2269_v48, %v2170_v19  ;;  %v1995_v52 = vld [vmem:[%s2463_s1 + $0x168] sm:$0xff]   ;;  %v1996_v53 = vld [vmem:[%s2463_s1 + $0x120] sm:$0xff]   ;;  %v1998_v55 = vld [vmem:[%s2463_s1 + $0x118] sm:$0xff]   ;;  %v736_v61 = vrot.slane %v1517_v45, %v2170_v19 }
  0x1b   : > { %1777 = vmatpush3.bf16.msra.mxu1 %v1965_v8  ;;  %1758 = vmatprep.subr.bf16.mxu0 %v2054_v1  ;;  %v1997_v54 = vld [vmem:[%s2463_s1 + $0x160] sm:$0xff]   ;;  %v1999_v56 = vld [vmem:[%s2463_s1 + $0x158] sm:$0xff]   ;;  %v2000_v57 = vld [vmem:[%s2463_s1 + $0x110] sm:$0xff]  }
  0x1c   : > { %1778 = vmatprep.subr.bf16.mxu1 %v2054_v1  ;;  %v2001_v58 = vld [vmem:[%s2463_s1 + $0x150] sm:$0xff]   ;;  %v2002_v59 = vld [vmem:[%s2463_s1 + $0x108] sm:$0xff]   ;;  %v2004_v62 = vld [vmem:[%s2463_s1 + $0x100] sm:$0xff]   ;;  %v738_v2 = vshrl.u32 %v736_v61, 16  ;;  %v1081_v22 = vshrl.u32 %v1079_v50, 16 }
  0x1d   : > { %v2003_v60 = vld [vmem:[%s2463_s1 + $0x148] sm:$0xff]   ;;  %v2005_v63 = vld [vmem:[%s2463_s1 + $0x140] sm:$0xff]   ;;  %v2006_v3 = vld [vmem:[%s2463_s1 + $0x1b8] sm:$0xff]  }
  0x1e   : > { %1759 = vmatpush3.bf16.msra.mxu0 %v1966_v10  ;;  %v1583_v0 = vld.sshfl [vmem:[%s2163_s24 + $0x2] sm:$0x2 pattern:$0x76325410]  ;;  %v2007_v5 = vld [vmem:[%s2463_s1 + $0x1f8] sm:$0xff]   ;;  %v2008_v6 = vld [vmem:[%s2463_s1 + $0x1b0] sm:$0xff]  }
  0x1f   : > { %1779 = vmatpush3.bf16.msra.mxu1 %v1967_v11  ;;  %1760 = vmatprep.subr.bf16.mxu0 %v2054_v1  ;;  %v856_v4 = vrot.slane %v1583_v0, 1  ;;  %v2009_v7 = vld [vmem:[%s2463_s1 + $0x1f0] sm:$0xff]   ;;  %v2010_v8 = vld [vmem:[%s2463_s1 + $0x1a8] sm:$0xff]   ;;  %v2012_v10 = vld [vmem:[%s2463_s1 + $0x1a0] sm:$0xff]  }
  0x20   : > { %1780 = vmatprep.subr.bf16.mxu1 %v2054_v1  ;;  %v2011_v9 = vld [vmem:[%s2463_s1 + $0x1e8] sm:$0xff]   ;;  %v2013_v11 = vld [vmem:[%s2463_s1 + $0x1e0] sm:$0xff]   ;;  %v2014_v12 = vld [vmem:[%s2463_s1 + $0x198] sm:$0xff]  }
  0x21   : > { %v2015_v13 = vld [vmem:[%s2463_s1 + $0x1d8] sm:$0xff]   ;;  %v2018_v17 = vld [vmem:[%s2463_s1 + $0x188] sm:$0xff]  }
  0x22   : > { %1761 = vmatpush3.bf16.msra.mxu0 %v1968_v15  ;;  %v2016_v15 = vld [vmem:[%s2463_s1 + $0x190] sm:$0xff]   ;;  %v2024_v19 = vld [vmem:[%s2463_s1 + $0x228] sm:$0xff]  }
  0x23   : > { %1781 = vmatpush3.bf16.msra.mxu1 %v1969_v16  ;;  %1762 = vmatprep.subr.bf16.mxu0 %v2054_v1  ;;  %v2017_v16 = vld [vmem:[%s2463_s1 + $0x1d0] sm:$0xff]  }
  0x24   : > { %1782 = vmatprep.subr.bf16.mxu1 %v2054_v1 }
  0x26   : > { %1763 = vmatpush3.bf16.msra.mxu0 %v1970_v18  ;;  %v2019_v18 = vld [vmem:[%s2463_s1 + $0x1c8] sm:$0xff]  }
  0x27   : > { %1783 = vmatpush3.bf16.msra.mxu1 %v1971_v21  ;;  %1764 = vmatprep.subr.bf16.mxu0 %v2054_v1  ;;  %v2021_v21 = vld [vmem:[%s2463_s1 + $0x1c0] sm:$0xff]  }
  0x28   : > { %1784 = vmatprep.subr.bf16.mxu1 %v2054_v1 }
  0x2a   : > { %1765 = vmatpush3.bf16.msra.mxu0 %v1972_v23  ;;  %v2022_v23 = vld [vmem:[%s2463_s1 + $0x238] sm:$0xff]  }
  0x2b   : > { %1785 = vmatpush3.bf16.msra.mxu1 %v1973_v24  ;;  %1790 = vmatprep.subr.bf16.mxu0 %v2054_v1  ;;  %v2023_v24 = vld [vmem:[%s2463_s1 + $0x230] sm:$0xff]  }
  0x2c   : > { %1810 = vmatprep.subr.bf16.mxu1 %v2054_v1 }
  0x2d   : > { %1767 = vmatmul.mubr.bf16.vlgmr.msra.gmra.mxu0 %v308_v25  ;;  %v2025_v25 = vld [vmem:[%s2463_s1 + $0x220] sm:$0xff]  }
  0x2e   : > { %1787 = vmatmul.mubr.bf16.vlgmr.msra.gmra.mxu1 %v265_v20  ;;  %1791 = vmatpush3.bf16.msra.mxu0 %v1974_v26  ;;  %v2020_v20 = vld [vmem:[%s2463_s1 + $0x180] sm:$0xff]   ;;  %v2026_v26 = vld [vmem:[%s2463_s1 + $0x218] sm:$0xff]  }
  0x2f   : > { %1811 = vmatpush3.bf16.msra.mxu1 %v1975_v27  ;;  %1792 = vmatprep.subr.bf16.mxu0 %v2054_v1  ;;  %v2027_v27 = vld [vmem:[%s2463_s1 + $0x210] sm:$0xff]  }
  0x30   : > { %1812 = vmatprep.subr.bf16.mxu1 %v2054_v1  ;;  %1806 = vmatprep.mubr.msk.bf16.mxu0 %vm2055_vm0, %v2054_v1 }
  0x31   : > { %1826 = vmatprep.mubr.msk.bf16.mxu1 %vm2055_vm0, %v2054_v1 }
  0x32   : > { %1793 = vmatpush3.bf16.msra.mxu0 %v1976_v28  ;;  %v2028_v28 = vld [vmem:[%s2463_s1 + $0x208] sm:$0xff]  }
  0x33   : > { %1813 = vmatpush3.bf16.msra.mxu1 %v1977_v29  ;;  %1794 = vmatprep.subr.bf16.mxu0 %v2054_v1  ;;  %v2029_v29 = vld [vmem:[%s2463_s1 + $0x200] sm:$0xff]  }
  0x34   : > { %1814 = vmatprep.subr.bf16.mxu1 %v2054_v1 }
  0x36   : > { %1795 = vmatpush3.bf16.msra.mxu0 %v1978_v30  ;;  %v1658_v30 = vld.sshfl [vmem:[%s2163_s24 + $0x4] sm:$0x2 pattern:$0x76325410] }
  0x37   : > { %1815 = vmatpush3.bf16.msra.mxu1 %v1979_v31  ;;  %1796 = vmatprep.subr.bf16.mxu0 %v2054_v1  ;;  %v1199_v31 = vrot.slane %v1658_v30, 1 }
  0x38   : > { %1816 = vmatprep.subr.bf16.mxu1 %v2054_v1 }
  0x3a   : > { %1797 = vmatpush3.bf16.msra.mxu0 %v1980_v32 }
  0x3b   : > { %1817 = vmatpush3.bf16.msra.mxu1 %v1981_v33  ;;  %1798 = vmatprep.subr.bf16.mxu0 %v2054_v1 }
  0x3c   : > { %1818 = vmatprep.subr.bf16.mxu1 %v2054_v1 }
  0x3e   : > { %1799 = vmatpush3.bf16.msra.mxu0 %v1982_v34 }
  0x3f   : > { %1819 = vmatpush3.bf16.msra.mxu1 %v1983_v35  ;;  %1800 = vmatprep.subr.bf16.mxu0 %v2054_v1 }
  0x40   : > { %1820 = vmatprep.subr.bf16.mxu1 %v2054_v1 }
  0x42   : > { %1801 = vmatpush3.bf16.msra.mxu0 %v1984_v36 }
  0x43   : > { %1821 = vmatpush3.bf16.msra.mxu1 %v1985_v37  ;;  %1802 = vmatprep.subr.bf16.mxu0 %v2054_v1 }
  0x44   : > { %1822 = vmatprep.subr.bf16.mxu1 %v2054_v1 }
  0x46   : > { %1803 = vmatpush3.bf16.msra.mxu0 %v1986_v38 }
  0x47   : > { %1823 = vmatpush3.bf16.msra.mxu1 %v1987_v39  ;;  %1804 = vmatprep.subr.bf16.mxu0 %v2054_v1 }
  0x48   : > { %1824 = vmatprep.subr.bf16.mxu1 %v2054_v1 }
  0x4a   : > { %1805 = vmatpush3.bf16.msra.mxu0 %v1988_v41 }
  0x4b   : > { %1825 = vmatpush3.bf16.msra.mxu1 %v1989_v42  ;;  %1830 = vmatprep.subr.bf16.mxu0 %v2054_v1 }
  0x4c   : > { %1850 = vmatprep.subr.bf16.mxu1 %v2054_v1 }
  0x4d   : > { %1807 = vmatmul.mubr.bf16.vlgmr.msra.gmra.mxu0 %v513_v43 }
  0x4e   : > { %1831 = vmatpush3.bf16.msra.mxu0 %v1990_v44  ;;  %1827 = vmatmul.mubr.bf16.vlgmr.msra.gmra.mxu1 %v1517_v45 }
  0x4f   : > { %1851 = vmatpush3.bf16.msra.mxu1 %v1991_v46  ;;  %1832 = vmatprep.subr.bf16.mxu0 %v2054_v1 }
  0x50   : > { %1852 = vmatprep.subr.bf16.mxu1 %v2054_v1  ;;  %1846 = vmatprep.mubr.msk.bf16.mxu0 %vm2055_vm0, %v2054_v1 }
  0x51   : > { %1866 = vmatprep.mubr.msk.bf16.mxu1 %vm2055_vm0, %v2054_v1 }
  0x52   : > { %1833 = vmatpush3.bf16.msra.mxu0 %v1992_v47 }
  0x53   : > { %1853 = vmatpush3.bf16.msra.mxu1 %v1993_v49  ;;  %1834 = vmatprep.subr.bf16.mxu0 %v2054_v1 }
  0x54   : > { %1854 = vmatprep.subr.bf16.mxu1 %v2054_v1 }
  0x56   : > { %1835 = vmatpush3.bf16.msra.mxu0 %v1994_v51 }
  0x57   : > { %1855 = vmatpush3.bf16.msra.mxu1 %v1995_v52  ;;  %1836 = vmatprep.subr.bf16.mxu0 %v2054_v1 }
  0x58   : > { %1856 = vmatprep.subr.bf16.mxu1 %v2054_v1 }
  0x5a   : > { %1837 = vmatpush3.bf16.msra.mxu0 %v1996_v53 }
  0x5b   : > { %1857 = vmatpush3.bf16.msra.mxu1 %v1997_v54  ;;  %1838 = vmatprep.subr.bf16.mxu0 %v2054_v1 }
  0x5c   : > { %1858 = vmatprep.subr.bf16.mxu1 %v2054_v1 }
  0x5e   : > { %1839 = vmatpush3.bf16.msra.mxu0 %v1998_v55 }
  0x5f   : > { %1859 = vmatpush3.bf16.msra.mxu1 %v1999_v56  ;;  %1840 = vmatprep.subr.bf16.mxu0 %v2054_v1 }
  0x60   : > { %1860 = vmatprep.subr.bf16.mxu1 %v2054_v1 }
  0x62   : > { %1841 = vmatpush3.bf16.msra.mxu0 %v2000_v57 }
  0x63   : > { %1861 = vmatpush3.bf16.msra.mxu1 %v2001_v58  ;;  %1842 = vmatprep.subr.bf16.mxu0 %v2054_v1 }
  0x64   : > { %1862 = vmatprep.subr.bf16.mxu1 %v2054_v1 }
  0x66   : > { %1843 = vmatpush3.bf16.msra.mxu0 %v2002_v59 }
  0x67   : > { %1863 = vmatpush3.bf16.msra.mxu1 %v2003_v60  ;;  %1844 = vmatprep.subr.bf16.mxu0 %v2054_v1 }
  0x68   : > { %1864 = vmatprep.subr.bf16.mxu1 %v2054_v1 }
  0x6a   : > { %1845 = vmatpush3.bf16.msra.mxu0 %v2004_v62 }
  0x6b   : > { %1865 = vmatpush3.bf16.msra.mxu1 %v2005_v63  ;;  %1870 = vmatprep.subr.bf16.mxu0 %v2054_v1 }
  0x6c   : > { %1890 = vmatprep.subr.bf16.mxu1 %v2054_v1 }
  0x6d   : > { %1847 = vmatmul.mubr.bf16.vlgmr.msra.gmra.mxu0 %v738_v2 }
  0x6e   : > { %1871 = vmatpush3.bf16.msra.mxu0 %v2006_v3  ;;  %1867 = vmatmul.mubr.bf16.vlgmr.msra.gmra.mxu1 %v856_v4 }
  0x6f   : > { %1891 = vmatpush3.bf16.msra.mxu1 %v2007_v5  ;;  %1872 = vmatprep.subr.bf16.mxu0 %v2054_v1 }
  0x70   : > { %1892 = vmatprep.subr.bf16.mxu1 %v2054_v1  ;;  %1886 = vmatprep.mubr.msk.bf16.mxu0 %vm2055_vm0, %v2054_v1 }
  0x71   : > { %1906 = vmatprep.mubr.msk.bf16.mxu1 %vm2055_vm0, %v2054_v1 }
  0x72   : > { %1873 = vmatpush3.bf16.msra.mxu0 %v2008_v6 }
  0x73   : > { %1893 = vmatpush3.bf16.msra.mxu1 %v2009_v7  ;;  %1874 = vmatprep.subr.bf16.mxu0 %v2054_v1 }
  0x74   : > { %1894 = vmatprep.subr.bf16.mxu1 %v2054_v1 }
  0x76   : > { %1875 = vmatpush3.bf16.msra.mxu0 %v2010_v8  ;;  %v1290_v8 = vld [vmem:[%s2464_s2] sm:$0x1] }
  0x77   : > { %1895 = vmatpush3.bf16.msra.mxu1 %v2011_v9  ;;  %1876 = vmatprep.subr.bf16.mxu0 %v2054_v1 }
  0x78   : > { %1896 = vmatprep.subr.bf16.mxu1 %v2054_v1 }
  0x7a   : > { %1877 = vmatpush3.bf16.msra.mxu0 %v2012_v10 }
  0x7b   : > { %1897 = vmatpush3.bf16.msra.mxu1 %v2013_v11  ;;  %1878 = vmatprep.subr.bf16.mxu0 %v2054_v1 }
  0x7c   : > { %1898 = vmatprep.subr.bf16.mxu1 %v2054_v1 }
  0x7e   : > { %1879 = vmatpush3.bf16.msra.mxu0 %v2014_v12  ;;  %v1296_v12 = vld [vmem:[%s256_s21] sm:$0x1] }
  0x7f   : > { %1899 = vmatpush3.bf16.msra.mxu1 %v2015_v13  ;;  %1880 = vmatprep.subr.bf16.mxu0 %v2054_v1  ;;  %v1308_v13 = vsub.s32 0, %v2151_v14 }
  0x80   : > { %1900 = vmatprep.subr.bf16.mxu1 %v2054_v1 }
  0x82   : > { %1881 = vmatpush3.bf16.msra.mxu0 %v2016_v15 }
  0x83   : > { %1901 = vmatpush3.bf16.msra.mxu1 %v2017_v16  ;;  %1882 = vmatprep.subr.bf16.mxu0 %v2054_v1 }
  0x84   : > { %1902 = vmatprep.subr.bf16.mxu1 %v2054_v1 }
  0x86   : > { %1883 = vmatpush3.bf16.msra.mxu0 %v2018_v17 }
  0x87   : > { %1903 = vmatpush3.bf16.msra.mxu1 %v2019_v18  ;;  %1884 = vmatprep.subr.bf16.mxu0 %v2054_v1 }
  0x88   : > { %1904 = vmatprep.subr.bf16.mxu1 %v2054_v1 }
  0x8a   : > { %1885 = vmatpush3.bf16.msra.mxu0 %v2020_v20 }
  0x8b   : > { %1905 = vmatpush3.bf16.msra.mxu1 %v2021_v21  ;;  %1910 = vmatprep.subr.bf16.mxu0 %v2054_v1 }
  0x8d   : > { %1887 = vmatmul.mubr.bf16.vlgmr.msra.gmra.mxu0 %v2269_v48 }
  0x8e   : > { %1911 = vmatpush3.bf16.msra.mxu0 %v2022_v23  ;;  %1907 = vmatmul.mubr.bf16.vlgmr.msra.gmra.mxu1 %v1081_v22 }
  0x8f   : > { %1912 = vmatprep.subr.bf16.mxu0 %v2054_v1  ;;  %1926 = vmatprep.mubr.msk.bf16.mxu0 %vm2055_vm0, %v2054_v1 }
  0x92   : > { %1913 = vmatpush3.bf16.msra.mxu0 %v2023_v24 }
  0x93   : > { %1914 = vmatprep.subr.bf16.mxu0 %v2054_v1 }
  0x96   : > { %1915 = vmatpush3.bf16.msra.mxu0 %v2024_v19 }
  0x97   : > { %1916 = vmatprep.subr.bf16.mxu0 %v2054_v1 }
  0x9a   : > { %1917 = vmatpush3.bf16.msra.mxu0 %v2025_v25 }
  0x9b   : > { %1918 = vmatprep.subr.bf16.mxu0 %v2054_v1 }
  0x9e   : > { %1919 = vmatpush3.bf16.msra.mxu0 %v2026_v26 }
  0x9f   : > { %1920 = vmatprep.subr.bf16.mxu0 %v2054_v1 }
  0xa2   : > { %1921 = vmatpush3.bf16.msra.mxu0 %v2027_v27 }
  0xa3   : > { %1922 = vmatprep.subr.bf16.mxu0 %v2054_v1 }
  0xa6   : > { %1923 = vmatpush3.bf16.msra.mxu0 %v2028_v28 }
  0xa7   : > { %1924 = vmatprep.subr.bf16.mxu0 %v2054_v1 }
  0xaa   : > { %1925 = vmatpush3.bf16.msra.mxu0 %v2029_v29 }
  0xad   : > { %1927 = vmatmul.mubr.bf16.vlgmr.msra.gmra.mxu0 %v1199_v31 }
  0xed   : > { %v393_v32 = vpop.f32.mrf.mxu0 }
  0xee   : > { %v481_v33 = vpop.f32.mrf.mxu1 }
  0xef   : > { %v482_v34 = vadd.f32 %v481_v33, %v393_v32  ;;  %v1768_v35 = vpop.f32.mrf.mxu0 }
  0xf0   : > { %v1788_v36 = vpop.f32.mrf.mxu1 }
  0xf1   : > { %v396_v37 = vpop.f32.mrf.mxu0 }
  0xf2   : > { %v484_v38 = vpop.f32.mrf.mxu1 }
  0xf3   : > { %v1769_v39 = vpop.f32.mrf.mxu0 }
  0xf4   : > { %v1789_v40 = vpop.f32.mrf.mxu1 }
 0x10d   : > { %v597_v41 = vpop.f32.mrf.mxu0 }
 0x10e   : > { %v603_v42 = vadd.f32 %v597_v41, %v482_v34  ;;  %v705_v43 = vpop.f32.mrf.mxu1 }
 0x10f   : > { %v1808_v44 = vpop.f32.mrf.mxu0 }
 0x110   : > { %v711_v45 = vadd.f32 %v705_v43, %v603_v42  ;;  %v1828_v46 = vpop.f32.mrf.mxu1 }
 0x111   : > { %v600_v47 = vpop.f32.mrf.mxu0 }
 0x112   : > { %v708_v1 = vpop.f32.mrf.mxu1 }
 0x113   : > { %v1809_v48 = vpop.f32.mrf.mxu0 }
 0x114   : > { %v1829_v49 = vpop.f32.mrf.mxu1 }
 0x12d   : > { %v823_v50 = vpop.f32.mrf.mxu0 }
 0x12e   : > { %v940_v51 = vpop.f32.mrf.mxu1  ;;  %v829_v3 = vadd.f32 %v823_v50, %v711_v45 }
 0x12f   : > { %v1848_v52 = vpop.f32.mrf.mxu0 }
 0x130   : > { %v1868_v53 = vpop.f32.mrf.mxu1  ;;  %v946_v4 = vadd.f32 %v940_v51, %v829_v3 }
 0x131   : > { %v826_v54 = vpop.f32.mrf.mxu0 }
 0x132   : > { %v943_v55 = vpop.f32.mrf.mxu1 }
 0x133   : > { %v1849_v56 = vpop.f32.mrf.mxu0 }
 0x134   : > { %v1869_v57 = vpop.f32.mrf.mxu1 }
 0x14d   : > { %v1048_v58 = vpop.f32.mrf.mxu0 }
 0x14e   : > { %v1166_v59 = vpop.f32.mrf.mxu1  ;;  %v1054_v5 = vadd.f32 %v1048_v58, %v946_v4 }
 0x14f   : > { %v1888_v60 = vpop.f32.mrf.mxu0 }
 0x150   : > { %v1908_v61 = vpop.f32.mrf.mxu1  ;;  %v1172_v6 = vadd.f32 %v1166_v59, %v1054_v5 }
 0x151   : > { %v1051_v62 = vpop.f32.mrf.mxu0 }
 0x152   : > { %v1169_v63 = vpop.f32.mrf.mxu1 }
 0x153   : > { %v1889_v0 = vpop.f32.mrf.mxu0 }
 0x154   : > { %v1909_v2 = vpop.f32.mrf.mxu1 }
 0x16d   : > { %v1283_v7 = vpop.f32.mrf.mxu0 }
 0x16e   : > { %v1289_v9 = vadd.f32 %v1283_v7, %v1172_v6 }
 0x16f   : > { %v1928_v10 = vpop.f32.mrf.mxu0 }
 0x170   : > { %v1291_v11 = vadd.f32 %v1290_v8, %v1289_v9 }
 0x171   : > { %v1286_v15 = vpop.f32.mrf.mxu0 }
 0x172   : > { %v1292_v16 = vpack.c.bf16 %v1291_v11, %v1291_v11  ;;  %v1300_v17 = vmul.f32 %v1291_v11, %v1291_v11  ;;  %v1314_v22 = vrot.slane %v1291_v11, %v1308_v13 }
 0x173   : > { %v1929_v18 = vpop.f32.mrf.mxu0 }
 0x174   : > { %v1297_v20 = vsel %vm1295_vm3, %v1292_v16, %v1296_v12  ;;  %v1309_v21 = vrot.slane %v1300_v17, %v1308_v13 }
 0x175   : > { %1298 = vst [vmem:[%s256_s21] sm:$0x1] %v1297_v20 }
 0x176   : > { %v1310_v23 = vsel %vm1305_vm4, %v1309_v21, 0.0 }
 0x177   : > { %v1315_v24 = vsel %vm1304_vm5, %v1314_v22, %v1310_v23 }
 0x178   : > { %1316 = vst [vmem:[%s263_s26] sm:$0xff] %v1315_v24 }
 0x179 PF: > { %s15_s17 = sadd.s32 1, %s2052_s17   ;;  %s2467_s15 = smov %s2048_s16 }
 0x17a   : > { %p12_p5 = scmp.ge.s32.totalorder %s15_s17, 4   ;;  %s2468_s16 = smov %s2470_s18 }
 0x17c   :  { %14 = sbr.rel (!%p12_p5) target bundleno = 2 (0x2), region = 90 }

// kernel: resnet_forward.212
= control target key start
LH: loop header
LB: loop body
LE: loop exit
PB: predicated region body
PF: predicated region fallthrough
CT: control target
= control target key end

     0   :  { %v67_v0 = vlaneseq  ;;  %s660_s0 = inlined_call_operand.vmem [shape: bf16[128,256], index: 0, kind: input, shape index: {}]   ;;  %s661_s1 = inlined_call_operand.vmem [shape: f32[1,256], index: 1, kind: input, shape index: {}]   ;;  %s662_s2 = inlined_call_operand.vmem [shape: f32[1,256], index: 2, kind: input, shape index: {}]   ;;  %s663_s3 = inlined_call_operand.vmem [shape: bf16[128,256], index: 3, kind: input, shape index: {}]   ;;  %s664_s4 = inlined_call_operand.vmem [shape: bf16[128,256], index: 4, kind: output, shape index: {}]  }
   0x1   :  { %v17_v1 = vld [vmem:[%s660_s0] sm:$0xff]  ;;  %v18_v7 = vld [vmem:[%s660_s0 + $0x8] sm:$0xff]  ;;  %v19_v14 = vld [vmem:[%s660_s0 + $0x10] sm:$0xff] }
   0x2   :  { %v65_v2 = vld [vmem:[%s661_s1] sm:$0x3]  ;;  %v33_v3 = vunpack.c.l.bf16 %v17_v1  ;;  %v34_v4 = vunpack.c.h.bf16 %v17_v1  ;;  %v68_v5 = vshrl.u32 %v67_v0, 7  ;;  %v186_v8 = vld [vmem:[%s663_s3 + $0x8] sm:$0xff]  ;;  %v35_v12 = vunpack.c.l.bf16 %v18_v7  ;;  %v187_v15 = vld [vmem:[%s663_s3 + $0x10] sm:$0xff] }
   0x3   :  { %v185_v6 = vld [vmem:[%s663_s3] sm:$0xff]  ;;  %v36_v13 = vunpack.c.h.bf16 %v18_v7  ;;  %v203_v18 = vunpack.c.l.bf16 %v186_v8  ;;  %v204_v19 = vunpack.c.h.bf16 %v186_v8  ;;  %v20_v20 = vld [vmem:[%s660_s0 + $0x18] sm:$0xff]  ;;  %v37_v22 = vunpack.c.l.bf16 %v19_v14 }
   0x4   :  { %v109_v9 = vld [vmem:[%s662_s2] sm:$0x3]  ;;  %v201_v10 = vunpack.c.l.bf16 %v185_v6  ;;  %v202_v11 = vunpack.c.h.bf16 %v185_v6  ;;  %v69_v16 = vsub.s32 0, %v68_v5  ;;  %v73_v17 = vsub.s32 1, %v68_v5  ;;  %v188_v21 = vld [vmem:[%s663_s3 + $0x18] sm:$0xff] }
   0x5   :  { %v38_v23 = vunpack.c.h.bf16 %v19_v14  ;;  %v205_v24 = vunpack.c.l.bf16 %v187_v15  ;;  %v206_v25 = vunpack.c.h.bf16 %v187_v15  ;;  %v39_v30 = vunpack.c.l.bf16 %v20_v20  ;;  %v21_v58 = vld [vmem:[%s660_s0 + $0x20] sm:$0xff] }
   0x6   :  { %v468_v26 = vrot.slane %v65_v2, %v69_v16  ;;  %v470_v27 = vrot.slane %v65_v2, %v73_v17  ;;  %v472_v28 = vrot.slane %v109_v9, %v69_v16  ;;  %v474_v29 = vrot.slane %v109_v9, %v73_v17  ;;  %v189_v63 = vld [vmem:[%s663_s3 + $0x20] sm:$0xff]  ;;  %v190_v9 = vld [vmem:[%s663_s3 + $0x28] sm:$0xff] }
   0x7   :  { %v40_v31 = vunpack.c.h.bf16 %v20_v20  ;;  %v207_v32 = vunpack.c.l.bf16 %v188_v21  ;;  %v208_v33 = vunpack.c.h.bf16 %v188_v21  ;;  %v41_v7 = vunpack.c.l.bf16 %v21_v58 }
   0x8   :  { %v77_v34 = vsub.f32 %v33_v3, %v468_v26  ;;  %v78_v35 = vsub.f32 %v34_v4, %v470_v27  ;;  %v79_v36 = vsub.f32 %v35_v12, %v468_v26  ;;  %v80_v37 = vsub.f32 %v36_v13, %v470_v27  ;;  %v22_v4 = vld [vmem:[%s660_s0 + $0x28] sm:$0xff] }
   0x9   :  { %v81_v38 = vsub.f32 %v37_v22, %v468_v26  ;;  %v82_v39 = vsub.f32 %v38_v23, %v470_v27  ;;  %v83_v40 = vsub.f32 %v39_v30, %v468_v26  ;;  %v84_v41 = vsub.f32 %v40_v31, %v470_v27 }
   0xa   :  { %v121_v42 = vmul.f32 %v472_v28, %v77_v34  ;;  %v122_v43 = vmul.f32 %v474_v29, %v78_v35  ;;  %v123_v44 = vmul.f32 %v472_v28, %v79_v36  ;;  %v124_v45 = vmul.f32 %v474_v29, %v80_v37 }
   0xb   :  { %v125_v46 = vmul.f32 %v472_v28, %v81_v38  ;;  %v126_v47 = vmul.f32 %v474_v29, %v82_v39  ;;  %v127_v48 = vmul.f32 %v472_v28, %v83_v40  ;;  %v128_v49 = vmul.f32 %v474_v29, %v84_v41 }
   0xc   :  { %v153_v50 = vmax.f32 %v121_v42, 0.0  ;;  %v154_v51 = vmax.f32 %v122_v43, 0.0  ;;  %v155_v52 = vmax.f32 %v123_v44, 0.0  ;;  %v156_v53 = vmax.f32 %v124_v45, 0.0  ;;  %v192_v45 = vld [vmem:[%s663_s3 + $0x38] sm:$0xff] }
   0xd   :  { %v157_v54 = vmax.f32 %v125_v46, 0.0  ;;  %v158_v55 = vmax.f32 %v126_v47, 0.0  ;;  %v159_v56 = vmax.f32 %v127_v48, 0.0  ;;  %v160_v57 = vmax.f32 %v128_v49, 0.0 }
   0xe   :  { %v233_v59 = vadd.f32 %v201_v10, %v153_v50  ;;  %v234_v60 = vadd.f32 %v202_v11, %v154_v51  ;;  %v235_v61 = vadd.f32 %v203_v18, %v155_v52  ;;  %v236_v62 = vadd.f32 %v204_v19, %v156_v53  ;;  %v23_v10 = vld [vmem:[%s660_s0 + $0x30] sm:$0xff] }
   0xf   :  { %v237_v0 = vadd.f32 %v205_v24, %v157_v54  ;;  %v238_v1 = vadd.f32 %v206_v25, %v158_v55  ;;  %v239_v2 = vadd.f32 %v207_v32, %v159_v56  ;;  %v240_v3 = vadd.f32 %v208_v33, %v160_v57  ;;  %v191_v19 = vld [vmem:[%s663_s3 + $0x30] sm:$0xff]  ;;  %v24_v32 = vld [vmem:[%s660_s0 + $0x38] sm:$0xff]  ;;  %v25_v54 = vld [vmem:[%s660_s0 + $0x40] sm:$0xff] }
  0x10   :  { %v397_v5 = vpack.c.bf16 %v234_v60, %v233_v59  ;;  %v398_v6 = vpack.c.bf16 %v236_v62, %v235_v61  ;;  %v42_v8 = vunpack.c.h.bf16 %v21_v58  ;;  %v209_v13 = vunpack.c.l.bf16 %v189_v63  ;;  %v193_v59 = vld [vmem:[%s663_s3 + $0x40] sm:$0xff] }
  0x11   :  { %v399_v11 = vpack.c.bf16 %v238_v1, %v237_v0  ;;  %v400_v12 = vpack.c.bf16 %v240_v3, %v239_v2  ;;  %v210_v14 = vunpack.c.h.bf16 %v189_v63  ;;  %v85_v15 = vsub.f32 %v41_v7, %v468_v26  ;;  %v26_v0 = vld [vmem:[%s660_s0 + $0x48] sm:$0xff] }
  0x12   :  { %361 = vst [vmem:[%s664_s4] sm:$0xff] %v397_v5  ;;  %362 = vst [vmem:[%s664_s4 + $0x8] sm:$0xff] %v398_v6  ;;  %v86_v16 = vsub.f32 %v42_v8, %v470_v27  ;;  %v43_v17 = vunpack.c.l.bf16 %v22_v4  ;;  %v44_v18 = vunpack.c.h.bf16 %v22_v4  ;;  %v211_v20 = vunpack.c.l.bf16 %v190_v9  ;;  %v194_v5 = vld [vmem:[%s663_s3 + $0x48] sm:$0xff] }
  0x13   :  { %363 = vst [vmem:[%s664_s4 + $0x10] sm:$0xff] %v399_v11  ;;  %364 = vst [vmem:[%s664_s4 + $0x18] sm:$0xff] %v400_v12  ;;  %v212_v21 = vunpack.c.h.bf16 %v190_v9  ;;  %v45_v22 = vunpack.c.l.bf16 %v23_v10  ;;  %v46_v23 = vunpack.c.h.bf16 %v23_v10  ;;  %v129_v24 = vmul.f32 %v472_v28, %v85_v15 }
  0x14   :  { %v130_v25 = vmul.f32 %v474_v29, %v86_v16  ;;  %v87_v30 = vsub.f32 %v43_v17, %v468_v26  ;;  %v88_v31 = vsub.f32 %v44_v18, %v470_v27  ;;  %v213_v35 = vunpack.c.l.bf16 %v191_v19 }
  0x15   :  { %v89_v33 = vsub.f32 %v45_v22, %v468_v26  ;;  %v90_v34 = vsub.f32 %v46_v23, %v470_v27  ;;  %v214_v36 = vunpack.c.h.bf16 %v191_v19  ;;  %v161_v37 = vmax.f32 %v129_v24, 0.0  ;;  %v195_v19 = vld [vmem:[%s663_s3 + $0x50] sm:$0xff] }
  0x16   :  { %v162_v38 = vmax.f32 %v130_v25, 0.0  ;;  %v131_v39 = vmul.f32 %v472_v28, %v87_v30  ;;  %v132_v40 = vmul.f32 %v474_v29, %v88_v31  ;;  %v47_v43 = vunpack.c.l.bf16 %v24_v32 }
  0x17   :  { %v133_v41 = vmul.f32 %v472_v28, %v89_v33  ;;  %v134_v42 = vmul.f32 %v474_v29, %v90_v34  ;;  %v48_v44 = vunpack.c.h.bf16 %v24_v32  ;;  %v241_v46 = vadd.f32 %v209_v13, %v161_v37  ;;  %v28_v32 = vld [vmem:[%s660_s0 + $0x58] sm:$0xff] }
  0x18   :  { %v242_v47 = vadd.f32 %v210_v14, %v162_v38  ;;  %v163_v48 = vmax.f32 %v131_v39, 0.0  ;;  %v164_v49 = vmax.f32 %v132_v40, 0.0  ;;  %v91_v52 = vsub.f32 %v47_v43, %v468_v26  ;;  %v27_v14 = vld [vmem:[%s660_s0 + $0x50] sm:$0xff] }
  0x19   :  { %v165_v50 = vmax.f32 %v133_v41, 0.0  ;;  %v166_v51 = vmax.f32 %v134_v42, 0.0  ;;  %v92_v53 = vsub.f32 %v48_v44, %v470_v27  ;;  %v215_v58 = vunpack.c.l.bf16 %v192_v45  ;;  %v196_v41 = vld [vmem:[%s663_s3 + $0x58] sm:$0xff] }
  0x1a   :  { %v401_v55 = vpack.c.bf16 %v242_v47, %v241_v46  ;;  %v243_v56 = vadd.f32 %v211_v20, %v163_v48  ;;  %v244_v57 = vadd.f32 %v212_v21, %v164_v49  ;;  %v135_v62 = vmul.f32 %v472_v28, %v91_v52 }
  0x1b   :  { %v245_v60 = vadd.f32 %v213_v35, %v165_v50  ;;  %v246_v61 = vadd.f32 %v214_v36, %v166_v51  ;;  %v136_v63 = vmul.f32 %v474_v29, %v92_v53  ;;  %v216_v2 = vunpack.c.h.bf16 %v192_v45  ;;  %v29_v50 = vld [vmem:[%s660_s0 + $0x60] sm:$0xff] }
  0x1c   :  { %365 = vst [vmem:[%s664_s4 + $0x20] sm:$0xff] %v401_v55  ;;  %v402_v1 = vpack.c.bf16 %v244_v57, %v243_v56  ;;  %v49_v3 = vunpack.c.l.bf16 %v25_v54  ;;  %v50_v4 = vunpack.c.h.bf16 %v25_v54  ;;  %v167_v7 = vmax.f32 %v135_v62, 0.0 }
  0x1d   :  { %v403_v6 = vpack.c.bf16 %v246_v61, %v245_v60  ;;  %v168_v8 = vmax.f32 %v136_v63, 0.0  ;;  %v217_v9 = vunpack.c.l.bf16 %v193_v59  ;;  %v218_v12 = vunpack.c.h.bf16 %v193_v59  ;;  %v197_v59 = vld [vmem:[%s663_s3 + $0x60] sm:$0xff] }
  0x1e   :  { %366 = vst [vmem:[%s664_s4 + $0x28] sm:$0xff] %v402_v1  ;;  %v93_v10 = vsub.f32 %v49_v3, %v468_v26  ;;  %v94_v11 = vsub.f32 %v50_v4, %v470_v27  ;;  %v51_v13 = vunpack.c.l.bf16 %v26_v0  ;;  %v247_v15 = vadd.f32 %v215_v58, %v167_v7 }
  0x1f   :  { %367 = vst [vmem:[%s664_s4 + $0x30] sm:$0xff] %v403_v6  ;;  %v248_v16 = vadd.f32 %v216_v2, %v168_v8  ;;  %v52_v17 = vunpack.c.h.bf16 %v26_v0  ;;  %v219_v18 = vunpack.c.l.bf16 %v194_v5  ;;  %v220_v23 = vunpack.c.h.bf16 %v194_v5  ;;  %v30_v0 = vld [vmem:[%s660_s0 + $0x68] sm:$0xff] }
  0x20   :  { %v137_v20 = vmul.f32 %v472_v28, %v93_v10  ;;  %v138_v21 = vmul.f32 %v474_v29, %v94_v11  ;;  %v95_v22 = vsub.f32 %v51_v13, %v468_v26  ;;  %v53_v30 = vunpack.c.l.bf16 %v27_v14 }
  0x21   :  { %v404_v24 = vpack.c.bf16 %v248_v16, %v247_v15  ;;  %v96_v25 = vsub.f32 %v52_v17, %v470_v27  ;;  %v54_v31 = vunpack.c.h.bf16 %v27_v14  ;;  %v221_v36 = vunpack.c.l.bf16 %v195_v19  ;;  %v31_v14 = vld [vmem:[%s660_s0 + $0x70] sm:$0xff] }
  0x22   :  { %v169_v33 = vmax.f32 %v137_v20, 0.0  ;;  %v170_v34 = vmax.f32 %v138_v21, 0.0  ;;  %v139_v35 = vmul.f32 %v472_v28, %v95_v22  ;;  %v97_v38 = vsub.f32 %v53_v30, %v468_v26  ;;  %v199_v30 = vld [vmem:[%s663_s3 + $0x70] sm:$0xff] }
  0x23   :  { %368 = vst [vmem:[%s664_s4 + $0x38] sm:$0xff] %v404_v24  ;;  %v140_v37 = vmul.f32 %v474_v29, %v96_v25  ;;  %v98_v39 = vsub.f32 %v54_v31, %v470_v27  ;;  %v222_v40 = vunpack.c.h.bf16 %v195_v19  ;;  %v55_v45 = vunpack.c.l.bf16 %v28_v32  ;;  %v32_v31 = vld [vmem:[%s660_s0 + $0x78] sm:$0xff] }
  0x24   :  { %v249_v42 = vadd.f32 %v217_v9, %v169_v33  ;;  %v250_v43 = vadd.f32 %v218_v12, %v170_v34  ;;  %v171_v44 = vmax.f32 %v139_v35, 0.0  ;;  %v141_v47 = vmul.f32 %v472_v28, %v97_v38  ;;  %v198_v9 = vld [vmem:[%s663_s3 + $0x68] sm:$0xff] }
  0x25   :  { %v172_v46 = vmax.f32 %v140_v37, 0.0  ;;  %v142_v48 = vmul.f32 %v474_v29, %v98_v39  ;;  %v56_v49 = vunpack.c.h.bf16 %v28_v32  ;;  %v99_v53 = vsub.f32 %v55_v45, %v468_v26 }
  0x26   :  { %v405_v51 = vpack.c.bf16 %v250_v43, %v249_v42  ;;  %v251_v52 = vadd.f32 %v219_v18, %v171_v44  ;;  %v223_v54 = vunpack.c.l.bf16 %v196_v41  ;;  %v173_v56 = vmax.f32 %v141_v47, 0.0 }
  0x27   :  { %v252_v55 = vadd.f32 %v220_v23, %v172_v46  ;;  %v174_v57 = vmax.f32 %v142_v48, 0.0  ;;  %v100_v58 = vsub.f32 %v56_v49, %v470_v27  ;;  %v143_v60 = vmul.f32 %v472_v28, %v99_v53  ;;  %v200_v48 = vld [vmem:[%s663_s3 + $0x78] sm:$0xff] }
  0x28   :  { %369 = vst [vmem:[%s664_s4 + $0x40] sm:$0xff] %v405_v51  ;;  %v224_v61 = vunpack.c.h.bf16 %v196_v41  ;;  %v57_v62 = vunpack.c.l.bf16 %v29_v50  ;;  %v58_v63 = vunpack.c.h.bf16 %v29_v50  ;;  %v253_v2 = vadd.f32 %v221_v36, %v173_v56 }
  0x29   :  { %v406_v1 = vpack.c.bf16 %v252_v55, %v251_v52  ;;  %v254_v3 = vadd.f32 %v222_v40, %v174_v57  ;;  %v144_v4 = vmul.f32 %v474_v29, %v100_v58  ;;  %v175_v5 = vmax.f32 %v143_v60, 0.0 }
  0x2a   :  { %v101_v6 = vsub.f32 %v57_v62, %v468_v26  ;;  %v102_v7 = vsub.f32 %v58_v63, %v470_v27  ;;  %v225_v8 = vunpack.c.l.bf16 %v197_v59  ;;  %v226_v12 = vunpack.c.h.bf16 %v197_v59 }
  0x2b   :  { %370 = vst [vmem:[%s664_s4 + $0x48] sm:$0xff] %v406_v1  ;;  %v407_v10 = vpack.c.bf16 %v254_v3, %v253_v2  ;;  %v176_v11 = vmax.f32 %v144_v4, 0.0  ;;  %v59_v13 = vunpack.c.l.bf16 %v30_v0  ;;  %v255_v15 = vadd.f32 %v223_v54, %v175_v5 }
  0x2c   :  { %v145_v16 = vmul.f32 %v472_v28, %v101_v6  ;;  %v146_v17 = vmul.f32 %v474_v29, %v102_v7  ;;  %v60_v18 = vunpack.c.h.bf16 %v30_v0  ;;  %v227_v21 = vunpack.c.l.bf16 %v198_v9 }
  0x2d   :  { %371 = vst [vmem:[%s664_s4 + $0x50] sm:$0xff] %v407_v10  ;;  %v256_v19 = vadd.f32 %v224_v61, %v176_v11  ;;  %v103_v20 = vsub.f32 %v59_v13, %v468_v26  ;;  %v61_v25 = vunpack.c.l.bf16 %v31_v14  ;;  %v228_v34 = vunpack.c.h.bf16 %v198_v9 }
  0x2e   :  { %v177_v22 = vmax.f32 %v145_v16, 0.0  ;;  %v178_v23 = vmax.f32 %v146_v17, 0.0  ;;  %v104_v24 = vsub.f32 %v60_v18, %v470_v27  ;;  %v62_v35 = vunpack.c.h.bf16 %v31_v14 }
  0x2f   :  { %v408_v32 = vpack.c.bf16 %v256_v19, %v255_v15  ;;  %v147_v33 = vmul.f32 %v472_v28, %v103_v20  ;;  %v105_v39 = vsub.f32 %v61_v25, %v468_v26  ;;  %v229_v42 = vunpack.c.l.bf16 %v199_v30 }
  0x30   :  { %v257_v36 = vadd.f32 %v225_v8, %v177_v22  ;;  %v258_v37 = vadd.f32 %v226_v12, %v178_v23  ;;  %v148_v38 = vmul.f32 %v474_v29, %v104_v24  ;;  %v106_v41 = vsub.f32 %v62_v35, %v470_v27 }
  0x31   :  { %372 = vst [vmem:[%s664_s4 + $0x58] sm:$0xff] %v408_v32  ;;  %v179_v40 = vmax.f32 %v147_v33, 0.0  ;;  %v63_v43 = vunpack.c.l.bf16 %v32_v31  ;;  %v149_v46 = vmul.f32 %v472_v28, %v105_v39  ;;  %v64_v47 = vunpack.c.h.bf16 %v32_v31 }
  0x32   :  { %v409_v44 = vpack.c.bf16 %v258_v37, %v257_v36  ;;  %v180_v45 = vmax.f32 %v148_v38, 0.0  ;;  %v150_v50 = vmul.f32 %v474_v29, %v106_v41  ;;  %v230_v51 = vunpack.c.h.bf16 %v199_v30 }
  0x33   :  { %v259_v49 = vadd.f32 %v227_v21, %v179_v40  ;;  %v107_v52 = vsub.f32 %v63_v43, %v468_v26  ;;  %v181_v54 = vmax.f32 %v149_v46, 0.0  ;;  %v108_v55 = vsub.f32 %v64_v47, %v470_v27 }
  0x34   :  { %373 = vst [vmem:[%s664_s4 + $0x60] sm:$0xff] %v409_v44  ;;  %v260_v53 = vadd.f32 %v228_v34, %v180_v45  ;;  %v182_v56 = vmax.f32 %v150_v50, 0.0  ;;  %v231_v58 = vunpack.c.l.bf16 %v200_v48  ;;  %v232_v62 = vunpack.c.h.bf16 %v200_v48 }
  0x35   :  { %v151_v57 = vmul.f32 %v472_v28, %v107_v52  ;;  %v261_v60 = vadd.f32 %v229_v42, %v181_v54  ;;  %v152_v61 = vmul.f32 %v474_v29, %v108_v55 }
  0x36   :  { %v410_v59 = vpack.c.bf16 %v260_v53, %v259_v49  ;;  %v262_v63 = vadd.f32 %v230_v51, %v182_v56 }
  0x37   :  { %v183_v0 = vmax.f32 %v151_v57, 0.0  ;;  %v184_v26 = vmax.f32 %v152_v61, 0.0 }
  0x38   :  { %374 = vst [vmem:[%s664_s4 + $0x68] sm:$0xff] %v410_v59  ;;  %v411_v1 = vpack.c.bf16 %v262_v63, %v261_v60 }
  0x39   :  { %v263_v2 = vadd.f32 %v231_v58, %v183_v0  ;;  %v264_v3 = vadd.f32 %v232_v62, %v184_v26 }
  0x3a   :  { %375 = vst [vmem:[%s664_s4 + $0x70] sm:$0xff] %v411_v1 }
  0x3b   :  { %v412_v27 = vpack.c.bf16 %v264_v3, %v263_v2 }
  0x3d   :  { %376 = vst [vmem:[%s664_s4 + $0x78] sm:$0xff] %v412_v27 }

// kernel: resnet_forward.214
= control target key start
LH: loop header
LB: loop body
LE: loop exit
PB: predicated region body
PF: predicated region fallthrough
CT: control target
= control target key end

     0   :  { %v939_v32 = vmov 0.0|0.0   ;;  %v498_v35 = vlaneseq  ;;  %v940_v49 = vmov 0.0   ;;  %s1113_s1 = inlined_call_operand.vmem [shape: bf16[256,128], index: 1, kind: input, shape index: {}]   ;;  %s1114_s0 = inlined_call_operand.vmem [shape: bf16[128,256], index: 0, kind: input, shape index: {}]   ;;  %s1115_s3 = inlined_call_operand.vmem [shape: bf16[128,128], index: 3, kind: output, shape index: {0}]   ;;  %s1116_s2 = inlined_call_operand.vmem [shape: f32[1,128], index: 2, kind: input, shape index: {}]   ;;  %s1117_s4 = inlined_call_operand.vmem [shape: f32[1,8,128], index: 4, kind: output, shape index: {1}]  }
   0x1   :  { %v899_v0 = vld [vmem:[%s1113_s1 + $0x78] sm:$0xff]   ;;  %v901_v2 = vld [vmem:[%s1113_s1 + $0x70] sm:$0xff]   ;;  %v903_v4 = vld [vmem:[%s1113_s1 + $0x68] sm:$0xff]   ;;  %v781_v33 = vcombine.low %v939_v32, %v939_v32  ;;  %v782_v34 = vcombine.high %v939_v32, %v939_v32 }
   0x2   :  { %v900_v1 = vld [vmem:[%s1113_s1 + $0x38] sm:$0xff]   ;;  %817 = vmatprep.subr.bf16.mxu0 %v899_v0  ;;  %881 = vmatprep.subr.bf16.mxu1 %v899_v0  ;;  %v902_v3 = vld [vmem:[%s1113_s1 + $0x30] sm:$0xff]   ;;  %v904_v5 = vld [vmem:[%s1113_s1 + $0x28] sm:$0xff]   ;;  %v499_v38 = vshrl.u32 %v498_v35, 7 }
   0x3   :  { %818 = vmatpush3.bf16.msra.mxu0 %v900_v1  ;;  %889 = vmatpush3.bf16.msra.mxu1 %v900_v1  ;;  %v905_v6 = vld [vmem:[%s1113_s1 + $0x60] sm:$0xff]   ;;  %v907_v8 = vld [vmem:[%s1113_s1 + $0x58] sm:$0xff]   ;;  %v909_v10 = vld [vmem:[%s1113_s1 + $0x50] sm:$0xff]   ;;  %645 = vst [vmem:[%s1115_s3 + $0x8] sm:$0xf] %v781_v33 }
   0x4   :  { %819 = vmatprep.subr.bf16.mxu0 %v901_v2  ;;  %882 = vmatprep.subr.bf16.mxu1 %v901_v2  ;;  %v906_v7 = vld [vmem:[%s1113_s1 + $0x20] sm:$0xff]   ;;  %v908_v9 = vld [vmem:[%s1113_s1 + $0x18] sm:$0xff]   ;;  %v910_v13 = vld [vmem:[%s1113_s1 + $0x10] sm:$0xff]   ;;  %646 = vst [vmem:[%s1115_s3 + $0xc] sm:$0xf] %v782_v34  ;;  %vm515_vm0 = vcmp.lt.s32.totalorder %v499_v38, 2 }
   0x5   :  { %v917_v11 = vld [vmem:[%s1114_s0 + $0x4] ss:$8 sps:$4 sm:$0xff]   ;;  %v915_v18 = vld [vmem:[%s1114_s0] ss:$8 sps:$4 sm:$0xff]   ;;  %v921_v20 = vld [vmem:[%s1114_s0 + $0x14] ss:$8 sps:$4 sm:$0xff]  }
   0x6   :  { %v920_v12 = vld [vmem:[%s1114_s0 + $0x44] ss:$8 sps:$4 sm:$0xff]   ;;  %280 = vmatprep.mubr.bf16.mxu0 %v917_v11  ;;  %v918_v19 = vld [vmem:[%s1114_s0 + $0x40] ss:$8 sps:$4 sm:$0xff]   ;;  %v923_v21 = vld [vmem:[%s1114_s0 + $0x54] ss:$8 sps:$4 sm:$0xff]  }
   0x7   :  { %820 = vmatpush3.bf16.msra.mxu0 %v902_v3  ;;  %890 = vmatpush3.bf16.msra.mxu1 %v902_v3  ;;  %v911_v14 = vld [vmem:[%s1113_s1 + $0x48] sm:$0xff]   ;;  %v913_v16 = vld [vmem:[%s1113_s1 + $0x40] sm:$0xff]   ;;  %v925_v22 = vld [vmem:[%s1114_s0 + $0x10] ss:$8 sps:$4 sm:$0xff]   ;;  %647 = vst [vmem:[%s1115_s3 + $0x10] sm:$0xf] %v781_v33 }
   0x8   :  { %821 = vmatprep.subr.bf16.mxu0 %v903_v4  ;;  %883 = vmatprep.subr.bf16.mxu1 %v903_v4  ;;  %v912_v15 = vld [vmem:[%s1113_s1 + $0x8] sm:$0xff]   ;;  %v914_v17 = vld [vmem:[%s1113_s1] sm:$0xff]   ;;  %v926_v23 = vld [vmem:[%s1114_s0 + $0x50] ss:$8 sps:$4 sm:$0xff]   ;;  %648 = vst [vmem:[%s1115_s3 + $0x14] sm:$0xf] %v782_v34 }
   0x9   :  { %312 = vmatprep.mubr.bf16.mxu1 %v920_v12  ;;  %v927_v24 = vld [vmem:[%s1114_s0 + $0x24] ss:$8 sps:$4 sm:$0xff]   ;;  %v931_v26 = vld [vmem:[%s1114_s0 + $0x20] ss:$8 sps:$4 sm:$0xff]   ;;  %v933_v28 = vld [vmem:[%s1114_s0 + $0x34] ss:$8 sps:$4 sm:$0xff]  }
   0xa   :  { %v929_v25 = vld [vmem:[%s1114_s0 + $0x64] ss:$8 sps:$4 sm:$0xff]   ;;  %v932_v27 = vld [vmem:[%s1114_s0 + $0x60] ss:$8 sps:$4 sm:$0xff]   ;;  %v935_v29 = vld [vmem:[%s1114_s0 + $0x74] ss:$8 sps:$4 sm:$0xff]  }
   0xb   :  { %822 = vmatpush3.bf16.msra.mxu0 %v904_v5  ;;  %891 = vmatpush3.bf16.msra.mxu1 %v904_v5  ;;  %v937_v30 = vld [vmem:[%s1114_s0 + $0x30] ss:$8 sps:$4 sm:$0xff]   ;;  %649 = vst [vmem:[%s1115_s3 + $0x18] sm:$0xf] %v781_v33  ;;  %650 = vst [vmem:[%s1115_s3 + $0x1c] sm:$0xf] %v782_v34 }
   0xc   :  { %823 = vmatprep.subr.bf16.mxu0 %v905_v6  ;;  %884 = vmatprep.subr.bf16.mxu1 %v905_v6  ;;  %v938_v31 = vld [vmem:[%s1114_s0 + $0x70] ss:$8 sps:$4 sm:$0xff]   ;;  %651 = vst [vmem:[%s1115_s3 + $0x20] sm:$0xf] %v781_v33  ;;  %652 = vst [vmem:[%s1115_s3 + $0x24] sm:$0xf] %v782_v34 }
   0xd   :  { %653 = vst [vmem:[%s1115_s3 + $0x28] sm:$0xf] %v781_v33  ;;  %654 = vst [vmem:[%s1115_s3 + $0x2c] sm:$0xf] %v782_v34  ;;  %v730_v39 = vld [vmem:[%s1116_s2] ss:$0 sm:$0xff] }
   0xe   :  { %655 = vst [vmem:[%s1115_s3 + $0x30] sm:$0xf] %v781_v33  ;;  %656 = vst [vmem:[%s1115_s3 + $0x34] sm:$0xf] %v782_v34  ;;  %vm718_vm1 = vcmp.eq.s32.totalorder %v499_v38, 1  ;;  %vm717_vm2 = vcmp.eq.s32.totalorder %v499_v38, 0 }
   0xf   :  { %824 = vmatpush3.bf16.msra.mxu0 %v906_v7  ;;  %892 = vmatpush3.bf16.msra.mxu1 %v906_v7  ;;  %657 = vst [vmem:[%s1115_s3 + $0x38] sm:$0xf] %v781_v33  ;;  %658 = vst [vmem:[%s1115_s3 + $0x3c] sm:$0xf] %v782_v34 }
  0x10   :  { %825 = vmatprep.subr.bf16.mxu0 %v907_v8  ;;  %885 = vmatprep.subr.bf16.mxu1 %v907_v8 }
  0x13   :  { %826 = vmatpush3.bf16.msra.mxu0 %v908_v9  ;;  %893 = vmatpush3.bf16.msra.mxu1 %v908_v9 }
  0x14   :  { %827 = vmatprep.subr.bf16.mxu0 %v909_v10  ;;  %886 = vmatprep.subr.bf16.mxu1 %v909_v10 }
  0x17   :  { %828 = vmatpush3.bf16.msra.mxu0 %v910_v13  ;;  %894 = vmatpush3.bf16.msra.mxu1 %v910_v13 }
  0x18   :  { %829 = vmatprep.subr.bf16.mxu0 %v911_v14  ;;  %887 = vmatprep.subr.bf16.mxu1 %v911_v14 }
  0x1b   :  { %830 = vmatpush3.bf16.msra.mxu0 %v912_v15  ;;  %895 = vmatpush3.bf16.msra.mxu1 %v912_v15 }
  0x1c   :  { %831 = vmatprep.subr.bf16.mxu0 %v913_v16  ;;  %888 = vmatprep.subr.bf16.mxu1 %v913_v16 }
  0x1f   :  { %832 = vmatpush3.bf16.msra.mxu0 %v914_v17  ;;  %896 = vmatpush3.bf16.msra.mxu1 %v914_v17 }
  0x22   :  { %281 = vmatmul.mubr.bf16.vlgmr.msra.gmra.mxu0 %v915_v18  ;;  %313 = vmatmul.mubr.bf16.vlgmr.msra.gmra.mxu1 %v918_v19 }
  0x23   :  { %288 = vmatprep.mubr.bf16.mxu0 %v921_v20  ;;  %320 = vmatprep.mubr.bf16.mxu1 %v923_v21 }
  0x2a   :  { %289 = vmatmul.mubr.bf16.gmra.mxu0 %v925_v22  ;;  %321 = vmatmul.mubr.bf16.gmra.mxu1 %v926_v23 }
  0x2b   :  { %296 = vmatprep.mubr.bf16.mxu0 %v927_v24  ;;  %328 = vmatprep.mubr.bf16.mxu1 %v929_v25 }
  0x32   :  { %297 = vmatmul.mubr.bf16.gmra.mxu0 %v931_v26  ;;  %329 = vmatmul.mubr.bf16.gmra.mxu1 %v932_v27 }
  0x33   :  { %304 = vmatprep.mubr.bf16.mxu0 %v933_v28  ;;  %336 = vmatprep.mubr.bf16.mxu1 %v935_v29 }
  0x3a   :  { %305 = vmatmul.mubr.bf16.gmra.mxu0 %v937_v30  ;;  %337 = vmatmul.mubr.bf16.gmra.mxu1 %v938_v31 }
  0xe2   :  { %v833_v36 = vpop.f32.mrf.mxu0  ;;  %v857_v37 = vpop.f32.mrf.mxu1 }
  0xe4   :  { %v834_v40 = vpop.f32.mrf.mxu0  ;;  %v858_v41 = vpop.f32.mrf.mxu1 }
  0xe5   :  { %v835_v42 = vadd.f32 %v834_v40, %v833_v36 }
  0xe6   :  { %v836_v43 = vpop.f32.mrf.mxu0  ;;  %v860_v44 = vpop.f32.mrf.mxu1 }
  0xe7   :  { %v283_v45 = vadd.f32 %v835_v42, %v730_v39 }
  0xe8   :  { %v837_v46 = vpop.f32.mrf.mxu0  ;;  %v861_v47 = vpop.f32.mrf.mxu1 }
  0xe9   :  { %v563_v48 = vsel %vm515_vm0, %v283_v45, 0.0 }
  0xea   :  { %v815_v50 = vpack.c.bf16 %v940_v49, %v563_v48  ;;  %v674_v51 = vrot.slane %v563_v48, 4  ;;  %v680_v52 = vmul.f32 %v563_v48, %v563_v48  ;;  %v839_v53 = vpop.f32.mrf.mxu0  ;;  %v863_v54 = vpop.f32.mrf.mxu1 }
  0xec   :  { %816 = vst [vmem:[%s1115_s3] sm:$0xff] %v815_v50   ;;  %v675_v55 = vadd.f32 %v674_v51, %v563_v48  ;;  %v711_v56 = vrot.slane %v680_v52, 4  ;;  %v840_v57 = vpop.f32.mrf.mxu0  ;;  %v864_v58 = vpop.f32.mrf.mxu1 }
  0xee   :  { %v676_v59 = vrot.slane %v675_v55, 2  ;;  %v712_v60 = vadd.f32 %v711_v56, %v680_v52  ;;  %v842_v61 = vpop.f32.mrf.mxu0  ;;  %v866_v62 = vpop.f32.mrf.mxu1 }
  0xf0   :  { %v677_v63 = vadd.f32 %v676_v59, %v675_v55  ;;  %v713_v0 = vrot.slane %v712_v60, 2  ;;  %v843_v1 = vpop.f32.mrf.mxu0  ;;  %v867_v2 = vpop.f32.mrf.mxu1 }
  0xf2   :  { %v714_v3 = vadd.f32 %v713_v0, %v712_v60  ;;  %v845_v4 = vpop.f32.mrf.mxu0  ;;  %v869_v5 = vpop.f32.mrf.mxu1  ;;  %v678_v6 = vrot.slane %v677_v63, 1 }
  0xf4   :  { %v715_v7 = vrot.slane %v714_v3, 1  ;;  %v846_v8 = vpop.f32.mrf.mxu0  ;;  %v870_v9 = vpop.f32.mrf.mxu1  ;;  %v679_v13 = vadd.f32 %v678_v6, %v677_v63 }
  0xf6   :  { %v716_v10 = vadd.f32 %v715_v7, %v714_v3  ;;  %v848_v11 = vpop.f32.mrf.mxu0  ;;  %v872_v12 = vpop.f32.mrf.mxu1 }
  0xf8   :  { %v719_v14 = vsel %vm718_vm1, %v716_v10, 0.0  ;;  %v849_v15 = vpop.f32.mrf.mxu0  ;;  %v873_v16 = vpop.f32.mrf.mxu1 }
  0xf9   :  { %v720_v17 = vsel %vm717_vm2, %v679_v13, %v719_v14 }
  0xfa   :  { %721 = vst [vmem:[%s1117_s4] sm:$0xff] %v720_v17  ;;  %v851_v18 = vpop.f32.mrf.mxu0  ;;  %v875_v19 = vpop.f32.mrf.mxu1 }
  0xfc   :  { %v852_v20 = vpop.f32.mrf.mxu0  ;;  %v876_v21 = vpop.f32.mrf.mxu1 }
  0xfe   :  { %v854_v22 = vpop.f32.mrf.mxu0  ;;  %v878_v23 = vpop.f32.mrf.mxu1 }
 0x100   :  { %v855_v24 = vpop.f32.mrf.mxu0  ;;  %v879_v25 = vpop.f32.mrf.mxu1 }

// kernel: resnet_forward.211
= control target key start
LH: loop header
LB: loop body
LE: loop exit
PB: predicated region body
PF: predicated region fallthrough
CT: control target
= control target key end

     0   :  { %v1013_v1 = vmov 0   ;;  %v1014_v25 = vmov 0.0|0.0   ;;  %v51_v28 = vlaneseq  ;;  %s1192_s1 = inlined_call_operand.vmem [shape: bf16[128,256], index: 1, kind: input, shape index: {}]   ;;  %s1193_s0 = inlined_call_operand.vmem [shape: bf16[128,128], index: 0, kind: input, shape index: {}]   ;;  %s1194_s3 = inlined_call_operand.vmem [shape: bf16[128,256], index: 3, kind: output, shape index: {0}]   ;;  %s1195_s2 = inlined_call_operand.vmem [shape: f32[1,256], index: 2, kind: input, shape index: {}]   ;;  %s1196_s4 = inlined_call_operand.vmem [shape: f32[1,8,256], index: 4, kind: output, shape index: {1}]  }
   0x1   :  { %v981_v0 = vld [vmem:[%s1192_s1 + $0x74] ss:$8 sps:$4 sm:$0xff]   ;;  %221 = vmatprep.mubr.bf16.mxu0 %v1013_v1  ;;  %261 = vmatprep.mubr.bf16.mxu1 %v1013_v1  ;;  %v983_v2 = vld [vmem:[%s1192_s1 + $0x70] ss:$8 sps:$4 sm:$0xff]   ;;  %v984_v3 = vld [vmem:[%s1192_s1 + $0x64] ss:$8 sps:$4 sm:$0xff]   ;;  %v931_v26 = vcombine.low %v1014_v25, %v1014_v25  ;;  %v932_v27 = vcombine.high %v1014_v25, %v1014_v25 }
   0x2   :  { %189 = vmatprep.subr.bf16.mxu0 %v981_v0  ;;  %963 = vmatprep.subr.bf16.mxu1 %v981_v0  ;;  %v986_v4 = vld [vmem:[%s1192_s1 + $0x60] ss:$8 sps:$4 sm:$0xff]   ;;  %v987_v5 = vld [vmem:[%s1192_s1 + $0x54] ss:$8 sps:$4 sm:$0xff]   ;;  %v989_v6 = vld [vmem:[%s1192_s1 + $0x50] ss:$8 sps:$4 sm:$0xff]  }
   0x3   :  { %190 = vmatpush1.bf16.msra.mxu0 %v983_v2  ;;  %971 = vmatpush1.bf16.msra.mxu1 %v983_v2  ;;  %v990_v7 = vld [vmem:[%s1192_s1 + $0x44] ss:$8 sps:$4 sm:$0xff]   ;;  %v992_v8 = vld [vmem:[%s1192_s1 + $0x40] ss:$8 sps:$4 sm:$0xff]   ;;  %v993_v9 = vld [vmem:[%s1192_s1 + $0x34] ss:$8 sps:$4 sm:$0xff]  }
   0x4   :  { %191 = vmatprep.subr.bf16.mxu0 %v984_v3  ;;  %964 = vmatprep.subr.bf16.mxu1 %v984_v3  ;;  %v995_v10 = vld [vmem:[%s1192_s1 + $0x30] ss:$8 sps:$4 sm:$0xff]   ;;  %v996_v11 = vld [vmem:[%s1192_s1 + $0x24] ss:$8 sps:$4 sm:$0xff]   ;;  %v998_v12 = vld [vmem:[%s1192_s1 + $0x20] ss:$8 sps:$4 sm:$0xff]  }
   0x5   :  { %v999_v13 = vld [vmem:[%s1192_s1 + $0x14] ss:$8 sps:$4 sm:$0xff]   ;;  %v1001_v14 = vld [vmem:[%s1192_s1 + $0x10] ss:$8 sps:$4 sm:$0xff]   ;;  %v1002_v15 = vld [vmem:[%s1192_s1 + $0x4] ss:$8 sps:$4 sm:$0xff]  }
   0x6   :  { %v1004_v16 = vld [vmem:[%s1192_s1] ss:$8 sps:$4 sm:$0xff]   ;;  %v1009_v21 = vld [vmem:[%s1193_s0 + $0x10] sm:$0xff]   ;;  %v1011_v23 = vld [vmem:[%s1193_s0 + $0x18] sm:$0xff]   ;;  %742 = vst [vmem:[%s1194_s3 + $0x8] sm:$0xff] %v1014_v25  ;;  %v1165_v29 = vshrl.u32 %v51_v28, 7 }
   0x7   :  { %192 = vmatpush1.bf16.msra.mxu0 %v986_v4  ;;  %972 = vmatpush1.bf16.msra.mxu1 %v986_v4  ;;  %v1005_v17 = vld [vmem:[%s1193_s0] sm:$0xff]   ;;  %v1007_v19 = vld [vmem:[%s1193_s0 + $0x8] sm:$0xff]   ;;  %v1010_v22 = vld [vmem:[%s1193_s0 + $0x30] sm:$0xff]   ;;  %743 = vst [vmem:[%s1194_s3 + $0x10] sm:$0xff] %v931_v26 }
   0x8   :  { %193 = vmatprep.subr.bf16.mxu0 %v987_v5  ;;  %965 = vmatprep.subr.bf16.mxu1 %v987_v5  ;;  %v1006_v18 = vld [vmem:[%s1193_s0 + $0x20] sm:$0xff]   ;;  %v1008_v20 = vld [vmem:[%s1193_s0 + $0x28] sm:$0xff]   ;;  %v1012_v24 = vld [vmem:[%s1193_s0 + $0x38] sm:$0xff]   ;;  %744 = vst [vmem:[%s1194_s3 + $0x18] sm:$0xff] %v932_v27  ;;  %v53_v30 = vsub.s32 0, %v1165_v29  ;;  %v57_v32 = vsub.s32 1, %v1165_v29 }
   0x9   :  { %745 = vst [vmem:[%s1194_s3 + $0x20] sm:$0xff] %v931_v26  ;;  %746 = vst [vmem:[%s1194_s3 + $0x28] sm:$0xff] %v932_v27  ;;  %v49_v31 = vld [vmem:[%s1195_s2] sm:$0x3]  ;;  %vm565_vm0 = vcmp.lt.s32.totalorder %v1165_v29, 2  ;;  %vm874_vm1 = vcmp.eq.s32.totalorder %v1165_v29, 1 }
   0xa   :  { %747 = vst [vmem:[%s1194_s3 + $0x30] sm:$0xff] %v931_v26  ;;  %748 = vst [vmem:[%s1194_s3 + $0x38] sm:$0xff] %v932_v27  ;;  %v54_v33 = vrot.slane %v49_v31, %v53_v30  ;;  %v58_v34 = vrot.slane %v49_v31, %v57_v32  ;;  %vm873_vm2 = vcmp.eq.s32.totalorder %v1165_v29, 0 }
   0xb   :  { %194 = vmatpush1.bf16.msra.mxu0 %v989_v6  ;;  %973 = vmatpush1.bf16.msra.mxu1 %v989_v6  ;;  %749 = vst [vmem:[%s1194_s3 + $0x40] sm:$0xff] %v931_v26  ;;  %750 = vst [vmem:[%s1194_s3 + $0x48] sm:$0xff] %v932_v27 }
   0xc   :  { %195 = vmatprep.subr.bf16.mxu0 %v990_v7  ;;  %966 = vmatprep.subr.bf16.mxu1 %v990_v7  ;;  %751 = vst [vmem:[%s1194_s3 + $0x50] sm:$0xff] %v931_v26  ;;  %752 = vst [vmem:[%s1194_s3 + $0x58] sm:$0xff] %v932_v27 }
   0xd   :  { %753 = vst [vmem:[%s1194_s3 + $0x60] sm:$0xff] %v931_v26  ;;  %754 = vst [vmem:[%s1194_s3 + $0x68] sm:$0xff] %v932_v27 }
   0xe   :  { %755 = vst [vmem:[%s1194_s3 + $0x70] sm:$0xff] %v931_v26  ;;  %756 = vst [vmem:[%s1194_s3 + $0x78] sm:$0xff] %v932_v27 }
   0xf   :  { %196 = vmatpush1.bf16.msra.mxu0 %v992_v8  ;;  %974 = vmatpush1.bf16.msra.mxu1 %v992_v8 }
  0x10   :  { %197 = vmatprep.subr.bf16.mxu0 %v993_v9  ;;  %967 = vmatprep.subr.bf16.mxu1 %v993_v9 }
  0x13   :  { %198 = vmatpush1.bf16.msra.mxu0 %v995_v10  ;;  %975 = vmatpush1.bf16.msra.mxu1 %v995_v10 }
  0x14   :  { %199 = vmatprep.subr.bf16.mxu0 %v996_v11  ;;  %968 = vmatprep.subr.bf16.mxu1 %v996_v11 }
  0x17   :  { %200 = vmatpush1.bf16.msra.mxu0 %v998_v12  ;;  %976 = vmatpush1.bf16.msra.mxu1 %v998_v12 }
  0x18   :  { %201 = vmatprep.subr.bf16.mxu0 %v999_v13  ;;  %969 = vmatprep.subr.bf16.mxu1 %v999_v13 }
  0x1b   :  { %202 = vmatpush1.bf16.msra.mxu0 %v1001_v14  ;;  %977 = vmatpush1.bf16.msra.mxu1 %v1001_v14 }
  0x1c   :  { %203 = vmatprep.subr.bf16.mxu0 %v1002_v15  ;;  %970 = vmatprep.subr.bf16.mxu1 %v1002_v15 }
  0x1f   :  { %204 = vmatpush1.bf16.msra.mxu0 %v1004_v16  ;;  %978 = vmatpush1.bf16.msra.mxu1 %v1004_v16 }
  0x22   :  { %222 = vmatmul.mubr.bf16.vlgmr.msra.gmra.mxu0 %v1005_v17  ;;  %262 = vmatmul.mubr.bf16.vlgmr.msra.gmra.mxu1 %v1006_v18 }
  0x23   :  { %231 = vmatprep.mubr.bf16.mxu0 %v1013_v1  ;;  %271 = vmatprep.mubr.bf16.mxu1 %v1013_v1 }
  0x2a   :  { %232 = vmatmul.mubr.bf16.gmra.mxu0 %v1007_v19  ;;  %272 = vmatmul.mubr.bf16.gmra.mxu1 %v1008_v20 }
  0x2b   :  { %241 = vmatprep.mubr.bf16.mxu0 %v1013_v1  ;;  %281 = vmatprep.mubr.bf16.mxu1 %v1013_v1 }
  0x32   :  { %242 = vmatmul.mubr.bf16.gmra.mxu0 %v1009_v21  ;;  %282 = vmatmul.mubr.bf16.gmra.mxu1 %v1010_v22 }
  0x33   :  { %251 = vmatprep.mubr.bf16.mxu0 %v1013_v1  ;;  %291 = vmatprep.mubr.bf16.mxu1 %v1013_v1 }
  0x3a   :  { %252 = vmatmul.mubr.bf16.gmra.mxu0 %v1011_v23  ;;  %292 = vmatmul.mubr.bf16.gmra.mxu1 %v1012_v24 }
  0xe2   :  { %v223_v35 = vpop.f32.mrf.mxu0  ;;  %v263_v36 = vpop.f32.mrf.mxu1 }
  0xe3   :  { %v224_v37 = vadd.f32 %v223_v35, %v54_v33 }
  0xe4   :  { %v225_v38 = vpop.f32.mrf.mxu0  ;;  %v265_v39 = vpop.f32.mrf.mxu1 }
  0xe5   :  { %v613_v40 = vsel %vm565_vm0, %v224_v37, 0.0  ;;  %v226_v41 = vadd.f32 %v225_v38, %v58_v34 }
  0xe6   :  { %v772_v42 = vrot.slane %v613_v40, 4  ;;  %v799_v43 = vmul.f32 %v613_v40, %v613_v40  ;;  %v227_v44 = vpop.f32.mrf.mxu0  ;;  %v267_v45 = vpop.f32.mrf.mxu1 }
  0xe7   :  { %v614_v46 = vsel %vm565_vm0, %v226_v41, 0.0 }
  0xe8   :  { %v773_v47 = vadd.f32 %v772_v42, %v613_v40  ;;  %v846_v48 = vrot.slane %v799_v43, 4  ;;  %v961_v49 = vpack.c.bf16 %v614_v46, %v613_v40  ;;  %v793_v50 = vrot.slane %v614_v46, 4  ;;  %v229_v51 = vpop.f32.mrf.mxu0  ;;  %v269_v52 = vpop.f32.mrf.mxu1 }
  0xe9   :  { %v800_v53 = vmul.f32 %v614_v46, %v614_v46 }
  0xea   :  { %v774_v54 = vrot.slane %v773_v47, 2  ;;  %v847_v55 = vadd.f32 %v846_v48, %v799_v43  ;;  %741 = vst [vmem:[%s1194_s3] sm:$0xff] %v961_v49  ;;  %v794_v56 = vadd.f32 %v793_v50, %v614_v46  ;;  %v233_v57 = vpop.f32.mrf.mxu0  ;;  %v273_v58 = vpop.f32.mrf.mxu1 }
  0xeb   :  { %v867_v59 = vrot.slane %v800_v53, 4 }
  0xec   :  { %v775_v60 = vadd.f32 %v774_v54, %v773_v47  ;;  %v848_v61 = vrot.slane %v847_v55, 2  ;;  %v795_v62 = vrot.slane %v794_v56, 2  ;;  %v235_v63 = vpop.f32.mrf.mxu0  ;;  %v275_v0 = vpop.f32.mrf.mxu1 }
  0xed   :  { %v868_v1 = vadd.f32 %v867_v59, %v800_v53 }
  0xee   :  { %v849_v2 = vadd.f32 %v848_v61, %v847_v55  ;;  %v796_v3 = vadd.f32 %v795_v62, %v794_v56  ;;  %v237_v4 = vpop.f32.mrf.mxu0  ;;  %v277_v5 = vpop.f32.mrf.mxu1  ;;  %v776_v6 = vrot.slane %v775_v60, 1 }
  0xef   :  { %v869_v7 = vrot.slane %v868_v1, 2 }
  0xf0   :  { %v850_v8 = vrot.slane %v849_v2, 1  ;;  %v239_v9 = vpop.f32.mrf.mxu0  ;;  %v279_v10 = vpop.f32.mrf.mxu1  ;;  %v797_v13 = vrot.slane %v796_v3, 1  ;;  %v777_v16 = vadd.f32 %v776_v6, %v775_v60 }
  0xf1   :  { %v870_v11 = vadd.f32 %v869_v7, %v868_v1 }
  0xf2   :  { %v851_v12 = vadd.f32 %v850_v8, %v849_v2  ;;  %v243_v14 = vpop.f32.mrf.mxu0  ;;  %v283_v15 = vpop.f32.mrf.mxu1  ;;  %v798_v23 = vadd.f32 %v797_v13, %v796_v3 }
  0xf3   :  { %v871_v17 = vrot.slane %v870_v11, 1 }
  0xf4   :  { %v875_v18 = vsel %vm874_vm1, %v851_v12, 0.0  ;;  %v245_v19 = vpop.f32.mrf.mxu0  ;;  %v285_v20 = vpop.f32.mrf.mxu1 }
  0xf5   :  { %v877_v21 = vsel %vm873_vm2, %v777_v16, %v875_v18  ;;  %v872_v22 = vadd.f32 %v871_v17, %v870_v11 }
  0xf6   :  { %879 = vst [vmem:[%s1196_s4] sm:$0xff] %v877_v21  ;;  %v247_v24 = vpop.f32.mrf.mxu0  ;;  %v287_v25 = vpop.f32.mrf.mxu1 }
  0xf7   :  { %v876_v26 = vsel %vm874_vm1, %v872_v22, 0.0 }
  0xf8   :  { %v878_v27 = vsel %vm873_vm2, %v798_v23, %v876_v26  ;;  %v249_v28 = vpop.f32.mrf.mxu0  ;;  %v289_v30 = vpop.f32.mrf.mxu1 }
  0xf9   :  { %880 = vst [vmem:[%s1196_s4 + $0x8] sm:$0xff] %v878_v27 }
  0xfa   :  { %v253_v31 = vpop.f32.mrf.mxu0  ;;  %v293_v32 = vpop.f32.mrf.mxu1 }
  0xfc   :  { %v255_v33 = vpop.f32.mrf.mxu0  ;;  %v295_v34 = vpop.f32.mrf.mxu1 }
  0xfe   :  { %v257_v35 = vpop.f32.mrf.mxu0  ;;  %v297_v36 = vpop.f32.mrf.mxu1 }
 0x100   :  { %v259_v37 = vpop.f32.mrf.mxu0  ;;  %v299_v38 = vpop.f32.mrf.mxu1 }

// kernel: resnet_forward.213
= control target key start
LH: loop header
LB: loop body
LE: loop exit
PB: predicated region body
PF: predicated region fallthrough
CT: control target
= control target key end

     0   :  { %v64_v48 = vlaneseq  ;;  %s978_s1 = inlined_call_operand.vmem [shape: bf16[256,256], index: 1, kind: input, shape index: {}]   ;;  %s979_s0 = inlined_call_operand.vmem [shape: bf16[128,256], index: 0, kind: input, shape index: {}]   ;;  %s980_s2 = inlined_call_operand.vmem [shape: f32[1,256], index: 2, kind: input, shape index: {}]   ;;  %s981_s3 = inlined_call_operand.vmem [shape: bf16[128,256], index: 3, kind: output, shape index: {}]  }
   0x1   :  { %v655_v0 = vld [vmem:[%s978_s1 + $0x74] ss:$8 sps:$4 sm:$0xff]   ;;  %v657_v1 = vld [vmem:[%s978_s1 + $0x70] ss:$8 sps:$4 sm:$0xff]   ;;  %v658_v2 = vld [vmem:[%s978_s1 + $0x64] ss:$8 sps:$4 sm:$0xff]  }
   0x2   :  { %314 = vmatprep.subr.bf16.mxu0 %v655_v0  ;;  %623 = vmatprep.subr.bf16.mxu1 %v655_v0  ;;  %v660_v3 = vld [vmem:[%s978_s1 + $0x60] ss:$8 sps:$4 sm:$0xff]   ;;  %v661_v4 = vld [vmem:[%s978_s1 + $0x54] ss:$8 sps:$4 sm:$0xff]   ;;  %v663_v5 = vld [vmem:[%s978_s1 + $0x50] ss:$8 sps:$4 sm:$0xff]  }
   0x3   :  { %315 = vmatpush1.bf16.msra.mxu0 %v657_v1  ;;  %639 = vmatpush1.bf16.msra.mxu1 %v657_v1  ;;  %v664_v6 = vld [vmem:[%s978_s1 + $0x44] ss:$8 sps:$4 sm:$0xff]   ;;  %v666_v7 = vld [vmem:[%s978_s1 + $0x40] ss:$8 sps:$4 sm:$0xff]   ;;  %v667_v8 = vld [vmem:[%s978_s1 + $0x34] ss:$8 sps:$4 sm:$0xff]  }
   0x4   :  { %316 = vmatprep.subr.bf16.mxu0 %v658_v2  ;;  %624 = vmatprep.subr.bf16.mxu1 %v658_v2  ;;  %v669_v9 = vld [vmem:[%s978_s1 + $0x30] ss:$8 sps:$4 sm:$0xff]   ;;  %v670_v10 = vld [vmem:[%s978_s1 + $0x24] ss:$8 sps:$4 sm:$0xff]   ;;  %v672_v11 = vld [vmem:[%s978_s1 + $0x20] ss:$8 sps:$4 sm:$0xff]  }
   0x5   :  { %v673_v12 = vld [vmem:[%s978_s1 + $0x14] ss:$8 sps:$4 sm:$0xff]   ;;  %v705_v13 = vld [vmem:[%s979_s0 + $0x4] ss:$8 sps:$4 sm:$0xff]   ;;  %v675_v14 = vld [vmem:[%s978_s1 + $0x10] ss:$8 sps:$4 sm:$0xff]  }
   0x6   :  { %v708_v15 = vld [vmem:[%s979_s0 + $0x44] ss:$8 sps:$4 sm:$0xff]   ;;  %346 = vmatprep.mubr.bf16.mxu0 %v705_v13  ;;  %v678_v17 = vld [vmem:[%s978_s1] ss:$8 sps:$4 sm:$0xff]   ;;  %v679_v18 = vld [vmem:[%s978_s1 + $0xf4] ss:$8 sps:$4 sm:$0xff]  }
   0x7   :  { %317 = vmatpush1.bf16.msra.mxu0 %v660_v3  ;;  %640 = vmatpush1.bf16.msra.mxu1 %v660_v3  ;;  %v676_v16 = vld [vmem:[%s978_s1 + $0x4] ss:$8 sps:$4 sm:$0xff]   ;;  %v681_v19 = vld [vmem:[%s978_s1 + $0xf0] ss:$8 sps:$4 sm:$0xff]   ;;  %v684_v21 = vld [vmem:[%s978_s1 + $0xe0] ss:$8 sps:$4 sm:$0xff]  }
   0x8   :  { %318 = vmatprep.subr.bf16.mxu0 %v661_v4  ;;  %625 = vmatprep.subr.bf16.mxu1 %v661_v4  ;;  %v682_v20 = vld [vmem:[%s978_s1 + $0xe4] ss:$8 sps:$4 sm:$0xff]   ;;  %v685_v22 = vld [vmem:[%s978_s1 + $0xd4] ss:$8 sps:$4 sm:$0xff]   ;;  %v687_v23 = vld [vmem:[%s978_s1 + $0xd0] ss:$8 sps:$4 sm:$0xff]  }
   0x9   :  { %386 = vmatprep.mubr.bf16.mxu1 %v708_v15  ;;  %v688_v24 = vld [vmem:[%s978_s1 + $0xc4] ss:$8 sps:$4 sm:$0xff]   ;;  %v690_v25 = vld [vmem:[%s978_s1 + $0xc0] ss:$8 sps:$4 sm:$0xff]   ;;  %v691_v26 = vld [vmem:[%s978_s1 + $0xb4] ss:$8 sps:$4 sm:$0xff]  }
   0xa   :  { %v693_v27 = vld [vmem:[%s978_s1 + $0xb0] ss:$8 sps:$4 sm:$0xff]   ;;  %v694_v28 = vld [vmem:[%s978_s1 + $0xa4] ss:$8 sps:$4 sm:$0xff]   ;;  %v696_v29 = vld [vmem:[%s978_s1 + $0xa0] ss:$8 sps:$4 sm:$0xff]  }
   0xb   :  { %319 = vmatpush1.bf16.msra.mxu0 %v663_v5  ;;  %641 = vmatpush1.bf16.msra.mxu1 %v663_v5  ;;  %v697_v30 = vld [vmem:[%s978_s1 + $0x94] ss:$8 sps:$4 sm:$0xff]   ;;  %v699_v31 = vld [vmem:[%s978_s1 + $0x90] ss:$8 sps:$4 sm:$0xff]   ;;  %v700_v32 = vld [vmem:[%s978_s1 + $0x84] ss:$8 sps:$4 sm:$0xff]  }
   0xc   :  { %320 = vmatprep.subr.bf16.mxu0 %v664_v6  ;;  %626 = vmatprep.subr.bf16.mxu1 %v664_v6  ;;  %v702_v33 = vld [vmem:[%s978_s1 + $0x80] ss:$8 sps:$4 sm:$0xff]   ;;  %v709_v36 = vld [vmem:[%s979_s0 + $0x14] ss:$8 sps:$4 sm:$0xff]   ;;  %v713_v38 = vld [vmem:[%s979_s0 + $0x10] ss:$8 sps:$4 sm:$0xff]  }
   0xd   :  { %v703_v34 = vld [vmem:[%s979_s0] ss:$8 sps:$4 sm:$0xff]   ;;  %v711_v37 = vld [vmem:[%s979_s0 + $0x54] ss:$8 sps:$4 sm:$0xff]   ;;  %v714_v39 = vld [vmem:[%s979_s0 + $0x50] ss:$8 sps:$4 sm:$0xff]  }
   0xe   :  { %v706_v35 = vld [vmem:[%s979_s0 + $0x40] ss:$8 sps:$4 sm:$0xff]   ;;  %v715_v40 = vld [vmem:[%s979_s0 + $0x24] ss:$8 sps:$4 sm:$0xff]   ;;  %v721_v44 = vld [vmem:[%s979_s0 + $0x34] ss:$8 sps:$4 sm:$0xff]  }
   0xf   :  { %321 = vmatpush1.bf16.msra.mxu0 %v666_v7  ;;  %642 = vmatpush1.bf16.msra.mxu1 %v666_v7  ;;  %v717_v41 = vld [vmem:[%s979_s0 + $0x64] ss:$8 sps:$4 sm:$0xff]   ;;  %v719_v42 = vld [vmem:[%s979_s0 + $0x20] ss:$8 sps:$4 sm:$0xff]   ;;  %v723_v45 = vld [vmem:[%s979_s0 + $0x74] ss:$8 sps:$4 sm:$0xff]  }
  0x10   :  { %322 = vmatprep.subr.bf16.mxu0 %v667_v8  ;;  %627 = vmatprep.subr.bf16.mxu1 %v667_v8  ;;  %v720_v43 = vld [vmem:[%s979_s0 + $0x60] ss:$8 sps:$4 sm:$0xff]   ;;  %v725_v46 = vld [vmem:[%s979_s0 + $0x30] ss:$8 sps:$4 sm:$0xff]   ;;  %v65_v49 = vshrl.u32 %v64_v48, 7 }
  0x11   :  { %v726_v47 = vld [vmem:[%s979_s0 + $0x70] ss:$8 sps:$4 sm:$0xff]   ;;  %v62_v52 = vld [vmem:[%s980_s2] sm:$0x3] }
  0x12   :  { %v66_v50 = vsub.s32 0, %v65_v49  ;;  %v70_v51 = vsub.s32 1, %v65_v49 }
  0x13   :  { %323 = vmatpush1.bf16.msra.mxu0 %v669_v9  ;;  %643 = vmatpush1.bf16.msra.mxu1 %v669_v9 }
  0x14   :  { %324 = vmatprep.subr.bf16.mxu0 %v670_v10  ;;  %628 = vmatprep.subr.bf16.mxu1 %v670_v10  ;;  %v894_v53 = vrot.slane %v62_v52, %v66_v50  ;;  %v896_v54 = vrot.slane %v62_v52, %v70_v51 }
  0x17   :  { %325 = vmatpush1.bf16.msra.mxu0 %v672_v11  ;;  %644 = vmatpush1.bf16.msra.mxu1 %v672_v11 }
  0x18   :  { %326 = vmatprep.subr.bf16.mxu0 %v673_v12  ;;  %629 = vmatprep.subr.bf16.mxu1 %v673_v12 }
  0x1b   :  { %327 = vmatpush1.bf16.msra.mxu0 %v675_v14  ;;  %645 = vmatpush1.bf16.msra.mxu1 %v675_v14 }
  0x1c   :  { %328 = vmatprep.subr.bf16.mxu0 %v676_v16  ;;  %630 = vmatprep.subr.bf16.mxu1 %v676_v16 }
  0x1f   :  { %329 = vmatpush1.bf16.msra.mxu0 %v678_v17  ;;  %646 = vmatpush1.bf16.msra.mxu1 %v678_v17 }
  0x20   :  { %330 = vmatprep.subr.bf16.mxu0 %v679_v18  ;;  %631 = vmatprep.subr.bf16.mxu1 %v679_v18 }
  0x23   :  { %331 = vmatpush2.bf16.msra.mxu0 %v681_v19  ;;  %647 = vmatpush2.bf16.msra.mxu1 %v681_v19 }
  0x24   :  { %332 = vmatprep.subr.bf16.mxu0 %v682_v20  ;;  %632 = vmatprep.subr.bf16.mxu1 %v682_v20 }
  0x27   :  { %333 = vmatpush2.bf16.msra.mxu0 %v684_v21  ;;  %648 = vmatpush2.bf16.msra.mxu1 %v684_v21 }
  0x28   :  { %334 = vmatprep.subr.bf16.mxu0 %v685_v22  ;;  %633 = vmatprep.subr.bf16.mxu1 %v685_v22 }
  0x2b   :  { %335 = vmatpush2.bf16.msra.mxu0 %v687_v23  ;;  %649 = vmatpush2.bf16.msra.mxu1 %v687_v23 }
  0x2c   :  { %336 = vmatprep.subr.bf16.mxu0 %v688_v24  ;;  %634 = vmatprep.subr.bf16.mxu1 %v688_v24 }
  0x2f   :  { %337 = vmatpush2.bf16.msra.mxu0 %v690_v25  ;;  %650 = vmatpush2.bf16.msra.mxu1 %v690_v25 }
  0x30   :  { %338 = vmatprep.subr.bf16.mxu0 %v691_v26  ;;  %635 = vmatprep.subr.bf16.mxu1 %v691_v26 }
  0x33   :  { %339 = vmatpush2.bf16.msra.mxu0 %v693_v27  ;;  %651 = vmatpush2.bf16.msra.mxu1 %v693_v27 }
  0x34   :  { %340 = vmatprep.subr.bf16.mxu0 %v694_v28  ;;  %636 = vmatprep.subr.bf16.mxu1 %v694_v28 }
  0x37   :  { %341 = vmatpush2.bf16.msra.mxu0 %v696_v29  ;;  %652 = vmatpush2.bf16.msra.mxu1 %v696_v29 }
  0x38   :  { %342 = vmatprep.subr.bf16.mxu0 %v697_v30  ;;  %637 = vmatprep.subr.bf16.mxu1 %v697_v30 }
  0x3b   :  { %343 = vmatpush2.bf16.msra.mxu0 %v699_v31  ;;  %653 = vmatpush2.bf16.msra.mxu1 %v699_v31 }
  0x3c   :  { %344 = vmatprep.subr.bf16.mxu0 %v700_v32  ;;  %638 = vmatprep.subr.bf16.mxu1 %v700_v32 }
  0x3f   :  { %345 = vmatpush2.bf16.msra.mxu0 %v702_v33  ;;  %654 = vmatpush2.bf16.msra.mxu1 %v702_v33 }
  0x42   :  { %347 = vmatmul.mubr.bf16.vlgmr.msra.gmra.mxu0 %v703_v34  ;;  %387 = vmatmul.mubr.bf16.vlgmr.msra.gmra.mxu1 %v706_v35 }
  0x43   :  { %356 = vmatprep.mubr.bf16.mxu0 %v709_v36  ;;  %396 = vmatprep.mubr.bf16.mxu1 %v711_v37 }
  0x4a   :  { %357 = vmatmul.mubr.bf16.gmra.mxu0 %v713_v38  ;;  %397 = vmatmul.mubr.bf16.gmra.mxu1 %v714_v39 }
  0x4b   :  { %366 = vmatprep.mubr.bf16.mxu0 %v715_v40  ;;  %406 = vmatprep.mubr.bf16.mxu1 %v717_v41 }
  0x52   :  { %367 = vmatmul.mubr.bf16.gmra.mxu0 %v719_v42  ;;  %407 = vmatmul.mubr.bf16.gmra.mxu1 %v720_v43 }
  0x53   :  { %376 = vmatprep.mubr.bf16.mxu0 %v721_v44  ;;  %416 = vmatprep.mubr.bf16.mxu1 %v723_v45 }
  0x5a   :  { %377 = vmatmul.mubr.bf16.gmra.mxu0 %v725_v46  ;;  %417 = vmatmul.mubr.bf16.gmra.mxu1 %v726_v47 }
 0x102   :  { %v348_v55 = vpop.f32.mrf.mxu0  ;;  %v388_v56 = vpop.f32.mrf.mxu1 }
 0x103   :  { %v349_v59 = vadd.f32 %v348_v55, %v894_v53  ;;  %v389_v60 = vadd.f32 %v388_v56, %v894_v53 }
 0x104   :  { %v350_v57 = vpop.f32.mrf.mxu0  ;;  %v390_v58 = vpop.f32.mrf.mxu1 }
 0x105   :  { %v351_v61 = vadd.f32 %v350_v57, %v896_v54  ;;  %v391_v62 = vadd.f32 %v390_v58, %v896_v54 }
 0x106   :  { %v352_v63 = vpop.f32.mrf.mxu0  ;;  %v392_v0 = vpop.f32.mrf.mxu1 }
 0x107   :  { %v607_v1 = vpack.c.bf16 %v351_v61, %v349_v59  ;;  %v615_v2 = vpack.c.bf16 %v391_v62, %v389_v60  ;;  %v353_v5 = vadd.f32 %v352_v63, %v894_v53  ;;  %v393_v6 = vadd.f32 %v392_v0, %v894_v53 }
 0x108   :  { %v354_v3 = vpop.f32.mrf.mxu0  ;;  %v394_v4 = vpop.f32.mrf.mxu1 }
 0x109   :  { %523 = vst [vmem:[%s981_s3] sm:$0xff] %v607_v1  ;;  %531 = vst [vmem:[%s981_s3 + $0x40] sm:$0xff] %v615_v2  ;;  %v355_v7 = vadd.f32 %v354_v3, %v896_v54  ;;  %v395_v8 = vadd.f32 %v394_v4, %v896_v54 }
 0x10a   :  { %v358_v9 = vpop.f32.mrf.mxu0  ;;  %v398_v10 = vpop.f32.mrf.mxu1 }
 0x10b   :  { %v608_v11 = vpack.c.bf16 %v355_v7, %v353_v5  ;;  %v616_v12 = vpack.c.bf16 %v395_v8, %v393_v6  ;;  %v359_v15 = vadd.f32 %v358_v9, %v894_v53  ;;  %v399_v16 = vadd.f32 %v398_v10, %v894_v53 }
 0x10c   :  { %v360_v13 = vpop.f32.mrf.mxu0  ;;  %v400_v14 = vpop.f32.mrf.mxu1 }
 0x10d   :  { %524 = vst [vmem:[%s981_s3 + $0x8] sm:$0xff] %v608_v11  ;;  %532 = vst [vmem:[%s981_s3 + $0x48] sm:$0xff] %v616_v12  ;;  %v361_v17 = vadd.f32 %v360_v13, %v896_v54  ;;  %v401_v18 = vadd.f32 %v400_v14, %v896_v54 }
 0x10e   :  { %v362_v19 = vpop.f32.mrf.mxu0  ;;  %v402_v20 = vpop.f32.mrf.mxu1 }
 0x10f   :  { %v609_v21 = vpack.c.bf16 %v361_v17, %v359_v15  ;;  %v617_v22 = vpack.c.bf16 %v401_v18, %v399_v16  ;;  %v363_v25 = vadd.f32 %v362_v19, %v894_v53  ;;  %v403_v26 = vadd.f32 %v402_v20, %v894_v53 }
 0x110   :  { %v364_v23 = vpop.f32.mrf.mxu0  ;;  %v404_v24 = vpop.f32.mrf.mxu1 }
 0x111   :  { %525 = vst [vmem:[%s981_s3 + $0x10] sm:$0xff] %v609_v21  ;;  %533 = vst [vmem:[%s981_s3 + $0x50] sm:$0xff] %v617_v22  ;;  %v365_v27 = vadd.f32 %v364_v23, %v896_v54  ;;  %v405_v28 = vadd.f32 %v404_v24, %v896_v54 }
 0x112   :  { %v368_v29 = vpop.f32.mrf.mxu0  ;;  %v408_v30 = vpop.f32.mrf.mxu1 }
 0x113   :  { %v610_v31 = vpack.c.bf16 %v365_v27, %v363_v25  ;;  %v618_v32 = vpack.c.bf16 %v405_v28, %v403_v26  ;;  %v369_v35 = vadd.f32 %v368_v29, %v894_v53  ;;  %v409_v36 = vadd.f32 %v408_v30, %v894_v53 }
 0x114   :  { %v370_v33 = vpop.f32.mrf.mxu0  ;;  %v410_v34 = vpop.f32.mrf.mxu1 }
 0x115   :  { %526 = vst [vmem:[%s981_s3 + $0x18] sm:$0xff] %v610_v31  ;;  %534 = vst [vmem:[%s981_s3 + $0x58] sm:$0xff] %v618_v32  ;;  %v371_v37 = vadd.f32 %v370_v33, %v896_v54  ;;  %v411_v38 = vadd.f32 %v410_v34, %v896_v54 }
 0x116   :  { %v372_v39 = vpop.f32.mrf.mxu0  ;;  %v412_v40 = vpop.f32.mrf.mxu1 }
 0x117   :  { %v611_v41 = vpack.c.bf16 %v371_v37, %v369_v35  ;;  %v619_v42 = vpack.c.bf16 %v411_v38, %v409_v36  ;;  %v373_v45 = vadd.f32 %v372_v39, %v894_v53  ;;  %v413_v46 = vadd.f32 %v412_v40, %v894_v53 }
 0x118   :  { %v374_v43 = vpop.f32.mrf.mxu0  ;;  %v414_v44 = vpop.f32.mrf.mxu1 }
 0x119   :  { %527 = vst [vmem:[%s981_s3 + $0x20] sm:$0xff] %v611_v41  ;;  %535 = vst [vmem:[%s981_s3 + $0x60] sm:$0xff] %v619_v42  ;;  %v375_v47 = vadd.f32 %v374_v43, %v896_v54  ;;  %v415_v48 = vadd.f32 %v414_v44, %v896_v54 }
 0x11a   :  { %v378_v49 = vpop.f32.mrf.mxu0  ;;  %v418_v50 = vpop.f32.mrf.mxu1 }
 0x11b   :  { %v612_v51 = vpack.c.bf16 %v375_v47, %v373_v45  ;;  %v620_v52 = vpack.c.bf16 %v415_v48, %v413_v46  ;;  %v379_v57 = vadd.f32 %v378_v49, %v894_v53  ;;  %v419_v58 = vadd.f32 %v418_v50, %v894_v53 }
 0x11c   :  { %v380_v55 = vpop.f32.mrf.mxu0  ;;  %v420_v56 = vpop.f32.mrf.mxu1 }
 0x11d   :  { %528 = vst [vmem:[%s981_s3 + $0x28] sm:$0xff] %v612_v51  ;;  %536 = vst [vmem:[%s981_s3 + $0x68] sm:$0xff] %v620_v52  ;;  %v381_v59 = vadd.f32 %v380_v55, %v896_v54  ;;  %v421_v60 = vadd.f32 %v420_v56, %v896_v54 }
 0x11e   :  { %v382_v61 = vpop.f32.mrf.mxu0  ;;  %v422_v62 = vpop.f32.mrf.mxu1 }
 0x11f   :  { %v613_v63 = vpack.c.bf16 %v381_v59, %v379_v57  ;;  %v621_v0 = vpack.c.bf16 %v421_v60, %v419_v58  ;;  %v383_v3 = vadd.f32 %v382_v61, %v894_v53  ;;  %v423_v4 = vadd.f32 %v422_v62, %v894_v53 }
 0x120   :  { %v384_v1 = vpop.f32.mrf.mxu0  ;;  %v424_v2 = vpop.f32.mrf.mxu1 }
 0x121   :  { %529 = vst [vmem:[%s981_s3 + $0x30] sm:$0xff] %v613_v63  ;;  %537 = vst [vmem:[%s981_s3 + $0x70] sm:$0xff] %v621_v0  ;;  %v385_v5 = vadd.f32 %v384_v1, %v896_v54  ;;  %v425_v6 = vadd.f32 %v424_v2, %v896_v54 }
 0x123   :  { %v614_v7 = vpack.c.bf16 %v385_v5, %v383_v3  ;;  %v622_v8 = vpack.c.bf16 %v425_v6, %v423_v4 }
 0x125   :  { %530 = vst [vmem:[%s981_s3 + $0x38] sm:$0xff] %v614_v7  ;;  %538 = vst [vmem:[%s981_s3 + $0x78] sm:$0xff] %v622_v8 }

// kernel: resnet_forward.227
= control target key start
LH: loop header
LB: loop body
LE: loop exit
PB: predicated region body
PF: predicated region fallthrough
CT: control target
= control target key end

     0   :  { %s701_s1 = inlined_call_operand.vmem [shape: bf16[256,128], index: 1, kind: input, shape index: {}]   ;;  %s702_s0 = inlined_call_operand.vmem [shape: bf16[128,256], index: 0, kind: input, shape index: {}]   ;;  %s703_s2 = inlined_call_operand.vmem [shape: f32[1,128], index: 2, kind: input, shape index: {}]   ;;  %s704_s3 = inlined_call_operand.vmem [shape: f32[128,128], index: 3, kind: output, shape index: {}]  }
   0x1   :  { %v476_v0 = vld [vmem:[%s701_s1 + $0x78] sm:$0xff]   ;;  %v478_v2 = vld [vmem:[%s701_s1 + $0x70] sm:$0xff]   ;;  %v480_v4 = vld [vmem:[%s701_s1 + $0x68] sm:$0xff]  }
   0x2   :  { %v477_v1 = vld [vmem:[%s701_s1 + $0x38] sm:$0xff]   ;;  %396 = vmatprep.subr.bf16.mxu0 %v476_v0  ;;  %460 = vmatprep.subr.bf16.mxu1 %v476_v0  ;;  %v479_v3 = vld [vmem:[%s701_s1 + $0x30] sm:$0xff]   ;;  %v481_v5 = vld [vmem:[%s701_s1 + $0x28] sm:$0xff]  }
   0x3   :  { %397 = vmatpush3.bf16.msra.mxu0 %v477_v1  ;;  %468 = vmatpush3.bf16.msra.mxu1 %v477_v1  ;;  %v482_v6 = vld [vmem:[%s701_s1 + $0x60] sm:$0xff]   ;;  %v484_v8 = vld [vmem:[%s701_s1 + $0x58] sm:$0xff]   ;;  %v486_v10 = vld [vmem:[%s701_s1 + $0x50] sm:$0xff]  }
   0x4   :  { %398 = vmatprep.subr.bf16.mxu0 %v478_v2  ;;  %461 = vmatprep.subr.bf16.mxu1 %v478_v2  ;;  %v483_v7 = vld [vmem:[%s701_s1 + $0x20] sm:$0xff]   ;;  %v485_v9 = vld [vmem:[%s701_s1 + $0x18] sm:$0xff]   ;;  %v487_v13 = vld [vmem:[%s701_s1 + $0x10] sm:$0xff]  }
   0x5   :  { %v494_v11 = vld [vmem:[%s702_s0 + $0x4] ss:$8 sps:$4 sm:$0xff]   ;;  %v492_v18 = vld [vmem:[%s702_s0] ss:$8 sps:$4 sm:$0xff]   ;;  %v498_v20 = vld [vmem:[%s702_s0 + $0x14] ss:$8 sps:$4 sm:$0xff]  }
   0x6   :  { %v497_v12 = vld [vmem:[%s702_s0 + $0x44] ss:$8 sps:$4 sm:$0xff]   ;;  %278 = vmatprep.mubr.bf16.mxu0 %v494_v11  ;;  %v495_v19 = vld [vmem:[%s702_s0 + $0x40] ss:$8 sps:$4 sm:$0xff]   ;;  %v500_v21 = vld [vmem:[%s702_s0 + $0x54] ss:$8 sps:$4 sm:$0xff]  }
   0x7   :  { %399 = vmatpush3.bf16.msra.mxu0 %v479_v3  ;;  %469 = vmatpush3.bf16.msra.mxu1 %v479_v3  ;;  %v488_v14 = vld [vmem:[%s701_s1 + $0x48] sm:$0xff]   ;;  %v490_v16 = vld [vmem:[%s701_s1 + $0x40] sm:$0xff]   ;;  %v502_v22 = vld [vmem:[%s702_s0 + $0x10] ss:$8 sps:$4 sm:$0xff]  }
   0x8   :  { %400 = vmatprep.subr.bf16.mxu0 %v480_v4  ;;  %462 = vmatprep.subr.bf16.mxu1 %v480_v4  ;;  %v489_v15 = vld [vmem:[%s701_s1 + $0x8] sm:$0xff]   ;;  %v491_v17 = vld [vmem:[%s701_s1] sm:$0xff]   ;;  %v503_v23 = vld [vmem:[%s702_s0 + $0x50] ss:$8 sps:$4 sm:$0xff]  }
   0x9   :  { %310 = vmatprep.mubr.bf16.mxu1 %v497_v12  ;;  %v504_v24 = vld [vmem:[%s702_s0 + $0x24] ss:$8 sps:$4 sm:$0xff]   ;;  %v508_v26 = vld [vmem:[%s702_s0 + $0x20] ss:$8 sps:$4 sm:$0xff]   ;;  %v510_v28 = vld [vmem:[%s702_s0 + $0x34] ss:$8 sps:$4 sm:$0xff]  }
   0xa   :  { %v506_v25 = vld [vmem:[%s702_s0 + $0x64] ss:$8 sps:$4 sm:$0xff]   ;;  %v509_v27 = vld [vmem:[%s702_s0 + $0x60] ss:$8 sps:$4 sm:$0xff]   ;;  %v512_v29 = vld [vmem:[%s702_s0 + $0x74] ss:$8 sps:$4 sm:$0xff]  }
   0xb   :  { %401 = vmatpush3.bf16.msra.mxu0 %v481_v5  ;;  %470 = vmatpush3.bf16.msra.mxu1 %v481_v5  ;;  %v514_v30 = vld [vmem:[%s702_s0 + $0x30] ss:$8 sps:$4 sm:$0xff]   ;;  %v635_v34 = vld [vmem:[%s703_s2] ss:$0 sm:$0xff] }
   0xc   :  { %402 = vmatprep.subr.bf16.mxu0 %v482_v6  ;;  %463 = vmatprep.subr.bf16.mxu1 %v482_v6  ;;  %v515_v31 = vld [vmem:[%s702_s0 + $0x70] ss:$8 sps:$4 sm:$0xff]  }
   0xf   :  { %403 = vmatpush3.bf16.msra.mxu0 %v483_v7  ;;  %471 = vmatpush3.bf16.msra.mxu1 %v483_v7 }
  0x10   :  { %404 = vmatprep.subr.bf16.mxu0 %v484_v8  ;;  %464 = vmatprep.subr.bf16.mxu1 %v484_v8 }
  0x13   :  { %405 = vmatpush3.bf16.msra.mxu0 %v485_v9  ;;  %472 = vmatpush3.bf16.msra.mxu1 %v485_v9 }
  0x14   :  { %406 = vmatprep.subr.bf16.mxu0 %v486_v10  ;;  %465 = vmatprep.subr.bf16.mxu1 %v486_v10 }
  0x17   :  { %407 = vmatpush3.bf16.msra.mxu0 %v487_v13  ;;  %473 = vmatpush3.bf16.msra.mxu1 %v487_v13 }
  0x18   :  { %408 = vmatprep.subr.bf16.mxu0 %v488_v14  ;;  %466 = vmatprep.subr.bf16.mxu1 %v488_v14 }
  0x1b   :  { %409 = vmatpush3.bf16.msra.mxu0 %v489_v15  ;;  %474 = vmatpush3.bf16.msra.mxu1 %v489_v15 }
  0x1c   :  { %410 = vmatprep.subr.bf16.mxu0 %v490_v16  ;;  %467 = vmatprep.subr.bf16.mxu1 %v490_v16 }
  0x1f   :  { %411 = vmatpush3.bf16.msra.mxu0 %v491_v17  ;;  %475 = vmatpush3.bf16.msra.mxu1 %v491_v17 }
  0x22   :  { %279 = vmatmul.mubr.bf16.vlgmr.msra.gmra.mxu0 %v492_v18  ;;  %311 = vmatmul.mubr.bf16.vlgmr.msra.gmra.mxu1 %v495_v19 }
  0x23   :  { %286 = vmatprep.mubr.bf16.mxu0 %v498_v20  ;;  %318 = vmatprep.mubr.bf16.mxu1 %v500_v21 }
  0x2a   :  { %287 = vmatmul.mubr.bf16.gmra.mxu0 %v502_v22  ;;  %319 = vmatmul.mubr.bf16.gmra.mxu1 %v503_v23 }
  0x2b   :  { %294 = vmatprep.mubr.bf16.mxu0 %v504_v24  ;;  %326 = vmatprep.mubr.bf16.mxu1 %v506_v25 }
  0x32   :  { %295 = vmatmul.mubr.bf16.gmra.mxu0 %v508_v26  ;;  %327 = vmatmul.mubr.bf16.gmra.mxu1 %v509_v27 }
  0x33   :  { %302 = vmatprep.mubr.bf16.mxu0 %v510_v28  ;;  %334 = vmatprep.mubr.bf16.mxu1 %v512_v29 }
  0x3a   :  { %303 = vmatmul.mubr.bf16.gmra.mxu0 %v514_v30  ;;  %335 = vmatmul.mubr.bf16.gmra.mxu1 %v515_v31 }
  0xe2   :  { %v412_v32 = vpop.f32.mrf.mxu0  ;;  %v436_v33 = vpop.f32.mrf.mxu1 }
  0xe4   :  { %v413_v35 = vpop.f32.mrf.mxu0  ;;  %v437_v36 = vpop.f32.mrf.mxu1 }
  0xe5   :  { %v414_v37 = vadd.f32 %v413_v35, %v412_v32  ;;  %v438_v38 = vadd.f32 %v437_v36, %v436_v33 }
  0xe6   :  { %v415_v39 = vpop.f32.mrf.mxu0  ;;  %v439_v40 = vpop.f32.mrf.mxu1 }
  0xe7   :  { %v281_v41 = vadd.f32 %v414_v37, %v635_v34  ;;  %v313_v42 = vadd.f32 %v438_v38, %v635_v34 }
  0xe8   :  { %v416_v43 = vpop.f32.mrf.mxu0  ;;  %v440_v44 = vpop.f32.mrf.mxu1 }
  0xe9   :  { %343 = vst [vmem:[%s704_s3] sm:$0xff] %v281_v41  ;;  %351 = vst [vmem:[%s704_s3 + $0x40] sm:$0xff] %v313_v42  ;;  %v417_v45 = vadd.f32 %v416_v43, %v415_v39  ;;  %v441_v46 = vadd.f32 %v440_v44, %v439_v40 }
  0xea   :  { %v418_v47 = vpop.f32.mrf.mxu0  ;;  %v442_v48 = vpop.f32.mrf.mxu1 }
  0xeb   :  { %v284_v49 = vadd.f32 %v417_v45, %v635_v34  ;;  %v316_v50 = vadd.f32 %v441_v46, %v635_v34 }
  0xec   :  { %v419_v51 = vpop.f32.mrf.mxu0  ;;  %v443_v52 = vpop.f32.mrf.mxu1 }
  0xed   :  { %344 = vst [vmem:[%s704_s3 + $0x8] sm:$0xff] %v284_v49  ;;  %352 = vst [vmem:[%s704_s3 + $0x48] sm:$0xff] %v316_v50  ;;  %v420_v53 = vadd.f32 %v419_v51, %v418_v47  ;;  %v444_v54 = vadd.f32 %v443_v52, %v442_v48 }
  0xee   :  { %v421_v55 = vpop.f32.mrf.mxu0  ;;  %v445_v56 = vpop.f32.mrf.mxu1 }
  0xef   :  { %v289_v57 = vadd.f32 %v420_v53, %v635_v34  ;;  %v321_v58 = vadd.f32 %v444_v54, %v635_v34 }
  0xf0   :  { %v422_v59 = vpop.f32.mrf.mxu0  ;;  %v446_v60 = vpop.f32.mrf.mxu1 }
  0xf1   :  { %345 = vst [vmem:[%s704_s3 + $0x10] sm:$0xff] %v289_v57  ;;  %353 = vst [vmem:[%s704_s3 + $0x50] sm:$0xff] %v321_v58  ;;  %v423_v61 = vadd.f32 %v422_v59, %v421_v55  ;;  %v447_v62 = vadd.f32 %v446_v60, %v445_v56 }
  0xf2   :  { %v424_v63 = vpop.f32.mrf.mxu0  ;;  %v448_v0 = vpop.f32.mrf.mxu1 }
  0xf3   :  { %v292_v1 = vadd.f32 %v423_v61, %v635_v34  ;;  %v324_v2 = vadd.f32 %v447_v62, %v635_v34 }
  0xf4   :  { %v425_v3 = vpop.f32.mrf.mxu0  ;;  %v449_v4 = vpop.f32.mrf.mxu1 }
  0xf5   :  { %346 = vst [vmem:[%s704_s3 + $0x18] sm:$0xff] %v292_v1  ;;  %354 = vst [vmem:[%s704_s3 + $0x58] sm:$0xff] %v324_v2  ;;  %v426_v5 = vadd.f32 %v425_v3, %v424_v63  ;;  %v450_v6 = vadd.f32 %v449_v4, %v448_v0 }
  0xf6   :  { %v427_v7 = vpop.f32.mrf.mxu0  ;;  %v451_v8 = vpop.f32.mrf.mxu1 }
  0xf7   :  { %v297_v9 = vadd.f32 %v426_v5, %v635_v34  ;;  %v329_v10 = vadd.f32 %v450_v6, %v635_v34 }
  0xf8   :  { %v428_v11 = vpop.f32.mrf.mxu0  ;;  %v452_v12 = vpop.f32.mrf.mxu1 }
  0xf9   :  { %347 = vst [vmem:[%s704_s3 + $0x20] sm:$0xff] %v297_v9  ;;  %355 = vst [vmem:[%s704_s3 + $0x60] sm:$0xff] %v329_v10  ;;  %v429_v13 = vadd.f32 %v428_v11, %v427_v7  ;;  %v453_v14 = vadd.f32 %v452_v12, %v451_v8 }
  0xfa   :  { %v430_v15 = vpop.f32.mrf.mxu0  ;;  %v454_v16 = vpop.f32.mrf.mxu1 }
  0xfb   :  { %v300_v17 = vadd.f32 %v429_v13, %v635_v34  ;;  %v332_v18 = vadd.f32 %v453_v14, %v635_v34 }
  0xfc   :  { %v431_v19 = vpop.f32.mrf.mxu0  ;;  %v455_v20 = vpop.f32.mrf.mxu1 }
  0xfd   :  { %348 = vst [vmem:[%s704_s3 + $0x28] sm:$0xff] %v300_v17  ;;  %356 = vst [vmem:[%s704_s3 + $0x68] sm:$0xff] %v332_v18  ;;  %v432_v21 = vadd.f32 %v431_v19, %v430_v15  ;;  %v456_v22 = vadd.f32 %v455_v20, %v454_v16 }
  0xfe   :  { %v433_v23 = vpop.f32.mrf.mxu0  ;;  %v457_v24 = vpop.f32.mrf.mxu1 }
  0xff   :  { %v305_v25 = vadd.f32 %v432_v21, %v635_v34  ;;  %v337_v26 = vadd.f32 %v456_v22, %v635_v34 }
 0x100   :  { %v434_v27 = vpop.f32.mrf.mxu0  ;;  %v458_v28 = vpop.f32.mrf.mxu1 }
 0x101   :  { %349 = vst [vmem:[%s704_s3 + $0x30] sm:$0xff] %v305_v25  ;;  %357 = vst [vmem:[%s704_s3 + $0x70] sm:$0xff] %v337_v26  ;;  %v435_v29 = vadd.f32 %v434_v27, %v433_v23  ;;  %v459_v30 = vadd.f32 %v458_v28, %v457_v24 }
 0x103   :  { %v308_v31 = vadd.f32 %v435_v29, %v635_v34  ;;  %v340_v32 = vadd.f32 %v459_v30, %v635_v34 }
 0x105   :  { %350 = vst [vmem:[%s704_s3 + $0x38] sm:$0xff] %v308_v31  ;;  %358 = vst [vmem:[%s704_s3 + $0x78] sm:$0xff] %v340_v32 }

</bundles_post_ra>
